<compile_context>
chip_gen: v5e
topology: v5e:2x2
jax: 0.10.0
libtpu: 0.0.40
codegen_flags: <defaults>
</compile_context>

<pallas_src>
import functools

import jax
import jax.numpy as jnp
from jax import lax
from jax.experimental import pallas as pl
from jax.experimental.pallas import tpu as pltpu


# ----------------------------- kernel helpers ---------------------------------


def _silu(v):
    # exp + approx reciprocal both go to the EUP slot -> no VALU divide.
    return v * pl.reciprocal(1.0 + jnp.exp(-v), approx=True)


def _linear(h, w, b):
    # bf16 operands on the MXU, f32 accumulation, f32 bias add.
    return jnp.dot(h.astype(w.dtype), w, preferred_element_type=jnp.float32) + b


def _block(x, w_in, b_in, w_mid_ref, b_mid_ref, w_out, b_out, n_mid, residual):
    """Block with c=None: Linear->SiLU stack (+ optional residual + SiLU)."""
    h = _silu(_linear(x, w_in, b_in))
    if n_mid <= 4:
        # shallow: static unroll (bounded code size / vreg pressure)
        for l in range(n_mid):
            h = _silu(_linear(h, w_mid_ref[l], b_mid_ref[l]))
    else:
        # deep: rolled loop over the stacked weight refs to bound code bloat
        h = lax.fori_loop(
            0, n_mid,
            lambda l, hh: _silu(_linear(hh, w_mid_ref[l], b_mid_ref[l])),
            h)
    h = _silu(_linear(h, w_out, b_out))
    return _silu(h + x) if residual else h


# ----------------------------- fused kernel -----------------------------------


def topdown_kernel(n_mid, z_dim,
                   z_ref, h_ref, eps_ref,
                   q_wi, q_bi, q_wm, q_bm, q_wo, q_bo,
                   p_wi, p_bi, p_wm, p_bm, p_wo, p_bo,
                   o_wi, o_bi, o_wm, o_bm, o_wo, o_bo,
                   zw, zb,
                   z_out_ref, kl_ref):
    z = z_ref[...]
    h = h_ref[...]
    eps = eps_ref[...]

    # ---- q_block(concat(z, h))  -> [TB, 2*z_dim]
    zh = jnp.concatenate([z, h], axis=1)            # lane concat (XLU slot)
    q = _block(zh, q_wi[...], q_bi[...], q_wm, q_bm, q_wo[...], q_bo[...],
               n_mid, residual=False)
    q_mu = q[:, :z_dim]
    q_logvar = q[:, z_dim:]

    # ---- p_block(z)  -> [TB, 3*z_dim]
    p = _block(z, p_wi[...], p_bi[...], p_wm, p_bm, p_wo[...], p_bo[...],
               n_mid, residual=False)
    z_res = p[:, :z_dim]
    p_mu = p[:, z_dim:2 * z_dim]
    p_logvar = p[:, 2 * z_dim:]

    # ---- reparametrization + fc_z
    z_sample = q_mu + jnp.exp(0.5 * q_logvar) * eps
    z_sample = _linear(z_sample, zw[...], zb[...])

    # ---- out_block(z + z_res + z_sample)  (residual=True)
    z_new = z + z_res + z_sample
    z_out_ref[...] = _block(z_new, o_wi[...], o_bi[...], o_wm, o_bm,
                            o_wo[...], o_bo[...], n_mid, residual=True)

    # ---- analytical KL(q || p) per element; summed in the wrapper
    kl_ref[...] = 0.5 * (p_logvar - q_logvar
                         + (jnp.exp(q_logvar) + (q_mu - p_mu) ** 2)
                         * jnp.exp(-p_logvar)
                         - 1.0)


# ----------------------------- wrapper -----------------------------------------


def topdown_forward(z, h, eps, params, n_mid, *, tb=128):
    B, z_dim = z.shape
    _, h_dim = h.shape
    if B % tb != 0:
        tb = B                       # fallback for awkward batch sizes
    grid = (B // tb,)

    def row_spec(d):
        return pl.BlockSpec((tb, d), lambda i: (i, 0))

    in_specs = [row_spec(z_dim), row_spec(h_dim), row_spec(z_dim)]
    # weights / biases: whole array, constant block index -> stays resident in VMEM
    for arr in params:
        in_specs.append(pl.BlockSpec(arr.shape, lambda i, nd=arr.ndim: (0,) * nd))

    out_specs = [row_spec(z_dim), row_spec(z_dim)]
    out_shapes = [jax.ShapeDtypeStruct((B, z_dim), jnp.float32),
                  jax.ShapeDtypeStruct((B, z_dim), jnp.float32)]

    z_out, kl = pl.pallas_call(
        functools.partial(topdown_kernel, n_mid, z_dim),
        out_shape=out_shapes,
        grid_spec=pltpu.PrefetchScalarGridSpec(
            num_scalar_prefetch=0,
            grid=grid,
            in_specs=in_specs,
            out_specs=out_specs),
        compiler_params=pltpu.CompilerParams(
            dimension_semantics=("parallel",),          # shards batch tiles on v7x
            vmem_limit_bytes=32 * 1024 * 1024),
    )(z, h, eps, *params)
    return z_out, jnp.sum(kl)


# ----------------------------- parameter setup ----------------------------------


def init_linear(key, in_dim, out_dim, dtype=jnp.bfloat16):
    kw, kb = jax.random.split(key)
    bound = 1.0 / (in_dim ** 0.5)
    w = jax.random.uniform(kw, (in_dim, out_dim), jnp.float32, -bound, bound)
    b = jax.random.uniform(kb, (out_dim,), jnp.float32, -bound, bound)
    # W pre-transposed to [in, out] (kernel does x @ W); weights bf16, bias f32.
    return w.astype(dtype), b.reshape(1, -1)


def init_block(key, in_dim, hid_dim, out_dim, n_layers):
    n_mid = n_layers - 2
    keys = jax.random.split(key, n_mid + 2)
    w_in, b_in = init_linear(keys[0], in_dim, hid_dim)
    mids = [init_linear(k, hid_dim, hid_dim) for k in keys[1:1 + n_mid]]
    w_out, b_out = init_linear(keys[-1], hid_dim, out_dim)
    return dict(w_in=w_in, b_in=b_in,
                w_mid=jnp.stack([m[0] for m in mids]),     # [n_mid, hid, hid] bf16
                b_mid=jnp.stack([m[1] for m in mids]),     # [n_mid, 1, hid]   f32
                w_out=w_out, b_out=b_out)


def flatten_block(p):
    return [p['w_in'], p['b_in'], p['w_mid'], p['b_mid'], p['w_out'], p['b_out']]


# ----------------------------- pure-JAX reference -------------------------------


def _dot_ref(x, w, b):
    # mirrors the kernel's bf16-input / f32-accumulate matmul
    return jnp.dot(x.astype(w.dtype), w, preferred_element_type=jnp.float32) + b


def block_ref(x, p, residual):
    h = jax.nn.silu(_dot_ref(x, p['w_in'], p['b_in']))
    for l in range(p['w_mid'].shape[0]):
        h = jax.nn.silu(_dot_ref(h, p['w_mid'][l], p['b_mid'][l]))
    h = jax.nn.silu(_dot_ref(h, p['w_out'], p['b_out']))
    return jax.nn.silu(h + x) if residual else h


def topdown_ref(z, h, eps, qp, pp, op, zw, zb):
    z_dim = z.shape[1]
    zh = jnp.concatenate([z, h], axis=1)
    q = block_ref(zh, qp, False)
    q_mu, q_logvar = q[:, :z_dim], q[:, z_dim:]
    p = block_ref(z, pp, False)
    z_res, p_mu, p_logvar = p[:, :z_dim], p[:, z_dim:2 * z_dim], p[:, 2 * z_dim:]
    z_sample = q_mu + jnp.exp(0.5 * q_logvar) * eps
    z_sample = _dot_ref(z_sample, zw, zb)
    z_out = block_ref(z + z_res + z_sample, op, True)
    kl = 0.5 * (p_logvar - q_logvar
                + (jnp.exp(q_logvar) + (q_mu - p_mu) ** 2) * jnp.exp(-p_logvar)
                - 1.0)
    return z_out, kl.sum()


# ----------------------------- main ---------------------------------------------


if __name__ == "__main__":
    # Lane-dense demo shapes: every feature dim is a multiple of 128; batch tile 128
    # so grid=(2,) -> pipelined DMAs and both v7x TensorCores busy.
    B, z_dim, h_dim, hid_dim, n_layers = 256, 128, 128, 256, 4
    n_mid = n_layers - 2

    key = jax.random.PRNGKey(0)
    kz, kh, ke, kq, kp, ko, kf = jax.random.split(key, 7)

    z = jax.random.normal(kz, (B, z_dim), jnp.float32)
    h = jax.random.normal(kh, (B, h_dim), jnp.float32)
    eps = jax.random.normal(ke, (B, z_dim), jnp.float32)   # reparametrization noise

    q_p = init_block(kq, z_dim + h_dim, hid_dim, 2 * z_dim, n_layers)
    p_p = init_block(kp, z_dim, hid_dim, 3 * z_dim, n_layers)
    o_p = init_block(ko, z_dim, hid_dim, z_dim, n_layers)
    zw, zb = init_linear(kf, z_dim, z_dim)

    params = (flatten_block(q_p) + flatten_block(p_p) + flatten_block(o_p)
              + [zw, zb])

    z_out, kl_sum = topdown_forward(z, h, eps, params, n_mid, tb=128)
    z_out, kl_sum = jax.block_until_ready((z_out, kl_sum))

    z_ref, kl_ref = topdown_ref(z, h, eps, q_p, p_p, o_p, zw, zb)

    assert z_out.shape == (B, z_dim)
    err_z = float(jnp.max(jnp.abs(z_out - z_ref)))
    err_kl = float(jnp.abs(kl_sum - kl_ref) / (jnp.abs(kl_ref) + 1e-6))
    # tolerance covers the EUP approx-reciprocal SiLU (reference uses exact sigmoid)
    assert jnp.allclose(z_out, z_ref, atol=2e-2, rtol=2e-2), err_z
    assert err_kl < 2e-2, (float(kl_sum), float(kl_ref))

    print("KERNEL_OK")
</pallas_src>

<mosaic_0001>
module attributes {stable_mosaic.version = 11 : i64} {
  func.func @topdown_kernel(%arg0: i32, %arg1: memref<128x128xf32, #tpu.memory_space<vmem>>, %arg2: memref<128x128xf32, #tpu.memory_space<vmem>>, %arg3: memref<128x128xf32, #tpu.memory_space<vmem>>, %arg4: memref<256x256xbf16, #tpu.memory_space<vmem>>, %arg5: memref<1x256xf32, #tpu.memory_space<vmem>>, %arg6: memref<2x256x256xbf16, #tpu.memory_space<vmem>>, %arg7: memref<2x1x256xf32, #tpu.memory_space<vmem>>, %arg8: memref<256x256xbf16, #tpu.memory_space<vmem>>, %arg9: memref<1x256xf32, #tpu.memory_space<vmem>>, %arg10: memref<128x256xbf16, #tpu.memory_space<vmem>>, %arg11: memref<1x256xf32, #tpu.memory_space<vmem>>, %arg12: memref<2x256x256xbf16, #tpu.memory_space<vmem>>, %arg13: memref<2x1x256xf32, #tpu.memory_space<vmem>>, %arg14: memref<256x384xbf16, #tpu.memory_space<vmem>>, %arg15: memref<1x384xf32, #tpu.memory_space<vmem>>, %arg16: memref<128x256xbf16, #tpu.memory_space<vmem>>, %arg17: memref<1x256xf32, #tpu.memory_space<vmem>>, %arg18: memref<2x256x256xbf16, #tpu.memory_space<vmem>>, %arg19: memref<2x1x256xf32, #tpu.memory_space<vmem>>, %arg20: memref<256x128xbf16, #tpu.memory_space<vmem>>, %arg21: memref<1x128xf32, #tpu.memory_space<vmem>>, %arg22: memref<128x128xbf16, #tpu.memory_space<vmem>>, %arg23: memref<1x128xf32, #tpu.memory_space<vmem>>, %arg24: memref<128x128xf32, #tpu.memory_space<vmem>>, %arg25: memref<128x128xf32, #tpu.memory_space<vmem>>) attributes {dimension_semantics = [#tpu.dimension_semantics<parallel>], iteration_bounds = array<i64: 2>, scalar_prefetch = 0 : i64, scratch_operands = 0 : i64, tpu.core_type = #tpu.core_type<tc>, window_params = [{transform_indices = @transform_0, window_bounds = array<i64: 128, 128>}, {transform_indices = @transform_1, window_bounds = array<i64: 128, 128>}, {transform_indices = @transform_2, window_bounds = array<i64: 128, 128>}, {pipeline_mode = #tpu.pipeline_mode<synchronous>, transform_indices = @transform_3, window_bounds = array<i64: 256, 256>}, {pipeline_mode = #tpu.pipeline_mode<synchronous>, transform_indices = @transform_4, window_bounds = array<i64: 1, 256>}, {pipeline_mode = #tpu.pipeline_mode<synchronous>, transform_indices = @transform_5, window_bounds = array<i64: 2, 256, 256>}, {pipeline_mode = #tpu.pipeline_mode<synchronous>, transform_indices = @transform_6, window_bounds = array<i64: 2, 1, 256>}, {pipeline_mode = #tpu.pipeline_mode<synchronous>, transform_indices = @transform_7, window_bounds = array<i64: 256, 256>}, {pipeline_mode = #tpu.pipeline_mode<synchronous>, transform_indices = @transform_8, window_bounds = array<i64: 1, 256>}, {pipeline_mode = #tpu.pipeline_mode<synchronous>, transform_indices = @transform_9, window_bounds = array<i64: 128, 256>}, {pipeline_mode = #tpu.pipeline_mode<synchronous>, transform_indices = @transform_10, window_bounds = array<i64: 1, 256>}, {pipeline_mode = #tpu.pipeline_mode<synchronous>, transform_indices = @transform_11, window_bounds = array<i64: 2, 256, 256>}, {pipeline_mode = #tpu.pipeline_mode<synchronous>, transform_indices = @transform_12, window_bounds = array<i64: 2, 1, 256>}, {pipeline_mode = #tpu.pipeline_mode<synchronous>, transform_indices = @transform_13, window_bounds = array<i64: 256, 384>}, {pipeline_mode = #tpu.pipeline_mode<synchronous>, transform_indices = @transform_14, window_bounds = array<i64: 1, 384>}, {pipeline_mode = #tpu.pipeline_mode<synchronous>, transform_indices = @transform_15, window_bounds = array<i64: 128, 256>}, {pipeline_mode = #tpu.pipeline_mode<synchronous>, transform_indices = @transform_16, window_bounds = array<i64: 1, 256>}, {pipeline_mode = #tpu.pipeline_mode<synchronous>, transform_indices = @transform_17, window_bounds = array<i64: 2, 256, 256>}, {pipeline_mode = #tpu.pipeline_mode<synchronous>, transform_indices = @transform_18, window_bounds = array<i64: 2, 1, 256>}, {pipeline_mode = #tpu.pipeline_mode<synchronous>, transform_indices = @transform_19, window_bounds = array<i64: 256, 128>}, {pipeline_mode = #tpu.pipeline_mode<synchronous>, transform_indices = @transform_20, window_bounds = array<i64: 1, 128>}, {pipeline_mode = #tpu.pipeline_mode<synchronous>, transform_indices = @transform_21, window_bounds = array<i64: 128, 128>}, {pipeline_mode = #tpu.pipeline_mode<synchronous>, transform_indices = @transform_22, window_bounds = array<i64: 1, 128>}, {transform_indices = @transform_23, window_bounds = array<i64: 128, 128>}, {transform_indices = @transform_24, window_bounds = array<i64: 128, 128>}]} {
    %c0 = arith.constant 0 : index
    %c0_0 = arith.constant 0 : index
    %0 = vector.load %arg1[%c0, %c0_0] : memref<128x128xf32, #tpu.memory_space<vmem>>, vector<128x128xf32>
    %c0_1 = arith.constant 0 : index
    %c0_2 = arith.constant 0 : index
    %1 = vector.load %arg2[%c0_1, %c0_2] : memref<128x128xf32, #tpu.memory_space<vmem>>, vector<128x128xf32>
    %c0_3 = arith.constant 0 : index
    %c0_4 = arith.constant 0 : index
    %2 = vector.load %arg3[%c0_3, %c0_4] : memref<128x128xf32, #tpu.memory_space<vmem>>, vector<128x128xf32>
    %3 = tpu.concatenate %0, %1 in 1 : vector<128x128xf32>, vector<128x128xf32> -> vector<128x256xf32>
    %c0_5 = arith.constant 0 : index
    %c0_6 = arith.constant 0 : index
    %4 = vector.load %arg4[%c0_5, %c0_6] : memref<256x256xbf16, #tpu.memory_space<vmem>>, vector<256x256xbf16>
    %c0_7 = arith.constant 0 : index
    %c0_8 = arith.constant 0 : index
    %5 = vector.load %arg5[%c0_7, %c0_8] : memref<1x256xf32, #tpu.memory_space<vmem>>, vector<1x256xf32>
    %c0_9 = arith.constant 0 : index
    %c0_10 = arith.constant 0 : index
    %6 = vector.load %arg8[%c0_9, %c0_10] : memref<256x256xbf16, #tpu.memory_space<vmem>>, vector<256x256xbf16>
    %c0_11 = arith.constant 0 : index
    %c0_12 = arith.constant 0 : index
    %7 = vector.load %arg9[%c0_11, %c0_12] : memref<1x256xf32, #tpu.memory_space<vmem>>, vector<1x256xf32>
    %8 = arith.truncf %3 : vector<128x256xf32> to vector<128x256xbf16>
    %cst = arith.constant dense<0.000000e+00> : vector<128x256xf32>
    %9 = tpu.matmul %8, %4, %cst {dimension_numbers = #tpu.dot_dimension_numbers<[1], [0], [0], [1], [0, 0, 1, 1], [], []>} : vector<128x256xbf16>, vector<256x256xbf16>, vector<128x256xf32> -> vector<128x256xf32>
    %10 = vector.broadcast %5 : vector<1x256xf32> to vector<128x256xf32>
    %11 = arith.addf %9, %10 : vector<128x256xf32>
    %cst_13 = arith.constant 0.000000e+00 : f32
    %12 = vector.broadcast %cst_13 : f32 to vector<128x256xf32>
    %13 = arith.subf %12, %11 : vector<128x256xf32>
    %14 = math.exp %13 : vector<128x256xf32>
    %cst_14 = arith.constant 1.000000e+00 : f32
    %15 = vector.broadcast %cst_14 : f32 to vector<128x256xf32>
    %16 = arith.addf %15, %14 : vector<128x256xf32>
    %17 = tpu.reciprocal %16 {approx = true} : vector<128x256xf32> -> vector<128x256xf32>
    %18 = arith.mulf %11, %17 : vector<128x256xf32>
    %c0_15 = arith.constant 0 : index
    %c0_16 = arith.constant 0 : index
    %c0_17 = arith.constant 0 : index
    %19 = vector.load %arg6[%c0_15, %c0_16, %c0_17] : memref<2x256x256xbf16, #tpu.memory_space<vmem>>, vector<1x256x256xbf16>
    %20 = vector.shape_cast %19 : vector<1x256x256xbf16> to vector<256x256xbf16>
    %c0_18 = arith.constant 0 : index
    %c0_19 = arith.constant 0 : index
    %c0_20 = arith.constant 0 : index
    %21 = vector.load %arg7[%c0_18, %c0_19, %c0_20] : memref<2x1x256xf32, #tpu.memory_space<vmem>>, vector<1x1x256xf32>
    %22 = vector.shape_cast %21 : vector<1x1x256xf32> to vector<1x256xf32>
    %23 = arith.truncf %18 : vector<128x256xf32> to vector<128x256xbf16>
    %cst_21 = arith.constant dense<0.000000e+00> : vector<128x256xf32>
    %24 = tpu.matmul %23, %20, %cst_21 {dimension_numbers = #tpu.dot_dimension_numbers<[1], [0], [0], [1], [0, 0, 1, 1], [], []>} : vector<128x256xbf16>, vector<256x256xbf16>, vector<128x256xf32> -> vector<128x256xf32>
    %25 = vector.broadcast %22 : vector<1x256xf32> to vector<128x256xf32>
    %26 = arith.addf %24, %25 : vector<128x256xf32>
    %cst_22 = arith.constant 0.000000e+00 : f32
    %27 = vector.broadcast %cst_22 : f32 to vector<128x256xf32>
    %28 = arith.subf %27, %26 : vector<128x256xf32>
    %29 = math.exp %28 : vector<128x256xf32>
    %cst_23 = arith.constant 1.000000e+00 : f32
    %30 = vector.broadcast %cst_23 : f32 to vector<128x256xf32>
    %31 = arith.addf %30, %29 : vector<128x256xf32>
    %32 = tpu.reciprocal %31 {approx = true} : vector<128x256xf32> -> vector<128x256xf32>
    %33 = arith.mulf %26, %32 : vector<128x256xf32>
    %c1 = arith.constant 1 : index
    %c0_24 = arith.constant 0 : index
    %c0_25 = arith.constant 0 : index
    %34 = vector.load %arg6[%c1, %c0_24, %c0_25] : memref<2x256x256xbf16, #tpu.memory_space<vmem>>, vector<1x256x256xbf16>
    %35 = vector.shape_cast %34 : vector<1x256x256xbf16> to vector<256x256xbf16>
    %c1_26 = arith.constant 1 : index
    %c0_27 = arith.constant 0 : index
    %c0_28 = arith.constant 0 : index
    %36 = vector.load %arg7[%c1_26, %c0_27, %c0_28] : memref<2x1x256xf32, #tpu.memory_space<vmem>>, vector<1x1x256xf32>
    %37 = vector.shape_cast %36 : vector<1x1x256xf32> to vector<1x256xf32>
    %38 = arith.truncf %33 : vector<128x256xf32> to vector<128x256xbf16>
    %cst_29 = arith.constant dense<0.000000e+00> : vector<128x256xf32>
    %39 = tpu.matmul %38, %35, %cst_29 {dimension_numbers = #tpu.dot_dimension_numbers<[1], [0], [0], [1], [0, 0, 1, 1], [], []>} : vector<128x256xbf16>, vector<256x256xbf16>, vector<128x256xf32> -> vector<128x256xf32>
    %40 = vector.broadcast %37 : vector<1x256xf32> to vector<128x256xf32>
    %41 = arith.addf %39, %40 : vector<128x256xf32>
    %cst_30 = arith.constant 0.000000e+00 : f32
    %42 = vector.broadcast %cst_30 : f32 to vector<128x256xf32>
    %43 = arith.subf %42, %41 : vector<128x256xf32>
    %44 = math.exp %43 : vector<128x256xf32>
    %cst_31 = arith.constant 1.000000e+00 : f32
    %45 = vector.broadcast %cst_31 : f32 to vector<128x256xf32>
    %46 = arith.addf %45, %44 : vector<128x256xf32>
    %47 = tpu.reciprocal %46 {approx = true} : vector<128x256xf32> -> vector<128x256xf32>
    %48 = arith.mulf %41, %47 : vector<128x256xf32>
    %49 = arith.truncf %48 : vector<128x256xf32> to vector<128x256xbf16>
    %cst_32 = arith.constant dense<0.000000e+00> : vector<128x256xf32>
    %50 = tpu.matmul %49, %6, %cst_32 {dimension_numbers = #tpu.dot_dimension_numbers<[1], [0], [0], [1], [0, 0, 1, 1], [], []>} : vector<128x256xbf16>, vector<256x256xbf16>, vector<128x256xf32> -> vector<128x256xf32>
    %51 = vector.broadcast %7 : vector<1x256xf32> to vector<128x256xf32>
    %52 = arith.addf %50, %51 : vector<128x256xf32>
    %cst_33 = arith.constant 0.000000e+00 : f32
    %53 = vector.broadcast %cst_33 : f32 to vector<128x256xf32>
    %54 = arith.subf %53, %52 : vector<128x256xf32>
    %55 = math.exp %54 : vector<128x256xf32>
    %cst_34 = arith.constant 1.000000e+00 : f32
    %56 = vector.broadcast %cst_34 : f32 to vector<128x256xf32>
    %57 = arith.addf %56, %55 : vector<128x256xf32>
    %58 = tpu.reciprocal %57 {approx = true} : vector<128x256xf32> -> vector<128x256xf32>
    %59 = arith.mulf %52, %58 : vector<128x256xf32>
    %60 = vector.extract_strided_slice %59 {offsets = [0, 0], sizes = [128, 128], strides = [1, 1]} : vector<128x256xf32> to vector<128x128xf32>
    %61 = vector.extract_strided_slice %59 {offsets = [0, 128], sizes = [128, 128], strides = [1, 1]} : vector<128x256xf32> to vector<128x128xf32>
    %c0_35 = arith.constant 0 : index
    %c0_36 = arith.constant 0 : index
    %62 = vector.load %arg10[%c0_35, %c0_36] : memref<128x256xbf16, #tpu.memory_space<vmem>>, vector<128x256xbf16>
    %c0_37 = arith.constant 0 : index
    %c0_38 = arith.constant 0 : index
    %63 = vector.load %arg11[%c0_37, %c0_38] : memref<1x256xf32, #tpu.memory_space<vmem>>, vector<1x256xf32>
    %c0_39 = arith.constant 0 : index
    %c0_40 = arith.constant 0 : index
    %64 = vector.load %arg14[%c0_39, %c0_40] : memref<256x384xbf16, #tpu.memory_space<vmem>>, vector<256x384xbf16>
    %c0_41 = arith.constant 0 : index
    %c0_42 = arith.constant 0 : index
    %65 = vector.load %arg15[%c0_41, %c0_42] : memref<1x384xf32, #tpu.memory_space<vmem>>, vector<1x384xf32>
    %66 = arith.truncf %0 : vector<128x128xf32> to vector<128x128xbf16>
    %cst_43 = arith.constant dense<0.000000e+00> : vector<128x256xf32>
    %67 = tpu.matmul %66, %62, %cst_43 {dimension_numbers = #tpu.dot_dimension_numbers<[1], [0], [0], [1], [0, 0, 1, 1], [], []>} : vector<128x128xbf16>, vector<128x256xbf16>, vector<128x256xf32> -> vector<128x256xf32>
    %68 = vector.broadcast %63 : vector<1x256xf32> to vector<128x256xf32>
    %69 = arith.addf %67, %68 : vector<128x256xf32>
    %cst_44 = arith.constant 0.000000e+00 : f32
    %70 = vector.broadcast %cst_44 : f32 to vector<128x256xf32>
    %71 = arith.subf %70, %69 : vector<128x256xf32>
    %72 = math.exp %71 : vector<128x256xf32>
    %cst_45 = arith.constant 1.000000e+00 : f32
    %73 = vector.broadcast %cst_45 : f32 to vector<128x256xf32>
    %74 = arith.addf %73, %72 : vector<128x256xf32>
    %75 = tpu.reciprocal %74 {approx = true} : vector<128x256xf32> -> vector<128x256xf32>
    %76 = arith.mulf %69, %75 : vector<128x256xf32>
    %c0_46 = arith.constant 0 : index
    %c0_47 = arith.constant 0 : index
    %c0_48 = arith.constant 0 : index
    %77 = vector.load %arg12[%c0_46, %c0_47, %c0_48] : memref<2x256x256xbf16, #tpu.memory_space<vmem>>, vector<1x256x256xbf16>
    %78 = vector.shape_cast %77 : vector<1x256x256xbf16> to vector<256x256xbf16>
    %c0_49 = arith.constant 0 : index
    %c0_50 = arith.constant 0 : index
    %c0_51 = arith.constant 0 : index
    %79 = vector.load %arg13[%c0_49, %c0_50, %c0_51] : memref<2x1x256xf32, #tpu.memory_space<vmem>>, vector<1x1x256xf32>
    %80 = vector.shape_cast %79 : vector<1x1x256xf32> to vector<1x256xf32>
    %81 = arith.truncf %76 : vector<128x256xf32> to vector<128x256xbf16>
    %cst_52 = arith.constant dense<0.000000e+00> : vector<128x256xf32>
    %82 = tpu.matmul %81, %78, %cst_52 {dimension_numbers = #tpu.dot_dimension_numbers<[1], [0], [0], [1], [0, 0, 1, 1], [], []>} : vector<128x256xbf16>, vector<256x256xbf16>, vector<128x256xf32> -> vector<128x256xf32>
    %83 = vector.broadcast %80 : vector<1x256xf32> to vector<128x256xf32>
    %84 = arith.addf %82, %83 : vector<128x256xf32>
    %cst_53 = arith.constant 0.000000e+00 : f32
    %85 = vector.broadcast %cst_53 : f32 to vector<128x256xf32>
    %86 = arith.subf %85, %84 : vector<128x256xf32>
    %87 = math.exp %86 : vector<128x256xf32>
    %cst_54 = arith.constant 1.000000e+00 : f32
    %88 = vector.broadcast %cst_54 : f32 to vector<128x256xf32>
    %89 = arith.addf %88, %87 : vector<128x256xf32>
    %90 = tpu.reciprocal %89 {approx = true} : vector<128x256xf32> -> vector<128x256xf32>
    %91 = arith.mulf %84, %90 : vector<128x256xf32>
    %c1_55 = arith.constant 1 : index
    %c0_56 = arith.constant 0 : index
    %c0_57 = arith.constant 0 : index
    %92 = vector.load %arg12[%c1_55, %c0_56, %c0_57] : memref<2x256x256xbf16, #tpu.memory_space<vmem>>, vector<1x256x256xbf16>
    %93 = vector.shape_cast %92 : vector<1x256x256xbf16> to vector<256x256xbf16>
    %c1_58 = arith.constant 1 : index
    %c0_59 = arith.constant 0 : index
    %c0_60 = arith.constant 0 : index
    %94 = vector.load %arg13[%c1_58, %c0_59, %c0_60] : memref<2x1x256xf32, #tpu.memory_space<vmem>>, vector<1x1x256xf32>
    %95 = vector.shape_cast %94 : vector<1x1x256xf32> to vector<1x256xf32>
    %96 = arith.truncf %91 : vector<128x256xf32> to vector<128x256xbf16>
    %cst_61 = arith.constant dense<0.000000e+00> : vector<128x256xf32>
    %97 = tpu.matmul %96, %93, %cst_61 {dimension_numbers = #tpu.dot_dimension_numbers<[1], [0], [0], [1], [0, 0, 1, 1], [], []>} : vector<128x256xbf16>, vector<256x256xbf16>, vector<128x256xf32> -> vector<128x256xf32>
    %98 = vector.broadcast %95 : vector<1x256xf32> to vector<128x256xf32>
    %99 = arith.addf %97, %98 : vector<128x256xf32>
    %cst_62 = arith.constant 0.000000e+00 : f32
    %100 = vector.broadcast %cst_62 : f32 to vector<128x256xf32>
    %101 = arith.subf %100, %99 : vector<128x256xf32>
    %102 = math.exp %101 : vector<128x256xf32>
    %cst_63 = arith.constant 1.000000e+00 : f32
    %103 = vector.broadcast %cst_63 : f32 to vector<128x256xf32>
    %104 = arith.addf %103, %102 : vector<128x256xf32>
    %105 = tpu.reciprocal %104 {approx = true} : vector<128x256xf32> -> vector<128x256xf32>
    %106 = arith.mulf %99, %105 : vector<128x256xf32>
    %107 = arith.truncf %106 : vector<128x256xf32> to vector<128x256xbf16>
    %cst_64 = arith.constant dense<0.000000e+00> : vector<128x384xf32>
    %108 = tpu.matmul %107, %64, %cst_64 {dimension_numbers = #tpu.dot_dimension_numbers<[1], [0], [0], [1], [0, 0, 1, 1], [], []>} : vector<128x256xbf16>, vector<256x384xbf16>, vector<128x384xf32> -> vector<128x384xf32>
    %109 = vector.broadcast %65 : vector<1x384xf32> to vector<128x384xf32>
    %110 = arith.addf %108, %109 : vector<128x384xf32>
    %cst_65 = arith.constant 0.000000e+00 : f32
    %111 = vector.broadcast %cst_65 : f32 to vector<128x384xf32>
    %112 = arith.subf %111, %110 : vector<128x384xf32>
    %113 = math.exp %112 : vector<128x384xf32>
    %cst_66 = arith.constant 1.000000e+00 : f32
    %114 = vector.broadcast %cst_66 : f32 to vector<128x384xf32>
    %115 = arith.addf %114, %113 : vector<128x384xf32>
    %116 = tpu.reciprocal %115 {approx = true} : vector<128x384xf32> -> vector<128x384xf32>
    %117 = arith.mulf %110, %116 : vector<128x384xf32>
    %118 = vector.extract_strided_slice %117 {offsets = [0, 0], sizes = [128, 128], strides = [1, 1]} : vector<128x384xf32> to vector<128x128xf32>
    %119 = vector.extract_strided_slice %117 {offsets = [0, 128], sizes = [128, 128], strides = [1, 1]} : vector<128x384xf32> to vector<128x128xf32>
    %120 = vector.extract_strided_slice %117 {offsets = [0, 256], sizes = [128, 128], strides = [1, 1]} : vector<128x384xf32> to vector<128x128xf32>
    %cst_67 = arith.constant 5.000000e-01 : f32
    %121 = vector.broadcast %cst_67 : f32 to vector<128x128xf32>
    %122 = arith.mulf %121, %61 : vector<128x128xf32>
    %123 = math.exp %122 : vector<128x128xf32>
    %124 = arith.mulf %123, %2 : vector<128x128xf32>
    %125 = arith.addf %60, %124 : vector<128x128xf32>
    %c0_68 = arith.constant 0 : index
    %c0_69 = arith.constant 0 : index
    %126 = vector.load %arg22[%c0_68, %c0_69] : memref<128x128xbf16, #tpu.memory_space<vmem>>, vector<128x128xbf16>
    %c0_70 = arith.constant 0 : index
    %c0_71 = arith.constant 0 : index
    %127 = vector.load %arg23[%c0_70, %c0_71] : memref<1x128xf32, #tpu.memory_space<vmem>>, vector<1x128xf32>
    %128 = arith.truncf %125 : vector<128x128xf32> to vector<128x128xbf16>
    %cst_72 = arith.constant dense<0.000000e+00> : vector<128x128xf32>
    %129 = tpu.matmul %128, %126, %cst_72 {dimension_numbers = #tpu.dot_dimension_numbers<[1], [0], [0], [1], [0, 0, 1, 1], [], []>} : vector<128x128xbf16>, vector<128x128xbf16>, vector<128x128xf32> -> vector<128x128xf32>
    %130 = vector.broadcast %127 : vector<1x128xf32> to vector<128x128xf32>
    %131 = arith.addf %129, %130 : vector<128x128xf32>
    %132 = arith.addf %0, %118 : vector<128x128xf32>
    %133 = arith.addf %132, %131 : vector<128x128xf32>
    %c0_73 = arith.constant 0 : index
    %c0_74 = arith.constant 0 : index
    %134 = vector.load %arg16[%c0_73, %c0_74] : memref<128x256xbf16, #tpu.memory_space<vmem>>, vector<128x256xbf16>
    %c0_75 = arith.constant 0 : index
    %c0_76 = arith.constant 0 : index
    %135 = vector.load %arg17[%c0_75, %c0_76] : memref<1x256xf32, #tpu.memory_space<vmem>>, vector<1x256xf32>
    %c0_77 = arith.constant 0 : index
    %c0_78 = arith.constant 0 : index
    %136 = vector.load %arg20[%c0_77, %c0_78] : memref<256x128xbf16, #tpu.memory_space<vmem>>, vector<256x128xbf16>
    %c0_79 = arith.constant 0 : index
    %c0_80 = arith.constant 0 : index
    %137 = vector.load %arg21[%c0_79, %c0_80] : memref<1x128xf32, #tpu.memory_space<vmem>>, vector<1x128xf32>
    %138 = arith.truncf %133 : vector<128x128xf32> to vector<128x128xbf16>
    %cst_81 = arith.constant dense<0.000000e+00> : vector<128x256xf32>
    %139 = tpu.matmul %138, %134, %cst_81 {dimension_numbers = #tpu.dot_dimension_numbers<[1], [0], [0], [1], [0, 0, 1, 1], [], []>} : vector<128x128xbf16>, vector<128x256xbf16>, vector<128x256xf32> -> vector<128x256xf32>
    %140 = vector.broadcast %135 : vector<1x256xf32> to vector<128x256xf32>
    %141 = arith.addf %139, %140 : vector<128x256xf32>
    %cst_82 = arith.constant 0.000000e+00 : f32
    %142 = vector.broadcast %cst_82 : f32 to vector<128x256xf32>
    %143 = arith.subf %142, %141 : vector<128x256xf32>
    %144 = math.exp %143 : vector<128x256xf32>
    %cst_83 = arith.constant 1.000000e+00 : f32
    %145 = vector.broadcast %cst_83 : f32 to vector<128x256xf32>
    %146 = arith.addf %145, %144 : vector<128x256xf32>
    %147 = tpu.reciprocal %146 {approx = true} : vector<128x256xf32> -> vector<128x256xf32>
    %148 = arith.mulf %141, %147 : vector<128x256xf32>
    %c0_84 = arith.constant 0 : index
    %c0_85 = arith.constant 0 : index
    %c0_86 = arith.constant 0 : index
    %149 = vector.load %arg18[%c0_84, %c0_85, %c0_86] : memref<2x256x256xbf16, #tpu.memory_space<vmem>>, vector<1x256x256xbf16>
    %150 = vector.shape_cast %149 : vector<1x256x256xbf16> to vector<256x256xbf16>
    %c0_87 = arith.constant 0 : index
    %c0_88 = arith.constant 0 : index
    %c0_89 = arith.constant 0 : index
    %151 = vector.load %arg19[%c0_87, %c0_88, %c0_89] : memref<2x1x256xf32, #tpu.memory_space<vmem>>, vector<1x1x256xf32>
    %152 = vector.shape_cast %151 : vector<1x1x256xf32> to vector<1x256xf32>
    %153 = arith.truncf %148 : vector<128x256xf32> to vector<128x256xbf16>
    %cst_90 = arith.constant dense<0.000000e+00> : vector<128x256xf32>
    %154 = tpu.matmul %153, %150, %cst_90 {dimension_numbers = #tpu.dot_dimension_numbers<[1], [0], [0], [1], [0, 0, 1, 1], [], []>} : vector<128x256xbf16>, vector<256x256xbf16>, vector<128x256xf32> -> vector<128x256xf32>
    %155 = vector.broadcast %152 : vector<1x256xf32> to vector<128x256xf32>
    %156 = arith.addf %154, %155 : vector<128x256xf32>
    %cst_91 = arith.constant 0.000000e+00 : f32
    %157 = vector.broadcast %cst_91 : f32 to vector<128x256xf32>
    %158 = arith.subf %157, %156 : vector<128x256xf32>
    %159 = math.exp %158 : vector<128x256xf32>
    %cst_92 = arith.constant 1.000000e+00 : f32
    %160 = vector.broadcast %cst_92 : f32 to vector<128x256xf32>
    %161 = arith.addf %160, %159 : vector<128x256xf32>
    %162 = tpu.reciprocal %161 {approx = true} : vector<128x256xf32> -> vector<128x256xf32>
    %163 = arith.mulf %156, %162 : vector<128x256xf32>
    %c1_93 = arith.constant 1 : index
    %c0_94 = arith.constant 0 : index
    %c0_95 = arith.constant 0 : index
    %164 = vector.load %arg18[%c1_93, %c0_94, %c0_95] : memref<2x256x256xbf16, #tpu.memory_space<vmem>>, vector<1x256x256xbf16>
    %165 = vector.shape_cast %164 : vector<1x256x256xbf16> to vector<256x256xbf16>
    %c1_96 = arith.constant 1 : index
    %c0_97 = arith.constant 0 : index
    %c0_98 = arith.constant 0 : index
    %166 = vector.load %arg19[%c1_96, %c0_97, %c0_98] : memref<2x1x256xf32, #tpu.memory_space<vmem>>, vector<1x1x256xf32>
    %167 = vector.shape_cast %166 : vector<1x1x256xf32> to vector<1x256xf32>
    %168 = arith.truncf %163 : vector<128x256xf32> to vector<128x256xbf16>
    %cst_99 = arith.constant dense<0.000000e+00> : vector<128x256xf32>
    %169 = tpu.matmul %168, %165, %cst_99 {dimension_numbers = #tpu.dot_dimension_numbers<[1], [0], [0], [1], [0, 0, 1, 1], [], []>} : vector<128x256xbf16>, vector<256x256xbf16>, vector<128x256xf32> -> vector<128x256xf32>
    %170 = vector.broadcast %167 : vector<1x256xf32> to vector<128x256xf32>
    %171 = arith.addf %169, %170 : vector<128x256xf32>
    %cst_100 = arith.constant 0.000000e+00 : f32
    %172 = vector.broadcast %cst_100 : f32 to vector<128x256xf32>
    %173 = arith.subf %172, %171 : vector<128x256xf32>
    %174 = math.exp %173 : vector<128x256xf32>
    %cst_101 = arith.constant 1.000000e+00 : f32
    %175 = vector.broadcast %cst_101 : f32 to vector<128x256xf32>
    %176 = arith.addf %175, %174 : vector<128x256xf32>
    %177 = tpu.reciprocal %176 {approx = true} : vector<128x256xf32> -> vector<128x256xf32>
    %178 = arith.mulf %171, %177 : vector<128x256xf32>
    %179 = arith.truncf %178 : vector<128x256xf32> to vector<128x256xbf16>
    %cst_102 = arith.constant dense<0.000000e+00> : vector<128x128xf32>
    %180 = tpu.matmul %179, %136, %cst_102 {dimension_numbers = #tpu.dot_dimension_numbers<[1], [0], [0], [1], [0, 0, 1, 1], [], []>} : vector<128x256xbf16>, vector<256x128xbf16>, vector<128x128xf32> -> vector<128x128xf32>
    %181 = vector.broadcast %137 : vector<1x128xf32> to vector<128x128xf32>
    %182 = arith.addf %180, %181 : vector<128x128xf32>
    %cst_103 = arith.constant 0.000000e+00 : f32
    %183 = vector.broadcast %cst_103 : f32 to vector<128x128xf32>
    %184 = arith.subf %183, %182 : vector<128x128xf32>
    %185 = math.exp %184 : vector<128x128xf32>
    %cst_104 = arith.constant 1.000000e+00 : f32
    %186 = vector.broadcast %cst_104 : f32 to vector<128x128xf32>
    %187 = arith.addf %186, %185 : vector<128x128xf32>
    %188 = tpu.reciprocal %187 {approx = true} : vector<128x128xf32> -> vector<128x128xf32>
    %189 = arith.mulf %182, %188 : vector<128x128xf32>
    %190 = arith.addf %189, %133 : vector<128x128xf32>
    %cst_105 = arith.constant 0.000000e+00 : f32
    %191 = vector.broadcast %cst_105 : f32 to vector<128x128xf32>
    %192 = arith.subf %191, %190 : vector<128x128xf32>
    %193 = math.exp %192 : vector<128x128xf32>
    %cst_106 = arith.constant 1.000000e+00 : f32
    %194 = vector.broadcast %cst_106 : f32 to vector<128x128xf32>
    %195 = arith.addf %194, %193 : vector<128x128xf32>
    %196 = tpu.reciprocal %195 {approx = true} : vector<128x128xf32> -> vector<128x128xf32>
    %197 = arith.mulf %190, %196 : vector<128x128xf32>
    %c0_107 = arith.constant 0 : index
    %c0_108 = arith.constant 0 : index
    %198 = vector.load %arg24[%c0_107, %c0_108] : memref<128x128xf32, #tpu.memory_space<vmem>>, vector<128x128xf32>
    tpu.vector_store %arg24[%c0_107, %c0_108], %197 {strides = array<i32>} : memref<128x128xf32, #tpu.memory_space<vmem>>, vector<128x128xf32>,
    %199 = arith.subf %120, %61 : vector<128x128xf32>
    %200 = math.exp %61 : vector<128x128xf32>
    %201 = arith.subf %60, %119 : vector<128x128xf32>
    %202 = arith.mulf %201, %201 : vector<128x128xf32>
    %203 = arith.addf %200, %202 : vector<128x128xf32>
    %cst_109 = arith.constant 0.000000e+00 : f32
    %204 = vector.broadcast %cst_109 : f32 to vector<128x128xf32>
    %205 = arith.subf %204, %120 : vector<128x128xf32>
    %206 = math.exp %205 : vector<128x128xf32>
    %207 = arith.mulf %203, %206 : vector<128x128xf32>
    %208 = arith.addf %199, %207 : vector<128x128xf32>
    %cst_110 = arith.constant 1.000000e+00 : f32
    %209 = vector.broadcast %cst_110 : f32 to vector<128x128xf32>
    %210 = arith.subf %208, %209 : vector<128x128xf32>
    %cst_111 = arith.constant 5.000000e-01 : f32
    %211 = vector.broadcast %cst_111 : f32 to vector<128x128xf32>
    %212 = arith.mulf %211, %210 : vector<128x128xf32>
    %c0_112 = arith.constant 0 : index
    %c0_113 = arith.constant 0 : index
    %213 = vector.load %arg25[%c0_112, %c0_113] : memref<128x128xf32, #tpu.memory_space<vmem>>, vector<128x128xf32>
    tpu.vector_store %arg25[%c0_112, %c0_113], %212 {strides = array<i32>} : memref<128x128xf32, #tpu.memory_space<vmem>>, vector<128x128xf32>,
    return
  }
  func.func @transform_0(%arg0: i32) -> (i32, i32) {
    %c0_i32 = arith.constant 0 : i32
    %c0_i32_0 = arith.constant 0 : i32
    return %arg0, %c0_i32 : i32, i32
  }
  func.func @transform_1(%arg0: i32) -> (i32, i32) {
    %c0_i32 = arith.constant 0 : i32
    %c0_i32_0 = arith.constant 0 : i32
    return %arg0, %c0_i32 : i32, i32
  }
  func.func @transform_2(%arg0: i32) -> (i32, i32) {
    %c0_i32 = arith.constant 0 : i32
    %c0_i32_0 = arith.constant 0 : i32
    return %arg0, %c0_i32 : i32, i32
  }
  func.func @transform_3(%arg0: i32) -> (i32, i32) {
    %c0_i32 = arith.constant 0 : i32
    %c0_i32_0 = arith.constant 0 : i32
    %c0_i32_1 = arith.constant 0 : i32
    return %c0_i32, %c0_i32_0 : i32, i32
  }
  func.func @transform_4(%arg0: i32) -> (i32, i32) {
    %c0_i32 = arith.constant 0 : i32
    %c0_i32_0 = arith.constant 0 : i32
    %c0_i32_1 = arith.constant 0 : i32
    return %c0_i32, %c0_i32_0 : i32, i32
  }
  func.func @transform_5(%arg0: i32) -> (i32, i32, i32) {
    %c0_i32 = arith.constant 0 : i32
    %c0_i32_0 = arith.constant 0 : i32
    %c0_i32_1 = arith.constant 0 : i32
    %c0_i32_2 = arith.constant 0 : i32
    return %c0_i32, %c0_i32_0, %c0_i32_1 : i32, i32, i32
  }
  func.func @transform_6(%arg0: i32) -> (i32, i32, i32) {
    %c0_i32 = arith.constant 0 : i32
    %c0_i32_0 = arith.constant 0 : i32
    %c0_i32_1 = arith.constant 0 : i32
    %c0_i32_2 = arith.constant 0 : i32
    return %c0_i32, %c0_i32_0, %c0_i32_1 : i32, i32, i32
  }
  func.func @transform_7(%arg0: i32) -> (i32, i32) {
    %c0_i32 = arith.constant 0 : i32
    %c0_i32_0 = arith.constant 0 : i32
    %c0_i32_1 = arith.constant 0 : i32
    return %c0_i32, %c0_i32_0 : i32, i32
  }
  func.func @transform_8(%arg0: i32) -> (i32, i32) {
    %c0_i32 = arith.constant 0 : i32
    %c0_i32_0 = arith.constant 0 : i32
    %c0_i32_1 = arith.constant 0 : i32
    return %c0_i32, %c0_i32_0 : i32, i32
  }
  func.func @transform_9(%arg0: i32) -> (i32, i32) {
    %c0_i32 = arith.constant 0 : i32
    %c0_i32_0 = arith.constant 0 : i32
    %c0_i32_1 = arith.constant 0 : i32
    return %c0_i32, %c0_i32_0 : i32, i32
  }
  func.func @transform_10(%arg0: i32) -> (i32, i32) {
    %c0_i32 = arith.constant 0 : i32
    %c0_i32_0 = arith.constant 0 : i32
    %c0_i32_1 = arith.constant 0 : i32
    return %c0_i32, %c0_i32_0 : i32, i32
  }
  func.func @transform_11(%arg0: i32) -> (i32, i32, i32) {
    %c0_i32 = arith.constant 0 : i32
    %c0_i32_0 = arith.constant 0 : i32
    %c0_i32_1 = arith.constant 0 : i32
    %c0_i32_2 = arith.constant 0 : i32
    return %c0_i32, %c0_i32_0, %c0_i32_1 : i32, i32, i32
  }
  func.func @transform_12(%arg0: i32) -> (i32, i32, i32) {
    %c0_i32 = arith.constant 0 : i32
    %c0_i32_0 = arith.constant 0 : i32
    %c0_i32_1 = arith.constant 0 : i32
    %c0_i32_2 = arith.constant 0 : i32
    return %c0_i32, %c0_i32_0, %c0_i32_1 : i32, i32, i32
  }
  func.func @transform_13(%arg0: i32) -> (i32, i32) {
    %c0_i32 = arith.constant 0 : i32
    %c0_i32_0 = arith.constant 0 : i32
    %c0_i32_1 = arith.constant 0 : i32
    return %c0_i32, %c0_i32_0 : i32, i32
  }
  func.func @transform_14(%arg0: i32) -> (i32, i32) {
    %c0_i32 = arith.constant 0 : i32
    %c0_i32_0 = arith.constant 0 : i32
    %c0_i32_1 = arith.constant 0 : i32
    return %c0_i32, %c0_i32_0 : i32, i32
  }
  func.func @transform_15(%arg0: i32) -> (i32, i32) {
    %c0_i32 = arith.constant 0 : i32
    %c0_i32_0 = arith.constant 0 : i32
    %c0_i32_1 = arith.constant 0 : i32
    return %c0_i32, %c0_i32_0 : i32, i32
  }
  func.func @transform_16(%arg0: i32) -> (i32, i32) {
    %c0_i32 = arith.constant 0 : i32
    %c0_i32_0 = arith.constant 0 : i32
    %c0_i32_1 = arith.constant 0 : i32
    return %c0_i32, %c0_i32_0 : i32, i32
  }
  func.func @transform_17(%arg0: i32) -> (i32, i32, i32) {
    %c0_i32 = arith.constant 0 : i32
    %c0_i32_0 = arith.constant 0 : i32
    %c0_i32_1 = arith.constant 0 : i32
    %c0_i32_2 = arith.constant 0 : i32
    return %c0_i32, %c0_i32_0, %c0_i32_1 : i32, i32, i32
  }
  func.func @transform_18(%arg0: i32) -> (i32, i32, i32) {
    %c0_i32 = arith.constant 0 : i32
    %c0_i32_0 = arith.constant 0 : i32
    %c0_i32_1 = arith.constant 0 : i32
    %c0_i32_2 = arith.constant 0 : i32
    return %c0_i32, %c0_i32_0, %c0_i32_1 : i32, i32, i32
  }
  func.func @transform_19(%arg0: i32) -> (i32, i32) {
    %c0_i32 = arith.constant 0 : i32
    %c0_i32_0 = arith.constant 0 : i32
    %c0_i32_1 = arith.constant 0 : i32
    return %c0_i32, %c0_i32_0 : i32, i32
  }
  func.func @transform_20(%arg0: i32) -> (i32, i32) {
    %c0_i32 = arith.constant 0 : i32
    %c0_i32_0 = arith.constant 0 : i32
    %c0_i32_1 = arith.constant 0 : i32
    return %c0_i32, %c0_i32_0 : i32, i32
  }
  func.func @transform_21(%arg0: i32) -> (i32, i32) {
    %c0_i32 = arith.constant 0 : i32
    %c0_i32_0 = arith.constant 0 : i32
    %c0_i32_1 = arith.constant 0 : i32
    return %c0_i32, %c0_i32_0 : i32, i32
  }
  func.func @transform_22(%arg0: i32) -> (i32, i32) {
    %c0_i32 = arith.constant 0 : i32
    %c0_i32_0 = arith.constant 0 : i32
    %c0_i32_1 = arith.constant 0 : i32
    return %c0_i32, %c0_i32_0 : i32, i32
  }
  func.func @transform_23(%arg0: i32) -> (i32, i32) {
    %c0_i32 = arith.constant 0 : i32
    %c0_i32_0 = arith.constant 0 : i32
    return %arg0, %c0_i32 : i32, i32
  }
  func.func @transform_24(%arg0: i32) -> (i32, i32) {
    %c0_i32 = arith.constant 0 : i32
    %c0_i32_0 = arith.constant 0 : i32
    return %arg0, %c0_i32 : i32, i32
  }
}

</mosaic_0001>

<bundles_post_ra>
// kernel: tpu_custom_call.1
= control target key start
LH: loop header
LB: loop body
LE: loop exit
PB: predicated region body
PF: predicated region fallthrough
CT: control target
= control target key end

     0   :  { %s16582_s0 = inlined_call_operand.hbm [shape: f32[256,128], index: 0, kind: input, shape index: {}]   ;;  %s16583_s1 = inlined_call_operand.hbm [shape: f32[256,128], index: 1, kind: input, shape index: {}]   ;;  %s16584_s2 = inlined_call_operand.hbm [shape: f32[256,128], index: 2, kind: input, shape index: {}]   ;;  %s16585_s3 = inlined_call_operand.hbm [shape: bf16[256,256], index: 3, kind: input, shape index: {}]   ;;  %s16586_s4 = inlined_call_operand.hbm [shape: f32[1,256], index: 4, kind: input, shape index: {}]   ;;  %s16587_s5 = inlined_call_operand.hbm [shape: bf16[2,256,256], index: 5, kind: input, shape index: {}]   ;;  %s16588_s6 = inlined_call_operand.vmem [shape: f32[2,1,256], index: 6, kind: input, shape index: {}]   ;;  %s16589_s7 = inlined_call_operand.hbm [shape: bf16[256,256], index: 7, kind: input, shape index: {}]   ;;  %s16590_s8 = inlined_call_operand.hbm [shape: f32[1,256], index: 8, kind: input, shape index: {}]   ;;  %s16591_s9 = inlined_call_operand.hbm [shape: bf16[128,256], index: 9, kind: input, shape index: {}]   ;;  %s16592_s10 = inlined_call_operand.hbm [shape: f32[1,256], index: 10, kind: input, shape index: {}]   ;;  %s16593_s11 = inlined_call_operand.hbm [shape: bf16[2,256,256], index: 11, kind: input, shape index: {}]   ;;  %s16594_s12 = inlined_call_operand.vmem [shape: f32[2,1,256], index: 12, kind: input, shape index: {}]   ;;  %s16595_s13 = inlined_call_operand.hbm [shape: bf16[256,384], index: 13, kind: input, shape index: {}]   ;;  %s16596_s14 = inlined_call_operand.hbm [shape: f32[1,384], index: 14, kind: input, shape index: {}]   ;;  %s16597_s15 = inlined_call_operand.hbm [shape: bf16[128,256], index: 15, kind: input, shape index: {}]   ;;  %s16598_s16 = inlined_call_operand.vmem [shape: f32[1,256], index: 16, kind: input, shape index: {}]   ;;  %s16599_s17 = inlined_call_operand.hbm [shape: bf16[2,256,256], index: 17, kind: input, shape index: {}]   ;;  %s16600_s18 = inlined_call_operand.vmem [shape: f32[2,1,256], index: 18, kind: input, shape index: {}]   ;;  %s16601_s19 = inlined_call_operand.hbm [shape: bf16[256,128], index: 19, kind: input, shape index: {}]   ;;  %s16602_s20 = inlined_call_operand.vmem [shape: f32[1,128], index: 20, kind: input, shape index: {}]   ;;  %s16603_s21 = inlined_call_operand.hbm [shape: bf16[128,128], index: 21, kind: input, shape index: {}]   ;;  %s16604_s22 = inlined_call_operand.vmem [shape: f32[1,128], index: 22, kind: input, shape index: {}]   ;;  %s16605_s23 = inlined_call_operand.hbm [shape: f32[256,128], index: 23, kind: output, shape index: {0}]   ;;  %s16606_s24 = inlined_call_operand.hbm [shape: f32[256,128], index: 24, kind: output, shape index: {1}]  }
   0x1   :  { %16690 = sst [smem:[#allocation93_spill]] %s16582_s0 }
   0x2   :  { %16691 = sst [smem:[#allocation94_spill]] %s16583_s1 }
   0x3   :  { %16692 = sst [smem:[#allocation95_spill]] %s16584_s2 }
   0x4   :  { %16693 = sst [smem:[#allocation96_spill]] %s16585_s3 }
   0x5   :  { %16694 = sst [smem:[#allocation97_spill]] %s16586_s4 }
   0x6   :  { %16695 = sst [smem:[#allocation98_spill]] %s16587_s5 }
   0x7   :  { %16696 = sst [smem:[#allocation99_spill]] %s16588_s6 }
   0x8   :  { %16697 = sst [smem:[#allocation100_spill]] %s16589_s7 }
   0x9   :  { %16698 = sst [smem:[#allocation101_spill]] %s16590_s8 }
   0xa   :  { %16699 = sst [smem:[#allocation102_spill]] %s16591_s9 }
   0xb   :  { %16700 = sst [smem:[#allocation103_spill]] %s16592_s10 }
   0xc   :  { %16701 = sst [smem:[#allocation104_spill]] %s16594_s12 }
   0xd   :  { %16702 = sst [smem:[#allocation105_spill]] %s16595_s13 }
   0xe   :  { %16703 = sst [smem:[#allocation106_spill]] %s16597_s15 }
   0xf   :  { %16704 = sst [smem:[#allocation107_spill]] %s16598_s16 }
  0x10   :  { %16705 = sst [smem:[#allocation108_spill]] %s16600_s18 }
  0x11   :  { %16706 = sst [smem:[#allocation109_spill]] %s16601_s19 }
  0x12   :  { %16707 = sst [smem:[#allocation110_spill]] %s16602_s20 }
  0x13   :  { %16708 = sst [smem:[#allocation111_spill]] %s16604_s22 }
  0x14   :  { %16709 = sst [smem:[#allocation112_spill]] %s16605_s23 }
  0x15   :  { %16710 = sst [smem:[#allocation113_spill]] %s16606_s24 }
  0x16   :  { %30 = vsyncpa [#allocation3], 0 }
  0x17   :  { %32 = vsyncpa [#allocation3 + $0x1], 0 }
  0x18   :  { %33 = vsyncpa [#allocation6], 0 }
  0x19   :  { %35 = vsyncpa [#allocation6 + $0x1], 0 }
  0x1a   :  { %36 = vsyncpa [#allocation9], 0 }
  0x1b   :  { %37 = vsyncpa [#allocation12], 0 }
  0x1c   :  { %38 = vsyncpa [#allocation15], 0 }
  0x1d   :  { %39 = vsyncpa [#allocation18], 0 }
  0x1e   :  { %40 = vsyncpa [#allocation21], 0 }
  0x1f   :  { %41 = vsyncpa [#allocation24], 0 }
  0x20   :  { %42 = vsyncpa [#allocation27], 0 }
  0x21   :  { %43 = vsyncpa [#allocation4], 0 }
  0x22   :  { %45 = vsyncpa [#allocation4 + $0x1], 0 }
  0x23   :  { %46 = vsyncpa [#allocation31], 0 }
  0x24   :  { %48 = vsyncpa [#allocation31 + $0x1], 0  ;;  %s13534_s5 = smov 0   ;;  %s13536_s26 = smov 0  }
  0x25   :  { %s13538_s27 = smov 0   ;;  %s13540_s28 = smov 0  }
  0x26 LB: > { %16711 = sst [smem:[#allocation43_spill]] %s13373_s5  ;;  %s13558_s7 = sadd.s32 4294967295, %s13385_s28   ;;  %s13385_s28 = sphi %s13540_s28, %s16920_s28   ;;  %s13381_s27 = sphi %s13538_s27, %s16924_s27   ;;  %s13377_s26 = sphi %s13536_s26, %s16923_s26   ;;  %s13373_s5 = sphi %s13534_s5, %s16922_s5  }
  0x27   : > { %16712 = sst [smem:[#allocation44_spill]] %s13385_s28  ;;  %p8918_p0 = scmp.ge.s32.totalorder %s13385_s28, 1 }
  0x28   : > { %s16713_s29 = sld [smem:[#allocation96_spill]]  ;;  %p16628_p1 = scmp.eq.s32.totalorder %s13558_s7, 0 }
  0x29   : > { %p609_p2 = scmp.lt.s32.totalorder %s13385_s28, 3  ;;  %s13387_s3 = smov [#allocation8]  }
  0x2a   : > { %s622_s25 = sshll.u32 %s13387_s3, 4  ;;  %s16715_s1 = sld [smem:[#allocation98_spill]]  ;;  %s623_s25 = int_to_ptr.vmem [resolvable:$true] %s622_s25 }
  0x2b   : > { %p13563_p3 = pnand %p8918_p0, %p609_p2  ;;  %s16717_s3 = sld [smem:[#allocation101_spill]] }
  0x2c   : > { %s13388_s20 = smov [#allocation11]   ;;  %s16618_s16 = smov 128  }
  0x2d   : > { %p10885_p4 = pneg %p13563_p3  ;;  %s648_s18 = sshll.u32 %s13388_s20, 4  ;;  %s649_s18 = int_to_ptr.vmem [resolvable:$true] %s648_s18 }
  0x2e   : > { %s620_s0 = sshll.u32 %s16713_s29, 4  ;;  %s16620_s22 = smov 8   ;;  %s621_s0 = int_to_ptr.hbm [resolvable:$true] %s620_s0 }
  0x2f   : > { %p13575_p6 = pnand %p10885_p4, %p16628_p1  ;;  %s16718_s10 = sld [smem:[#allocation103_spill]] }
  0x30   : > { %s646_s6 = sshll.u32 %s16715_s1, 4  ;;  %s13391_s20 = smov [#allocation14]   ;;  %s647_s6 = int_to_ptr.hbm [resolvable:$true] %s646_s6 }
  0x31   : > { %s678_s24 = sshll.u32 %s16717_s3, 4  ;;  %s680_s1 = sshll.u32 %s13391_s20, 4  ;;  %s679_s24 = int_to_ptr.hbm [resolvable:$true] %s678_s24  ;;  %s681_s1 = int_to_ptr.vmem [resolvable:$true] %s680_s1 }
  0x32   : > { %10888 = dma.hbm_to_vmem [thread:$0]  (!%p13575_p6), %s621_s0, 4096, %s623_s25, [#allocation9], %s16618_s16, %s16618_s16, %s16620_s22  }
  0x33   : > { %10894 = dma.hbm_to_vmem [thread:$0]  (!%p13575_p6), %s647_s6, 8192, %s649_s18, [#allocation12], %s16618_s16, %s16618_s16, %s16620_s22  }
  0x34   : > { %10900 = dma.hbm_to_vmem [thread:$0]  (!%p13575_p6), %s679_s24, 32, %s681_s1, [#allocation15]  }
  0x35   : > { %s704_s4 = sshll.u32 %s16718_s10, 4  ;;  %s13392_s29 = smov [#allocation17]   ;;  %s705_s4 = int_to_ptr.hbm [resolvable:$true] %s704_s4 }
  0x36   : > { %s706_s0 = sshll.u32 %s13392_s29, 4  ;;  %s16719_s13 = sld [smem:[#allocation105_spill]]  ;;  %s707_s0 = int_to_ptr.vmem [resolvable:$true] %s706_s0 }
  0x37   : > { %10906 = dma.hbm_to_vmem [thread:$0]  (!%p13575_p6), %s705_s4, 32, %s707_s0, [#allocation18]  }
  0x38   : > { %s13393_s18 = smov [#allocation20]   ;;  %s16720_s15 = sld [smem:[#allocation106_spill]] }
  0x39   : > { %s734_s6 = sshll.u32 %s13393_s18, 4  ;;  %s13394_s24 = smov 192   ;;  %s735_s6 = int_to_ptr.vmem [resolvable:$true] %s734_s6 }
  0x3a   : > { %s13395_s1 = smov 12   ;;  %s13396_s29 = smov [#allocation23]  }
  0x3b   : > { %s760_s4 = sshll.u32 %s13396_s29, 4  ;;  %s16721_s19 = sld [smem:[#allocation109_spill]]  ;;  %s761_s4 = int_to_ptr.vmem [resolvable:$true] %s760_s4 }
  0x3c   : > { %s732_s12 = sshll.u32 %s16719_s13, 4  ;;  %s16617_s8 = smov 4   ;;  %s733_s12 = int_to_ptr.hbm [resolvable:$true] %s732_s12 }
  0x3d   : > { %10912 = dma.hbm_to_vmem [thread:$0]  (!%p13575_p6), %s733_s12, 6144, %s735_s6, [#allocation21], %s13394_s24, %s13394_s24, %s13395_s1  }
  0x3e   : > { %s758_s20 = sshll.u32 %s16720_s15, 4  ;;  %s13397_s12 = smov [#allocation26]   ;;  %s759_s20 = int_to_ptr.hbm [resolvable:$true] %s758_s20 }
  0x3f   : > { %10918 = dma.hbm_to_vmem [thread:$0]  (!%p13575_p6), %s759_s20, 2048, %s761_s4, [#allocation24], %s16618_s16, %s16618_s16, %s16620_s22  }
  0x40   : > { %s794_s18 = sshll.u32 %s13397_s12, 4  ;;  %s16616_s6 = smov 64   ;;  %s795_s18 = int_to_ptr.vmem [resolvable:$true] %s794_s18 }
  0x41   : > { %s792_s3 = sshll.u32 %s16721_s19, 4  ;;  %s8917_s23 = sadd.s32 4294967294, %s13385_s28   ;;  %s793_s3 = int_to_ptr.hbm [resolvable:$true] %s792_s3 }
  0x42   : > { %10924 = dma.hbm_to_vmem [thread:$0]  (!%p13575_p6), %s793_s3, 2048, %s795_s18, [#allocation27], %s16616_s6, %s16616_s6, %s16617_s8  }
  0x43   : > { %s13622_s24 = sadd.s32 1, %s13385_s28   ;;  %s61_s20 = sadd.s32 1, %s13381_s27 }
  0x44   : > { %16722 = sst [smem:[#allocation45_spill]] %s13622_s24  ;;  %s58_s1 = ssub.s32 %s13385_s28, %s13622_s24 }
  0x45   : > { %p68_p7 = scmp.ne.s32.totalorder %s13381_s27, %s13377_s26  ;;  %p59_p8 = scmp.eq.s32.totalorder %s58_s1, 0 }
  0x46   : > { %p69_p9 = scmp.eq.s32.totalorder %s13385_s28, 0  ;;  %p74_p10 = scmp.ne.s32.totalorder %s13377_s26, %s13373_s5 }
  0x47   : > { %p570_p11 = scmp.eq.s32.totalorder %s13558_s7, 1  ;;  %p576_p2 = scmp.eq.s32.totalorder %s8917_s23, 1 }
  0x48   : > { %s13634_s29 = scalar_select %p59_p8, %s13381_s27, %s61_s20  }
  0x49   : > { %p70_p12 = por %p69_p9, %p68_p7  ;;  %p13638_p13 = por %p16628_p1, %p74_p10 }
  0x4a   : > { %16723 = sst [smem:[#allocation46_spill]] %s13634_s29  ;;  %p13642_p0 = por %p570_p11, %p68_p7 }
  0x4b   : > { %p10959_p4 = scmp.lt.s32.totalorder %s13385_s28, 2  ;;  %s16622_s25 = sand.u32 1, %s13381_s27  }
  0x4c   : > { %s16725_s0 = scalar_select %p13642_p0, 1, 0 }
  0x4d   : > { %p13648_p5 = por %p576_p2, %p74_p10  ;;  %s13654_s12 = sshll.u32 %s16622_s25, 7 }
  0x4e   : > { %16726 = sst [smem:[#allocation47_spill]] %s16725_s0  ;;  %s13657_s18 = sshll.u32 %s13385_s28, 7 }
  0x4f   : > { %s16727_s3 = scalar_select %p13648_p5, 1, 0 }
  0x50   : > { %p13659_p8 = pnand %p10959_p4, %p70_p12  ;;  %s850_s23 = sand.u32 1, %s13385_s28  }
  0x51   : > { %16728 = sst [smem:[#allocation48_spill]] %s16727_s3  ;;  %s854_s22 = scalar_lea.vmem [#allocation5], %s13654_s12 }
  0x52   : > { %s16730_s8 = sld [smem:[#allocation94_spill]]  ;;  %s862_s10 = sshll.u32 %s854_s22, 4  ;;  %s863_s10 = int_to_ptr.vmem [resolvable:$true] %s862_s10 }
  0x53   : > { %s16731_s19 = sld [smem:[#allocation97_spill]]  ;;  %s13672_s24 = scalar_lea.sflag [#allocation6], %s850_s23 }
  0x54   : > { %p12959_p9 = pneg %p13659_p8 }
  0x58   : > { %s859_s16 = scalar_lea.hbm %s16730_s8, %s13657_s18  ;;  %s12962_s6 = scalar_lea.hbm %s16730_s8, 256 }
  0x59   : > { %s860_s13 = sshll.u32 %s859_s16, 4  ;;  %s635_s29 = sshll.u32 %s16731_s19, 4  ;;  %s861_s13 = int_to_ptr.hbm [resolvable:$true] %s860_s13  ;;  %s636_s29 = int_to_ptr.hbm [resolvable:$true] %s635_s29 }
  0x5a   : > { %s12955_s3 = sshra.s32 %s861_s13, 4  ;;  %s12956_s3 = int_to_ptr.hbm [resolvable:$true] %s12955_s3 }
  0x5b   : > { %s12957_s5 = scalar_lea.hbm %s12956_s3, 128  ;;  %p12963_p12 = scmp.lt.s32.totalorder %s12956_s3, %s16730_s8 }
  0x5c   : > { %p12958_p7 = scmp.ne.s32.totalorder %s12956_s3, %s12957_s5  ;;  %p12964_p2 = scmp.lt.s32.totalorder %s12962_s6, %s12957_s5 }
  0x5e   : > { %p12960_p10 = pnand %p12959_p9, %p12958_p7  ;;  %p12965_p4 = por %p12964_p2, %p12963_p12 }
  0x60   : > { %p12961_p11 = pneg %p12960_p10 }
  0x62   : > { %p12966_p1 = pnand %p12965_p4, %p12961_p11 }
  0x64   : > { %12969 = shalt.err (!%p12966_p1)
}
  0x65   : > { %s16732_s15 = smov 8   ;;  %s16733_s19 = smov 128  }
  0x66   : > { %10934 = dma.hbm_to_vmem [thread:$0]  (!%p13659_p8), %s861_s13, 2048, %s863_s10, %s13672_s24, %s16733_s19, %s16733_s19, %s16732_s15  }
  0x67   : > { %s13400_s25 = smov [#allocation10]   ;;  %s16734_s28 = sld [smem:[#allocation100_spill]] }
  0x68   : > { %s637_s23 = sshll.u32 %s13400_s25, 4  ;;  %s16735_s9 = sld [smem:[#allocation102_spill]]  ;;  %s638_s23 = int_to_ptr.vmem [resolvable:$true] %s637_s23 }
  0x69   : > { %10891 = dma.hbm_to_vmem [thread:$0]  (!%p13575_p6), %s636_s29, 32, %s638_s23, [#allocation9]  }
  0x6a   : > { %s13401_s8 = smov [#allocation13]   ;;  %s13402_s10 = smov [#allocation16]  }
  0x6b   : > { %s665_s0 = sshll.u32 %s13401_s8, 4  ;;  %s691_s13 = sshll.u32 %s13402_s10, 4  ;;  %s666_s0 = int_to_ptr.vmem [resolvable:$true] %s665_s0  ;;  %s692_s13 = int_to_ptr.vmem [resolvable:$true] %s691_s13 }
  0x6c   : > { %s715_s29 = sshll.u32 %s16593_s11, 4  ;;  %s747_s16 = sshll.u32 %s16596_s14, 4  ;;  %s716_s29 = int_to_ptr.hbm [resolvable:$true] %s715_s29  ;;  %s748_s16 = int_to_ptr.hbm [resolvable:$true] %s747_s16 }
  0x6d   : > { %s663_s5 = sshll.u32 %s16734_s28, 4  ;;  %s13403_s28 = smov [#allocation19]   ;;  %s664_s5 = int_to_ptr.hbm [resolvable:$true] %s663_s5 }
  0x6e   : > { %s689_s1 = sshll.u32 %s16735_s9, 4  ;;  %s775_s10 = sshll.u32 %s16599_s17, 4  ;;  %s690_s1 = int_to_ptr.hbm [resolvable:$true] %s689_s1  ;;  %s776_s10 = int_to_ptr.hbm [resolvable:$true] %s775_s10 }
  0x6f   : > { %10897 = dma.hbm_to_vmem [thread:$0]  (!%p13575_p6), %s664_s5, 4096, %s666_s0, [#allocation12], %s16733_s19, %s16733_s19, %s16732_s15  }
  0x70   : > { %10903 = dma.hbm_to_vmem [thread:$0]  (!%p13575_p6), %s690_s1, 2048, %s692_s13, [#allocation15], %s16733_s19, %s16733_s19, %s16732_s15  }
  0x71   : > { %s717_s0 = sshll.u32 %s13403_s28, 4  ;;  %s13404_s5 = smov [#allocation22]   ;;  %s718_s0 = int_to_ptr.vmem [resolvable:$true] %s717_s0 }
  0x72   : > { %10909 = dma.hbm_to_vmem [thread:$0]  (!%p13575_p6), %s716_s29, 8192, %s718_s0, [#allocation18], %s16733_s19, %s16733_s19, %s16732_s15  }
  0x73   : > { %s749_s3 = sshll.u32 %s13404_s5, 4  ;;  %s809_s22 = sshll.u32 %s16603_s21, 4  ;;  %s750_s3 = int_to_ptr.vmem [resolvable:$true] %s749_s3  ;;  %s810_s22 = int_to_ptr.hbm [resolvable:$true] %s809_s22 }
  0x74   : > { %10915 = dma.hbm_to_vmem [thread:$0]  (!%p13575_p6), %s748_s16, 48, %s750_s3, [#allocation21]  }
  0x75   : > { %s13405_s8 = smov [#allocation25]   ;;  %s13406_s23 = smov [#allocation28]  }
  0x76   : > { %s777_s29 = sshll.u32 %s13405_s8, 4  ;;  %s811_s28 = sshll.u32 %s13406_s23, 4  ;;  %s778_s29 = int_to_ptr.vmem [resolvable:$true] %s777_s29  ;;  %s812_s28 = int_to_ptr.vmem [resolvable:$true] %s811_s28 }
  0x77   : > { %10921 = dma.hbm_to_vmem [thread:$0]  (!%p13575_p6), %s776_s10, 8192, %s778_s29, [#allocation24], %s16733_s19, %s16733_s19, %s16732_s15  }
  0x78   : > { %s16736_s16 = smov 4   ;;  %s16737_s0 = smov 64  }
  0x79   : > { %10927 = dma.hbm_to_vmem [thread:$0]  (!%p13575_p6), %s810_s22, 1024, %s812_s28, [#allocation27], %s16737_s0, %s16737_s0, %s16736_s16  }
  0x7a   : > { %s16738_s6 = sld [smem:[#allocation93_spill]]  ;;  %s832_s13 = scalar_lea.vmem [#allocation2], %s13654_s12 }
  0x7b   : > { %s840_s25 = sshll.u32 %s832_s13, 4  ;;  %s16739_s9 = sand.u32 1, %s13381_s27   ;;  %s841_s25 = int_to_ptr.vmem [resolvable:$true] %s840_s25 }
  0x7c   : > { %s829_s10 = scalar_lea.sflag [#allocation3], %s16739_s9 }
  0x80   : > { %s837_s1 = scalar_lea.hbm %s16738_s6, %s13657_s18  ;;  %s13202_s28 = scalar_lea.hbm %s16738_s6, 256 }
  0x81   : > { %s838_s8 = sshll.u32 %s837_s1, 4  ;;  %s839_s8 = int_to_ptr.hbm [resolvable:$true] %s838_s8 }
  0x82   : > { %s13195_s29 = sshra.s32 %s839_s8, 4  ;;  %s13196_s29 = int_to_ptr.hbm [resolvable:$true] %s13195_s29 }
  0x83   : > { %s13197_s23 = scalar_lea.hbm %s13196_s29, 128  ;;  %p13203_p6 = scmp.lt.s32.totalorder %s13196_s29, %s16738_s6 }
  0x84   : > { %p13198_p1 = scmp.ne.s32.totalorder %s13196_s29, %s13197_s23  ;;  %p13204_p11 = scmp.lt.s32.totalorder %s13202_s28, %s13197_s23 }
  0x86   : > { %p13200_p7 = pnand %p13198_p1, %p12959_p9  ;;  %p13205_p12 = por %p13204_p11, %p13203_p6 }
  0x88   : > { %p13201_p10 = pneg %p13200_p7 }
  0x8a   : > { %p13206_p2 = pnand %p13205_p12, %p13201_p10 }
  0x8c   : > { %13209 = shalt.err (!%p13206_p2)
}
  0x8d   : > { %10931 = dma.hbm_to_vmem [thread:$0]  (!%p13659_p8), %s839_s8, 2048, %s841_s25, %s829_s10, %s16733_s19, %s16733_s19, %s16732_s15  }
  0x8e   : > { %s16740_s3 = sld [smem:[#allocation95_spill]]  ;;  %s876_s13 = scalar_lea.vmem [#allocation7], %s13654_s12 }
  0x8f   : > { %s884_s2 = sshll.u32 %s876_s13, 4  ;;  %s885_s2 = int_to_ptr.vmem [resolvable:$true] %s884_s2 }
  0x94   : > { %s881_s1 = scalar_lea.hbm %s16740_s3, %s13657_s18  ;;  %s13232_s25 = scalar_lea.hbm %s16740_s3, 256 }
  0x95   : > { %s882_s29 = sshll.u32 %s881_s1, 4  ;;  %s883_s29 = int_to_ptr.hbm [resolvable:$true] %s882_s29 }
  0x96   : > { %s13225_s23 = sshra.s32 %s883_s29, 4  ;;  %s13226_s23 = int_to_ptr.hbm [resolvable:$true] %s13225_s23 }
  0x97   : > { %s13227_s22 = scalar_lea.hbm %s13226_s23, 128  ;;  %p13233_p10 = scmp.lt.s32.totalorder %s13226_s23, %s16740_s3 }
  0x98   : > { %p13228_p4 = scmp.ne.s32.totalorder %s13226_s23, %s13227_s22  ;;  %p13234_p6 = scmp.lt.s32.totalorder %s13232_s25, %s13227_s22 }
  0x9a   : > { %p13230_p1 = pnand %p13228_p4, %p12959_p9  ;;  %p13235_p11 = por %p13234_p6, %p13233_p10 }
  0x9c   : > { %p13231_p7 = pneg %p13230_p1 }
  0x9e   : > { %p13236_p12 = pnand %p13235_p11, %p13231_p7 }
  0xa0   : > { %13239 = shalt.err (!%p13236_p12)
}
  0xa1   : > { %10937 = dma.hbm_to_vmem [thread:$0]  (!%p13659_p8), %s883_s29, 2048, %s885_s2, %s13672_s24, %s16733_s19, %s16733_s19, %s16732_s15  }
  0xa2   : > { %896 = sbr.rel (%p13563_p3) target bundleno = 2459 (0x99b), region = 112 }
  0xa7   : > { %s13782_s12 = sand.u32 1, %s13377_s26  }
  0xa8   : > { %s13785_s18 = sshll.u32 %s13782_s12, 7  ;;  %s899_s0 = scalar_lea.sflag [#allocation3], %s13782_s12 }
  0xa9   : > { %s13789_s9 = scalar_lea.vmem [#allocation2], %s13785_s18 }
  0xaa   : > { %13328 = dma.done.wait (%p13638_p13), %s899_s0, 2048  }
  0xab   : > { %13330 = vsyncadd (%p13638_p13), %s899_s0, 4294965248  ;;  %s908_s30 = sand.u32 1, %s13558_s7   ;;  %s13797_s20 = scalar_lea.vmem [#allocation5], %s13785_s18 }
  0xac   : > { %s909_s24 = scalar_lea.sflag [#allocation6], %s908_s30 }
  0xad   : > { %13332 = dma.done.wait (%p13638_p13), %s909_s24, 4096  }
  0xae   : > { %13334 = vsyncadd (%p13638_p13), %s909_s24, 4294963200  ;;  %s13804_s15 = scalar_lea.vmem [#allocation7], %s13785_s18  ;;  %p16741_p3 = scmp.eq.s32.totalorder %s13558_s7, 0 }
  0xb0   : > { %13336 = dma.done.wait (%p16741_p3), [#allocation9], 4128   ;;  %p16742_p8 = pmov %p16741_p3 }
  0xb1   : > { %p16743_p9 = pmov %p16741_p3 }
  0xb2   : > { %13338 = vsyncadd (%p16742_p8), [#allocation9], 4294963168 }
  0xb3   : > { %13340 = dma.done.wait (%p16743_p9), [#allocation12], 12288   ;;  %p16744_p2 = pmov %p16741_p3 }
  0xb5   : > { %13342 = vsyncadd (%p16744_p2), [#allocation12], 4294955008  ;;  %p16745_p4 = pmov %p16744_p2 }
  0xb6   : > { %p16746_p13 = pmov %p16744_p2 }
  0xb7   : > { %13344 = dma.done.wait (%p16745_p4), [#allocation15], 2080  }
  0xb8   : > { %13346 = vsyncadd (%p16746_p13), [#allocation15], 4294965216  ;;  %p16747_p1 = pmov %p16744_p2 }
  0xba   : > { %13348 = dma.done.wait (%p16747_p1), [#allocation18], 8224   ;;  %p16748_p7 = pmov %p16747_p1 }
  0xbb   : > { %p16749_p10 = pmov %p16747_p1 }
  0xbc   : > { %13350 = vsyncadd (%p16748_p7), [#allocation18], 4294959072 }
  0xbd   : > { %13352 = dma.done.wait (%p16749_p10), [#allocation21], 6192   ;;  %p16750_p6 = pmov %p16747_p1 }
  0xbe   : > { %p16751_p11 = pmov %p16747_p1 }
  0xbf   : > { %13354 = vsyncadd (%p16750_p6), [#allocation21], 4294961104 }
  0xc0   : > { %13356 = dma.done.wait (%p16751_p11), [#allocation24], 10240   ;;  %p16752_p12 = pmov %p16747_p1 }
  0xc1   : > { %p16753_p3 = pmov %p16747_p1 }
  0xc2   : > { %13358 = vsyncadd (%p16752_p12), [#allocation24], 4294957056 }
  0xc3   : > { %13360 = dma.done.wait (%p16753_p3), [#allocation27], 3072   ;;  %p16754_p8 = pmov %p16747_p1 }
  0xc4   : > { %v9021_v0 = vld [vmem:[#allocation8 + $0x70] sm:$0xf]  ;;  %v10448_v1 = vld [vmem:[#allocation8 + $0x74] sm:$0xf0]  ;;  %v9013_v2 = vld [vmem:[#allocation8 + $0x60] sm:$0xf] }
  0xc5   : > { %13362 = vsyncadd (%p16754_p8), [#allocation27], 4294964224  ;;  %v9022_v3 = vor.u32 %v10448_v1, %v9021_v0  ;;  %v10446_v4 = vld [vmem:[#allocation8 + $0x64] sm:$0xf0]  ;;  %v9005_v6 = vld [vmem:[#allocation8 + $0x50] sm:$0xf] }
  0xc6   : > { %v9014_v5 = vor.u32 %v10446_v4, %v9013_v2  ;;  %v10444_v7 = vld [vmem:[#allocation8 + $0x54] sm:$0xf0]  ;;  %v8997_v9 = vld [vmem:[#allocation8 + $0x40] sm:$0xf]  ;;  %v10442_v10 = vld [vmem:[#allocation8 + $0x44] sm:$0xf0] }
  0xc7   : > { %10795 = vmatpush.bf16.msra.mxu1 %v9022_v3  ;;  %10796 = vmatpush.bf16.msra.mxu2 %v9022_v3  ;;  %v9006_v8 = vor.u32 %v10444_v7, %v9005_v6  ;;  %v8998_v11 = vor.u32 %v10442_v10, %v8997_v9  ;;  %v8989_v12 = vld [vmem:[#allocation8 + $0x30] sm:$0xf]  ;;  %v10440_v13 = vld [vmem:[#allocation8 + $0x34] sm:$0xf0]  ;;  %v8981_v15 = vld [vmem:[#allocation8 + $0x20] sm:$0xf] }
  0xc8   : > { %10797 = vmatpush.bf16.msra.mxu3 %v9022_v3  ;;  %1373 = vmatpush.bf16.msra.mxu0 %v9022_v3  ;;  %v8990_v14 = vor.u32 %v10440_v13, %v8989_v12  ;;  %v10438_v16 = vld [vmem:[#allocation8 + $0x24] sm:$0xf0]  ;;  %v8973_v18 = vld [vmem:[#allocation8 + $0x10] sm:$0xf]  ;;  %v10436_v19 = vld [vmem:[#allocation8 + $0x14] sm:$0xf0] }
  0xc9   : > { %v8982_v17 = vor.u32 %v10438_v16, %v8981_v15  ;;  %v8974_v20 = vor.u32 %v10436_v19, %v8973_v18  ;;  %v8965_v21 = vld [vmem:[#allocation8] sm:$0xf]  ;;  %v10434_v22 = vld [vmem:[#allocation8 + $0x4] sm:$0xf0]  ;;  %v10447_v24 = vld [vmem:[#allocation8 + $0x74] sm:$0xf] }
  0xca   : > { %v1082_v23 = vld [vmem:[%s13789_s9 + $0x20] sm:$0xff]  ;;  %v9023_v25 = vld [vmem:[#allocation8 + $0x78] sm:$0xf0]  ;;  %v9085_v26 = vld [vmem:[#allocation8 + $0xf0] sm:$0xf]  ;;  %v8966_v30 = vor.u32 %v10434_v22, %v8965_v21  ;;  %s16755_s5 = sld [smem:[#allocation99_spill]] }
  0xcb   : > { %10798 = vmatpush.bf16.msra.mxu1 %v9014_v5  ;;  %10799 = vmatpush.bf16.msra.mxu2 %v9014_v5  ;;  %v10464_v27 = vld [vmem:[#allocation8 + $0xf4] sm:$0xf0]  ;;  %v10463_v28 = vld [vmem:[#allocation8 + $0xf4] sm:$0xf]  ;;  %v9087_v29 = vld [vmem:[#allocation8 + $0xf8] sm:$0xf0]  ;;  %v9026_v36 = vor.u32 %v10447_v24, %v9023_v25 }
  0xcc   : > { %10800 = vmatpush.bf16.msra.mxu3 %v9014_v5  ;;  %1374 = vmatpush.bf16.msra.mxu0 %v9014_v5  ;;  %v1083_v31 = vld [vmem:[%s13789_s9 + $0x28] sm:$0xff]  ;;  %v1086_v32 = vld [vmem:[%s13789_s9 + $0x40] sm:$0xff]  ;;  %v9086_v37 = vor.u32 %v10464_v27, %v9085_v26  ;;  %v9090_v38 = vor.u32 %v10463_v28, %v9087_v29  ;;  %v10443_v53 = vld [vmem:[#allocation8 + $0x54] sm:$0xf]  ;;  %s16773_s22 = sld [smem:[#allocation104_spill]]  ;;  %s15648_s0 = scalar_lea.vmem [#allocation30], %s13785_s18 }
  0xcd   : > { %v1087_v33 = vld [vmem:[%s13789_s9 + $0x48] sm:$0xff]  ;;  %v1090_v34 = vld [vmem:[%s13789_s9 + $0x60] sm:$0xff]  ;;  %v13840_v42 = vpack.c.bf16 %v1083_v31, %v1082_v23  ;;  %v9007_v54 = vld [vmem:[#allocation8 + $0x58] sm:$0xf0]  ;;  %s16851_s10 = sld [smem:[#allocation111_spill]]  ;;  %s10793_s25 = sshll.u32 %s13558_s7, 7 }
  0xce   : > { %v1091_v35 = vld [vmem:[%s13789_s9 + $0x68] sm:$0xff]  ;;  %v10445_v39 = vld [vmem:[#allocation8 + $0x64] sm:$0xf]  ;;  %v9077_v41 = vld [vmem:[#allocation8 + $0xe0] sm:$0xf]  ;;  %v13842_v43 = vpack.c.bf16 %v1087_v33, %v1086_v32  ;;  %v9010_v60 = vor.u32 %v10443_v53, %v9007_v54  ;;  %s16910_s16 = sld [smem:[#allocation110_spill]] }
  0xcf   : > { %10801 = vmatpush.bf16.msra.mxu1 %v9006_v8  ;;  %10802 = vmatpush.bf16.msra.mxu2 %v9006_v8  ;;  %v9015_v40 = vld [vmem:[#allocation8 + $0x68] sm:$0xf0]  ;;  %v10462_v44 = vld [vmem:[#allocation8 + $0xe4] sm:$0xf0]  ;;  %v10461_v45 = vld [vmem:[#allocation8 + $0xe4] sm:$0xf]  ;;  %v13844_v47 = vpack.c.bf16 %v1091_v35, %v1090_v34 }
  0xd0   : > { %10803 = vmatpush.bf16.msra.mxu3 %v9006_v8  ;;  %1375 = vmatpush.bf16.msra.mxu0 %v9006_v8  ;;  %v9079_v46 = vld [vmem:[#allocation8 + $0xe8] sm:$0xf0]  ;;  %v1078_v48 = vld [vmem:[%s13789_s9] sm:$0xff]  ;;  %v9018_v50 = vor.u32 %v10445_v39, %v9015_v40  ;;  %v9078_v51 = vor.u32 %v10462_v44, %v9077_v41  ;;  %v9069_v55 = vld [vmem:[#allocation8 + $0xd0] sm:$0xf]  ;;  %s16756_s1 = smov %s16755_s5  ;;  %s16913_s24 = sld [smem:[#allocation113_spill]] }
  0xd1   : > { %v1079_v49 = vld [vmem:[%s13789_s9 + $0x8] sm:$0xff]  ;;  %v9082_v52 = vor.u32 %v10461_v45, %v9079_v46  ;;  %v10460_v56 = vld [vmem:[#allocation8 + $0xd4] sm:$0xf0]  ;;  %v10459_v57 = vld [vmem:[#allocation8 + $0xd4] sm:$0xf]  ;;  %s8632_s4 = sshll.u32 %s15648_s0, 4  ;;  %s8633_s4 = int_to_ptr.vmem [resolvable:$true] %s8632_s4 }
  0xd2   : > { %v9071_v58 = vld [vmem:[#allocation8 + $0xd8] sm:$0xf0]  ;;  %v13850_v59 = vpack.c.bf16 %v1079_v49, %v1078_v48  ;;  %v9070_v61 = vor.u32 %v10460_v56, %v9069_v55  ;;  %v10441_v63 = vld [vmem:[#allocation8 + $0x44] sm:$0xf]  ;;  %v8999_v0 = vld [vmem:[#allocation8 + $0x48] sm:$0xf0] }
  0xd3   : > { %10804 = vmatpush.bf16.msra.mxu1 %v8998_v11  ;;  %10805 = vmatpush.bf16.msra.mxu2 %v8998_v11  ;;  %v9074_v62 = vor.u32 %v10459_v57, %v9071_v58  ;;  %v9061_v1 = vld [vmem:[#allocation8 + $0xc0] sm:$0xf]  ;;  %v10458_v2 = vld [vmem:[#allocation8 + $0xc4] sm:$0xf0]  ;;  %v10457_v3 = vld [vmem:[#allocation8 + $0xc4] sm:$0xf]  ;;  %v9002_v5 = vor.u32 %v10441_v63, %v8999_v0 }
  0xd4   : > { %10806 = vmatpush.bf16.msra.mxu3 %v8998_v11  ;;  %1376 = vmatpush.bf16.msra.mxu0 %v8998_v11  ;;  %v9063_v4 = vld [vmem:[#allocation8 + $0xc8] sm:$0xf0]  ;;  %v9062_v6 = vor.u32 %v10458_v2, %v9061_v1  ;;  %v1084_v8 = vld [vmem:[%s13789_s9 + $0x30] sm:$0xff]  ;;  %v8991_v10 = vld [vmem:[#allocation8 + $0x38] sm:$0xf0] }
  0xd5   : > { %v9066_v7 = vor.u32 %v10457_v3, %v9063_v4  ;;  %v10439_v9 = vld [vmem:[#allocation8 + $0x34] sm:$0xf]  ;;  %v9053_v11 = vld [vmem:[#allocation8 + $0xb0] sm:$0xf]  ;;  %v10456_v12 = vld [vmem:[#allocation8 + $0xb4] sm:$0xf0] }
  0xd6   : > { %v10455_v13 = vld [vmem:[#allocation8 + $0xb4] sm:$0xf]  ;;  %v1085_v15 = vld [vmem:[%s13789_s9 + $0x38] sm:$0xff]  ;;  %v9054_v21 = vor.u32 %v10456_v12, %v9053_v11  ;;  %v10437_v23 = vld [vmem:[#allocation8 + $0x24] sm:$0xf] }
  0xd7   : > { %10807 = vmatpush.bf16.msra.mxu1 %v8990_v14  ;;  %10808 = vmatpush.bf16.msra.mxu2 %v8990_v14  ;;  %v1088_v16 = vld [vmem:[%s13789_s9 + $0x50] sm:$0xff]  ;;  %v1093_v19 = vld [vmem:[%s13789_s9 + $0x78] sm:$0xff]  ;;  %v8983_v24 = vld [vmem:[#allocation8 + $0x28] sm:$0xf0]  ;;  %v13860_v26 = vpack.c.bf16 %v1085_v15, %v1084_v8 }
  0xd8   : > { %10809 = vmatpush.bf16.msra.mxu3 %v8990_v14  ;;  %1377 = vmatpush.bf16.msra.mxu0 %v8990_v14  ;;  %v9055_v14 = vld [vmem:[#allocation8 + $0xb8] sm:$0xf0]  ;;  %v1092_v18 = vld [vmem:[%s13789_s9 + $0x70] sm:$0xff]  ;;  %v9045_v25 = vld [vmem:[#allocation8 + $0xa0] sm:$0xf]  ;;  %v8986_v34 = vor.u32 %v10437_v23, %v8983_v24 }
  0xd9   : > { %v9058_v22 = vor.u32 %v10455_v13, %v9055_v14  ;;  %v10454_v28 = vld [vmem:[#allocation8 + $0xa4] sm:$0xf0]  ;;  %v10453_v29 = vld [vmem:[#allocation8 + $0xa4] sm:$0xf]  ;;  %v13864_v31 = vpack.c.bf16 %v1093_v19, %v1092_v18  ;;  %v1080_v32 = vld [vmem:[%s13789_s9 + $0x10] sm:$0xff] }
  0xda   : > { %v1081_v33 = vld [vmem:[%s13789_s9 + $0x18] sm:$0xff]  ;;  %v9046_v35 = vor.u32 %v10454_v28, %v9045_v25  ;;  %v9037_v39 = vld [vmem:[#allocation8 + $0x90] sm:$0xf]  ;;  %v10451_v41 = vld [vmem:[#allocation8 + $0x94] sm:$0xf] }
  0xdb   : > { %10810 = vmatpush.bf16.msra.mxu1 %v8982_v17  ;;  %10811 = vmatpush.bf16.msra.mxu2 %v8982_v17  ;;  %v10452_v40 = vld [vmem:[#allocation8 + $0x94] sm:$0xf0]  ;;  %v9039_v44 = vld [vmem:[#allocation8 + $0x98] sm:$0xf0]  ;;  %v13870_v45 = vpack.c.bf16 %v1081_v33, %v1080_v32  ;;  %v10450_v53 = vld [vmem:[#allocation8 + $0x84] sm:$0xf0] }
  0xdc   : > { %10812 = vmatpush.bf16.msra.mxu3 %v8982_v17  ;;  %1378 = vmatpush.bf16.msra.mxu0 %v8982_v17  ;;  %v1089_v17 = vld [vmem:[%s13789_s9 + $0x58] sm:$0xff]  ;;  %v9038_v48 = vor.u32 %v10452_v40, %v9037_v39  ;;  %v9042_v49 = vor.u32 %v10451_v41, %v9039_v44  ;;  %v10449_v54 = vld [vmem:[#allocation8 + $0x84] sm:$0xf]  ;;  %v9031_v55 = vld [vmem:[#allocation8 + $0x88] sm:$0xf0] }
  0xdd   : > { %v13862_v27 = vpack.c.bf16 %v1089_v17, %v1088_v16  ;;  %v9034_v58 = vor.u32 %v10449_v54, %v9031_v55  ;;  %v10511_v63 = vld [vmem:[#allocation11 + $0x74] sm:$0xf]  ;;  %v9151_v0 = vld [vmem:[#allocation11 + $0x78] sm:$0xf0]  ;;  %v9213_v4 = vld [vmem:[#allocation11 + $0xf0] sm:$0xf] }
  0xde   : > { %v10527_v1 = vld [vmem:[#allocation11 + $0xf4] sm:$0xf]  ;;  %v9154_v2 = vor.u32 %v10511_v63, %v9151_v0  ;;  %v9215_v3 = vld [vmem:[#allocation11 + $0xf8] sm:$0xf0]  ;;  %v10509_v11 = vld [vmem:[#allocation11 + $0x64] sm:$0xf] }
  0xdf   : > { %10813 = vmatpush.bf16.msra.mxu1 %v8974_v20  ;;  %10814 = vmatpush.bf16.msra.mxu2 %v8974_v20  ;;  %v1096_v8 = vld [vmem:[%s13797_s20 + $0x10] sm:$0xff]  ;;  %v10525_v13 = vld [vmem:[#allocation11 + $0xe4] sm:$0xf]  ;;  %v9205_v16 = vld [vmem:[#allocation11 + $0xe0] sm:$0xf] }
  0xe0   : > { %10815 = vmatpush.bf16.msra.mxu3 %v8974_v20  ;;  %1379 = vmatpush.bf16.msra.mxu0 %v8974_v20  ;;  %v8994_v20 = vor.u32 %v10439_v9, %v8991_v10  ;;  %v1097_v9 = vld [vmem:[%s13797_s20 + $0x18] sm:$0xff]  ;;  %v9143_v12 = vld [vmem:[#allocation11 + $0x68] sm:$0xf0]  ;;  %v10526_v17 = vld [vmem:[#allocation11 + $0xe4] sm:$0xf0] }
  0xe1   : > { %v1195_v10 = vpack.c.bf16 %v1097_v9, %v1096_v8  ;;  %v9146_v14 = vor.u32 %v10509_v11, %v9143_v12  ;;  %v9207_v15 = vld [vmem:[#allocation11 + $0xe8] sm:$0xf0]  ;;  %v9206_v19 = vor.u32 %v10526_v17, %v9205_v16  ;;  %v10507_v23 = vld [vmem:[#allocation11 + $0x54] sm:$0xf]  ;;  %v9135_v24 = vld [vmem:[#allocation11 + $0x58] sm:$0xf0] }
  0xe2   : > { %v9210_v18 = vor.u32 %v10525_v13, %v9207_v15  ;;  %v10523_v25 = vld [vmem:[#allocation11 + $0xd4] sm:$0xf]  ;;  %v9138_v28 = vor.u32 %v10507_v23, %v9135_v24  ;;  %v10524_v32 = vld [vmem:[#allocation11 + $0xd4] sm:$0xf0]  ;;  %v9127_v39 = vld [vmem:[#allocation11 + $0x48] sm:$0xf0] }
  0xe3   : > { %10816 = vmatpush.bf16.msra.mxu1 %v8966_v30  ;;  %10817 = vmatpush.bf16.msra.mxu2 %v8966_v30  ;;  %v10521_v40 = vld [vmem:[#allocation11 + $0xc4] sm:$0xf]  ;;  %v9191_v44 = vld [vmem:[#allocation11 + $0xc8] sm:$0xf0]  ;;  %v10503_v54 = vld [vmem:[#allocation11 + $0x34] sm:$0xf] }
  0xe4   : > { %10818 = vmatpush.bf16.msra.mxu3 %v8966_v30  ;;  %1380 = vmatpush.bf16.msra.mxu0 %v8966_v30  ;;  %v9047_v30 = vld [vmem:[#allocation8 + $0xa8] sm:$0xf0]  ;;  %v9119_v55 = vld [vmem:[#allocation11 + $0x38] sm:$0xf0]  ;;  %v9181_v0 = vld [vmem:[#allocation11 + $0xb0] sm:$0xf] }
  0xe5   : > { %v1106_v9 = vld [vmem:[%s13797_s20 + $0x60] sm:$0xff]  ;;  %v10518_v15 = vld [vmem:[#allocation11 + $0xa4] sm:$0xf0]  ;;  %v9149_v17 = vld [vmem:[#allocation11 + $0x70] sm:$0xf] }
  0xe6   : > { %1391 = vmatmul.bf16.vlgmr.msra.gmra.mxu1 %v13840_v42  ;;  %1401 = vmatmul.bf16.vlgmr.msra.gmra.mxu2 %v13842_v43  ;;  %v13894_v12 = vld [vmem:[#allocation10] sm:$0x3]  ;;  %v9141_v24 = vld [vmem:[#allocation11 + $0x60] sm:$0xf] }
  0xe7   : > { %1471 = vmatpush.bf16.msrb.mxu2 %v9026_v36  ;;  %1422 = vmatpush.bf16.msrb.mxu1 %v9086_v37  ;;  %v9050_v36 = vor.u32 %v10453_v29, %v9047_v30  ;;  %v10435_v37 = vld [vmem:[#allocation8 + $0x14] sm:$0xf]  ;;  %v9199_v29 = vld [vmem:[#allocation11 + $0xd8] sm:$0xf0] }
  0xe8   : > { %1520 = vmatpush.bf16.msrb.mxu3 %v9090_v38  ;;  %1381 = vmatmul.bf16.vlgmr.msra.gmra.mxu0 %v13850_v59  ;;  %v8975_v38 = vld [vmem:[#allocation8 + $0x18] sm:$0xf0]  ;;  %v9197_v30 = vld [vmem:[#allocation11 + $0xd0] sm:$0xf]  ;;  %v9202_v33 = vor.u32 %v10523_v25, %v9199_v29  ;;  %v10510_v25 = vld [vmem:[#allocation11 + $0x64] sm:$0xf0] }
  0xe9   : > { %1411 = vmatmul.bf16.vlgmr.msra.gmra.mxu3 %v13844_v47  ;;  %v8978_v46 = vor.u32 %v10435_v37, %v8975_v38  ;;  %v10505_v38 = vld [vmem:[#allocation11 + $0x44] sm:$0xf] }
  0xea   : > { %v9130_v41 = vor.u32 %v10505_v38, %v9127_v39 }
  0xeb   : > { %1472 = vmatpush.bf16.msrb.mxu2 %v9018_v50  ;;  %1423 = vmatpush.bf16.msrb.mxu1 %v9078_v51  ;;  %v10433_v50 = vld [vmem:[#allocation8 + $0x4] sm:$0xf]  ;;  %v8967_v51 = vld [vmem:[#allocation8 + $0x8] sm:$0xf0] }
  0xec   : > { %1521 = vmatpush.bf16.msrb.mxu3 %v9082_v52  ;;  %v9029_v52 = vld [vmem:[#allocation8 + $0x80] sm:$0xf]  ;;  %v8970_v56 = vor.u32 %v10433_v50, %v8967_v51 }
  0xed   : > { %v9030_v57 = vor.u32 %v10450_v53, %v9029_v52  ;;  %v1102_v51 = vld [vmem:[%s13797_s20 + $0x40] sm:$0xff]  ;;  %v1103_v52 = vld [vmem:[%s13797_s20 + $0x48] sm:$0xff] }
  0xee   : > { %v1201_v53 = vpack.c.bf16 %v1103_v52, %v1102_v51 }
  0xef   : > { %1473 = vmatpush.bf16.msrb.mxu2 %v9010_v60  ;;  %1424 = vmatpush.bf16.msrb.mxu1 %v9070_v61  ;;  %v1094_v60 = vld [vmem:[%s13797_s20] sm:$0xff]  ;;  %v1095_v61 = vld [vmem:[%s13797_s20 + $0x8] sm:$0xff] }
  0xf0   : > { %1522 = vmatpush.bf16.msrb.mxu3 %v9074_v62  ;;  %v1193_v62 = vpack.c.bf16 %v1095_v61, %v1094_v60  ;;  %v1104_v61 = vld [vmem:[%s13797_s20 + $0x50] sm:$0xff] }
  0xf3   : > { %1474 = vmatpush.bf16.msrb.mxu2 %v9002_v5  ;;  %1425 = vmatpush.bf16.msrb.mxu1 %v9062_v6  ;;  %v10528_v5 = vld [vmem:[#allocation11 + $0xf4] sm:$0xf0]  ;;  %v9218_v6 = vor.u32 %v10527_v1, %v9215_v3  ;;  %v10501_v3 = vld [vmem:[#allocation11 + $0x24] sm:$0xf] }
  0xf4   : > { %1523 = vmatpush.bf16.msrb.mxu3 %v9066_v7  ;;  %v9214_v7 = vor.u32 %v10528_v5, %v9213_v4  ;;  %v10520_v1 = vld [vmem:[#allocation11 + $0xb4] sm:$0xf0]  ;;  %v9111_v4 = vld [vmem:[#allocation11 + $0x28] sm:$0xf0]  ;;  %v10517_v5 = vld [vmem:[#allocation11 + $0xa4] sm:$0xf] }
  0xf6   : > { %1396 = vmatmul.bf16.gmra.mxu1 %v13860_v26  ;;  %1406 = vmatmul.bf16.gmra.mxu2 %v13862_v27 }
  0xf7   : > { %1475 = vmatpush.bf16.msrb.mxu2 %v8994_v20  ;;  %1426 = vmatpush.bf16.msrb.mxu1 %v9054_v21  ;;  %v1098_v20 = vld [vmem:[%s13797_s20 + $0x20] sm:$0xff]  ;;  %v1099_v21 = vld [vmem:[%s13797_s20 + $0x28] sm:$0xff] }
  0xf8   : > { %1524 = vmatpush.bf16.msrb.mxu3 %v9058_v22  ;;  %1386 = vmatmul.bf16.gmra.mxu0 %v13870_v45  ;;  %v1197_v22 = vpack.c.bf16 %v1099_v21, %v1098_v20 }
  0xf9   : > { %1416 = vmatmul.bf16.gmra.mxu3 %v13864_v31 }
  0xfb   : > { %1476 = vmatpush.bf16.msrb.mxu2 %v8986_v34  ;;  %1427 = vmatpush.bf16.msrb.mxu1 %v9046_v35  ;;  %v9198_v34 = vor.u32 %v10524_v32, %v9197_v30  ;;  %v1100_v35 = vld [vmem:[%s13797_s20 + $0x30] sm:$0xff]  ;;  %v9142_v30 = vor.u32 %v10510_v25, %v9141_v24  ;;  %v10516_v25 = vld [vmem:[#allocation11 + $0x94] sm:$0xf0] }
  0xfc   : > { %1525 = vmatpush.bf16.msrb.mxu3 %v9050_v36  ;;  %v1101_v36 = vld [vmem:[%s13797_s20 + $0x38] sm:$0xff]  ;;  %v9133_v32 = vld [vmem:[#allocation11 + $0x50] sm:$0xf] }
  0xfd   : > { %v1199_v37 = vpack.c.bf16 %v1101_v36, %v1100_v35  ;;  %v1109_v35 = vld [vmem:[%s13797_s20 + $0x78] sm:$0xff]  ;;  %v9165_v24 = vld [vmem:[#allocation11 + $0x90] sm:$0xf] }
  0xff   : > { %1477 = vmatpush.bf16.msrb.mxu2 %v8978_v46  ;;  %1428 = vmatpush.bf16.msrb.mxu1 %v9038_v48  ;;  %v9189_v46 = vld [vmem:[#allocation11 + $0xc0] sm:$0xf]  ;;  %v10522_v48 = vld [vmem:[#allocation11 + $0xc4] sm:$0xf0] }
 0x100   : > { %1526 = vmatpush.bf16.msrb.mxu3 %v9042_v49  ;;  %v9194_v49 = vor.u32 %v10521_v40, %v9191_v44  ;;  %v9190_v50 = vor.u32 %v10522_v48, %v9189_v46  ;;  %v9125_v40 = vld [vmem:[#allocation11 + $0x40] sm:$0xf]  ;;  %v9117_v48 = vld [vmem:[#allocation11 + $0x30] sm:$0xf] }
 0x103   : > { %1478 = vmatpush.bf16.msrb.mxu2 %v8970_v56  ;;  %1429 = vmatpush.bf16.msrb.mxu1 %v9030_v57  ;;  %v10519_v56 = vld [vmem:[#allocation11 + $0xb4] sm:$0xf]  ;;  %v9122_v57 = vor.u32 %v10503_v54, %v9119_v55  ;;  %v9109_v55 = vld [vmem:[#allocation11 + $0x20] sm:$0xf] }
 0x104   : > { %1527 = vmatpush.bf16.msrb.mxu3 %v9034_v58  ;;  %v9183_v58 = vld [vmem:[#allocation11 + $0xb8] sm:$0xf0] }
 0x105   : > { %v9186_v60 = vor.u32 %v10519_v56, %v9183_v58  ;;  %v10502_v56 = vld [vmem:[#allocation11 + $0x24] sm:$0xf0] }
 0x106   : > { %1430 = vmatmul.bf16.vlgmr.msrb.gmra.mxu1 %v1193_v62  ;;  %1479 = vmatmul.bf16.vlgmr.msrb.gmra.mxu2 %v13850_v59 }
 0x107   : > { %2073 = vmatpush.bf16.msra.mxu2 %v9154_v2  ;;  %2024 = vmatpush.bf16.msra.mxu1 %v9214_v7  ;;  %v9182_v2 = vor.u32 %v10520_v1, %v9181_v0  ;;  %v9175_v7 = vld [vmem:[#allocation11 + $0xa8] sm:$0xf0]  ;;  %v10500_v1 = vld [vmem:[#allocation11 + $0x14] sm:$0xf0] }
 0x108   : > { %2122 = vmatpush.bf16.msra.mxu3 %v9218_v6  ;;  %v9114_v6 = vor.u32 %v10501_v3, %v9111_v4  ;;  %v9178_v8 = vor.u32 %v10517_v5, %v9175_v7  ;;  %v9095_v7 = vld [vmem:[#allocation11 + $0x8] sm:$0xf0] }
 0x109   : > { %1528 = vmatmul.bf16.vlgmr.msrb.gmra.mxu3 %v1193_v62  ;;  %v1105_v62 = vld [vmem:[%s13797_s20 + $0x58] sm:$0xff] }
 0x10a   : > { %v1203_v63 = vpack.c.bf16 %v1105_v62, %v1104_v61  ;;  %v10499_v61 = vld [vmem:[#allocation11 + $0x14] sm:$0xf]  ;;  %v9103_v62 = vld [vmem:[#allocation11 + $0x18] sm:$0xf0] }
 0x10b   : > { %2074 = vmatpush.bf16.msra.mxu2 %v9146_v14  ;;  %2025 = vmatpush.bf16.msra.mxu1 %v9206_v19  ;;  %v9173_v14 = vld [vmem:[#allocation11 + $0xa0] sm:$0xf]  ;;  %v13899_v19 = vperm.slane %v13894_v12, 0  ;;  %v9106_v0 = vor.u32 %v10499_v61, %v9103_v62 }
 0x10c   : > { %2123 = vmatpush.bf16.msra.mxu3 %v9210_v18  ;;  %v9174_v16 = vor.u32 %v10518_v15, %v9173_v14  ;;  %v10512_v18 = vld [vmem:[#allocation11 + $0x74] sm:$0xf0]  ;;  %v10498_v14 = vld [vmem:[#allocation11 + $0x4] sm:$0xf0] }
 0x10d   : > { %v9150_v20 = vor.u32 %v10512_v18, %v9149_v17  ;;  %v9167_v17 = vld [vmem:[#allocation11 + $0x98] sm:$0xf0] }
 0x10f   : > { %2075 = vmatpush.bf16.msra.mxu2 %v9138_v28  ;;  %2026 = vmatpush.bf16.msra.mxu1 %v9198_v34  ;;  %v1108_v34 = vld [vmem:[%s13797_s20 + $0x70] sm:$0xff] }
 0x110   : > { %2124 = vmatpush.bf16.msra.mxu3 %v9202_v33  ;;  %1975 = vmatpush.bf16.msrb.mxu0 %v9150_v20  ;;  %v10508_v33 = vld [vmem:[#allocation11 + $0x54] sm:$0xf0]  ;;  %v1207_v39 = vpack.c.bf16 %v1109_v35, %v1108_v34 }
 0x111   : > { %v9134_v36 = vor.u32 %v10508_v33, %v9133_v32 }
 0x113   : > { %2076 = vmatpush.bf16.msra.mxu2 %v9130_v41  ;;  %2027 = vmatpush.bf16.msra.mxu1 %v9190_v50  ;;  %v10506_v41 = vld [vmem:[#allocation11 + $0x44] sm:$0xf0] }
 0x114   : > { %2125 = vmatpush.bf16.msra.mxu3 %v9194_v49  ;;  %1976 = vmatpush.bf16.msrb.mxu0 %v9142_v30  ;;  %v9126_v46 = vor.u32 %v10506_v41, %v9125_v40  ;;  %v10504_v49 = vld [vmem:[#allocation11 + $0x34] sm:$0xf0]  ;;  %v9166_v30 = vor.u32 %v10516_v25, %v9165_v24  ;;  %v9159_v40 = vld [vmem:[#allocation11 + $0x88] sm:$0xf0]  ;;  %v9157_v41 = vld [vmem:[#allocation11 + $0x80] sm:$0xf] }
 0x115   : > { %v9118_v50 = vor.u32 %v10504_v49, %v9117_v48 }
 0x116   : > { %1435 = vmatmul.bf16.gmra.mxu1 %v1195_v10  ;;  %1484 = vmatmul.bf16.gmra.mxu2 %v13870_v45 }
 0x117   : > { %2077 = vmatpush.bf16.msra.mxu2 %v9122_v57  ;;  %2028 = vmatpush.bf16.msra.mxu1 %v9182_v2 }
 0x118   : > { %2126 = vmatpush.bf16.msra.mxu3 %v9186_v60  ;;  %1977 = vmatpush.bf16.msrb.mxu0 %v9134_v36  ;;  %v9110_v60 = vor.u32 %v10502_v56, %v9109_v55 }
 0x119   : > { %1533 = vmatmul.bf16.gmra.mxu3 %v1195_v10  ;;  %v1107_v10 = vld [vmem:[%s13797_s20 + $0x68] sm:$0xff]  ;;  %s16473_s20 = scalar_lea.vmem [#allocation29], %s13785_s18  ;;  %s8603_s18 = scalar_lea.sflag [#allocation31], %s13782_s12 }
 0x11a   : > { %v1205_v11 = vpack.c.bf16 %v1107_v10, %v1106_v9 }
 0x11b   : > { %2078 = vmatpush.bf16.msra.mxu2 %v9114_v6  ;;  %2029 = vmatpush.bf16.msra.mxu1 %v9174_v16  ;;  %v10497_v6 = vld [vmem:[#allocation11 + $0x4] sm:$0xf]  ;;  %v10515_v16 = vld [vmem:[#allocation11 + $0x94] sm:$0xf] }
 0x11c   : > { %2127 = vmatpush.bf16.msra.mxu3 %v9178_v8  ;;  %1978 = vmatpush.bf16.msrb.mxu0 %v9126_v46  ;;  %v9093_v8 = vld [vmem:[#allocation11] sm:$0xf]  ;;  %v9170_v20 = vor.u32 %v10515_v16, %v9167_v17 }
 0x11d   : > { %v9094_v18 = vor.u32 %v10498_v14, %v9093_v8 }
 0x11f   : > { %2079 = vmatpush.bf16.msra.mxu2 %v9106_v0  ;;  %2030 = vmatpush.bf16.msra.mxu1 %v9166_v30 }
 0x120   : > { %1979 = vmatpush.bf16.msrb.mxu0 %v9118_v50  ;;  %2128 = vmatpush.bf16.msra.mxu3 %v9170_v20 }
 0x124   : > { %1980 = vmatpush.bf16.msrb.mxu0 %v9110_v60 }
 0x126   : > { %1440 = vmatmul.bf16.gmra.mxu1 %v1197_v22  ;;  %1489 = vmatmul.bf16.gmra.mxu2 %v13840_v42 }
 0x129   : > { %1538 = vmatmul.bf16.gmra.mxu3 %v1197_v22 }
 0x136   : > { %1445 = vmatmul.bf16.gmra.mxu1 %v1199_v37  ;;  %1494 = vmatmul.bf16.gmra.mxu2 %v13860_v26 }
 0x139   : > { %1543 = vmatmul.bf16.gmra.mxu3 %v1199_v37 }
 0x146   : > { %1450 = vmatmul.bf16.gmra.mxu1 %v1201_v53  ;;  %1499 = vmatmul.bf16.gmra.mxu2 %v13842_v43 }
 0x149   : > { %1548 = vmatmul.bf16.gmra.mxu3 %v1201_v53 }
 0x156   : > { %1455 = vmatmul.bf16.gmra.mxu1 %v1203_v63  ;;  %1504 = vmatmul.bf16.gmra.mxu2 %v13862_v27 }
 0x159   : > { %1553 = vmatmul.bf16.gmra.mxu3 %v1203_v63  ;;  %v9101_v63 = vld [vmem:[#allocation11 + $0x10] sm:$0xf] }
 0x15a   : > { %v9102_v3 = vor.u32 %v10500_v1, %v9101_v63 }
 0x15c   : > { %1981 = vmatpush.bf16.msrb.mxu0 %v9102_v3 }
 0x160   : > { %1982 = vmatpush.bf16.msrb.mxu0 %v9094_v18 }
 0x163   : > { %v13896_v13 = vpop.f32.mrf.mxu1 }
 0x165   : > { %v1382_v52 = vpop.f32.mrf.mxu0 }
 0x166   : > { %1460 = vmatmul.bf16.gmra.mxu1 %v1205_v11  ;;  %1509 = vmatmul.bf16.gmra.mxu2 %v13844_v47  ;;  %v1383_v2 = vadd.f32 %v1382_v52, %v13899_v19 }
 0x169   : > { %1558 = vmatmul.bf16.gmra.mxu3 %v1205_v11  ;;  %v1402_v21 = vpop.f32.mrf.mxu2  ;;  %v9098_v11 = vor.u32 %v10497_v6, %v9095_v7 }
 0x16a   : > { %v13903_v22 = vadd.f32 %v1402_v21, %v13899_v19 }
 0x16b   : > { %v13908_v29 = vpop.f32.mrf.mxu1  ;;  %2080 = vmatpush.bf16.msra.mxu2 %v9098_v11 }
 0x16c   : > { %v1412_v23 = vpop.f32.mrf.mxu3 }
 0x16d   : > { %v13906_v28 = vadd.f32 %v1412_v23, %v13899_v19  ;;  %v1384_v10 = vpop.f32.mrf.mxu0  ;;  %v13936_v23 = vperm.slane %v13894_v12, 1  ;;  %v10514_v12 = vld [vmem:[#allocation11 + $0x84] sm:$0xf0] }
 0x16e   : > { %v1385_v34 = vadd.f32 %v1384_v10, %v13899_v19 }
 0x171   : > { %v13912_v37 = vpop.f32.mrf.mxu2 }
 0x173   : > { %v13916_v44 = vpop.f32.mrf.mxu1 }
 0x174   : > { %v13914_v38 = vpop.f32.mrf.mxu3 }
 0x175   : > { %v1387_v52 = vpop.f32.mrf.mxu0 }
 0x176   : > { %1465 = vmatmul.bf16.gmra.mxu1 %v1207_v39  ;;  %1514 = vmatmul.bf16.gmra.mxu2 %v13864_v31  ;;  %v1388_v61 = vadd.f32 %v1387_v52, %v13899_v19  ;;  %v1393_v52 = vadd.f32 %v13896_v13, %v13899_v19 }
 0x179   : > { %1563 = vmatmul.bf16.gmra.mxu3 %v1207_v39  ;;  %v1407_v51 = vpop.f32.mrf.mxu2  ;;  %v10513_v39 = vld [vmem:[#allocation11 + $0x84] sm:$0xf] }
 0x17a   : > { %v13920_v53 = vadd.f32 %v1407_v51, %v13899_v19  ;;  %v9162_v48 = vor.u32 %v10513_v39, %v9159_v40  ;;  %v9158_v51 = vor.u32 %v10514_v12, %v9157_v41 }
 0x17b   : > { %v13925_v58 = vpop.f32.mrf.mxu1 }
 0x17c   : > { %v1417_v54 = vpop.f32.mrf.mxu3  ;;  %2129 = vmatpush.bf16.msra.mxu3 %v9162_v48  ;;  %2031 = vmatpush.bf16.msra.mxu1 %v9158_v51 }
 0x17d   : > { %v13923_v57 = vadd.f32 %v1417_v54, %v13899_v19  ;;  %v1389_v10 = vpop.f32.mrf.mxu0 }
 0x17e   : > { %v1390_v20 = vadd.f32 %v1389_v10, %v13899_v19 }
 0x181   : > { %v13928_v4 = vpop.f32.mrf.mxu2 }
 0x183   : > { %v1431_v9 = vpop.f32.mrf.mxu1 }
 0x184   : > { %v13930_v5 = vpop.f32.mrf.mxu3  ;;  %v13932_v15 = vadd.f32 %v1431_v9, %v1383_v2 }
 0x186   : > { %v1569_v21 = vsub.f32 0.0, %v13932_v15 }
 0x188   : > { %v1601_v32 = vmul.f32 1.442695, %v1569_v21 }
 0x189   : > { %v1480_v33 = vpop.f32.mrf.mxu2 }
 0x18a   : > { %v1481_v35 = vadd.f32 %v1480_v33, %v13936_v23  ;;  %11031 = vpow2.f32 %v1601_v32 }
 0x18b   : > { %v1433_v46 = vpop.f32.mrf.mxu1 }
 0x18c   : > { %v1529_v36 = vpop.f32.mrf.mxu3  ;;  %v1434_v50 = vadd.f32 %v1433_v46, %v1385_v34 }
 0x18d   : > { %v13940_v49 = vadd.f32 %v1529_v36, %v1481_v35 }
 0x18e   : > { %v1571_v55 = vsub.f32 0.0, %v1434_v50 }
 0x18f   : > { %v1570_v54 = vsub.f32 0.0, %v13940_v49 }
 0x190   : > { %v1605_v60 = vmul.f32 1.442695, %v1571_v55  ;;  %v11032_v63 = vpop.eup %11031 }
 0x191   : > { %v1603_v56 = vmul.f32 1.442695, %v1570_v54  ;;  %v1482_v62 = vpop.f32.mrf.mxu2  ;;  %v1665_v7 = vadd.f32 1.0, %v11032_v63 }
 0x192   : > { %v1483_v0 = vadd.f32 %v1482_v62, %v13936_v23 }
 0x193   : > { %11033 = vpow2.f32 %v1603_v56  ;;  %v1436_v2 = vpop.f32.mrf.mxu1 }
 0x194   : > { %v1531_v1 = vpop.f32.mrf.mxu3  ;;  %11035 = vpow2.f32 %v1605_v60  ;;  %v13945_v6 = vadd.f32 %v1436_v2, %v1388_v61 }
 0x195   : > { %v1532_v3 = vadd.f32 %v1531_v1, %v1483_v0  ;;  %11037 = vrcp.f32 %v1665_v7 }
 0x196   : > { %v1573_v9 = vsub.f32 0.0, %v13945_v6 }
 0x197   : > { %v1572_v8 = vsub.f32 0.0, %v1532_v3 }
 0x198   : > { %v1609_v14 = vmul.f32 1.442695, %v1573_v9 }
 0x199   : > { %v1607_v11 = vmul.f32 1.442695, %v1572_v8  ;;  %v11034_v16 = vpop.eup %11033  ;;  %v1485_v17 = vpop.f32.mrf.mxu2 }
 0x19a   : > { %v11036_v18 = vpop.eup %11035  ;;  %v1486_v21 = vadd.f32 %v1485_v17, %v13936_v23  ;;  %v1666_v34 = vadd.f32 1.0, %v11034_v16 }
 0x19b   : > { %11039 = vpow2.f32 %v1607_v11  ;;  %v1667_v25 = vadd.f32 1.0, %v11036_v18  ;;  %v1438_v30 = vpop.f32.mrf.mxu1  ;;  %v11038_v39 = vpop.eup %11037 }
 0x19c   : > { %v1534_v24 = vpop.f32.mrf.mxu3  ;;  %11041 = vpow2.f32 %v1609_v14  ;;  %v13952_v33 = vadd.f32 %v1438_v30, %v1390_v20  ;;  %v1729_v60 = vmul.f32 %v11038_v39, %v13932_v15 }
 0x19d   : > { %v13950_v32 = vadd.f32 %v1534_v24, %v1486_v21  ;;  %11043 = vrcp.f32 %v1667_v25  ;;  %v1395_v21 = vadd.f32 %v13908_v29, %v13899_v19 }
 0x19e   : > { %v1575_v36 = vsub.f32 0.0, %v13952_v33  ;;  %11045 = vrcp.f32 %v1666_v34 }
 0x19f   : > { %v1574_v35 = vsub.f32 0.0, %v13950_v32 }
 0x1a0   : > { %v1613_v46 = vmul.f32 1.442695, %v1575_v36 }
 0x1a1   : > { %v11040_v40 = vpop.eup %11039  ;;  %v1611_v41 = vmul.f32 1.442695, %v1574_v35  ;;  %v1487_v12 = vpop.f32.mrf.mxu2 }
 0x1a2   : > { %v1668_v48 = vadd.f32 1.0, %v11040_v40  ;;  %v11042_v51 = vpop.eup %11041  ;;  %v1488_v54 = vadd.f32 %v1487_v12, %v13936_v23 }
 0x1a3   : > { %11047 = vpow2.f32 %v1611_v41  ;;  %v11044_v56 = vpop.eup %11043  ;;  %v1441_v61 = vpop.f32.mrf.mxu1  ;;  %v1669_v1 = vadd.f32 1.0, %v11042_v51  ;;  %v1398_v51 = vadd.f32 %v13916_v44, %v13899_v19 }
 0x1a4   : > { %v1536_v55 = vpop.f32.mrf.mxu3  ;;  %11049 = vrcp.f32 %v1668_v48  ;;  %v1731_v62 = vmul.f32 %v11044_v56, %v1434_v50  ;;  %v13962_v0 = vadd.f32 %v1441_v61, %v1393_v52  ;;  %v11046_v8 = vpop.eup %11045 }
 0x1a5   : > { %11051 = vpow2.f32 %v1613_v46  ;;  %v13960_v63 = vadd.f32 %v1536_v55, %v1488_v54  ;;  %v1730_v16 = vmul.f32 %v11046_v8, %v13940_v49 }
 0x1a6   : > { %v1577_v13 = vsub.f32 0.0, %v13962_v0  ;;  %v1794_v7 = vpack.c.bf16 %v1731_v62, %v1729_v60  ;;  %11053 = vrcp.f32 %v1669_v1 }
 0x1a7   : > { %v1576_v2 = vsub.f32 0.0, %v13960_v63 }
 0x1a8   : > { %v1617_v11 = vmul.f32 1.442695, %v1577_v13  ;;  %1983 = vmatmul.bf16.vlgmr.msrb.gmra.mxu0 %v1794_v7  ;;  %2081 = vmatmul.bf16.vlgmr.msra.gmra.mxu2 %v1794_v7 }
 0x1a9   : > { %v11048_v9 = vpop.eup %11047  ;;  %v1615_v10 = vmul.f32 1.442695, %v1576_v2  ;;  %v1490_v50 = vpop.f32.mrf.mxu2 }
 0x1aa   : > { %v11050_v15 = vpop.eup %11049  ;;  %v1491_v18 = vadd.f32 %v1490_v50, %v13936_v23  ;;  %v1670_v35 = vadd.f32 1.0, %v11048_v9 }
 0x1ab   : > { %v11052_v14 = vpop.eup %11051  ;;  %v1732_v17 = vmul.f32 %v11050_v15, %v1532_v3  ;;  %11055 = vpow2.f32 %v1615_v10  ;;  %v1443_v25 = vpop.f32.mrf.mxu1 }
 0x1ac   : > { %v1539_v20 = vpop.f32.mrf.mxu3  ;;  %v1671_v24 = vadd.f32 1.0, %v11052_v14  ;;  %11057 = vpow2.f32 %v1617_v11  ;;  %v13972_v36 = vadd.f32 %v1443_v25, %v1395_v21  ;;  %v11054_v3 = vpop.eup %11053  ;;  %v1400_v14 = vadd.f32 %v13925_v58, %v13899_v19 }
 0x1ad   : > { %v1795_v30 = vpack.c.bf16 %v1732_v17, %v1730_v16  ;;  %v13970_v34 = vadd.f32 %v1539_v20, %v1491_v18  ;;  %v1733_v56 = vmul.f32 %v11054_v3, %v13945_v6 }
 0x1ae   : > { %11059 = vrcp.f32 %v1671_v24  ;;  %v1579_v39 = vsub.f32 0.0, %v13972_v36 }
 0x1af   : > { %v1578_v49 = vsub.f32 0.0, %v13970_v34  ;;  %2032 = vmatmul.bf16.vlgmr.msra.gmra.mxu1 %v1795_v30  ;;  %2130 = vmatmul.bf16.vlgmr.msra.gmra.mxu3 %v1795_v30  ;;  %11061 = vrcp.f32 %v1670_v35 }
 0x1b0   : > { %v1621_v46 = vmul.f32 1.442695, %v1579_v39 }
 0x1b1   : > { %v11056_v40 = vpop.eup %11055  ;;  %v1619_v41 = vmul.f32 1.442695, %v1578_v49  ;;  %v1492_v48 = vpop.f32.mrf.mxu2 }
 0x1b2   : > { %v1672_v29 = vadd.f32 1.0, %v11056_v40  ;;  %v11058_v12 = vpop.eup %11057  ;;  %v1493_v52 = vadd.f32 %v1492_v48, %v13936_v23 }
 0x1b3   : > { %11063 = vpow2.f32 %v1619_v41  ;;  %v1446_v60 = vpop.f32.mrf.mxu1  ;;  %v1673_v2 = vadd.f32 1.0, %v11058_v12 }
 0x1b4   : > { %v1541_v54 = vpop.f32.mrf.mxu3  ;;  %v11060_v55 = vpop.eup %11059  ;;  %11065 = vrcp.f32 %v1672_v29  ;;  %v13982_v62 = vadd.f32 %v1446_v60, %v1398_v51 }
 0x1b5   : > { %11067 = vpow2.f32 %v1621_v46  ;;  %v13980_v61 = vadd.f32 %v1541_v54, %v1493_v52  ;;  %v1735_v1 = vmul.f32 %v11060_v55, %v13952_v33  ;;  %v11062_v8 = vpop.eup %11061 }
 0x1b6   : > { %v1581_v44 = vsub.f32 0.0, %v13982_v62  ;;  %11069 = vrcp.f32 %v1673_v2  ;;  %v1734_v18 = vmul.f32 %v11062_v8, %v13950_v32 }
 0x1b7   : > { %v1580_v13 = vsub.f32 0.0, %v13980_v61  ;;  %v1796_v7 = vpack.c.bf16 %v1735_v1, %v1733_v56 }
 0x1b8   : > { %v1625_v11 = vmul.f32 1.442695, %v1581_v44 }
 0x1b9   : > { %v11064_v9 = vpop.eup %11063  ;;  %v1623_v10 = vmul.f32 1.442695, %v1580_v13  ;;  %1988 = vmatmul.bf16.gmra.mxu0 %v1796_v7  ;;  %2086 = vmatmul.bf16.gmra.mxu2 %v1796_v7  ;;  %v1495_v15 = vpop.f32.mrf.mxu2 }
 0x1ba   : > { %v11066_v6 = vpop.eup %11065  ;;  %v1496_v33 = vadd.f32 %v1495_v15, %v13936_v23  ;;  %v1674_v30 = vadd.f32 1.0, %v11064_v9 }
 0x1bb   : > { %v11068_v50 = vpop.eup %11067  ;;  %11071 = vpow2.f32 %v1623_v10  ;;  %v1736_v17 = vmul.f32 %v11066_v6, %v13960_v63  ;;  %v1448_v21 = vpop.f32.mrf.mxu1 }
 0x1bc   : > { %v1544_v16 = vpop.f32.mrf.mxu3  ;;  %v1675_v20 = vadd.f32 1.0, %v11068_v50  ;;  %11073 = vpow2.f32 %v1625_v11  ;;  %v13994_v25 = vadd.f32 %v1448_v21, %v1400_v14  ;;  %v11070_v3 = vpop.eup %11069  ;;  %v10543_v50 = vld [vmem:[#allocation11 + $0x174] sm:$0xf]  ;;  %v9280_v14 = vld [vmem:[#allocation11 + $0x178] sm:$0xf0] }
 0x1bd   : > { %v13992_v24 = vadd.f32 %v1544_v16, %v1496_v33  ;;  %v1797_v35 = vpack.c.bf16 %v1736_v17, %v1734_v18  ;;  %v1737_v51 = vmul.f32 %v11070_v3, %v13962_v0  ;;  %v10544_v3 = vld [vmem:[#allocation11 + $0x174] sm:$0xf0] }
 0x1be   : > { %11075 = vrcp.f32 %v1675_v20  ;;  %v1583_v49 = vsub.f32 0.0, %v13994_v25  ;;  %v9283_v20 = vor.u32 %v10543_v50, %v9280_v14 }
 0x1bf   : > { %v1582_v58 = vsub.f32 0.0, %v13992_v24  ;;  %2037 = vmatmul.bf16.gmra.mxu1 %v1797_v35  ;;  %2135 = vmatmul.bf16.gmra.mxu3 %v1797_v35  ;;  %11077 = vrcp.f32 %v1674_v30  ;;  %v9344_v35 = vld [vmem:[#allocation11 + $0x1f8] sm:$0xf0] }
 0x1c0   : > { %v1629_v32 = vmul.f32 1.442695, %v1583_v49  ;;  %2677 = vmatpush.bf16.msrb.mxu2 %v9283_v20  ;;  %v9272_v20 = vld [vmem:[#allocation11 + $0x168] sm:$0xf0] }
 0x1c1   : > { %v11072_v63 = vpop.eup %11071  ;;  %v1627_v39 = vmul.f32 1.442695, %v1582_v58  ;;  %v1497_v41 = vpop.f32.mrf.mxu2 }
 0x1c2   : > { %v1676_v40 = vadd.f32 1.0, %v11072_v63  ;;  %v11074_v29 = vpop.eup %11073  ;;  %v1498_v46 = vadd.f32 %v1497_v41, %v13936_v23  ;;  %v9342_v63 = vld [vmem:[#allocation11 + $0x1f0] sm:$0xf] }
 0x1c3   : > { %11079 = vpow2.f32 %v1627_v39  ;;  %v1451_v52 = vpop.f32.mrf.mxu1  ;;  %v1677_v60 = vadd.f32 1.0, %v11074_v29  ;;  %v10560_v39 = vld [vmem:[#allocation11 + $0x1f4] sm:$0xf0] }
 0x1c4   : > { %v1546_v48 = vpop.f32.mrf.mxu3  ;;  %v11076_v12 = vpop.eup %11075  ;;  %11081 = vrcp.f32 %v1676_v40  ;;  %v14003_v55 = vadd.f32 %v1451_v52, %v13903_v22  ;;  %v1405_v22 = vadd.f32 %v13912_v37, %v13899_v19  ;;  %v10559_v37 = vld [vmem:[#allocation11 + $0x1f4] sm:$0xf]  ;;  %v9343_v41 = vor.u32 %v10560_v39, %v9342_v63  ;;  %v9336_v39 = vld [vmem:[#allocation11 + $0x1e8] sm:$0xf0] }
 0x1c5   : > { %11083 = vpow2.f32 %v1629_v32  ;;  %v14000_v54 = vadd.f32 %v1546_v48, %v1498_v46  ;;  %v1739_v56 = vmul.f32 %v11076_v12, %v13972_v36  ;;  %v11078_v44 = vpop.eup %11077  ;;  %v9347_v49 = vor.u32 %v10559_v37, %v9344_v35 }
 0x1c6   : > { %v1585_v2 = vsub.f32 0.0, %v14003_v55  ;;  %11085 = vrcp.f32 %v1677_v60  ;;  %v1738_v33 = vmul.f32 %v11078_v44, %v13970_v34  ;;  %2628 = vmatpush.bf16.msrb.mxu1 %v9343_v41  ;;  %v9334_v41 = vld [vmem:[#allocation11 + $0x1e0] sm:$0xf] }
 0x1c7   : > { %v1584_v1 = vsub.f32 0.0, %v14000_v54  ;;  %v1798_v13 = vpack.c.bf16 %v1739_v56, %v1737_v51  ;;  %2726 = vmatpush.bf16.msrb.mxu3 %v9347_v49 }
 0x1c8   : > { %v1633_v0 = vmul.f32 1.442695, %v1585_v2 }
 0x1c9   : > { %v11080_v7 = vpop.eup %11079  ;;  %v1631_v8 = vmul.f32 1.442695, %v1584_v1  ;;  %1993 = vmatmul.bf16.gmra.mxu0 %v1798_v13  ;;  %2091 = vmatmul.bf16.gmra.mxu2 %v1798_v13  ;;  %v1500_v10 = vpop.f32.mrf.mxu2 }
 0x1ca   : > { %v11082_v9 = vpop.eup %11081  ;;  %v1501_v6 = vadd.f32 %v1500_v10, %v13936_v23  ;;  %v1678_v16 = vadd.f32 1.0, %v11080_v7 }
 0x1cb   : > { %v11084_v11 = vpop.eup %11083  ;;  %v1740_v36 = vmul.f32 %v11082_v9, %v13980_v61  ;;  %11087 = vpow2.f32 %v1631_v8  ;;  %v1453_v18 = vpop.f32.mrf.mxu1  ;;  %v9278_v61 = vld [vmem:[#allocation11 + $0x170] sm:$0xf] }
 0x1cc   : > { %v1549_v15 = vpop.f32.mrf.mxu3  ;;  %v1679_v17 = vadd.f32 1.0, %v11084_v11  ;;  %11089 = vpow2.f32 %v1633_v0  ;;  %v14015_v30 = vadd.f32 %v1453_v18, %v1405_v22  ;;  %v9279_v40 = vor.u32 %v10544_v3, %v9278_v61  ;;  %v11086_v29 = vpop.eup %11085  ;;  %v10541_v18 = vld [vmem:[#allocation11 + $0x164] sm:$0xf] }
 0x1cd   : > { %v14013_v21 = vadd.f32 %v1549_v15, %v1501_v6  ;;  %v1799_v58 = vpack.c.bf16 %v1740_v36, %v1738_v33  ;;  %v1741_v13 = vmul.f32 %v11086_v29, %v13982_v62  ;;  %v9275_v49 = vor.u32 %v10541_v18, %v9272_v20  ;;  %v10558_v29 = vld [vmem:[#allocation11 + $0x1e4] sm:$0xf0] }
 0x1ce   : > { %11091 = vrcp.f32 %v1679_v17  ;;  %v1587_v32 = vsub.f32 0.0, %v14015_v30  ;;  %2579 = vmatpush.bf16.msra.mxu0 %v9279_v40  ;;  %v10542_v40 = vld [vmem:[#allocation11 + $0x164] sm:$0xf0] }
 0x1cf   : > { %v1586_v34 = vsub.f32 0.0, %v14013_v21  ;;  %2042 = vmatmul.bf16.gmra.mxu1 %v1799_v58  ;;  %2140 = vmatmul.bf16.gmra.mxu3 %v1799_v58  ;;  %11093 = vrcp.f32 %v1678_v16 }
 0x1d0   : > { %v1637_v12 = vmul.f32 1.442695, %v1587_v32  ;;  %2678 = vmatpush.bf16.msrb.mxu2 %v9275_v49 }
 0x1d1   : > { %v11088_v46 = vpop.eup %11087  ;;  %v1635_v48 = vmul.f32 1.442695, %v1586_v34  ;;  %v1502_v52 = vpop.f32.mrf.mxu2 }
 0x1d2   : > { %v1680_v51 = vadd.f32 1.0, %v11088_v46  ;;  %v11090_v56 = vpop.eup %11089  ;;  %v1503_v60 = vadd.f32 %v1502_v52, %v13936_v23 }
 0x1d3   : > { %11095 = vpow2.f32 %v1635_v48  ;;  %v1456_v44 = vpop.f32.mrf.mxu1  ;;  %v1681_v9 = vadd.f32 1.0, %v11090_v56 }
 0x1d4   : > { %v1551_v1 = vpop.f32.mrf.mxu3  ;;  %v11092_v2 = vpop.eup %11091  ;;  %11097 = vrcp.f32 %v1680_v51  ;;  %v14024_v8 = vadd.f32 %v1456_v44, %v13920_v53  ;;  %v1410_v53 = vadd.f32 %v13928_v4, %v13899_v19  ;;  %v10557_v4 = vld [vmem:[#allocation11 + $0x1e4] sm:$0xf] }
 0x1d5   : > { %11099 = vpow2.f32 %v1637_v12  ;;  %v14021_v7 = vadd.f32 %v1551_v1, %v1503_v60  ;;  %v1743_v0 = vmul.f32 %v11092_v2, %v13994_v25  ;;  %v11094_v36 = vpop.eup %11093  ;;  %v9339_v32 = vor.u32 %v10557_v4, %v9336_v39 }
 0x1d6   : > { %v1589_v11 = vsub.f32 0.0, %v14024_v8  ;;  %11101 = vrcp.f32 %v1681_v9  ;;  %v1742_v37 = vmul.f32 %v11094_v36, %v13992_v24  ;;  %v9335_v12 = vor.u32 %v10558_v29, %v9334_v41 }
 0x1d7   : > { %v1588_v10 = vsub.f32 0.0, %v14021_v7  ;;  %v1800_v22 = vpack.c.bf16 %v1743_v0, %v1741_v13  ;;  %2727 = vmatpush.bf16.msrb.mxu3 %v9339_v32 }
 0x1d8   : > { %v1641_v62 = vmul.f32 1.442695, %v1589_v11  ;;  %2629 = vmatpush.bf16.msrb.mxu1 %v9335_v12 }
 0x1d9   : > { %v11096_v6 = vpop.eup %11095  ;;  %v1639_v15 = vmul.f32 1.442695, %v1588_v10  ;;  %1998 = vmatmul.bf16.gmra.mxu0 %v1800_v22  ;;  %2096 = vmatmul.bf16.gmra.mxu2 %v1800_v22  ;;  %v1505_v14 = vpop.f32.mrf.mxu2 }
 0x1da   : > { %v11098_v50 = vpop.eup %11097  ;;  %v1506_v16 = vadd.f32 %v1505_v14, %v13936_v23  ;;  %v1682_v35 = vadd.f32 1.0, %v11096_v6 }
 0x1db   : > { %v11100_v33 = vpop.eup %11099  ;;  %v1744_v25 = vmul.f32 %v11098_v50, %v14000_v54  ;;  %11103 = vpow2.f32 %v1639_v15  ;;  %v1458_v58 = vpop.f32.mrf.mxu1  ;;  %v9270_v54 = vld [vmem:[#allocation11 + $0x160] sm:$0xf] }
 0x1dc   : > { %v1554_v17 = vpop.f32.mrf.mxu3  ;;  %v1683_v61 = vadd.f32 1.0, %v11100_v33  ;;  %11105 = vpow2.f32 %v1641_v62  ;;  %v14036_v63 = vadd.f32 %v1458_v58, %v1410_v53  ;;  %v9271_v48 = vor.u32 %v10542_v40, %v9270_v54  ;;  %v11102_v51 = vpop.eup %11101  ;;  %v9328_v40 = vld [vmem:[#allocation11 + $0x1d8] sm:$0xf0] }
 0x1dd   : > { %v14034_v3 = vadd.f32 %v1554_v17, %v1506_v16  ;;  %v1801_v34 = vpack.c.bf16 %v1744_v25, %v1742_v37  ;;  %v1745_v10 = vmul.f32 %v11102_v51, %v14003_v55 }
 0x1de   : > { %11107 = vrcp.f32 %v1683_v61  ;;  %v1591_v46 = vsub.f32 0.0, %v14036_v63  ;;  %2580 = vmatpush.bf16.msra.mxu0 %v9271_v48  ;;  %v9264_v61 = vld [vmem:[#allocation11 + $0x158] sm:$0xf0]  ;;  %v10556_v48 = vld [vmem:[#allocation11 + $0x1d4] sm:$0xf0] }
 0x1df   : > { %v1590_v24 = vsub.f32 0.0, %v14034_v3  ;;  %2047 = vmatmul.bf16.gmra.mxu1 %v1801_v34  ;;  %2145 = vmatmul.bf16.gmra.mxu3 %v1801_v34  ;;  %11109 = vrcp.f32 %v1682_v35  ;;  %v10539_v35 = vld [vmem:[#allocation11 + $0x154] sm:$0xf] }
 0x1e0   : > { %v1645_v60 = vmul.f32 1.442695, %v1591_v46  ;;  %v9267_v54 = vor.u32 %v10539_v35, %v9264_v61  ;;  %v9326_v46 = vld [vmem:[#allocation11 + $0x1d0] sm:$0xf] }
 0x1e1   : > { %v11104_v52 = vpop.eup %11103  ;;  %v1643_v56 = vmul.f32 1.442695, %v1590_v24  ;;  %v1507_v2 = vpop.f32.mrf.mxu2  ;;  %v10540_v24 = vld [vmem:[#allocation11 + $0x154] sm:$0xf0] }
 0x1e2   : > { %v1684_v1 = vadd.f32 1.0, %v11104_v52  ;;  %v11106_v13 = vpop.eup %11105  ;;  %v1508_v44 = vadd.f32 %v1507_v2, %v13936_v23  ;;  %2679 = vmatpush.bf16.msrb.mxu2 %v9267_v54  ;;  %v9327_v52 = vor.u32 %v10556_v48, %v9326_v46 }
 0x1e3   : > { %11111 = vpow2.f32 %v1643_v56  ;;  %v1461_v11 = vpop.f32.mrf.mxu1  ;;  %v1685_v15 = vadd.f32 1.0, %v11106_v13 }
 0x1e4   : > { %v1556_v0 = vpop.f32.mrf.mxu3  ;;  %v11108_v9 = vpop.eup %11107  ;;  %11113 = vrcp.f32 %v1684_v1  ;;  %v14045_v36 = vadd.f32 %v1461_v11, %v13906_v28  ;;  %v1415_v28 = vadd.f32 %v13914_v38, %v13899_v19  ;;  %v10555_v38 = vld [vmem:[#allocation11 + $0x1d4] sm:$0xf]  ;;  %2630 = vmatpush.bf16.msrb.mxu1 %v9327_v52 }
 0x1e5   : > { %11115 = vpow2.f32 %v1645_v60  ;;  %v14042_v22 = vadd.f32 %v1556_v0, %v1508_v44  ;;  %v1747_v6 = vmul.f32 %v11108_v9, %v14015_v30  ;;  %v11110_v33 = vpop.eup %11109  ;;  %v9331_v29 = vor.u32 %v10555_v38, %v9328_v40 }
 0x1e6   : > { %v1593_v50 = vsub.f32 0.0, %v14045_v36  ;;  %11117 = vrcp.f32 %v1685_v15  ;;  %v1746_v58 = vmul.f32 %v11110_v33, %v14013_v21 }
 0x1e7   : > { %v1592_v62 = vsub.f32 0.0, %v14042_v22  ;;  %v1802_v14 = vpack.c.bf16 %v1747_v6, %v1745_v10  ;;  %2728 = vmatpush.bf16.msrb.mxu3 %v9331_v29  ;;  %v10554_v29 = vld [vmem:[#allocation11 + $0x1c4] sm:$0xf0] }
 0x1e8   : > { %v1649_v55 = vmul.f32 1.442695, %v1593_v50 }
 0x1e9   : > { %v11112_v53 = vpop.eup %11111  ;;  %v1647_v25 = vmul.f32 1.442695, %v1592_v62  ;;  %2003 = vmatmul.bf16.gmra.mxu0 %v1802_v14  ;;  %2101 = vmatmul.bf16.gmra.mxu2 %v1802_v14  ;;  %v1510_v17 = vpop.f32.mrf.mxu2 }
 0x1ea   : > { %v11114_v16 = vpop.eup %11113  ;;  %v1511_v20 = vadd.f32 %v1510_v17, %v13936_v23  ;;  %v1686_v49 = vadd.f32 1.0, %v11112_v53 }
 0x1eb   : > { %v11116_v18 = vpop.eup %11115  ;;  %v1748_v30 = vmul.f32 %v11114_v16, %v14021_v7  ;;  %11119 = vpow2.f32 %v1647_v25  ;;  %v1463_v39 = vpop.f32.mrf.mxu1  ;;  %v9262_v7 = vld [vmem:[#allocation11 + $0x150] sm:$0xf] }
 0x1ec   : > { %v1559_v37 = vpop.f32.mrf.mxu3  ;;  %v1687_v4 = vadd.f32 1.0, %v11116_v18  ;;  %11121 = vpow2.f32 %v1649_v55  ;;  %v14057_v32 = vadd.f32 %v1463_v39, %v1415_v28  ;;  %v9263_v51 = vor.u32 %v10540_v24, %v9262_v7  ;;  %v11118_v56 = vpop.eup %11117  ;;  %v9320_v7 = vld [vmem:[#allocation11 + $0x1c8] sm:$0xf0] }
 0x1ed   : > { %v14055_v34 = vadd.f32 %v1559_v37, %v1511_v20  ;;  %v1803_v41 = vpack.c.bf16 %v1748_v30, %v1746_v58  ;;  %v1749_v6 = vmul.f32 %v11118_v56, %v14024_v8  ;;  %v1420_v30 = vadd.f32 %v13930_v5, %v13899_v19  ;;  %v10537_v58 = vld [vmem:[#allocation11 + $0x144] sm:$0xf]  ;;  %v9254_v19 = vld [vmem:[#allocation11 + $0x140] sm:$0xf] }
 0x1ee   : > { %11123 = vrcp.f32 %v1687_v4  ;;  %v1595_v12 = vsub.f32 0.0, %v14057_v32  ;;  %2581 = vmatpush.bf16.msra.mxu0 %v9263_v51  ;;  %v10553_v4 = vld [vmem:[#allocation11 + $0x1c4] sm:$0xf]  ;;  %v10551_v51 = vld [vmem:[#allocation11 + $0x1b4] sm:$0xf] }
 0x1ef   : > { %v1594_v21 = vsub.f32 0.0, %v14055_v34  ;;  %2052 = vmatmul.bf16.gmra.mxu1 %v1803_v41  ;;  %2150 = vmatmul.bf16.gmra.mxu3 %v1803_v41  ;;  %11125 = vrcp.f32 %v1686_v49  ;;  %v9256_v49 = vld [vmem:[#allocation11 + $0x148] sm:$0xf0]  ;;  %v9318_v41 = vld [vmem:[#allocation11 + $0x1c0] sm:$0xf]  ;;  %v9323_v46 = vor.u32 %v10553_v4, %v9320_v7 }
 0x1f0   : > { %v1653_v2 = vmul.f32 1.442695, %v1595_v12  ;;  %v9259_v40 = vor.u32 %v10537_v58, %v9256_v49  ;;  %v9248_v12 = vld [vmem:[#allocation11 + $0x138] sm:$0xf0]  ;;  %v10549_v49 = vld [vmem:[#allocation11 + $0x1a4] sm:$0xf] }
 0x1f1   : > { %v11120_v60 = vpop.eup %11119  ;;  %v1651_v1 = vmul.f32 1.442695, %v1594_v21  ;;  %v1512_v44 = vpop.f32.mrf.mxu2  ;;  %v10535_v21 = vld [vmem:[#allocation11 + $0x134] sm:$0xf]  ;;  %2729 = vmatpush.bf16.msrb.mxu3 %v9323_v46  ;;  %v9304_v4 = vld [vmem:[#allocation11 + $0x1a8] sm:$0xf0] }
 0x1f2   : > { %v1688_v13 = vadd.f32 1.0, %v11120_v60  ;;  %v11122_v0 = vpop.eup %11121  ;;  %v1513_v9 = vadd.f32 %v1512_v44, %v13936_v23  ;;  %2680 = vmatpush.bf16.msrb.mxu2 %v9259_v40  ;;  %v9319_v60 = vor.u32 %v10554_v29, %v9318_v41  ;;  %v10536_v44 = vld [vmem:[#allocation11 + $0x134] sm:$0xf0]  ;;  %v9302_v40 = vld [vmem:[#allocation11 + $0x1a0] sm:$0xf] }
 0x1f3   : > { %11127 = vpow2.f32 %v1651_v1  ;;  %v1466_v15 = vpop.f32.mrf.mxu1  ;;  %v1689_v16 = vadd.f32 1.0, %v11122_v0  ;;  %v9251_v1 = vor.u32 %v10535_v21, %v9248_v12  ;;  %v9310_v0 = vld [vmem:[#allocation11 + $0x1b0] sm:$0xf] }
 0x1f4   : > { %v1561_v10 = vpop.f32.mrf.mxu3  ;;  %v11124_v11 = vpop.eup %11123  ;;  %11129 = vrcp.f32 %v1688_v13  ;;  %v14066_v50 = vadd.f32 %v1466_v15, %v13923_v57  ;;  %v9246_v13 = vld [vmem:[#allocation11 + $0x130] sm:$0xf]  ;;  %2631 = vmatpush.bf16.msrb.mxu1 %v9319_v60 }
 0x1f5   : > { %11131 = vpow2.f32 %v1653_v2  ;;  %v14063_v62 = vadd.f32 %v1561_v10, %v1513_v9  ;;  %v1751_v14 = vmul.f32 %v11124_v11, %v14036_v63  ;;  %v11126_v55 = vpop.eup %11125  ;;  %v9312_v2 = vld [vmem:[#allocation11 + $0x1b8] sm:$0xf0]  ;;  %v10552_v9 = vld [vmem:[#allocation11 + $0x1b4] sm:$0xf0] }
 0x1f6   : > { %v1597_v53 = vsub.f32 0.0, %v14066_v50  ;;  %v1750_v63 = vmul.f32 %v11126_v55, %v14034_v3  ;;  %v9315_v15 = vor.u32 %v10551_v51, %v9312_v2  ;;  %2681 = vmatpush.bf16.msrb.mxu2 %v9251_v1 }
 0x1f7   : > { %v1596_v33 = vsub.f32 0.0, %v14063_v62  ;;  %v1804_v25 = vpack.c.bf16 %v1751_v14, %v1749_v6  ;;  %v9247_v14 = vor.u32 %v10536_v44, %v9246_v13 }
 0x1f8   : > { %v1657_v8 = vmul.f32 1.442695, %v1597_v53  ;;  %2730 = vmatpush.bf16.msrb.mxu3 %v9315_v15  ;;  %v9230_v15 = vld [vmem:[#allocation11 + $0x110] sm:$0xf] }
 0x1f9   : > { %v11128_v17 = vpop.eup %11127  ;;  %v1655_v18 = vmul.f32 1.442695, %v1596_v33  ;;  %2008 = vmatmul.bf16.gmra.mxu0 %v1804_v25  ;;  %2106 = vmatmul.bf16.gmra.mxu2 %v1804_v25  ;;  %v1515_v57 = vpop.f32.mrf.mxu2  ;;  %v10533_v33 = vld [vmem:[#allocation11 + $0x124] sm:$0xf] }
 0x1fa   : > { %v11130_v28 = vpop.eup %11129  ;;  %v1516_v35 = vadd.f32 %v1515_v57, %v13936_v23  ;;  %v1690_v39 = vadd.f32 1.0, %v11128_v17  ;;  %v9240_v17 = vld [vmem:[#allocation11 + $0x128] sm:$0xf0] }
 0x1fb   : > { %v11132_v20 = vpop.eup %11131  ;;  %v1752_v37 = vmul.f32 %v11130_v28, %v14042_v22  ;;  %11133 = vpow2.f32 %v1655_v18  ;;  %v1468_v38 = vpop.f32.mrf.mxu1  ;;  %v10538_v22 = vld [vmem:[#allocation11 + $0x144] sm:$0xf0]  ;;  %v9243_v28 = vor.u32 %v10533_v33, %v9240_v17  ;;  %v10532_v33 = vld [vmem:[#allocation11 + $0x114] sm:$0xf0] }
 0x1fc   : > { %v1564_v61 = vpop.f32.mrf.mxu3  ;;  %11135 = vrcp.f32 %v1689_v16  ;;  %v1691_v54 = vadd.f32 1.0, %v11132_v20  ;;  %v14078_v3 = vadd.f32 %v1468_v38, %v1420_v30  ;;  %v9255_v48 = vor.u32 %v10538_v22, %v9254_v19  ;;  %v10534_v38 = vld [vmem:[#allocation11 + $0x124] sm:$0xf0] }
 0x1fd   : > { %11137 = vpow2.f32 %v1657_v8  ;;  %v14076_v5 = vadd.f32 %v1564_v61, %v1516_v35  ;;  %v1805_v24 = vpack.c.bf16 %v1752_v37, %v1750_v63  ;;  %v9311_v16 = vor.u32 %v10552_v9, %v9310_v0  ;;  %2682 = vmatpush.bf16.msrb.mxu2 %v9243_v28 }
 0x1fe   : > { %11139 = vrcp.f32 %v1691_v54  ;;  %v1599_v56 = vsub.f32 0.0, %v14078_v3  ;;  %2582 = vmatpush.bf16.msra.mxu0 %v9255_v48  ;;  %v9238_v54 = vld [vmem:[#allocation11 + $0x120] sm:$0xf] }
 0x1ff   : > { %v1598_v52 = vsub.f32 0.0, %v14076_v5  ;;  %2057 = vmatmul.bf16.gmra.mxu1 %v1805_v24  ;;  %2155 = vmatmul.bf16.gmra.mxu3 %v1805_v24  ;;  %11141 = vrcp.f32 %v1690_v39  ;;  %v9307_v39 = vor.u32 %v10549_v49, %v9304_v4  ;;  %v9239_v19 = vor.u32 %v10534_v38, %v9238_v54  ;;  %v10548_v49 = vld [vmem:[#allocation11 + $0x194] sm:$0xf0]  ;;  %v10545_v38 = vld [vmem:[#allocation11 + $0x184] sm:$0xf] }
 0x200   : > { %v1661_v6 = vmul.f32 1.442695, %v1599_v56  ;;  %2632 = vmatpush.bf16.msrb.mxu1 %v9311_v16  ;;  %v9222_v16 = vld [vmem:[#allocation11 + $0x100] sm:$0xf] }
 0x201   : > { %v11134_v10 = vpop.eup %11133  ;;  %v1659_v11 = vmul.f32 1.442695, %v1598_v52  ;;  %v1517_v55 = vpop.f32.mrf.mxu2  ;;  %2731 = vmatpush.bf16.msrb.mxu3 %v9307_v39 }
 0x202   : > { %v11136_v53 = vpop.eup %11135  ;;  %v1692_v25 = vadd.f32 1.0, %v11134_v10  ;;  %v1518_v8 = vadd.f32 %v1517_v55, %v13936_v23  ;;  %2583 = vmatpush.bf16.msra.mxu0 %v9247_v14  ;;  %v1793_v10 = vld [vmem:[%s16755_s5] sm:$0x3]  ;;  %v9224_v55 = vld [vmem:[#allocation11 + $0x108] sm:$0xf0]  ;;  %s16908_s5 = sld [smem:[#allocation108_spill]] }
 0x203   : > { %v11138_v18 = vpop.eup %11137  ;;  %11143 = vpow2.f32 %v1659_v11  ;;  %v1753_v20 = vmul.f32 %v11136_v53, %v14045_v36  ;;  %v14093_v11 = vperm.slane %v1793_v10, 0  ;;  %v9231_v53 = vor.u32 %v10532_v33, %v9230_v15 }
 0x204   : > { %v11140_v30 = vpop.eup %11139  ;;  %11145 = vrcp.f32 %v1692_v25  ;;  %v1566_v57 = vpop.f32.mrf.mxu3  ;;  %v1693_v35 = vadd.f32 1.0, %v11138_v18  ;;  %v10529_v25 = vld [vmem:[#allocation11 + $0x104] sm:$0xf]  ;;  %v14096_v17 = vperm.slane %v1793_v10, 1 }
 0x205   : > { %11147 = vpow2.f32 %v1661_v6  ;;  %v1567_v63 = vadd.f32 %v1566_v57, %v1518_v8  ;;  %v1755_v37 = vmul.f32 %v11140_v30, %v14057_v32  ;;  %v11142_v23 = vpop.eup %11141  ;;  %v10550_v32 = vld [vmem:[#allocation11 + $0x1a4] sm:$0xf0]  ;;  %v10531_v6 = vld [vmem:[#allocation11 + $0x114] sm:$0xf]  ;;  %v9227_v28 = vor.u32 %v10529_v25, %v9224_v55 }
 0x206   : > { %v9303_v41 = vor.u32 %v10550_v32, %v9302_v40  ;;  %v1754_v24 = vmul.f32 %v11142_v23, %v14055_v34  ;;  %2584 = vmatpush.bf16.msra.mxu0 %v9239_v19  ;;  %v10530_v30 = vld [vmem:[#allocation11 + $0x104] sm:$0xf0]  ;;  %v9288_v40 = vld [vmem:[#allocation11 + $0x188] sm:$0xf0]  ;;  %v9286_v19 = vld [vmem:[#allocation11 + $0x180] sm:$0xf] }
 0x207   : > { %v1600_v61 = vsub.f32 0.0, %v1567_v63  ;;  %v1806_v58 = vpack.c.bf16 %v1755_v37, %v1753_v20  ;;  %v10547_v20 = vld [vmem:[#allocation11 + $0x194] sm:$0xf]  ;;  %v9294_v37 = vld [vmem:[#allocation11 + $0x190] sm:$0xf] }
 0x208   : > { %2633 = vmatpush.bf16.msrb.mxu1 %v9303_v41  ;;  %v9295_v23 = vor.u32 %v10548_v49, %v9294_v37  ;;  %v10546_v32 = vld [vmem:[#allocation11 + $0x184] sm:$0xf0]  ;;  %s16909_s13 = smov %s16908_s5 }
 0x209   : > { %v11144_v7 = vpop.eup %11143  ;;  %v1663_v36 = vmul.f32 1.442695, %v1600_v61  ;;  %2013 = vmatmul.bf16.gmra.mxu0 %v1806_v58  ;;  %2111 = vmatmul.bf16.gmra.mxu2 %v1806_v58 }
 0x20a   : > { %v11146_v22 = vpop.eup %11145  ;;  %v1694_v12 = vadd.f32 1.0, %v11144_v7  ;;  %2585 = vmatpush.bf16.msra.mxu0 %v9231_v53 }
 0x20b   : > { %v11148_v29 = vpop.eup %11147  ;;  %v1756_v46 = vmul.f32 %v11146_v22, %v14063_v62  ;;  %11149 = vpow2.f32 %v1663_v36  ;;  %v9291_v36 = vor.u32 %v10545_v38, %v9288_v40 }
 0x20c   : > { %11151 = vrcp.f32 %v1693_v35  ;;  %v1695_v48 = vadd.f32 1.0, %v11148_v29  ;;  %v9223_v35 = vor.u32 %v10530_v30, %v9222_v16  ;;  %2634 = vmatpush.bf16.msrb.mxu1 %v9295_v23  ;;  %v9287_v29 = vor.u32 %v10546_v32, %v9286_v19 }
 0x20d   : > { %v1807_v21 = vpack.c.bf16 %v1756_v46, %v1754_v24 }
 0x20e   : > { %11153 = vrcp.f32 %v1695_v48  ;;  %2586 = vmatpush.bf16.msra.mxu0 %v9223_v35 }
 0x20f   : > { %2062 = vmatmul.bf16.gmra.mxu1 %v1807_v21  ;;  %2160 = vmatmul.bf16.gmra.mxu3 %v1807_v21  ;;  %11155 = vrcp.f32 %v1694_v12 }
 0x210   : > { %2635 = vmatpush.bf16.msrb.mxu1 %v9287_v29 }
 0x211   : > { %v11150_v51 = vpop.eup %11149 }
 0x212   : > { %v11152_v52 = vpop.eup %11151  ;;  %v1696_v56 = vadd.f32 1.0, %v11150_v51 }
 0x213   : > { %v1757_v34 = vmul.f32 %v11152_v52, %v14066_v50 }
 0x214   : > { %v11154_v60 = vpop.eup %11153  ;;  %11157 = vrcp.f32 %v1696_v56 }
 0x215   : > { %v1759_v62 = vmul.f32 %v11154_v60, %v14078_v3  ;;  %v11156_v2 = vpop.eup %11155  ;;  %v9232_v3 = vld [vmem:[#allocation11 + $0x118] sm:$0xf0] }
 0x216   : > { %v1758_v44 = vmul.f32 %v11156_v2, %v14076_v5  ;;  %v9235_v14 = vor.u32 %v10531_v6, %v9232_v3 }
 0x217   : > { %v1808_v1 = vpack.c.bf16 %v1759_v62, %v1757_v34 }
 0x218   : > { %2683 = vmatpush.bf16.msrb.mxu2 %v9235_v14 }
 0x219   : > { %2018 = vmatmul.bf16.gmra.mxu0 %v1808_v1  ;;  %2116 = vmatmul.bf16.gmra.mxu2 %v1808_v1 }
 0x21a   : > { %v11158_v13 = vpop.eup %11157 }
 0x21b   : > { %v1760_v0 = vmul.f32 %v11158_v13, %v1567_v63  ;;  %v9296_v63 = vld [vmem:[#allocation11 + $0x198] sm:$0xf0] }
 0x21c   : > { %v9299_v58 = vor.u32 %v10547_v20, %v9296_v63  ;;  %2684 = vmatpush.bf16.msrb.mxu2 %v9227_v28 }
 0x21d   : > { %v1809_v9 = vpack.c.bf16 %v1760_v0, %v1758_v44 }
 0x21e   : > { %2732 = vmatpush.bf16.msrb.mxu3 %v9299_v58 }
 0x21f   : > { %2067 = vmatmul.bf16.gmra.mxu1 %v1809_v9  ;;  %2165 = vmatmul.bf16.gmra.mxu3 %v1809_v9 }
 0x222   : > { %2733 = vmatpush.bf16.msrb.mxu3 %v9291_v36 }
 0x225   : > { %v1984_v50 = vpop.f32.mrf.mxu0 }
 0x226   : > { %v1985_v5 = vadd.f32 %v1984_v50, %v14093_v11 }
 0x22b   : > { %v2082_v18 = vpop.f32.mrf.mxu2 }
 0x22c   : > { %v2033_v8 = vpop.f32.mrf.mxu1  ;;  %v2083_v39 = vadd.f32 %v2082_v18, %v14096_v17 }
 0x22d   : > { %v14098_v57 = vadd.f32 %v2033_v8, %v1985_v5  ;;  %v1986_v61 = vpop.f32.mrf.mxu0 }
 0x22e   : > { %v1987_v22 = vadd.f32 %v1986_v61, %v14093_v11 }
 0x22f   : > { %v2171_v4 = vsub.f32 0.0, %v14098_v57 }
 0x231   : > { %v2203_v54 = vmul.f32 1.442695, %v2171_v4 }
 0x232   : > { %v2131_v7 = vpop.f32.mrf.mxu3 }
 0x233   : > { %v14103_v41 = vadd.f32 %v2131_v7, %v2083_v39  ;;  %v2084_v24 = vpop.f32.mrf.mxu2  ;;  %11159 = vpow2.f32 %v2203_v54 }
 0x234   : > { %v2035_v46 = vpop.f32.mrf.mxu1  ;;  %v2085_v56 = vadd.f32 %v2084_v24, %v14096_v17 }
 0x235   : > { %v2172_v48 = vsub.f32 0.0, %v14103_v41  ;;  %v2036_v21 = vadd.f32 %v2035_v46, %v1987_v22 }
 0x236   : > { %v1989_v12 = vpop.f32.mrf.mxu0 }
 0x237   : > { %v2205_v51 = vmul.f32 1.442695, %v2172_v48  ;;  %v2173_v52 = vsub.f32 0.0, %v2036_v21  ;;  %v1990_v2 = vadd.f32 %v1989_v12, %v14093_v11 }
 0x239   : > { %v2207_v60 = vmul.f32 1.442695, %v2173_v52  ;;  %11161 = vpow2.f32 %v2205_v51  ;;  %v11160_v62 = vpop.eup %11159 }
 0x23a   : > { %v2133_v34 = vpop.f32.mrf.mxu3  ;;  %v2267_v9 = vadd.f32 1.0, %v11160_v62 }
 0x23b   : > { %11163 = vpow2.f32 %v2207_v60  ;;  %v2134_v1 = vadd.f32 %v2133_v34, %v2085_v56 }
 0x23c   : > { %v2087_v13 = vpop.f32.mrf.mxu2  ;;  %v2038_v0 = vpop.f32.mrf.mxu1 }
 0x23d   : > { %v2174_v44 = vsub.f32 0.0, %v2134_v1  ;;  %v14108_v50 = vadd.f32 %v2038_v0, %v1990_v2  ;;  %v2088_v53 = vadd.f32 %v2087_v13, %v14096_v17 }
 0x23e   : > { %v1991_v10 = vpop.f32.mrf.mxu0 }
 0x23f   : > { %v2209_v6 = vmul.f32 1.442695, %v2174_v44  ;;  %v11162_v3 = vpop.eup %11161  ;;  %v2175_v15 = vsub.f32 0.0, %v14108_v50  ;;  %v1992_v16 = vadd.f32 %v1991_v10, %v14093_v11 }
 0x240   : > { %v2268_v55 = vadd.f32 1.0, %v11162_v3 }
 0x241   : > { %v11164_v14 = vpop.eup %11163  ;;  %11165 = vpow2.f32 %v2209_v6  ;;  %v2211_v5 = vmul.f32 1.442695, %v2175_v15 }
 0x242   : > { %11167 = vrcp.f32 %v2267_v9  ;;  %v2269_v33 = vadd.f32 1.0, %v11164_v14  ;;  %v2136_v25 = vpop.f32.mrf.mxu3 }
 0x243   : > { %v14113_v8 = vadd.f32 %v2136_v25, %v2088_v53 }
 0x244   : > { %11169 = vrcp.f32 %v2269_v33  ;;  %v2089_v18 = vpop.f32.mrf.mxu2  ;;  %v2040_v28 = vpop.f32.mrf.mxu1 }
 0x245   : > { %11171 = vpow2.f32 %v2211_v5  ;;  %v2176_v30 = vsub.f32 0.0, %v14113_v8  ;;  %v14116_v63 = vadd.f32 %v2040_v28, %v1992_v16  ;;  %v2090_v23 = vadd.f32 %v2089_v18, %v14096_v17 }
 0x246   : > { %v1994_v20 = vpop.f32.mrf.mxu0  ;;  %11173 = vrcp.f32 %v2268_v55 }
 0x247   : > { %v11166_v37 = vpop.eup %11165  ;;  %v2213_v58 = vmul.f32 1.442695, %v2176_v30  ;;  %v2177_v49 = vsub.f32 0.0, %v14116_v63  ;;  %v1995_v36 = vadd.f32 %v1994_v20, %v14093_v11 }
 0x248   : > { %v11168_v35 = vpop.eup %11167  ;;  %v2270_v61 = vadd.f32 1.0, %v11166_v37 }
 0x249   : > { %v2215_v39 = vmul.f32 1.442695, %v2177_v49  ;;  %v2331_v38 = vmul.f32 %v11168_v35, %v14098_v57 }
 0x24a   : > { %v11170_v4 = vpop.eup %11169  ;;  %11175 = vrcp.f32 %v2270_v61  ;;  %v2138_v7 = vpop.f32.mrf.mxu3 }
 0x24b   : > { %v11172_v54 = vpop.eup %11171  ;;  %v2333_v40 = vmul.f32 %v11170_v4, %v2036_v21  ;;  %11177 = vpow2.f32 %v2213_v58  ;;  %v14122_v32 = vadd.f32 %v2138_v7, %v2090_v23 }
 0x24c   : > { %11179 = vpow2.f32 %v2215_v39  ;;  %v2092_v19 = vpop.f32.mrf.mxu2  ;;  %v2271_v29 = vadd.f32 1.0, %v11172_v54  ;;  %v2043_v24 = vpop.f32.mrf.mxu1 }
 0x24d   : > { %v2398_v22 = vpack.c.bf16 %v2333_v40, %v2331_v38  ;;  %v11174_v46 = vpop.eup %11173  ;;  %v2178_v48 = vsub.f32 0.0, %v14122_v32  ;;  %v14125_v51 = vadd.f32 %v2043_v24, %v1995_v36  ;;  %v2093_v2 = vadd.f32 %v2092_v19, %v14096_v17 }
 0x24e   : > { %v1996_v12 = vpop.f32.mrf.mxu0  ;;  %v2332_v60 = vmul.f32 %v11174_v46, %v14103_v41  ;;  %11181 = vrcp.f32 %v2271_v29 }
 0x24f   : > { %2587 = vmatmul.bf16.vlgmr.msra.gmra.mxu0 %v2398_v22  ;;  %2685 = vmatmul.bf16.vlgmr.msrb.gmra.mxu2 %v2398_v22  ;;  %v2217_v21 = vmul.f32 1.442695, %v2178_v48  ;;  %v2179_v52 = vsub.f32 0.0, %v14125_v51  ;;  %v1997_v6 = vadd.f32 %v1996_v12, %v14093_v11 }
 0x250   : > { %v11176_v57 = vpop.eup %11175 }
 0x251   : > { %v11178_v56 = vpop.eup %11177  ;;  %v2334_v34 = vmul.f32 %v11176_v57, %v2134_v1  ;;  %11183 = vpow2.f32 %v2217_v21  ;;  %v2219_v13 = vmul.f32 1.442695, %v2179_v52 }
 0x252   : > { %v11180_v62 = vpop.eup %11179  ;;  %v2141_v9 = vpop.f32.mrf.mxu3  ;;  %v2272_v10 = vadd.f32 1.0, %v11178_v56 }
 0x253   : > { %v2399_v44 = vpack.c.bf16 %v2334_v34, %v2332_v60  ;;  %v2273_v0 = vadd.f32 1.0, %v11180_v62  ;;  %v14131_v15 = vadd.f32 %v2141_v9, %v2093_v2 }
 0x254   : > { %v2094_v3 = vpop.f32.mrf.mxu2  ;;  %v2045_v14 = vpop.f32.mrf.mxu1 }
 0x255   : > { %11185 = vrcp.f32 %v2273_v0  ;;  %2636 = vmatmul.bf16.vlgmr.msrb.gmra.mxu1 %v2399_v44  ;;  %2734 = vmatmul.bf16.vlgmr.msrb.gmra.mxu3 %v2399_v44  ;;  %v2180_v41 = vsub.f32 0.0, %v14131_v15  ;;  %v14134_v33 = vadd.f32 %v2045_v14, %v1997_v6  ;;  %v11182_v53 = vpop.eup %11181  ;;  %v2095_v18 = vadd.f32 %v2094_v3, %v14096_v17 }
 0x256   : > { %11187 = vpow2.f32 %v2219_v13  ;;  %v1999_v1 = vpop.f32.mrf.mxu0  ;;  %v2335_v20 = vmul.f32 %v11182_v53, %v14108_v50 }
 0x257   : > { %v11184_v5 = vpop.eup %11183  ;;  %11189 = vrcp.f32 %v2272_v10  ;;  %v2221_v25 = vmul.f32 1.442695, %v2180_v41  ;;  %v2181_v55 = vsub.f32 0.0, %v14134_v33  ;;  %v2000_v61 = vadd.f32 %v1999_v1, %v14093_v11 }
 0x258   : > { %v2274_v16 = vadd.f32 1.0, %v11184_v5 }
 0x259   : > { %11191 = vpow2.f32 %v2221_v25  ;;  %v2223_v28 = vmul.f32 1.442695, %v2181_v55 }
 0x25a   : > { %11193 = vrcp.f32 %v2274_v16  ;;  %v2143_v37 = vpop.f32.mrf.mxu3 }
 0x25b   : > { %v11186_v30 = vpop.eup %11185  ;;  %11195 = vpow2.f32 %v2223_v28  ;;  %v14140_v49 = vadd.f32 %v2143_v37, %v2095_v18  ;;  %v9406_v28 = vld [vmem:[#allocation13 + $0x70] sm:$0xf] }
 0x25c   : > { %v11188_v35 = vpop.eup %11187  ;;  %v2097_v58 = vpop.f32.mrf.mxu2  ;;  %v2337_v4 = vmul.f32 %v11186_v30, %v14116_v63  ;;  %v10480_v30 = vld [vmem:[#allocation13 + $0x74] sm:$0xf0] }
 0x25d   : > { %v2275_v23 = vadd.f32 1.0, %v11188_v35  ;;  %v2048_v39 = vpop.f32.mrf.mxu1  ;;  %v11190_v54 = vpop.eup %11189  ;;  %v2182_v38 = vsub.f32 0.0, %v14140_v49  ;;  %v2098_v48 = vadd.f32 %v2097_v58, %v14096_v17  ;;  %v9407_v35 = vor.u32 %v10480_v30, %v9406_v28 }
 0x25e   : > { %v2001_v40 = vpop.f32.mrf.mxu0  ;;  %v14144_v7 = vadd.f32 %v2048_v39, %v2000_v61  ;;  %v2400_v50 = vpack.c.bf16 %v2337_v4, %v2335_v20  ;;  %v2336_v24 = vmul.f32 %v11190_v54, %v14113_v8 }
 0x25f   : > { %v11192_v36 = vpop.eup %11191  ;;  %v2225_v19 = vmul.f32 1.442695, %v2182_v38  ;;  %11197 = vrcp.f32 %v2275_v23  ;;  %v2002_v21 = vadd.f32 %v2001_v40, %v14093_v11  ;;  %3148 = vmatpush.bf16.msrb.mxu0 %v9407_v35 }
 0x260   : > { %v2183_v22 = vsub.f32 0.0, %v14144_v7  ;;  %2592 = vmatmul.bf16.gmra.mxu0 %v2400_v50  ;;  %2690 = vmatmul.bf16.gmra.mxu2 %v2400_v50  ;;  %v11194_v29 = vpop.eup %11193  ;;  %v2276_v56 = vadd.f32 1.0, %v11192_v36 }
 0x261   : > { %v11196_v63 = vpop.eup %11195  ;;  %v2338_v46 = vmul.f32 %v11194_v29, %v14122_v32  ;;  %11199 = vpow2.f32 %v2225_v19  ;;  %v9470_v29 = vld [vmem:[#allocation13 + $0xf0] sm:$0xf] }
 0x262   : > { %v2227_v12 = vmul.f32 1.442695, %v2183_v22  ;;  %v2277_v57 = vadd.f32 1.0, %v11196_v63  ;;  %v2146_v52 = vpop.f32.mrf.mxu3 }
 0x263   : > { %v14151_v34 = vadd.f32 %v2146_v52, %v2098_v48  ;;  %v2401_v62 = vpack.c.bf16 %v2338_v46, %v2336_v24  ;;  %v10496_v24 = vld [vmem:[#allocation13 + $0xf4] sm:$0xf0] }
 0x264   : > { %11201 = vpow2.f32 %v2227_v12  ;;  %v2099_v60 = vpop.f32.mrf.mxu2  ;;  %v9471_v12 = vor.u32 %v10496_v24, %v9470_v29 }
 0x265   : > { %11203 = vrcp.f32 %v2277_v57  ;;  %v2050_v8 = vpop.f32.mrf.mxu1  ;;  %v2184_v2 = vsub.f32 0.0, %v14151_v34  ;;  %2641 = vmatmul.bf16.gmra.mxu1 %v2401_v62  ;;  %2739 = vmatmul.bf16.gmra.mxu3 %v2401_v62  ;;  %v11198_v44 = vpop.eup %11197  ;;  %v2100_v14 = vadd.f32 %v2099_v60, %v14096_v17 }
 0x266   : > { %v2004_v13 = vpop.f32.mrf.mxu0  ;;  %v14154_v32 = vadd.f32 %v2050_v8, %v2002_v21  ;;  %11205 = vrcp.f32 %v2276_v56  ;;  %v2339_v53 = vmul.f32 %v11198_v44, %v14125_v51  ;;  %3197 = vmatpush.bf16.msra.mxu1 %v9471_v12 }
 0x267   : > { %v11200_v0 = vpop.eup %11199  ;;  %v2229_v9 = vmul.f32 1.442695, %v2184_v2  ;;  %v2005_v55 = vadd.f32 %v2004_v13, %v14093_v11 }
 0x268   : > { %v2185_v10 = vsub.f32 0.0, %v14154_v32  ;;  %v2278_v6 = vadd.f32 1.0, %v11200_v0 }
 0x269   : > { %11207 = vpow2.f32 %v2229_v9 }
 0x26a   : > { %v11202_v3 = vpop.eup %11201  ;;  %v2231_v41 = vmul.f32 1.442695, %v2185_v10  ;;  %11209 = vrcp.f32 %v2278_v6  ;;  %v2148_v5 = vpop.f32.mrf.mxu3 }
 0x26b   : > { %v11204_v1 = vpop.eup %11203  ;;  %v14161_v18 = vadd.f32 %v2148_v5, %v2100_v14  ;;  %v2279_v20 = vadd.f32 1.0, %v11202_v3 }
 0x26c   : > { %v2341_v25 = vmul.f32 %v11204_v1, %v14134_v33  ;;  %11211 = vpow2.f32 %v2231_v41  ;;  %v2102_v16 = vpop.f32.mrf.mxu2  ;;  %v11206_v61 = vpop.eup %11205 }
 0x26d   : > { %v2053_v37 = vpop.f32.mrf.mxu1  ;;  %v2186_v58 = vsub.f32 0.0, %v14161_v18  ;;  %v2340_v40 = vmul.f32 %v11206_v61, %v14131_v15  ;;  %11213 = vrcp.f32 %v2279_v20  ;;  %v2103_v19 = vadd.f32 %v2102_v16, %v14096_v17  ;;  %v10478_v16 = vld [vmem:[#allocation13 + $0x64] sm:$0xf0] }
 0x26e   : > { %v2006_v4 = vpop.f32.mrf.mxu0  ;;  %v14164_v51 = vadd.f32 %v2053_v37, %v2005_v55  ;;  %v2402_v23 = vpack.c.bf16 %v2341_v25, %v2339_v53  ;;  %v9398_v55 = vld [vmem:[#allocation13 + $0x60] sm:$0xf] }
 0x26f   : > { %v11208_v33 = vpop.eup %11207  ;;  %v2233_v39 = vmul.f32 1.442695, %v2186_v58  ;;  %v2007_v46 = vadd.f32 %v2006_v4, %v14093_v11  ;;  %v9399_v20 = vor.u32 %v10478_v16, %v9398_v55 }
 0x270   : > { %v2187_v54 = vsub.f32 0.0, %v14164_v51  ;;  %2597 = vmatmul.bf16.gmra.mxu0 %v2402_v23  ;;  %2695 = vmatmul.bf16.gmra.mxu2 %v2402_v23  ;;  %v11210_v38 = vpop.eup %11209  ;;  %v2280_v57 = vadd.f32 1.0, %v11208_v33 }
 0x271   : > { %v2342_v36 = vmul.f32 %v11210_v38, %v14140_v49  ;;  %11215 = vpow2.f32 %v2233_v39  ;;  %3149 = vmatpush.bf16.msrb.mxu0 %v9399_v20 }
 0x272   : > { %v11212_v50 = vpop.eup %11211  ;;  %v2235_v22 = vmul.f32 1.442695, %v2187_v54  ;;  %v2151_v48 = vpop.f32.mrf.mxu3 }
 0x273   : > { %v2281_v63 = vadd.f32 1.0, %v11212_v50  ;;  %v14171_v52 = vadd.f32 %v2151_v48, %v2103_v19  ;;  %v2403_v15 = vpack.c.bf16 %v2342_v36, %v2340_v40  ;;  %v11214_v8 = vpop.eup %11213  ;;  %v9462_v36 = vld [vmem:[#allocation13 + $0xe0] sm:$0xf]  ;;  %v10494_v19 = vld [vmem:[#allocation13 + $0xe4] sm:$0xf0] }
 0x274   : > { %11217 = vpow2.f32 %v2235_v22  ;;  %v2104_v21 = vpop.f32.mrf.mxu2  ;;  %v2343_v14 = vmul.f32 %v11214_v8, %v14144_v7 }
 0x275   : > { %11219 = vrcp.f32 %v2281_v63  ;;  %v2055_v56 = vpop.f32.mrf.mxu1  ;;  %v2188_v49 = vsub.f32 0.0, %v14171_v52  ;;  %2646 = vmatmul.bf16.gmra.mxu1 %v2403_v15  ;;  %2744 = vmatmul.bf16.gmra.mxu3 %v2403_v15  ;;  %v2105_v10 = vadd.f32 %v2104_v21, %v14096_v17  ;;  %v9463_v63 = vor.u32 %v10494_v19, %v9462_v36 }
 0x276   : > { %v2009_v60 = vpop.f32.mrf.mxu0  ;;  %v14174_v62 = vadd.f32 %v2055_v56, %v2007_v46  ;;  %11221 = vrcp.f32 %v2280_v57 }
 0x277   : > { %v11216_v2 = vpop.eup %11215  ;;  %v2237_v13 = vmul.f32 1.442695, %v2188_v49  ;;  %v2010_v53 = vadd.f32 %v2009_v60, %v14093_v11  ;;  %3198 = vmatpush.bf16.msra.mxu1 %v9463_v63 }
 0x278   : > { %v2189_v44 = vsub.f32 0.0, %v14174_v62  ;;  %v2282_v0 = vadd.f32 1.0, %v11216_v2 }
 0x279   : > { %11223 = vpow2.f32 %v2237_v13 }
 0x27a   : > { %v11218_v9 = vpop.eup %11217  ;;  %v2239_v6 = vmul.f32 1.442695, %v2189_v44  ;;  %11225 = vrcp.f32 %v2282_v0  ;;  %v2153_v41 = vpop.f32.mrf.mxu3 }
 0x27b   : > { %v11220_v3 = vpop.eup %11219  ;;  %v14181_v25 = vadd.f32 %v2153_v41, %v2105_v10  ;;  %v2283_v28 = vadd.f32 1.0, %v11218_v9 }
 0x27c   : > { %v2345_v1 = vmul.f32 %v11220_v3, %v14154_v32  ;;  %11227 = vpow2.f32 %v2239_v6  ;;  %v2107_v5 = vpop.f32.mrf.mxu2  ;;  %v11222_v37 = vpop.eup %11221 }
 0x27d   : > { %v2058_v30 = vpop.f32.mrf.mxu1  ;;  %v2190_v35 = vsub.f32 0.0, %v14181_v25  ;;  %v2344_v39 = vmul.f32 %v11222_v37, %v14151_v34  ;;  %11229 = vrcp.f32 %v2283_v28  ;;  %v2108_v40 = vadd.f32 %v2107_v5, %v14096_v17  ;;  %v10476_v5 = vld [vmem:[#allocation13 + $0x54] sm:$0xf0] }
 0x27e   : > { %v2011_v61 = vpop.f32.mrf.mxu0  ;;  %v14184_v7 = vadd.f32 %v2058_v30, %v2010_v53  ;;  %v2404_v58 = vpack.c.bf16 %v2345_v1, %v2343_v14  ;;  %v9390_v53 = vld [vmem:[#allocation13 + $0x50] sm:$0xf] }
 0x27f   : > { %v11224_v32 = vpop.eup %11223  ;;  %v2241_v4 = vmul.f32 1.442695, %v2190_v35  ;;  %v2012_v29 = vadd.f32 %v2011_v61, %v14093_v11  ;;  %v9391_v28 = vor.u32 %v10476_v5, %v9390_v53 }
 0x280   : > { %v2191_v23 = vsub.f32 0.0, %v14184_v7  ;;  %2602 = vmatmul.bf16.gmra.mxu0 %v2404_v58  ;;  %2700 = vmatmul.bf16.gmra.mxu2 %v2404_v58  ;;  %v11226_v33 = vpop.eup %11225  ;;  %v2284_v46 = vadd.f32 1.0, %v11224_v32 }
 0x281   : > { %v2346_v38 = vmul.f32 %v11226_v33, %v14161_v18  ;;  %11231 = vpow2.f32 %v2241_v4  ;;  %3150 = vmatpush.bf16.msrb.mxu0 %v9391_v28 }
 0x282   : > { %v11228_v54 = vpop.eup %11227  ;;  %v2243_v50 = vmul.f32 1.442695, %v2191_v23  ;;  %v2156_v24 = vpop.f32.mrf.mxu3 }
 0x283   : > { %v2285_v22 = vadd.f32 1.0, %v11228_v54  ;;  %v14191_v12 = vadd.f32 %v2156_v24, %v2108_v40  ;;  %v2405_v34 = vpack.c.bf16 %v2346_v38, %v2344_v39  ;;  %v11230_v56 = vpop.eup %11229  ;;  %v9454_v38 = vld [vmem:[#allocation13 + $0xd0] sm:$0xf]  ;;  %v10492_v40 = vld [vmem:[#allocation13 + $0xd4] sm:$0xf0] }
 0x284   : > { %11233 = vpow2.f32 %v2243_v50  ;;  %v2109_v48 = vpop.f32.mrf.mxu2  ;;  %v2347_v10 = vmul.f32 %v11230_v56, %v14164_v51  ;;  %v9455_v19 = vor.u32 %v10492_v40, %v9454_v38 }
 0x285   : > { %11235 = vrcp.f32 %v2285_v22  ;;  %v2060_v57 = vpop.f32.mrf.mxu1  ;;  %v2192_v18 = vsub.f32 0.0, %v14191_v12  ;;  %2651 = vmatmul.bf16.gmra.mxu1 %v2405_v34  ;;  %2749 = vmatmul.bf16.gmra.mxu3 %v2405_v34  ;;  %v2110_v44 = vadd.f32 %v2109_v48, %v14096_v17 }
 0x286   : > { %v2014_v21 = vpop.f32.mrf.mxu0  ;;  %v14194_v15 = vadd.f32 %v2060_v57, %v2012_v29  ;;  %11237 = vrcp.f32 %v2284_v46  ;;  %3199 = vmatpush.bf16.msra.mxu1 %v9455_v19 }
 0x287   : > { %v11232_v49 = vpop.eup %11231  ;;  %v2245_v60 = vmul.f32 1.442695, %v2192_v18  ;;  %v2015_v14 = vadd.f32 %v2014_v21, %v14093_v11 }
 0x288   : > { %v2193_v8 = vsub.f32 0.0, %v14194_v15  ;;  %v2286_v2 = vadd.f32 1.0, %v11232_v49 }
 0x289   : > { %11239 = vpow2.f32 %v2245_v60 }
 0x28a   : > { %v11234_v13 = vpop.eup %11233  ;;  %v2247_v0 = vmul.f32 1.442695, %v2193_v8  ;;  %11241 = vrcp.f32 %v2286_v2  ;;  %v2158_v6 = vpop.f32.mrf.mxu3 }
 0x28b   : > { %v11236_v9 = vpop.eup %11235  ;;  %v14201_v1 = vadd.f32 %v2158_v6, %v2110_v44  ;;  %v2287_v55 = vadd.f32 1.0, %v11234_v13 }
 0x28c   : > { %v2349_v3 = vmul.f32 %v11236_v9, %v14174_v62  ;;  %11243 = vpow2.f32 %v2247_v0  ;;  %v2112_v41 = vpop.f32.mrf.mxu2  ;;  %v11238_v30 = vpop.eup %11237 }
 0x28d   : > { %v2063_v16 = vpop.f32.mrf.mxu1  ;;  %v2194_v20 = vsub.f32 0.0, %v14201_v1  ;;  %v2348_v4 = vmul.f32 %v11238_v30, %v14171_v52  ;;  %11245 = vrcp.f32 %v2287_v55  ;;  %v2113_v39 = vadd.f32 %v2112_v41, %v14096_v17 }
 0x28e   : > { %v2016_v37 = vpop.f32.mrf.mxu0  ;;  %v14204_v51 = vadd.f32 %v2063_v16, %v2015_v14  ;;  %v2406_v35 = vpack.c.bf16 %v2349_v3, %v2347_v10  ;;  %v9382_v3 = vld [vmem:[#allocation13 + $0x40] sm:$0xf]  ;;  %v10474_v14 = vld [vmem:[#allocation13 + $0x44] sm:$0xf0] }
 0x28f   : > { %v11240_v62 = vpop.eup %11239  ;;  %v2249_v61 = vmul.f32 1.442695, %v2194_v20  ;;  %v2017_v29 = vadd.f32 %v2016_v37, %v14093_v11  ;;  %v9383_v5 = vor.u32 %v10474_v14, %v9382_v3 }
 0x290   : > { %v2195_v58 = vsub.f32 0.0, %v14204_v51  ;;  %2607 = vmatmul.bf16.gmra.mxu0 %v2406_v35  ;;  %2705 = vmatmul.bf16.gmra.mxu2 %v2406_v35  ;;  %v11242_v32 = vpop.eup %11241  ;;  %v2288_v22 = vadd.f32 1.0, %v11240_v62 }
 0x291   : > { %v2350_v33 = vmul.f32 %v11242_v32, %v14181_v25  ;;  %11247 = vpow2.f32 %v2249_v61  ;;  %3151 = vmatpush.bf16.msrb.mxu0 %v9383_v5 }
 0x292   : > { %v11244_v23 = vpop.eup %11243  ;;  %v2251_v54 = vmul.f32 1.442695, %v2195_v58  ;;  %v2161_v36 = vpop.f32.mrf.mxu3 }
 0x293   : > { %v2289_v50 = vadd.f32 1.0, %v11244_v23  ;;  %v14211_v63 = vadd.f32 %v2161_v36, %v2113_v39  ;;  %v2407_v52 = vpack.c.bf16 %v2350_v33, %v2348_v4  ;;  %v11246_v34 = vpop.eup %11245  ;;  %v9446_v33 = vld [vmem:[#allocation13 + $0xc0] sm:$0xf]  ;;  %v10490_v39 = vld [vmem:[#allocation13 + $0xc4] sm:$0xf0] }
 0x294   : > { %v2114_v24 = vpop.f32.mrf.mxu2  ;;  %v2351_v13 = vmul.f32 %v11246_v34, %v14184_v7  ;;  %v9447_v40 = vor.u32 %v10490_v39, %v9446_v33  ;;  %v10472_v36 = vld [vmem:[#allocation13 + $0x34] sm:$0xf0] }
 0x295   : > { %11249 = vrcp.f32 %v2289_v50  ;;  %v2065_v46 = vpop.f32.mrf.mxu1  ;;  %v2196_v25 = vsub.f32 0.0, %v14211_v63  ;;  %2656 = vmatmul.bf16.gmra.mxu1 %v2407_v52  ;;  %2754 = vmatmul.bf16.gmra.mxu3 %v2407_v52  ;;  %v2115_v60 = vadd.f32 %v2114_v24, %v14096_v17  ;;  %v9374_v50 = vld [vmem:[#allocation13 + $0x30] sm:$0xf]  ;;  %v10488_v24 = vld [vmem:[#allocation13 + $0xb4] sm:$0xf0] }
 0x296   : > { %11251 = vpow2.f32 %v2251_v54  ;;  %v14214_v48 = vadd.f32 %v2065_v46, %v2017_v29  ;;  %v2019_v57 = vpop.f32.mrf.mxu0  ;;  %v9438_v29 = vld [vmem:[#allocation13 + $0xb0] sm:$0xf]  ;;  %3200 = vmatpush.bf16.msra.mxu1 %v9447_v40  ;;  %v9375_v46 = vor.u32 %v10472_v36, %v9374_v50  ;;  %v10477_v40 = vld [vmem:[#allocation13 + $0x64] sm:$0xf] }
 0x297   : > { %v11248_v18 = vpop.eup %11247  ;;  %11253 = vrcp.f32 %v2288_v22  ;;  %v2253_v21 = vmul.f32 1.442695, %v2196_v25  ;;  %v2020_v10 = vadd.f32 %v2019_v57, %v14093_v11  ;;  %v9439_v25 = vor.u32 %v10488_v24, %v9438_v29  ;;  %v9472_v29 = vld [vmem:[#allocation13 + $0xf8] sm:$0xf0] }
 0x298   : > { %v2197_v56 = vsub.f32 0.0, %v14214_v48  ;;  %v2290_v49 = vadd.f32 1.0, %v11248_v18  ;;  %v9366_v18 = vld [vmem:[#allocation13 + $0x20] sm:$0xf]  ;;  %3152 = vmatpush.bf16.msrb.mxu0 %v9375_v46  ;;  %v9392_v46 = vld [vmem:[#allocation13 + $0x58] sm:$0xf0] }
 0x299   : > { %11255 = vpow2.f32 %v2253_v21 }
 0x29a   : > { %v2255_v8 = vmul.f32 1.442695, %v2197_v56  ;;  %11257 = vrcp.f32 %v2290_v49  ;;  %v2163_v44 = vpop.f32.mrf.mxu3  ;;  %v9430_v49 = vld [vmem:[#allocation13 + $0xa0] sm:$0xf]  ;;  %3201 = vmatpush.bf16.msra.mxu1 %v9439_v25 }
 0x29b   : > { %v11250_v2 = vpop.eup %11249  ;;  %v14221_v6 = vadd.f32 %v2163_v44, %v2115_v60  ;;  %v10486_v60 = vld [vmem:[#allocation13 + $0xa4] sm:$0xf0] }
 0x29c   : > { %v11252_v0 = vpop.eup %11251  ;;  %v2353_v9 = vmul.f32 %v11250_v2, %v14194_v15  ;;  %11259 = vpow2.f32 %v2255_v8  ;;  %v2117_v41 = vpop.f32.mrf.mxu2 }
 0x29d   : > { %v2068_v53 = vpop.f32.mrf.mxu1  ;;  %v11254_v55 = vpop.eup %11253  ;;  %v2198_v16 = vsub.f32 0.0, %v14221_v6  ;;  %v2291_v30 = vadd.f32 1.0, %v11252_v0  ;;  %v2118_v4 = vadd.f32 %v2117_v41, %v14096_v17 }
 0x29e   : > { %v14224_v28 = vadd.f32 %v2068_v53, %v2020_v10  ;;  %v2408_v7 = vpack.c.bf16 %v2353_v9, %v2351_v13  ;;  %v2352_v62 = vmul.f32 %v11254_v55, %v14191_v12  ;;  %v2021_v61 = vpop.f32.mrf.mxu0  ;;  %v9431_v9 = vor.u32 %v10486_v60, %v9430_v49  ;;  %v10473_v49 = vld [vmem:[#allocation13 + $0x44] sm:$0xf]  ;;  %v9384_v60 = vld [vmem:[#allocation13 + $0x48] sm:$0xf0] }
 0x29f   : > { %v11256_v20 = vpop.eup %11255  ;;  %v2257_v15 = vmul.f32 1.442695, %v2198_v16  ;;  %v2022_v19 = vadd.f32 %v2021_v61, %v14093_v11  ;;  %v10470_v11 = vld [vmem:[#allocation13 + $0x24] sm:$0xf0] }
 0x2a0   : > { %v2199_v37 = vsub.f32 0.0, %v14224_v28  ;;  %2612 = vmatmul.bf16.gmra.mxu0 %v2408_v7  ;;  %2710 = vmatmul.bf16.gmra.mxu2 %v2408_v7  ;;  %v11258_v35 = vpop.eup %11257  ;;  %v9367_v56 = vor.u32 %v10470_v11, %v9366_v18  ;;  %v10493_v18 = vld [vmem:[#allocation13 + $0xe4] sm:$0xf]  ;;  %v9464_v11 = vld [vmem:[#allocation13 + $0xe8] sm:$0xf0] }
 0x2a1   : > { %v2354_v32 = vmul.f32 %v11258_v35, %v14201_v1  ;;  %11261 = vpow2.f32 %v2257_v15  ;;  %v2292_v1 = vadd.f32 1.0, %v11256_v20  ;;  %3202 = vmatpush.bf16.msra.mxu1 %v9431_v9  ;;  %v10471_v9 = vld [vmem:[#allocation13 + $0x34] sm:$0xf] }
 0x2a2   : > { %v11260_v58 = vpop.eup %11259  ;;  %v2259_v23 = vmul.f32 1.442695, %v2199_v37  ;;  %11263 = vrcp.f32 %v2291_v30  ;;  %v2166_v38 = vpop.f32.mrf.mxu3  ;;  %3153 = vmatpush.bf16.msrb.mxu0 %v9367_v56  ;;  %v9467_v56 = vor.u32 %v10493_v18, %v9464_v11 }
 0x2a3   : > { %v2293_v54 = vadd.f32 1.0, %v11260_v58  ;;  %v14231_v22 = vadd.f32 %v2166_v38, %v2118_v4  ;;  %v2409_v12 = vpack.c.bf16 %v2354_v32, %v2352_v62  ;;  %v10479_v4 = vld [vmem:[#allocation13 + $0x74] sm:$0xf] }
 0x2a4   : > { %v2119_v21 = vpop.f32.mrf.mxu2 }
 0x2a5   : > { %11265 = vrcp.f32 %v2293_v54  ;;  %v2070_v52 = vpop.f32.mrf.mxu1  ;;  %v2200_v34 = vsub.f32 0.0, %v14231_v22  ;;  %2661 = vmatmul.bf16.gmra.mxu1 %v2409_v12  ;;  %2759 = vmatmul.bf16.gmra.mxu3 %v2409_v12  ;;  %v2120_v10 = vadd.f32 %v2119_v21, %v14096_v17  ;;  %v10495_v12 = vld [vmem:[#allocation13 + $0xf4] sm:$0xf] }
 0x2a6   : > { %11267 = vpow2.f32 %v2259_v23  ;;  %v14234_v57 = vadd.f32 %v2070_v52, %v2022_v19  ;;  %v9408_v23 = vld [vmem:[#allocation13 + $0x78] sm:$0xf0]  ;;  %v9475_v24 = vor.u32 %v10495_v12, %v9472_v29  ;;  %v10475_v52 = vld [vmem:[#allocation13 + $0x54] sm:$0xf]  ;;  %v9352_v12 = vld [vmem:[#allocation13 + $0x8] sm:$0xf0] }
 0x2a7   : > { %v11262_v8 = vpop.eup %11261  ;;  %v2261_v2 = vmul.f32 1.442695, %v2200_v34  ;;  %11269 = vrcp.f32 %v2292_v1  ;;  %v9411_v33 = vor.u32 %v10479_v4, %v9408_v23  ;;  %v9395_v34 = vor.u32 %v10475_v52, %v9392_v46  ;;  %v10483_v52 = vld [vmem:[#allocation13 + $0x94] sm:$0xf]  ;;  %v9424_v46 = vld [vmem:[#allocation13 + $0x98] sm:$0xf0] }
 0x2a8   : > { %v2201_v13 = vsub.f32 0.0, %v14234_v57  ;;  %v11264_v44 = vpop.eup %11263  ;;  %v2294_v0 = vadd.f32 1.0, %v11262_v8  ;;  %3295 = vmatpush.bf16.msra.mxu3 %v9475_v24  ;;  %v9387_v8 = vor.u32 %v10473_v49, %v9384_v60 }
 0x2a9   : > { %11271 = vpow2.f32 %v2261_v2  ;;  %v2355_v5 = vmul.f32 %v11264_v44, %v14204_v51  ;;  %3246 = vmatpush.bf16.msra.mxu2 %v9411_v33  ;;  %v9456_v44 = vld [vmem:[#allocation13 + $0xd8] sm:$0xf0] }
 0x2aa   : > { %v2263_v3 = vmul.f32 1.442695, %v2201_v13  ;;  %11273 = vrcp.f32 %v2294_v0  ;;  %v2168_v41 = vpop.f32.mrf.mxu3  ;;  %v10491_v13 = vld [vmem:[#allocation13 + $0xd4] sm:$0xf] }
 0x2ab   : > { %v11266_v14 = vpop.eup %11265  ;;  %v2169_v16 = vadd.f32 %v2168_v41, %v2120_v10  ;;  %v9459_v0 = vor.u32 %v10491_v13, %v9456_v44  ;;  %v9376_v10 = vld [vmem:[#allocation13 + $0x38] sm:$0xf0]  ;;  %v9448_v41 = vld [vmem:[#allocation13 + $0xc8] sm:$0xf0] }
 0x2ac   : > { %v11268_v53 = vpop.eup %11267  ;;  %v2357_v55 = vmul.f32 %v11266_v14, %v14214_v48  ;;  %11275 = vpow2.f32 %v2263_v3  ;;  %3296 = vmatpush.bf16.msra.mxu3 %v9467_v56  ;;  %v9379_v3 = vor.u32 %v10471_v9, %v9376_v10  ;;  %v10489_v14 = vld [vmem:[#allocation13 + $0xc4] sm:$0xf]  ;;  %v9414_v56 = vld [vmem:[#allocation13 + $0x80] sm:$0xf] }
 0x2ad   : > { %v2202_v7 = vsub.f32 0.0, %v2169_v16  ;;  %v11270_v20 = vpop.eup %11269  ;;  %v2295_v15 = vadd.f32 1.0, %v11268_v53  ;;  %v9219_v53 = vld [vmem:[%s16756_s1 + $0x2] sm:$0x3] }
 0x2ae   : > { %v2410_v30 = vpack.c.bf16 %v2357_v55, %v2355_v5  ;;  %v2356_v61 = vmul.f32 %v11270_v20, %v14211_v63  ;;  %v9400_v63 = vld [vmem:[#allocation13 + $0x68] sm:$0xf0]  ;;  %v10469_v5 = vld [vmem:[#allocation13 + $0x24] sm:$0xf]  ;;  %v9440_v20 = vld [vmem:[#allocation13 + $0xb8] sm:$0xf0] }
 0x2af   : > { %v11272_v37 = vpop.eup %11271  ;;  %v2265_v17 = vmul.f32 1.442695, %v2202_v7  ;;  %v9368_v55 = vld [vmem:[#allocation13 + $0x28] sm:$0xf0]  ;;  %v14251_v23 = vperm.slane %v9219_v53, 1 }
 0x2b0   : > { %2617 = vmatmul.bf16.gmra.mxu0 %v2410_v30  ;;  %2715 = vmatmul.bf16.gmra.mxu2 %v2410_v30  ;;  %v11274_v35 = vpop.eup %11273  ;;  %v2296_v32 = vadd.f32 1.0, %v11272_v37  ;;  %v10487_v30 = vld [vmem:[#allocation13 + $0xb4] sm:$0xf] }
 0x2b1   : > { %v2358_v58 = vmul.f32 %v11274_v35, %v14221_v6  ;;  %11277 = vpow2.f32 %v2265_v17  ;;  %v9403_v6 = vor.u32 %v10477_v40, %v9400_v63  ;;  %3297 = vmatpush.bf16.msra.mxu3 %v9459_v0  ;;  %v9443_v37 = vor.u32 %v10487_v30, %v9440_v20  ;;  %v9358_v17 = vld [vmem:[#allocation13 + $0x10] sm:$0xf]  ;;  %v10468_v35 = vld [vmem:[#allocation13 + $0x14] sm:$0xf0]  ;;  %v10466_v40 = vld [vmem:[#allocation13 + $0x4] sm:$0xf0] }
 0x2b2   : > { %v11276_v62 = vpop.eup %11275  ;;  %11279 = vrcp.f32 %v2295_v15  ;;  %v14248_v15 = vperm.slane %v9219_v53, 0  ;;  %v10465_v63 = vld [vmem:[#allocation13 + $0x4] sm:$0xf] }
 0x2b3   : > { %v2297_v51 = vadd.f32 1.0, %v11276_v62  ;;  %v2411_v48 = vpack.c.bf16 %v2358_v58, %v2356_v61  ;;  %3247 = vmatpush.bf16.msra.mxu2 %v9403_v6  ;;  %v10467_v62 = vld [vmem:[#allocation13 + $0x14] sm:$0xf]  ;;  %v9359_v61 = vor.u32 %v10468_v35, %v9358_v17  ;;  %v9360_v58 = vld [vmem:[#allocation13 + $0x18] sm:$0xf0] }
 0x2b4   : > { %v9422_v6 = vld [vmem:[#allocation13 + $0x90] sm:$0xf] }
 0x2b5   : > { %11281 = vrcp.f32 %v2297_v51  ;;  %2666 = vmatmul.bf16.gmra.mxu1 %v2411_v48  ;;  %2764 = vmatmul.bf16.gmra.mxu3 %v2411_v48  ;;  %v9363_v51 = vor.u32 %v10467_v62, %v9360_v58  ;;  %v10485_v48 = vld [vmem:[#allocation13 + $0xa4] sm:$0xf] }
 0x2b6   : > { %11283 = vrcp.f32 %v2296_v32  ;;  %v9432_v32 = vld [vmem:[#allocation13 + $0xa8] sm:$0xf0]  ;;  %3154 = vmatpush.bf16.msrb.mxu0 %v9359_v61 }
 0x2b7   : > { %v11278_v39 = vpop.eup %11277  ;;  %3248 = vmatpush.bf16.msra.mxu2 %v9395_v34  ;;  %v9435_v33 = vor.u32 %v10485_v48, %v9432_v32  ;;  %v9427_v34 = vor.u32 %v10483_v52, %v9424_v46 }
 0x2b8   : > { %v11280_v54 = vpop.eup %11279  ;;  %v2298_v38 = vadd.f32 1.0, %v11278_v39 }
 0x2b9   : > { %v2359_v36 = vmul.f32 %v11280_v54, %v14224_v28 }
 0x2ba   : > { %11285 = vrcp.f32 %v2298_v38  ;;  %v9350_v38 = vld [vmem:[#allocation13] sm:$0xf] }
 0x2bb   : > { %v11282_v50 = vpop.eup %11281  ;;  %3249 = vmatpush.bf16.msra.mxu2 %v9387_v8 }
 0x2bc   : > { %v2361_v19 = vmul.f32 %v11282_v50, %v14234_v57  ;;  %v11284_v25 = vpop.eup %11283 }
 0x2bd   : > { %v2360_v28 = vmul.f32 %v11284_v25, %v14231_v22  ;;  %v9451_v22 = vor.u32 %v10489_v14, %v9448_v41 }
 0x2be   : > { %v2412_v1 = vpack.c.bf16 %v2361_v19, %v2359_v36  ;;  %v10484_v36 = vld [vmem:[#allocation13 + $0x94] sm:$0xf0]  ;;  %v9351_v19 = vor.u32 %v10466_v40, %v9350_v38 }
 0x2bf   : > { %3250 = vmatpush.bf16.msra.mxu2 %v9379_v3  ;;  %3298 = vmatpush.bf16.msra.mxu3 %v9451_v22  ;;  %v9423_v24 = vor.u32 %v10484_v36, %v9422_v6 }
 0x2c0   : > { %2622 = vmatmul.bf16.gmra.mxu0 %v2412_v1  ;;  %2720 = vmatmul.bf16.gmra.mxu2 %v2412_v1  ;;  %v11286_v21 = vpop.eup %11285  ;;  %v9355_v1 = vor.u32 %v10465_v63, %v9352_v12 }
 0x2c1   : > { %v2362_v57 = vmul.f32 %v11286_v21, %v2169_v16  ;;  %v9371_v16 = vor.u32 %v10469_v5, %v9368_v55  ;;  %3155 = vmatpush.bf16.msrb.mxu0 %v9351_v19  ;;  %3203 = vmatpush.bf16.msra.mxu1 %v9423_v24 }
 0x2c3   : > { %v2413_v2 = vpack.c.bf16 %v2362_v57, %v2360_v28  ;;  %3251 = vmatpush.bf16.msra.mxu2 %v9371_v16  ;;  %3299 = vmatpush.bf16.msra.mxu3 %v9443_v37  ;;  %v10482_v28 = vld [vmem:[#allocation13 + $0x84] sm:$0xf0]  ;;  %v10481_v57 = vld [vmem:[#allocation13 + $0x84] sm:$0xf] }
 0x2c4   : > { %v9415_v8 = vor.u32 %v10482_v28, %v9414_v56 }
 0x2c5   : > { %2671 = vmatmul.bf16.gmra.mxu1 %v2413_v2  ;;  %2769 = vmatmul.bf16.gmra.mxu3 %v2413_v2  ;;  %v9416_v2 = vld [vmem:[#allocation13 + $0x88] sm:$0xf0] }
 0x2c6   : > { %v9419_v0 = vor.u32 %v10481_v57, %v9416_v2  ;;  %3204 = vmatpush.bf16.msra.mxu1 %v9415_v8 }
 0x2c7   : > { %3252 = vmatpush.bf16.msra.mxu2 %v9363_v51  ;;  %3300 = vmatpush.bf16.msra.mxu3 %v9435_v33 }
 0x2cb   : > { %3253 = vmatpush.bf16.msra.mxu2 %v9355_v1  ;;  %3301 = vmatpush.bf16.msra.mxu3 %v9427_v34 }
 0x2cc   : > { %v2588_v7 = vpop.f32.mrf.mxu0 }
 0x2cd   : > { %v2589_v4 = vadd.f32 %v2588_v7, %v14248_v15 }
 0x2cf   : > { %3302 = vmatpush.bf16.msra.mxu3 %v9419_v0  ;;  %v9536_v0 = vld [vmem:[#allocation16 + $0x78] sm:$0xf0] }
 0x2d2   : > { %v2637_v39 = vpop.f32.mrf.mxu1  ;;  %v2686_v54 = vpop.f32.mrf.mxu2 }
 0x2d3   : > { %v14253_v50 = vadd.f32 %v2637_v39, %v2589_v4  ;;  %v2687_v11 = vadd.f32 %v2686_v54, %v14251_v23 }
 0x2d4   : > { %v2590_v29 = vpop.f32.mrf.mxu0 }
 0x2d5   : > { %v2775_v25 = vsub.f32 0.0, %v14253_v50  ;;  %v2591_v49 = vadd.f32 %v2590_v29, %v14248_v15 }
 0x2d7   : > { %v2807_v18 = vmul.f32 1.442695, %v2775_v25 }
 0x2d8   : > { %v2735_v21 = vpop.f32.mrf.mxu3 }
 0x2d9   : > { %v14258_v60 = vadd.f32 %v2735_v21, %v2687_v11  ;;  %11287 = vpow2.f32 %v2807_v18  ;;  %v9534_v11 = vld [vmem:[#allocation16 + $0x70] sm:$0xf]  ;;  %v10576_v21 = vld [vmem:[#allocation16 + $0x74] sm:$0xf0] }
 0x2da   : > { %v2639_v13 = vpop.f32.mrf.mxu1  ;;  %v2688_v44 = vpop.f32.mrf.mxu2  ;;  %v9535_v8 = vor.u32 %v10576_v21, %v9534_v11 }
 0x2db   : > { %v2776_v9 = vsub.f32 0.0, %v14258_v60  ;;  %v2640_v10 = vadd.f32 %v2639_v13, %v2591_v49  ;;  %v2689_v53 = vadd.f32 %v2688_v44, %v14251_v23  ;;  %v10575_v44 = vld [vmem:[#allocation16 + $0x74] sm:$0xf] }
 0x2dc   : > { %3703 = vmatpush.bf16.msra.mxu0 %v9535_v8  ;;  %v10573_v8 = vld [vmem:[#allocation16 + $0x64] sm:$0xf] }
 0x2dd   : > { %v2809_v3 = vmul.f32 1.442695, %v2776_v9  ;;  %v2777_v14 = vsub.f32 0.0, %v2640_v10  ;;  %v2593_v41 = vpop.f32.mrf.mxu0 }
 0x2de   : > { %v2594_v7 = vadd.f32 %v2593_v41, %v14248_v15 }
 0x2df   : > { %v2811_v22 = vmul.f32 1.442695, %v2777_v14  ;;  %11289 = vpow2.f32 %v2809_v3  ;;  %v11288_v55 = vpop.eup %11287 }
 0x2e0   : > { %v2737_v5 = vpop.f32.mrf.mxu3  ;;  %v2871_v17 = vadd.f32 1.0, %v11288_v55 }
 0x2e1   : > { %11291 = vpow2.f32 %v2811_v22  ;;  %v14262_v16 = vadd.f32 %v2737_v5, %v2689_v53  ;;  %v9539_v22 = vor.u32 %v10575_v44, %v9536_v0 }
 0x2e2   : > { %v2642_v20 = vpop.f32.mrf.mxu1 }
 0x2e3   : > { %v2778_v30 = vsub.f32 0.0, %v14262_v16  ;;  %v2691_v37 = vpop.f32.mrf.mxu2  ;;  %v14266_v35 = vadd.f32 %v2642_v20, %v2594_v7  ;;  %3752 = vmatpush.bf16.msrb.mxu1 %v9539_v22 }
 0x2e4   : > { %v2692_v33 = vadd.f32 %v2691_v37, %v14251_v23 }
 0x2e5   : > { %v2813_v62 = vmul.f32 1.442695, %v2778_v30  ;;  %v2595_v61 = vpop.f32.mrf.mxu0  ;;  %v11290_v58 = vpop.eup %11289  ;;  %v2779_v51 = vsub.f32 0.0, %v14266_v35 }
 0x2e6   : > { %v2872_v54 = vadd.f32 1.0, %v11290_v58  ;;  %v2596_v38 = vadd.f32 %v2595_v61, %v14248_v15 }
 0x2e7   : > { %v11292_v48 = vpop.eup %11291  ;;  %11293 = vpow2.f32 %v2813_v62  ;;  %v2815_v4 = vmul.f32 1.442695, %v2779_v51 }
 0x2e8   : > { %11295 = vrcp.f32 %v2871_v17  ;;  %v2873_v32 = vadd.f32 1.0, %v11292_v48  ;;  %v2740_v39 = vpop.f32.mrf.mxu3 }
 0x2e9   : > { %v14271_v40 = vadd.f32 %v2740_v39, %v2692_v33 }
 0x2ea   : > { %11297 = vrcp.f32 %v2873_v32  ;;  %v2644_v63 = vpop.f32.mrf.mxu1 }
 0x2eb   : > { %11299 = vpow2.f32 %v2815_v4  ;;  %v2693_v6 = vpop.f32.mrf.mxu2  ;;  %v2780_v36 = vsub.f32 0.0, %v14271_v40  ;;  %v14274_v19 = vadd.f32 %v2644_v63, %v2596_v38 }
 0x2ec   : > { %11301 = vrcp.f32 %v2872_v54  ;;  %v2694_v18 = vadd.f32 %v2693_v6, %v14251_v23 }
 0x2ed   : > { %v11294_v12 = vpop.eup %11293  ;;  %v2598_v29 = vpop.f32.mrf.mxu0  ;;  %v2817_v52 = vmul.f32 1.442695, %v2780_v36  ;;  %v2781_v46 = vsub.f32 0.0, %v14274_v19 }
 0x2ee   : > { %v11296_v24 = vpop.eup %11295  ;;  %v2874_v1 = vadd.f32 1.0, %v11294_v12  ;;  %v2599_v2 = vadd.f32 %v2598_v29, %v14248_v15 }
 0x2ef   : > { %v2819_v34 = vmul.f32 1.442695, %v2781_v46  ;;  %v2935_v28 = vmul.f32 %v11296_v24, %v14253_v50  ;;  %v9526_v46 = vld [vmem:[#allocation16 + $0x60] sm:$0xf] }
 0x2f0   : > { %v11298_v25 = vpop.eup %11297  ;;  %11303 = vrcp.f32 %v2874_v1  ;;  %v2742_v49 = vpop.f32.mrf.mxu3 }
 0x2f1   : > { %v11300_v56 = vpop.eup %11299  ;;  %v2937_v57 = vmul.f32 %v11298_v25, %v2640_v10  ;;  %11305 = vpow2.f32 %v2817_v52  ;;  %v14280_v13 = vadd.f32 %v2742_v49, %v2694_v18  ;;  %v10574_v25 = vld [vmem:[#allocation16 + $0x64] sm:$0xf0] }
 0x2f2   : > { %11307 = vpow2.f32 %v2819_v34  ;;  %v2875_v3 = vadd.f32 1.0, %v11300_v56  ;;  %v2647_v14 = vpop.f32.mrf.mxu1  ;;  %v11302_v53 = vpop.eup %11301  ;;  %v9527_v21 = vor.u32 %v10574_v25, %v9526_v46 }
 0x2f3   : > { %v2967_v9 = vpack.c.bf16 %v2937_v57, %v2935_v28  ;;  %v2696_v41 = vpop.f32.mrf.mxu2  ;;  %v2782_v50 = vsub.f32 0.0, %v14280_v13  ;;  %v14283_v10 = vadd.f32 %v2647_v14, %v2599_v2  ;;  %v2936_v37 = vmul.f32 %v11302_v53, %v14258_v60  ;;  %v9528_v2 = vld [vmem:[#allocation16 + $0x68] sm:$0xf0] }
 0x2f4   : > { %11309 = vrcp.f32 %v2875_v3  ;;  %v2697_v58 = vadd.f32 %v2696_v41, %v14251_v23  ;;  %3704 = vmatpush.bf16.msra.mxu0 %v9527_v21  ;;  %v9531_v3 = vor.u32 %v10573_v8, %v9528_v2 }
 0x2f5   : > { %v2600_v5 = vpop.f32.mrf.mxu0  ;;  %3156 = vmatmul.bf16.vlgmr.msrb.gmra.mxu0 %v2967_v9  ;;  %3254 = vmatmul.bf16.vlgmr.msra.gmra.mxu2 %v2967_v9  ;;  %v2821_v7 = vmul.f32 1.442695, %v2782_v50  ;;  %v2783_v30 = vsub.f32 0.0, %v14283_v10 }
 0x2f6   : > { %v11304_v55 = vpop.eup %11303  ;;  %v2601_v33 = vadd.f32 %v2600_v5, %v14248_v15  ;;  %3753 = vmatpush.bf16.msrb.mxu1 %v9531_v3 }
 0x2f7   : > { %v11306_v20 = vpop.eup %11305  ;;  %v2938_v17 = vmul.f32 %v11304_v55, %v14262_v16  ;;  %11311 = vpow2.f32 %v2821_v7  ;;  %v2823_v61 = vmul.f32 1.442695, %v2783_v30 }
 0x2f8   : > { %v11308_v62 = vpop.eup %11307  ;;  %v2745_v32 = vpop.f32.mrf.mxu3  ;;  %v2876_v4 = vadd.f32 1.0, %v11306_v20 }
 0x2f9   : > { %v2968_v51 = vpack.c.bf16 %v2938_v17, %v2936_v37  ;;  %v2877_v48 = vadd.f32 1.0, %v11308_v62  ;;  %v14290_v39 = vadd.f32 %v2745_v32, %v2697_v58 }
 0x2fa   : > { %v2649_v54 = vpop.f32.mrf.mxu1  ;;  %v11310_v63 = vpop.eup %11309 }
 0x2fb   : > { %11313 = vrcp.f32 %v2877_v48  ;;  %v2698_v38 = vpop.f32.mrf.mxu2  ;;  %3205 = vmatmul.bf16.vlgmr.msra.gmra.mxu1 %v2968_v51  ;;  %3303 = vmatmul.bf16.vlgmr.msra.gmra.mxu3 %v2968_v51  ;;  %v2784_v60 = vsub.f32 0.0, %v14290_v39  ;;  %v14293_v16 = vadd.f32 %v2649_v54, %v2601_v33  ;;  %v2939_v18 = vmul.f32 %v11310_v63, %v14266_v35 }
 0x2fc   : > { %11315 = vpow2.f32 %v2823_v61  ;;  %v2699_v52 = vadd.f32 %v2698_v38, %v14251_v23 }
 0x2fd   : > { %v2603_v6 = vpop.f32.mrf.mxu0  ;;  %v11312_v36 = vpop.eup %11311  ;;  %11317 = vrcp.f32 %v2876_v4  ;;  %v2825_v12 = vmul.f32 1.442695, %v2784_v60  ;;  %v2785_v29 = vsub.f32 0.0, %v14293_v16 }
 0x2fe   : > { %v2878_v24 = vadd.f32 1.0, %v11312_v36  ;;  %v2604_v57 = vadd.f32 %v2603_v6, %v14248_v15 }
 0x2ff   : > { %11319 = vpow2.f32 %v2825_v12  ;;  %v2827_v1 = vmul.f32 1.442695, %v2785_v29 }
 0x300   : > { %11321 = vrcp.f32 %v2878_v24  ;;  %v2747_v11 = vpop.f32.mrf.mxu3 }
 0x301   : > { %v11314_v34 = vpop.eup %11313  ;;  %11323 = vpow2.f32 %v2827_v1  ;;  %v14300_v49 = vadd.f32 %v2747_v11, %v2699_v52  ;;  %v9518_v1 = vld [vmem:[#allocation16 + $0x50] sm:$0xf]  ;;  %v10572_v52 = vld [vmem:[#allocation16 + $0x54] sm:$0xf0] }
 0x302   : > { %v11316_v56 = vpop.eup %11315  ;;  %v2941_v28 = vmul.f32 %v11314_v34, %v14274_v19  ;;  %v2652_v0 = vpop.f32.mrf.mxu1 }
 0x303   : > { %v2879_v44 = vadd.f32 1.0, %v11316_v56  ;;  %v2701_v9 = vpop.f32.mrf.mxu2  ;;  %v11318_v14 = vpop.eup %11317  ;;  %v2786_v35 = vsub.f32 0.0, %v14300_v49  ;;  %v14303_v41 = vadd.f32 %v2652_v0, %v2604_v57  ;;  %v9520_v57 = vld [vmem:[#allocation16 + $0x58] sm:$0xf0] }
 0x304   : > { %v2969_v22 = vpack.c.bf16 %v2941_v28, %v2939_v18  ;;  %v2940_v7 = vmul.f32 %v11318_v14, %v14271_v40  ;;  %v2702_v17 = vadd.f32 %v2701_v9, %v14251_v23  ;;  %v9519_v18 = vor.u32 %v10572_v52, %v9518_v1  ;;  %v10571_v28 = vld [vmem:[#allocation16 + $0x54] sm:$0xf] }
 0x305   : > { %v2605_v53 = vpop.f32.mrf.mxu0  ;;  %v11320_v19 = vpop.eup %11319  ;;  %v2829_v50 = vmul.f32 1.442695, %v2786_v35  ;;  %v2787_v5 = vsub.f32 0.0, %v14303_v41  ;;  %11325 = vrcp.f32 %v2879_v44  ;;  %v9523_v0 = vor.u32 %v10571_v28, %v9520_v57 }
 0x306   : > { %3161 = vmatmul.bf16.gmra.mxu0 %v2969_v22  ;;  %3259 = vmatmul.bf16.gmra.mxu2 %v2969_v22  ;;  %v11322_v55 = vpop.eup %11321  ;;  %v2606_v61 = vadd.f32 %v2605_v53, %v14248_v15  ;;  %v2880_v51 = vadd.f32 1.0, %v11320_v19 }
 0x307   : > { %v11324_v30 = vpop.eup %11323  ;;  %v2942_v20 = vmul.f32 %v11322_v55, %v14280_v13  ;;  %11327 = vpow2.f32 %v2829_v50  ;;  %v2831_v37 = vmul.f32 1.442695, %v2787_v5  ;;  %3705 = vmatpush.bf16.msra.mxu0 %v9519_v18  ;;  %3754 = vmatpush.bf16.msrb.mxu1 %v9523_v0 }
 0x308   : > { %v2881_v62 = vadd.f32 1.0, %v11324_v30  ;;  %v2750_v58 = vpop.f32.mrf.mxu3 }
 0x309   : > { %11329 = vpow2.f32 %v2831_v37  ;;  %v14310_v48 = vadd.f32 %v2750_v58, %v2702_v17  ;;  %v2970_v32 = vpack.c.bf16 %v2942_v20, %v2940_v7 }
 0x30a   : > { %11331 = vrcp.f32 %v2881_v62  ;;  %v2654_v4 = vpop.f32.mrf.mxu1 }
 0x30b   : > { %v2703_v40 = vpop.f32.mrf.mxu2  ;;  %v2788_v33 = vsub.f32 0.0, %v14310_v48  ;;  %v14313_v54 = vadd.f32 %v2654_v4, %v2606_v61  ;;  %3210 = vmatmul.bf16.gmra.mxu1 %v2970_v32  ;;  %3308 = vmatmul.bf16.gmra.mxu3 %v2970_v32  ;;  %v11326_v13 = vpop.eup %11325  ;;  %11333 = vrcp.f32 %v2880_v51 }
 0x30c   : > { %v2704_v24 = vadd.f32 %v2703_v40, %v14251_v23  ;;  %v2943_v25 = vmul.f32 %v11326_v13, %v14283_v10 }
 0x30d   : > { %v2608_v38 = vpop.f32.mrf.mxu0  ;;  %v11328_v60 = vpop.eup %11327  ;;  %v2833_v63 = vmul.f32 1.442695, %v2788_v33  ;;  %v2789_v6 = vsub.f32 0.0, %v14313_v54 }
 0x30e   : > { %v2882_v36 = vadd.f32 1.0, %v11328_v60  ;;  %v2609_v21 = vadd.f32 %v2608_v38, %v14248_v15 }
 0x30f   : > { %v11330_v12 = vpop.eup %11329  ;;  %11335 = vpow2.f32 %v2833_v63  ;;  %v2835_v29 = vmul.f32 1.442695, %v2789_v6 }
 0x310   : > { %v11332_v46 = vpop.eup %11331  ;;  %11337 = vrcp.f32 %v2882_v36  ;;  %v2752_v34 = vpop.f32.mrf.mxu3  ;;  %v2883_v8 = vadd.f32 1.0, %v11330_v12  ;;  %v9510_v12 = vld [vmem:[#allocation16 + $0x40] sm:$0xf] }
 0x311   : > { %v2945_v11 = vmul.f32 %v11332_v46, %v14293_v16  ;;  %11339 = vpow2.f32 %v2835_v29  ;;  %v14320_v56 = vadd.f32 %v2752_v34, %v2704_v24  ;;  %v11334_v9 = vpop.eup %11333  ;;  %v10570_v29 = vld [vmem:[#allocation16 + $0x44] sm:$0xf0] }
 0x312   : > { %v2657_v2 = vpop.f32.mrf.mxu1  ;;  %v2944_v50 = vmul.f32 %v11334_v9, %v14290_v39  ;;  %11341 = vrcp.f32 %v2883_v8  ;;  %v9511_v46 = vor.u32 %v10570_v29, %v9510_v12 }
 0x313   : > { %v2706_v44 = vpop.f32.mrf.mxu2  ;;  %v2790_v10 = vsub.f32 0.0, %v14320_v56  ;;  %v14323_v3 = vadd.f32 %v2657_v2, %v2609_v21  ;;  %v2971_v14 = vpack.c.bf16 %v2945_v11, %v2943_v25  ;;  %v10569_v11 = vld [vmem:[#allocation16 + $0x44] sm:$0xf]  ;;  %v9512_v21 = vld [vmem:[#allocation16 + $0x48] sm:$0xf0] }
 0x314   : > { %v2707_v30 = vadd.f32 %v2706_v44, %v14251_v23  ;;  %3706 = vmatpush.bf16.msra.mxu0 %v9511_v46  ;;  %v9515_v2 = vor.u32 %v10569_v11, %v9512_v21 }
 0x315   : > { %v2610_v35 = vpop.f32.mrf.mxu0  ;;  %v11336_v16 = vpop.eup %11335  ;;  %v2837_v22 = vmul.f32 1.442695, %v2790_v10  ;;  %v2791_v53 = vsub.f32 0.0, %v14323_v3 }
 0x316   : > { %3166 = vmatmul.bf16.gmra.mxu0 %v2971_v14  ;;  %3264 = vmatmul.bf16.gmra.mxu2 %v2971_v14  ;;  %v11338_v19 = vpop.eup %11337  ;;  %v2611_v37 = vadd.f32 %v2610_v35, %v14248_v15  ;;  %v2884_v62 = vadd.f32 1.0, %v11336_v16 }
 0x317   : > { %v11340_v5 = vpop.eup %11339  ;;  %v2946_v55 = vmul.f32 %v11338_v19, %v14300_v49  ;;  %11343 = vpow2.f32 %v2837_v22  ;;  %v2839_v7 = vmul.f32 1.442695, %v2791_v53  ;;  %3755 = vmatpush.bf16.msrb.mxu1 %v9515_v2 }
 0x318   : > { %v2885_v20 = vadd.f32 1.0, %v11340_v5  ;;  %v2755_v17 = vpop.f32.mrf.mxu3  ;;  %v11342_v49 = vpop.eup %11341 }
 0x319   : > { %11345 = vpow2.f32 %v2839_v7  ;;  %v14330_v61 = vadd.f32 %v2755_v17, %v2707_v30  ;;  %v2972_v58 = vpack.c.bf16 %v2946_v55, %v2944_v50  ;;  %v2947_v1 = vmul.f32 %v11342_v49, %v14303_v41 }
 0x31a   : > { %11347 = vrcp.f32 %v2885_v20  ;;  %v2659_v51 = vpop.f32.mrf.mxu1 }
 0x31b   : > { %v2708_v39 = vpop.f32.mrf.mxu2  ;;  %v2792_v32 = vsub.f32 0.0, %v14330_v61  ;;  %v14333_v4 = vadd.f32 %v2659_v51, %v2611_v37  ;;  %3215 = vmatmul.bf16.gmra.mxu1 %v2972_v58  ;;  %3313 = vmatmul.bf16.gmra.mxu3 %v2972_v58  ;;  %11349 = vrcp.f32 %v2884_v62 }
 0x31c   : > { %v2709_v36 = vadd.f32 %v2708_v39, %v14251_v23 }
 0x31d   : > { %v2613_v40 = vpop.f32.mrf.mxu0  ;;  %v11344_v33 = vpop.eup %11343  ;;  %v2841_v13 = vmul.f32 1.442695, %v2792_v32  ;;  %v2793_v38 = vsub.f32 0.0, %v14333_v4 }
 0x31e   : > { %v2886_v60 = vadd.f32 1.0, %v11344_v33  ;;  %v2614_v34 = vadd.f32 %v2613_v40, %v14248_v15 }
 0x31f   : > { %v11346_v63 = vpop.eup %11345  ;;  %11351 = vpow2.f32 %v2841_v13  ;;  %v2843_v6 = vmul.f32 1.442695, %v2793_v38 }
 0x320   : > { %v11348_v24 = vpop.eup %11347  ;;  %11353 = vrcp.f32 %v2886_v60  ;;  %v2757_v52 = vpop.f32.mrf.mxu3  ;;  %v2887_v28 = vadd.f32 1.0, %v11346_v63  ;;  %v9502_v63 = vld [vmem:[#allocation16 + $0x30] sm:$0xf] }
 0x321   : > { %v2949_v25 = vmul.f32 %v11348_v24, %v14313_v54  ;;  %11355 = vpow2.f32 %v2843_v6  ;;  %v14340_v18 = vadd.f32 %v2757_v52, %v2709_v36  ;;  %v11350_v44 = vpop.eup %11349  ;;  %v10568_v6 = vld [vmem:[#allocation16 + $0x34] sm:$0xf0] }
 0x322   : > { %v2662_v57 = vpop.f32.mrf.mxu1  ;;  %v2948_v22 = vmul.f32 %v11350_v44, %v14310_v48  ;;  %11357 = vrcp.f32 %v2887_v28  ;;  %v9503_v24 = vor.u32 %v10568_v6, %v9502_v63 }
 0x323   : > { %v2711_v8 = vpop.f32.mrf.mxu2  ;;  %v2794_v41 = vsub.f32 0.0, %v14340_v18  ;;  %v14343_v0 = vadd.f32 %v2662_v57, %v2614_v34  ;;  %v2973_v9 = vpack.c.bf16 %v2949_v25, %v2947_v1  ;;  %v10567_v25 = vld [vmem:[#allocation16 + $0x34] sm:$0xf]  ;;  %v9504_v34 = vld [vmem:[#allocation16 + $0x38] sm:$0xf0] }
 0x324   : > { %v2712_v5 = vadd.f32 %v2711_v8, %v14251_v23  ;;  %3707 = vmatpush.bf16.msra.mxu0 %v9503_v24  ;;  %v9507_v57 = vor.u32 %v10567_v25, %v9504_v34 }
 0x325   : > { %v2615_v10 = vpop.f32.mrf.mxu0  ;;  %v11352_v54 = vpop.eup %11351  ;;  %v2845_v14 = vmul.f32 1.442695, %v2794_v41  ;;  %v2795_v35 = vsub.f32 0.0, %v14343_v0 }
 0x326   : > { %3171 = vmatmul.bf16.gmra.mxu0 %v2973_v9  ;;  %3269 = vmatmul.bf16.gmra.mxu2 %v2973_v9  ;;  %v11354_v16 = vpop.eup %11353  ;;  %v2616_v7 = vadd.f32 %v2615_v10, %v14248_v15  ;;  %v2888_v20 = vadd.f32 1.0, %v11352_v54 }
 0x327   : > { %v11356_v53 = vpop.eup %11355  ;;  %v2950_v19 = vmul.f32 %v11354_v16, %v14320_v56  ;;  %11359 = vpow2.f32 %v2845_v14  ;;  %v2847_v50 = vmul.f32 1.442695, %v2795_v35  ;;  %3756 = vmatpush.bf16.msrb.mxu1 %v9507_v57 }
 0x328   : > { %v2889_v55 = vadd.f32 1.0, %v11356_v53  ;;  %v2760_v30 = vpop.f32.mrf.mxu3  ;;  %v11358_v56 = vpop.eup %11357 }
 0x329   : > { %11361 = vpow2.f32 %v2847_v50  ;;  %v14350_v37 = vadd.f32 %v2760_v30, %v2712_v5  ;;  %v2974_v17 = vpack.c.bf16 %v2950_v19, %v2948_v22  ;;  %v2951_v12 = vmul.f32 %v11358_v56, %v14323_v3 }
 0x32a   : > { %11363 = vrcp.f32 %v2889_v55  ;;  %v2664_v62 = vpop.f32.mrf.mxu1 }
 0x32b   : > { %v2713_v48 = vpop.f32.mrf.mxu2  ;;  %v2796_v58 = vsub.f32 0.0, %v14350_v37  ;;  %v14353_v51 = vadd.f32 %v2664_v62, %v2616_v7  ;;  %3220 = vmatmul.bf16.gmra.mxu1 %v2974_v17  ;;  %3318 = vmatmul.bf16.gmra.mxu3 %v2974_v17  ;;  %11365 = vrcp.f32 %v2888_v20 }
 0x32c   : > { %v2714_v60 = vadd.f32 %v2713_v48, %v14251_v23 }
 0x32d   : > { %v2618_v39 = vpop.f32.mrf.mxu0  ;;  %v11360_v32 = vpop.eup %11359  ;;  %v2849_v49 = vmul.f32 1.442695, %v2796_v58  ;;  %v2797_v40 = vsub.f32 0.0, %v14353_v51 }
 0x32e   : > { %v2890_v33 = vadd.f32 1.0, %v11360_v32  ;;  %v2619_v52 = vadd.f32 %v2618_v39, %v14248_v15 }
 0x32f   : > { %v11362_v13 = vpop.eup %11361  ;;  %11367 = vpow2.f32 %v2849_v49  ;;  %v2851_v38 = vmul.f32 1.442695, %v2797_v40 }
 0x330   : > { %v11364_v36 = vpop.eup %11363  ;;  %11369 = vrcp.f32 %v2890_v33  ;;  %v2762_v29 = vpop.f32.mrf.mxu3  ;;  %v2891_v11 = vadd.f32 1.0, %v11362_v13  ;;  %v9494_v33 = vld [vmem:[#allocation16 + $0x20] sm:$0xf]  ;;  %v10566_v13 = vld [vmem:[#allocation16 + $0x24] sm:$0xf0] }
 0x331   : > { %v2953_v1 = vmul.f32 %v11364_v36, %v14333_v4  ;;  %11371 = vpow2.f32 %v2851_v38  ;;  %v14360_v46 = vadd.f32 %v2762_v29, %v2714_v60  ;;  %v11366_v8 = vpop.eup %11365  ;;  %v9495_v6 = vor.u32 %v10566_v13, %v9494_v33 }
 0x332   : > { %v2667_v21 = vpop.f32.mrf.mxu1  ;;  %v2952_v14 = vmul.f32 %v11366_v8, %v14330_v61  ;;  %11373 = vrcp.f32 %v2891_v11 }
 0x333   : > { %v2716_v28 = vpop.f32.mrf.mxu2  ;;  %v2798_v3 = vsub.f32 0.0, %v14360_v46  ;;  %v14363_v2 = vadd.f32 %v2667_v21, %v2619_v52  ;;  %v2975_v44 = vpack.c.bf16 %v2953_v1, %v2951_v12  ;;  %v10565_v1 = vld [vmem:[#allocation16 + $0x24] sm:$0xf]  ;;  %v9496_v52 = vld [vmem:[#allocation16 + $0x28] sm:$0xf0]  ;;  %3708 = vmatpush.bf16.msra.mxu0 %v9495_v6 }
 0x334   : > { %v2717_v53 = vadd.f32 %v2716_v28, %v14251_v23  ;;  %v9499_v11 = vor.u32 %v10565_v1, %v9496_v52 }
 0x335   : > { %v2620_v41 = vpop.f32.mrf.mxu0  ;;  %v11368_v4 = vpop.eup %11367  ;;  %v2853_v9 = vmul.f32 1.442695, %v2798_v3  ;;  %v2799_v10 = vsub.f32 0.0, %v14363_v2 }
 0x336   : > { %3176 = vmatmul.bf16.gmra.mxu0 %v2975_v44  ;;  %3274 = vmatmul.bf16.gmra.mxu2 %v2975_v44  ;;  %v11370_v54 = vpop.eup %11369  ;;  %v2892_v5 = vadd.f32 1.0, %v11368_v4  ;;  %v2621_v55 = vadd.f32 %v2620_v41, %v14248_v15 }
 0x337   : > { %v11372_v35 = vpop.eup %11371  ;;  %v2954_v16 = vmul.f32 %v11370_v54, %v14340_v18  ;;  %11375 = vpow2.f32 %v2853_v9  ;;  %v2855_v22 = vmul.f32 1.442695, %v2799_v10  ;;  %3757 = vmatpush.bf16.msrb.mxu1 %v9499_v11 }
 0x338   : > { %v2893_v19 = vadd.f32 1.0, %v11372_v35  ;;  %v2765_v50 = vpop.f32.mrf.mxu3  ;;  %v11374_v18 = vpop.eup %11373 }
 0x339   : > { %v14370_v7 = vadd.f32 %v2765_v50, %v2717_v53  ;;  %v2976_v30 = vpack.c.bf16 %v2954_v16, %v2952_v14  ;;  %v2955_v60 = vmul.f32 %v11374_v18, %v14343_v0  ;;  %v9486_v16 = vld [vmem:[#allocation16 + $0x10] sm:$0xf] }
 0x33a   : > { %11377 = vrcp.f32 %v2893_v19  ;;  %v2669_v20 = vpop.f32.mrf.mxu1 }
 0x33b   : > { %v2718_v17 = vpop.f32.mrf.mxu2  ;;  %11379 = vpow2.f32 %v2855_v22  ;;  %v2800_v61 = vsub.f32 0.0, %v14370_v7  ;;  %v14373_v62 = vadd.f32 %v2669_v20, %v2621_v55  ;;  %3225 = vmatmul.bf16.gmra.mxu1 %v2976_v30  ;;  %3323 = vmatmul.bf16.gmra.mxu3 %v2976_v30  ;;  %v10564_v22 = vld [vmem:[#allocation16 + $0x14] sm:$0xf0]  ;;  %v9488_v55 = vld [vmem:[#allocation16 + $0x18] sm:$0xf0] }
 0x33c   : > { %11381 = vrcp.f32 %v2892_v5  ;;  %v2719_v40 = vadd.f32 %v2718_v17, %v14251_v23  ;;  %v9487_v50 = vor.u32 %v10564_v22, %v9486_v16  ;;  %v10563_v5 = vld [vmem:[#allocation16 + $0x14] sm:$0xf]  ;;  %v9478_v17 = vld [vmem:[#allocation16] sm:$0xf] }
 0x33d   : > { %v2623_v48 = vpop.f32.mrf.mxu0  ;;  %v11376_v58 = vpop.eup %11375  ;;  %v2857_v56 = vmul.f32 1.442695, %v2800_v61  ;;  %v2801_v39 = vsub.f32 0.0, %v14373_v62  ;;  %v10562_v61 = vld [vmem:[#allocation16 + $0x4] sm:$0xf0] }
 0x33e   : > { %v2894_v32 = vadd.f32 1.0, %v11376_v58  ;;  %v2624_v29 = vadd.f32 %v2623_v48, %v14248_v15  ;;  %3709 = vmatpush.bf16.msra.mxu0 %v9487_v50  ;;  %v9491_v48 = vor.u32 %v10563_v5, %v9488_v55  ;;  %v9479_v58 = vor.u32 %v10562_v61, %v9478_v17  ;;  %v1191_v5 = vld [vmem:[#allocation14] sm:$0x3] }
 0x33f   : > { %11383 = vpow2.f32 %v2857_v56  ;;  %v2859_v49 = vmul.f32 1.442695, %v2801_v39 }
 0x340   : > { %v11378_v38 = vpop.eup %11377  ;;  %11385 = vrcp.f32 %v2894_v32  ;;  %v2767_v63 = vpop.f32.mrf.mxu3  ;;  %v10561_v32 = vld [vmem:[#allocation16 + $0x4] sm:$0xf]  ;;  %3758 = vmatpush.bf16.msrb.mxu1 %v9491_v48 }
 0x341   : > { %v11380_v36 = vpop.eup %11379  ;;  %v2957_v12 = vmul.f32 %v11378_v38, %v14353_v51  ;;  %11387 = vpow2.f32 %v2859_v49  ;;  %v14380_v24 = vadd.f32 %v2767_v63, %v2719_v40  ;;  %v9480_v49 = vld [vmem:[#allocation16 + $0x8] sm:$0xf0] }
 0x342   : > { %v2672_v25 = vpop.f32.mrf.mxu1  ;;  %v11382_v21 = vpop.eup %11381  ;;  %v2895_v8 = vadd.f32 1.0, %v11380_v36  ;;  %v9483_v40 = vor.u32 %v10561_v32, %v9480_v49  ;;  %3710 = vmatpush.bf16.msra.mxu0 %v9479_v58 }
 0x343   : > { %v2721_v34 = vpop.f32.mrf.mxu2  ;;  %v2802_v0 = vsub.f32 0.0, %v14380_v24  ;;  %v14383_v28 = vadd.f32 %v2672_v25, %v2624_v29  ;;  %v2977_v57 = vpack.c.bf16 %v2957_v12, %v2955_v60  ;;  %v2956_v4 = vmul.f32 %v11382_v21, %v14350_v37 }
 0x344   : > { %v2722_v35 = vadd.f32 %v2721_v34, %v14251_v23  ;;  %3759 = vmatpush.bf16.msrb.mxu1 %v9483_v40 }
 0x345   : > { %v11384_v51 = vpop.eup %11383  ;;  %v2861_v3 = vmul.f32 1.442695, %v2802_v0  ;;  %v2803_v44 = vsub.f32 0.0, %v14383_v28  ;;  %v2625_v9 = vpop.f32.mrf.mxu0 }
 0x346   : > { %3181 = vmatmul.bf16.gmra.mxu0 %v2977_v57  ;;  %3279 = vmatmul.bf16.gmra.mxu2 %v2977_v57  ;;  %v11386_v41 = vpop.eup %11385  ;;  %v2626_v30 = vadd.f32 %v2625_v9, %v14248_v15 }
 0x347   : > { %v11388_v10 = vpop.eup %11387  ;;  %v2958_v54 = vmul.f32 %v11386_v41, %v14360_v46  ;;  %11389 = vpow2.f32 %v2861_v3  ;;  %v2863_v14 = vmul.f32 1.442695, %v2803_v44  ;;  %v2896_v46 = vadd.f32 1.0, %v11384_v51 }
 0x348   : > { %11391 = vrcp.f32 %v2895_v8  ;;  %v2897_v53 = vadd.f32 1.0, %v11388_v10  ;;  %v2770_v19 = vpop.f32.mrf.mxu3 }
 0x349   : > { %v14390_v20 = vadd.f32 %v2770_v19, %v2722_v35  ;;  %v2978_v37 = vpack.c.bf16 %v2958_v54, %v2956_v4 }
 0x34a   : > { %11393 = vrcp.f32 %v2897_v53  ;;  %v2674_v18 = vpop.f32.mrf.mxu1 }
 0x34b   : > { %11395 = vpow2.f32 %v2863_v14  ;;  %v2804_v56 = vsub.f32 0.0, %v14390_v20  ;;  %v2675_v39 = vadd.f32 %v2674_v18, %v2626_v30  ;;  %3230 = vmatmul.bf16.gmra.mxu1 %v2978_v37  ;;  %3328 = vmatmul.bf16.gmra.mxu3 %v2978_v37  ;;  %v2723_v15 = vpop.f32.mrf.mxu2  ;;  %v14400_v30 = vperm.slane %v1191_v5, 0 }
 0x34c   : > { %11397 = vrcp.f32 %v2896_v46  ;;  %v2724_v36 = vadd.f32 %v2723_v15, %v14251_v23  ;;  %v14406_v46 = vperm.slane %v1191_v5, 1 }
 0x34d   : > { %v11390_v33 = vpop.eup %11389  ;;  %v2865_v13 = vmul.f32 1.442695, %v2804_v56  ;;  %v2805_v38 = vsub.f32 0.0, %v2675_v39 }
 0x34e   : > { %v11392_v60 = vpop.eup %11391  ;;  %v2898_v63 = vadd.f32 1.0, %v11390_v33 }
 0x34f   : > { %11399 = vpow2.f32 %v2865_v13  ;;  %v2867_v6 = vmul.f32 1.442695, %v2805_v38  ;;  %v2959_v52 = vmul.f32 %v11392_v60, %v14363_v2 }
 0x350   : > { %v11394_v12 = vpop.eup %11393  ;;  %11401 = vrcp.f32 %v2898_v63  ;;  %v2772_v29 = vpop.f32.mrf.mxu3 }
 0x351   : > { %v11396_v1 = vpop.eup %11395  ;;  %v2961_v25 = vmul.f32 %v11394_v12, %v14373_v62  ;;  %11403 = vpow2.f32 %v2867_v6  ;;  %v2773_v34 = vadd.f32 %v2772_v29, %v2724_v36 }
 0x352   : > { %v11398_v0 = vpop.eup %11397  ;;  %v2899_v57 = vadd.f32 1.0, %v11396_v1 }
 0x353   : > { %v2806_v11 = vsub.f32 0.0, %v2773_v34  ;;  %v2979_v21 = vpack.c.bf16 %v2961_v25, %v2959_v52  ;;  %v2960_v44 = vmul.f32 %v11398_v0, %v14370_v7 }
 0x355   : > { %v11400_v8 = vpop.eup %11399  ;;  %v2869_v51 = vmul.f32 1.442695, %v2806_v11  ;;  %v10640_v11 = vld [vmem:[#allocation19 + $0x74] sm:$0xf0] }
 0x356   : > { %3186 = vmatmul.bf16.gmra.mxu0 %v2979_v21  ;;  %3284 = vmatmul.bf16.gmra.mxu2 %v2979_v21  ;;  %v11402_v23 = vpop.eup %11401  ;;  %v2900_v4 = vadd.f32 1.0, %v11400_v8  ;;  %v9662_v21 = vld [vmem:[#allocation19 + $0xf0] sm:$0xf] }
 0x357   : > { %v11404_v3 = vpop.eup %11403  ;;  %v2962_v41 = vmul.f32 %v11402_v23, %v14380_v24  ;;  %11405 = vpow2.f32 %v2869_v51 }
 0x358   : > { %11407 = vrcp.f32 %v2899_v57  ;;  %v2901_v2 = vadd.f32 1.0, %v11404_v3 }
 0x359   : > { %v2980_v62 = vpack.c.bf16 %v2962_v41, %v2960_v44 }
 0x35a   : > { %11409 = vrcp.f32 %v2901_v2  ;;  %v10639_v2 = vld [vmem:[#allocation19 + $0x74] sm:$0xf] }
 0x35b   : > { %3235 = vmatmul.bf16.gmra.mxu1 %v2980_v62  ;;  %3333 = vmatmul.bf16.gmra.mxu3 %v2980_v62  ;;  %11411 = vrcp.f32 %v2900_v4  ;;  %v9600_v62 = vld [vmem:[#allocation19 + $0x78] sm:$0xf0]  ;;  %v10655_v4 = vld [vmem:[#allocation19 + $0xf4] sm:$0xf] }
 0x35d   : > { %v11406_v9 = vpop.eup %11405 }
 0x35e   : > { %v11408_v10 = vpop.eup %11407  ;;  %v2902_v54 = vadd.f32 1.0, %v11406_v9  ;;  %v9664_v9 = vld [vmem:[#allocation19 + $0xf8] sm:$0xf0] }
 0x35f   : > { %v2963_v35 = vmul.f32 %v11408_v10, %v14383_v28 }
 0x360   : > { %v11410_v14 = vpop.eup %11409  ;;  %11413 = vrcp.f32 %v2902_v54  ;;  %v9603_v54 = vor.u32 %v10639_v2, %v9600_v62 }
 0x361   : > { %v2965_v16 = vmul.f32 %v11410_v14, %v2675_v39  ;;  %v11412_v22 = vpop.eup %11411 }
 0x362   : > { %v2964_v53 = vmul.f32 %v11412_v22, %v14390_v20  ;;  %4305 = vmatpush.bf16.msrb.mxu0 %v9603_v54 }
 0x363   : > { %v2981_v7 = vpack.c.bf16 %v2965_v16, %v2963_v35  ;;  %v9667_v35 = vor.u32 %v10655_v4, %v9664_v9 }
 0x365   : > { %4354 = vmatpush.bf16.msra.mxu1 %v9667_v35  ;;  %v9584_v35 = vld [vmem:[#allocation19 + $0x58] sm:$0xf0] }
 0x366   : > { %3191 = vmatmul.bf16.gmra.mxu0 %v2981_v7  ;;  %3289 = vmatmul.bf16.gmra.mxu2 %v2981_v7  ;;  %v11414_v24 = vpop.eup %11413 }
 0x367   : > { %v2966_v19 = vmul.f32 %v11414_v24, %v2773_v34  ;;  %v9598_v34 = vld [vmem:[#allocation19 + $0x70] sm:$0xf] }
 0x368   : > { %v9599_v0 = vor.u32 %v10640_v11, %v9598_v34 }
 0x369   : > { %v2982_v50 = vpack.c.bf16 %v2966_v19, %v2964_v53  ;;  %v9590_v19 = vld [vmem:[#allocation19 + $0x60] sm:$0xf] }
 0x36a   : > { %4207 = vmatpush.bf16.msrb.mxu2 %v9599_v0  ;;  %v9582_v0 = vld [vmem:[#allocation19 + $0x50] sm:$0xf] }
 0x36b   : > { %3240 = vmatmul.bf16.gmra.mxu1 %v2982_v50  ;;  %3338 = vmatmul.bf16.gmra.mxu3 %v2982_v50  ;;  %v10638_v50 = vld [vmem:[#allocation19 + $0x64] sm:$0xf0] }
 0x372   : > { %v3157_v55 = vpop.f32.mrf.mxu0 }
 0x373   : > { %v3158_v28 = vadd.f32 %v3157_v55, %v14400_v30  ;;  %v9591_v55 = vor.u32 %v10638_v50, %v9590_v19  ;;  %v9648_v19 = vld [vmem:[#allocation19 + $0xd8] sm:$0xf0] }
 0x375   : > { %4208 = vmatpush.bf16.msrb.mxu2 %v9591_v55 }
 0x376   : > { %3711 = vmatmul.bf16.vlgmr.msra.gmra.mxu0 %v13850_v59 }
 0x378   : > { %v3206_v37 = vpop.f32.mrf.mxu1  ;;  %v3255_v17 = vpop.f32.mrf.mxu2 }
 0x379   : > { %v14404_v61 = vadd.f32 %v3206_v37, %v3158_v28  ;;  %v3256_v20 = vadd.f32 %v3255_v17, %v14406_v46  ;;  %v9654_v28 = vld [vmem:[#allocation19 + $0xe0] sm:$0xf]  ;;  %v10654_v37 = vld [vmem:[#allocation19 + $0xe4] sm:$0xf0] }
 0x37a   : > { %v3159_v18 = vpop.f32.mrf.mxu0 }
 0x37b   : > { %3760 = vmatmul.bf16.vlgmr.msrb.gmra.mxu1 %v13850_v59  ;;  %v3160_v58 = vadd.f32 %v3159_v18, %v14400_v30  ;;  %v9655_v18 = vor.u32 %v10654_v37, %v9654_v28 }
 0x37e   : > { %v3304_v48 = vpop.f32.mrf.mxu3 }
 0x37f   : > { %v14411_v56 = vadd.f32 %v3304_v48, %v3256_v20 }
 0x380   : > { %v3208_v39 = vpop.f32.mrf.mxu1  ;;  %v14413_v32 = vpop.f32.mrf.mxu2 }
 0x381   : > { %v14415_v49 = vadd.f32 %v3208_v39, %v3160_v58 }
 0x383   : > { %v3162_v15 = vpop.f32.mrf.mxu0 }
 0x384   : > { %v3163_v33 = vadd.f32 %v3162_v15, %v14400_v30  ;;  %v10637_v15 = vld [vmem:[#allocation19 + $0x64] sm:$0xf] }
 0x386   : > { %3716 = vmatmul.bf16.gmra.mxu0 %v13870_v45  ;;  %v14418_v40 = vpop.f32.mrf.mxu3 }
 0x388   : > { %v3211_v59 = vpop.f32.mrf.mxu1 }
 0x389   : > { %v3260_v13 = vpop.f32.mrf.mxu2  ;;  %v14421_v38 = vadd.f32 %v3211_v59, %v3163_v33  ;;  %v9592_v33 = vld [vmem:[#allocation19 + $0x68] sm:$0xf0]  ;;  %v10653_v59 = vld [vmem:[#allocation19 + $0xe4] sm:$0xf] }
 0x38a   : > { %v3261_v63 = vadd.f32 %v3260_v13, %v14406_v46 }
 0x38b   : > { %v3164_v60 = vpop.f32.mrf.mxu0  ;;  %3765 = vmatmul.bf16.gmra.mxu1 %v13870_v45  ;;  %v10656_v45 = vld [vmem:[#allocation19 + $0xf4] sm:$0xf0] }
 0x38c   : > { %v3165_v36 = vadd.f32 %v3164_v60, %v14400_v30  ;;  %v9663_v51 = vor.u32 %v10656_v45, %v9662_v21  ;;  %v9595_v60 = vor.u32 %v10637_v15, %v9592_v33  ;;  %v10636_v45 = vld [vmem:[#allocation19 + $0x54] sm:$0xf0] }
 0x38e   : > { %v3309_v6 = vpop.f32.mrf.mxu3  ;;  %4256 = vmatpush.bf16.msrb.mxu3 %v9663_v51  ;;  %4306 = vmatpush.bf16.msrb.mxu0 %v9595_v60  ;;  %v9583_v51 = vor.u32 %v10636_v45, %v9582_v0  ;;  %v10649_v0 = vld [vmem:[#allocation19 + $0xc4] sm:$0xf] }
 0x38f   : > { %v14426_v12 = vadd.f32 %v3309_v6, %v3261_v63  ;;  %v9656_v63 = vld [vmem:[#allocation19 + $0xe8] sm:$0xf0] }
 0x390   : > { %v3213_v29 = vpop.f32.mrf.mxu1  ;;  %4209 = vmatpush.bf16.msrb.mxu2 %v9583_v51 }
 0x391   : > { %v14428_v1 = vpop.f32.mrf.mxu2  ;;  %v14430_v52 = vadd.f32 %v3213_v29, %v3165_v36  ;;  %v9659_v36 = vor.u32 %v10653_v59, %v9656_v63 }
 0x392   : > { %4257 = vmatpush.bf16.msrb.mxu3 %v9655_v18  ;;  %v9574_v18 = vld [vmem:[#allocation19 + $0x40] sm:$0xf] }
 0x393   : > { %v3167_v25 = vpop.f32.mrf.mxu0  ;;  %4355 = vmatpush.bf16.msra.mxu1 %v9659_v36 }
 0x394   : > { %v3168_v8 = vadd.f32 %v3167_v25, %v14400_v30 }
 0x396   : > { %3721 = vmatmul.bf16.gmra.mxu0 %v13840_v42  ;;  %v14433_v57 = vpop.f32.mrf.mxu3 }
 0x398   : > { %v3216_v23 = vpop.f32.mrf.mxu1 }
 0x399   : > { %v3265_v3 = vpop.f32.mrf.mxu2  ;;  %v14436_v44 = vadd.f32 %v3216_v23, %v3168_v8  ;;  %v9646_v23 = vld [vmem:[#allocation19 + $0xd0] sm:$0xf] }
 0x39a   : > { %v3266_v10 = vadd.f32 %v3265_v3, %v14406_v46  ;;  %v10652_v3 = vld [vmem:[#allocation19 + $0xd4] sm:$0xf0] }
 0x39b   : > { %v3169_v41 = vpop.f32.mrf.mxu0  ;;  %3770 = vmatmul.bf16.gmra.mxu1 %v13840_v42  ;;  %v9647_v4 = vor.u32 %v10652_v3, %v9646_v23  ;;  %v9640_v23 = vld [vmem:[#allocation19 + $0xc8] sm:$0xf0] }
 0x39c   : > { %v3170_v16 = vadd.f32 %v3169_v41, %v14400_v30 }
 0x39d   : > { %4258 = vmatpush.bf16.msrb.mxu3 %v9647_v4  ;;  %v9566_v4 = vld [vmem:[#allocation19 + $0x30] sm:$0xf] }
 0x39e   : > { %v3314_v14 = vpop.f32.mrf.mxu3 }
 0x39f   : > { %v14441_v7 = vadd.f32 %v3314_v14, %v3266_v10  ;;  %v10635_v14 = vld [vmem:[#allocation19 + $0x54] sm:$0xf] }
 0x3a0   : > { %v3218_v22 = vpop.f32.mrf.mxu1 }
 0x3a1   : > { %v14443_v24 = vpop.f32.mrf.mxu2  ;;  %v14445_v53 = vadd.f32 %v3218_v22, %v3170_v16  ;;  %v9587_v22 = vor.u32 %v10635_v14, %v9584_v35  ;;  %v9630_v14 = vld [vmem:[#allocation19 + $0xb0] sm:$0xf]  ;;  %v10648_v35 = vld [vmem:[#allocation19 + $0xb4] sm:$0xf0] }
 0x3a3   : > { %v3172_v42 = vpop.f32.mrf.mxu0  ;;  %4307 = vmatpush.bf16.msrb.mxu0 %v9587_v22  ;;  %v9631_v22 = vor.u32 %v10648_v35, %v9630_v14 }
 0x3a4   : > { %v3173_v17 = vadd.f32 %v3172_v42, %v14400_v30  ;;  %v10651_v42 = vld [vmem:[#allocation19 + $0xd4] sm:$0xf] }
 0x3a5   : > { %v9651_v55 = vor.u32 %v10651_v42, %v9648_v19 }
 0x3a6   : > { %3726 = vmatmul.bf16.gmra.mxu0 %v13860_v26  ;;  %v14448_v5 = vpop.f32.mrf.mxu3 }
 0x3a7   : > { %4356 = vmatpush.bf16.msra.mxu1 %v9651_v55 }
 0x3a8   : > { %v3221_v20 = vpop.f32.mrf.mxu1 }
 0x3a9   : > { %v3270_v48 = vpop.f32.mrf.mxu2  ;;  %v14451_v58 = vadd.f32 %v3221_v20, %v3173_v17 }
 0x3aa   : > { %v3271_v13 = vadd.f32 %v3270_v48, %v14406_v46  ;;  %v9638_v48 = vld [vmem:[#allocation19 + $0xc0] sm:$0xf] }
 0x3ab   : > { %v3174_v39 = vpop.f32.mrf.mxu0  ;;  %3775 = vmatmul.bf16.gmra.mxu1 %v13860_v26 }
 0x3ac   : > { %v3175_v29 = vadd.f32 %v3174_v39, %v14400_v30  ;;  %v10650_v39 = vld [vmem:[#allocation19 + $0xc4] sm:$0xf0] }
 0x3ad   : > { %v9639_v33 = vor.u32 %v10650_v39, %v9638_v48  ;;  %v9568_v48 = vld [vmem:[#allocation19 + $0x38] sm:$0xf0] }
 0x3ae   : > { %v3319_v6 = vpop.f32.mrf.mxu3 }
 0x3af   : > { %v14456_v25 = vadd.f32 %v3319_v6, %v3271_v13  ;;  %4259 = vmatpush.bf16.msrb.mxu3 %v9639_v33 }
 0x3b0   : > { %v3223_v34 = vpop.f32.mrf.mxu1 }
 0x3b1   : > { %v14458_v11 = vpop.f32.mrf.mxu2  ;;  %v14460_v21 = vadd.f32 %v3223_v34, %v3175_v29  ;;  %v10633_v34 = vld [vmem:[#allocation19 + $0x44] sm:$0xf] }
 0x3b3   : > { %v3177_v26 = vpop.f32.mrf.mxu0  ;;  %4260 = vmatpush.bf16.msrb.mxu3 %v9631_v22 }
 0x3b4   : > { %v3178_v41 = vadd.f32 %v3177_v26, %v14400_v30  ;;  %v9576_v26 = vld [vmem:[#allocation19 + $0x48] sm:$0xf0] }
 0x3b5   : > { %v9579_v51 = vor.u32 %v10633_v34, %v9576_v26 }
 0x3b6   : > { %3731 = vmatmul.bf16.gmra.mxu0 %v13842_v43  ;;  %v14463_v8 = vpop.f32.mrf.mxu3 }
 0x3b7   : > { %4308 = vmatpush.bf16.msrb.mxu0 %v9579_v51  ;;  %v9622_v51 = vld [vmem:[#allocation19 + $0xa0] sm:$0xf] }
 0x3b8   : > { %v3226_v2 = vpop.f32.mrf.mxu1 }
 0x3b9   : > { %v3275_v62 = vpop.f32.mrf.mxu2  ;;  %v14466_v9 = vadd.f32 %v3226_v2, %v3178_v41  ;;  %v9643_v2 = vor.u32 %v10649_v0, %v9640_v23  ;;  %v9558_v0 = vld [vmem:[#allocation19 + $0x20] sm:$0xf] }
 0x3ba   : > { %v3276_v54 = vadd.f32 %v3275_v62, %v14406_v46 }
 0x3bb   : > { %16757 = vst [vmem:[#allocation49_spill] sm:$0xff] %v14466_v9  ;;  %v14468_v10 = vpop.f32.mrf.mxu0  ;;  %3780 = vmatmul.bf16.gmra.mxu1 %v13842_v43  ;;  %v10634_v43 = vld [vmem:[#allocation19 + $0x44] sm:$0xf0] }
 0x3bc   : > { %v9575_v20 = vor.u32 %v10634_v43, %v9574_v18  ;;  %4357 = vmatpush.bf16.msra.mxu1 %v9643_v2  ;;  %v10646_v2 = vld [vmem:[#allocation19 + $0xa4] sm:$0xf0] }
 0x3be   : > { %v3324_v16 = vpop.f32.mrf.mxu3  ;;  %4210 = vmatpush.bf16.msrb.mxu2 %v9575_v20  ;;  %v10631_v20 = vld [vmem:[#allocation19 + $0x34] sm:$0xf] }
 0x3bf   : > { %v14472_v50 = vadd.f32 %v3324_v16, %v3276_v54  ;;  %v9571_v33 = vor.u32 %v10631_v20, %v9568_v48 }
 0x3c0   : > { %v14474_v28 = vpop.f32.mrf.mxu1 }
 0x3c1   : > { %16758 = vst [vmem:[#allocation50_spill] sm:$0xff] %v14474_v28  ;;  %v14476_v37 = vpop.f32.mrf.mxu2  ;;  %4309 = vmatpush.bf16.msrb.mxu0 %v9571_v33  ;;  %v9624_v33 = vld [vmem:[#allocation19 + $0xa8] sm:$0xf0] }
 0x3c3   : > { %v3182_v17 = vpop.f32.mrf.mxu0 }
 0x3c4   : > { %v3183_v59 = vadd.f32 %v3182_v17, %v14400_v30 }
 0x3c6   : > { %3736 = vmatmul.bf16.gmra.mxu0 %v13862_v27  ;;  %v14479_v15 = vpop.f32.mrf.mxu3 }
 0x3c8   : > { %v3231_v13 = vpop.f32.mrf.mxu1 }
 0x3c9   : > { %v3280_v60 = vpop.f32.mrf.mxu2  ;;  %v14482_v63 = vadd.f32 %v3231_v13, %v3183_v59  ;;  %v10647_v59 = vld [vmem:[#allocation19 + $0xb4] sm:$0xf]  ;;  %v9632_v13 = vld [vmem:[#allocation19 + $0xb8] sm:$0xf0] }
 0x3ca   : > { %v3281_v36 = vadd.f32 %v3280_v60, %v14406_v46 }
 0x3cb   : > { %16759 = vst [vmem:[#allocation51_spill] sm:$0xff] %v14482_v63  ;;  %v14484_v6 = vpop.f32.mrf.mxu0  ;;  %3785 = vmatmul.bf16.gmra.mxu1 %v13862_v27  ;;  %v10632_v27 = vld [vmem:[#allocation19 + $0x34] sm:$0xf0] }
 0x3cc   : > { %16760 = vst [vmem:[#allocation52_spill] sm:$0xff] %v14484_v6  ;;  %v9567_v54 = vor.u32 %v10632_v27, %v9566_v4  ;;  %v9623_v4 = vor.u32 %v10646_v2, %v9622_v51  ;;  %v9552_v2 = vld [vmem:[#allocation19 + $0x18] sm:$0xf0] }
 0x3ce   : > { %v3329_v29 = vpop.f32.mrf.mxu3  ;;  %4211 = vmatpush.bf16.msrb.mxu2 %v9567_v54  ;;  %4261 = vmatpush.bf16.msrb.mxu3 %v9623_v4 }
 0x3cf   : > { %v14488_v45 = vadd.f32 %v3329_v29, %v3281_v36  ;;  %v9635_v36 = vor.u32 %v10647_v59, %v9632_v13 }
 0x3d0   : > { %v14490_v3 = vpop.f32.mrf.mxu1 }
 0x3d1   : > { %16761 = vst [vmem:[#allocation53_spill] sm:$0xff] %v14488_v45  ;;  %v14492_v41 = vpop.f32.mrf.mxu2  ;;  %4358 = vmatpush.bf16.msra.mxu1 %v9635_v36 }
 0x3d2   : > { %16762 = vst [vmem:[#allocation54_spill] sm:$0xff] %v14490_v3 }
 0x3d3   : > { %v3187_v62 = vpop.f32.mrf.mxu0 }
 0x3d4   : > { %v3188_v42 = vadd.f32 %v3187_v62, %v14400_v30 }
 0x3d6   : > { %3741 = vmatmul.bf16.gmra.mxu0 %v13844_v47  ;;  %v14495_v16 = vpop.f32.mrf.mxu3 }
 0x3d8   : > { %v3236_v19 = vpop.f32.mrf.mxu1 }
 0x3d9   : > { %v3285_v55 = vpop.f32.mrf.mxu2  ;;  %v14498_v17 = vadd.f32 %v3236_v19, %v3188_v42  ;;  %v3552_v42 = vld [vmem:[#allocation17] sm:$0x3]  ;;  %v10629_v19 = vld [vmem:[#allocation19 + $0x24] sm:$0xf] }
 0x3da   : > { %v3286_v43 = vadd.f32 %v3285_v55, %v14406_v46  ;;  %v9560_v55 = vld [vmem:[#allocation19 + $0x28] sm:$0xf0]  ;;  %v14520_v59 = vperm.slane %v3552_v42, 0 }
 0x3db   : > { %16763 = vst [vmem:[#allocation55_spill] sm:$0xff] %v14498_v17  ;;  %v14500_v18 = vpop.f32.mrf.mxu0  ;;  %3790 = vmatmul.bf16.gmra.mxu1 %v13844_v47  ;;  %v10630_v47 = vld [vmem:[#allocation19 + $0x24] sm:$0xf0]  ;;  %v9563_v48 = vor.u32 %v10629_v19, %v9560_v55  ;;  %v14530_v19 = vperm.slane %v3552_v42, 1 }
 0x3dc   : > { %16764 = vst [vmem:[#allocation56_spill] sm:$0xff] %v14500_v18  ;;  %v9559_v23 = vor.u32 %v10630_v47, %v9558_v0  ;;  %v9550_v0 = vld [vmem:[#allocation19 + $0x10] sm:$0xf]  ;;  %v10628_v47 = vld [vmem:[#allocation19 + $0x14] sm:$0xf0] }
 0x3dd   : > { %4310 = vmatpush.bf16.msrb.mxu0 %v9563_v48  ;;  %v9551_v51 = vor.u32 %v10628_v47, %v9550_v0  ;;  %v10626_v55 = vld [vmem:[#allocation19 + $0x4] sm:$0xf0]  ;;  %v10625_v48 = vld [vmem:[#allocation19 + $0x4] sm:$0xf]  ;;  %v9616_v0 = vld [vmem:[#allocation19 + $0x98] sm:$0xf0] }
 0x3de   : > { %v3334_v39 = vpop.f32.mrf.mxu3  ;;  %4212 = vmatpush.bf16.msrb.mxu2 %v9559_v23  ;;  %v10627_v23 = vld [vmem:[#allocation19 + $0x14] sm:$0xf] }
 0x3df   : > { %v14504_v60 = vadd.f32 %v3334_v39, %v3286_v43  ;;  %v10645_v39 = vld [vmem:[#allocation19 + $0xa4] sm:$0xf] }
 0x3e0   : > { %v14506_v29 = vpop.f32.mrf.mxu1 }
 0x3e1   : > { %16765 = vst [vmem:[#allocation57_spill] sm:$0xff] %v14504_v60  ;;  %v14508_v34 = vpop.f32.mrf.mxu2 }
 0x3e2   : > { %16766 = vst [vmem:[#allocation58_spill] sm:$0xff] %v14506_v29  ;;  %4213 = vmatpush.bf16.msrb.mxu2 %v9551_v51 }
 0x3e3   : > { %16767 = vst [vmem:[#allocation59_spill] sm:$0xff] %v14508_v34  ;;  %v3192_v26 = vpop.f32.mrf.mxu0  ;;  %v9695_v34 = vld [vmem:[#allocation19 + $0x130] sm:$0xf] }
 0x3e4   : > { %v3193_v27 = vadd.f32 %v3192_v26, %v14400_v30  ;;  %v9627_v26 = vor.u32 %v10645_v39, %v9624_v33 }
 0x3e6   : > { %3746 = vmatmul.bf16.gmra.mxu0 %v13864_v31  ;;  %v14511_v62 = vpop.f32.mrf.mxu3  ;;  %4359 = vmatpush.bf16.msra.mxu1 %v9627_v26  ;;  %v10643_v26 = vld [vmem:[#allocation19 + $0x94] sm:$0xf] }
 0x3e7   : > { %16768 = vst [vmem:[#allocation60_spill] sm:$0xff] %v14511_v62  ;;  %v10688_v62 = vld [vmem:[#allocation19 + $0x1f4] sm:$0xf0] }
 0x3e8   : > { %v3241_v54 = vpop.f32.mrf.mxu1 }
 0x3e9   : > { %v14514_v14 = vadd.f32 %v3241_v54, %v3193_v27  ;;  %v3290_v22 = vpop.f32.mrf.mxu2  ;;  %v9555_v27 = vor.u32 %v10627_v23, %v9552_v2  ;;  %v9542_v54 = vld [vmem:[#allocation19] sm:$0xf]  ;;  %v9619_v23 = vor.u32 %v10643_v26, %v9616_v0 }
 0x3ea   : > { %v3291_v43 = vadd.f32 %v3290_v22, %v14406_v46  ;;  %v9543_v47 = vor.u32 %v10626_v55, %v9542_v54  ;;  %v9608_v55 = vld [vmem:[#allocation19 + $0x88] sm:$0xf0] }
 0x3eb   : > { %16769 = vst [vmem:[#allocation61_spill] sm:$0xff] %v14514_v14  ;;  %v14516_v35 = vpop.f32.mrf.mxu0  ;;  %3795 = vmatmul.bf16.gmra.mxu1 %v13864_v31  ;;  %4311 = vmatpush.bf16.msrb.mxu0 %v9555_v27  ;;  %v9544_v14 = vld [vmem:[#allocation19 + $0x8] sm:$0xf0]  ;;  %v9606_v27 = vld [vmem:[#allocation19 + $0x80] sm:$0xf] }
 0x3ec   : > { %16770 = vst [vmem:[#allocation62_spill] sm:$0xff] %v14516_v35  ;;  %4214 = vmatpush.bf16.msrb.mxu2 %v9543_v47  ;;  %v9547_v35 = vor.u32 %v10625_v48, %v9544_v14  ;;  %4360 = vmatpush.bf16.msra.mxu1 %v9619_v23 }
 0x3ee   : > { %v3339_v20 = vpop.f32.mrf.mxu3 }
 0x3ef   : > { %v14522_v13 = vadd.f32 %v3339_v20, %v3291_v43  ;;  %v9614_v43 = vld [vmem:[#allocation19 + $0x90] sm:$0xf]  ;;  %v10644_v20 = vld [vmem:[#allocation19 + $0x94] sm:$0xf0]  ;;  %4312 = vmatpush.bf16.msrb.mxu0 %v9547_v35 }
 0x3f0   : > { %v14524_v36 = vpop.f32.mrf.mxu1  ;;  %v9615_v33 = vor.u32 %v10644_v20, %v9614_v43  ;;  %v10641_v20 = vld [vmem:[#allocation19 + $0x84] sm:$0xf] }
 0x3f1   : > { %16771 = vst [vmem:[#allocation63_spill] sm:$0xff] %v14522_v13 }
 0x3f2   : > { %16772 = vst [vmem:[#allocation64_spill] sm:$0xff] %v14524_v36  ;;  %4262 = vmatpush.bf16.msrb.mxu3 %v9615_v33  ;;  %v10642_v36 = vld [vmem:[#allocation19 + $0x84] sm:$0xf0]  ;;  %v9611_v33 = vor.u32 %v10641_v20, %v9608_v55 }
 0x3f3   : > { %v3712_v31 = vpop.f32.mrf.mxu0  ;;  %v9607_v43 = vor.u32 %v10642_v36, %v9606_v27 }
 0x3f4   : > { %v14527_v4 = vadd.f32 %v3712_v31, %v14520_v59  ;;  %4361 = vmatpush.bf16.msra.mxu1 %v9611_v33 }
 0x3f6   : > { %v3801_v22 = vsub.f32 0.0, %v14527_v4  ;;  %4263 = vmatpush.bf16.msrb.mxu3 %v9607_v43 }
 0x3f8   : > { %v3761_v39 = vpop.f32.mrf.mxu1  ;;  %v3833_v2 = vmul.f32 1.442695, %v3801_v22 }
 0x3f9   : > { %v14533_v31 = vadd.f32 %v3761_v39, %v14530_v19 }
 0x3fa   : > { %11415 = vpow2.f32 %v3833_v2 }
 0x3fb   : > { %v3714_v51 = vpop.f32.mrf.mxu0  ;;  %v3802_v54 = vsub.f32 0.0, %v14533_v31 }
 0x3fc   : > { %v14536_v42 = vadd.f32 %v3714_v51, %v14520_v59 }
 0x3fd   : > { %v3835_v22 = vmul.f32 1.442695, %v3802_v54 }
 0x3fe   : > { %v3803_v39 = vsub.f32 0.0, %v14536_v42 }
 0x3ff   : > { %11417 = vpow2.f32 %v3835_v22 }
 0x400   : > { %v3763_v26 = vpop.f32.mrf.mxu1  ;;  %v3837_v47 = vmul.f32 1.442695, %v3803_v39  ;;  %v11416_v48 = vpop.eup %11415 }
 0x401   : > { %v3764_v0 = vadd.f32 %v3763_v26, %v14530_v19  ;;  %v3897_v27 = vadd.f32 1.0, %v11416_v48 }
 0x402   : > { %11419 = vpow2.f32 %v3837_v47 }
 0x403   : > { %v3717_v51 = vpop.f32.mrf.mxu0  ;;  %v3804_v14 = vsub.f32 0.0, %v3764_v0 }
 0x404   : > { %v14542_v36 = vadd.f32 %v3717_v51, %v14520_v59 }
 0x405   : > { %v3839_v35 = vmul.f32 1.442695, %v3804_v14  ;;  %v11418_v55 = vpop.eup %11417 }
 0x406   : > { %v3805_v23 = vsub.f32 0.0, %v14542_v36  ;;  %v3898_v26 = vadd.f32 1.0, %v11418_v55 }
 0x407   : > { %11421 = vpow2.f32 %v3839_v35 }
 0x408   : > { %v3766_v2 = vpop.f32.mrf.mxu1  ;;  %v3841_v43 = vmul.f32 1.442695, %v3805_v23  ;;  %v11420_v33 = vpop.eup %11419  ;;  %11423 = vrcp.f32 %v3897_v27 }
 0x409   : > { %v14546_v20 = vadd.f32 %v3766_v2, %v14530_v19  ;;  %v3899_v51 = vadd.f32 1.0, %v11420_v33 }
 0x40a   : > { %11425 = vpow2.f32 %v3841_v43 }
 0x40b   : > { %v3719_v54 = vpop.f32.mrf.mxu0  ;;  %v3806_v22 = vsub.f32 0.0, %v14546_v20  ;;  %11427 = vrcp.f32 %v3898_v26 }
 0x40c   : > { %v14549_v39 = vadd.f32 %v3719_v54, %v14520_v59  ;;  %11429 = vrcp.f32 %v3899_v51 }
 0x40d   : > { %v11422_v14 = vpop.eup %11421  ;;  %v3843_v48 = vmul.f32 1.442695, %v3806_v22 }
 0x40e   : > { %v3807_v47 = vsub.f32 0.0, %v14549_v39  ;;  %v3900_v35 = vadd.f32 1.0, %v11422_v14  ;;  %v11424_v27 = vpop.eup %11423 }
 0x40f   : > { %11431 = vpow2.f32 %v3843_v48 }
 0x410   : > { %v3768_v23 = vpop.f32.mrf.mxu1  ;;  %11433 = vrcp.f32 %v3900_v35  ;;  %v3845_v2 = vmul.f32 1.442695, %v3807_v47  ;;  %v11426_v17 = vpop.eup %11425  ;;  %v3961_v47 = vmul.f32 %v11424_v27, %v14527_v4 }
 0x411   : > { %v14554_v54 = vadd.f32 %v3768_v23, %v14530_v19  ;;  %v11428_v13 = vpop.eup %11427  ;;  %v3901_v23 = vadd.f32 1.0, %v11426_v17 }
 0x412   : > { %v11430_v26 = vpop.eup %11429  ;;  %11435 = vpow2.f32 %v3845_v2  ;;  %v3962_v29 = vmul.f32 %v11428_v13, %v14533_v31 }
 0x413   : > { %v3722_v55 = vpop.f32.mrf.mxu0  ;;  %v3808_v33 = vsub.f32 0.0, %v14554_v54  ;;  %v3963_v48 = vmul.f32 %v11430_v26, %v14536_v42 }
 0x414   : > { %v14558_v43 = vadd.f32 %v3722_v55, %v14520_v59 }
 0x415   : > { %v3847_v22 = vmul.f32 1.442695, %v3808_v33  ;;  %v11432_v14 = vpop.eup %11431  ;;  %v4026_v18 = vpack.c.bf16 %v3963_v48, %v3961_v47 }
 0x416   : > { %v3809_v51 = vsub.f32 0.0, %v14558_v43  ;;  %v11434_v35 = vpop.eup %11433  ;;  %v3902_v55 = vadd.f32 1.0, %v11432_v14 }
 0x417   : > { %11437 = vpow2.f32 %v3847_v22  ;;  %v3964_v63 = vmul.f32 %v11434_v35, %v3764_v0  ;;  %4215 = vmatmul.bf16.vlgmr.msrb.gmra.mxu2 %v4026_v18  ;;  %4313 = vmatmul.bf16.vlgmr.msrb.gmra.mxu0 %v4026_v18 }
 0x418   : > { %v3771_v60 = vpop.f32.mrf.mxu1  ;;  %v3849_v3 = vmul.f32 1.442695, %v3809_v51  ;;  %v11436_v4 = vpop.eup %11435  ;;  %11439 = vrcp.f32 %v3901_v23 }
 0x419   : > { %v14565_v2 = vadd.f32 %v3771_v60, %v14530_v19  ;;  %v4027_v33 = vpack.c.bf16 %v3964_v63, %v3962_v29  ;;  %11441 = vrcp.f32 %v3902_v55  ;;  %v3903_v13 = vadd.f32 1.0, %v11436_v4 }
 0x41a   : > { %11443 = vpow2.f32 %v3849_v3 }
 0x41b   : > { %v3724_v6 = vpop.f32.mrf.mxu0  ;;  %v3810_v42 = vsub.f32 0.0, %v14565_v2  ;;  %4264 = vmatmul.bf16.vlgmr.msrb.gmra.mxu3 %v4027_v33  ;;  %4362 = vmatmul.bf16.vlgmr.msra.gmra.mxu1 %v4027_v33  ;;  %11445 = vrcp.f32 %v3903_v13 }
 0x41c   : > { %v14569_v17 = vadd.f32 %v3724_v6, %v14520_v59 }
 0x41d   : > { %v11438_v31 = vpop.eup %11437  ;;  %v3851_v0 = vmul.f32 1.442695, %v3810_v42 }
 0x41e   : > { %v3811_v60 = vsub.f32 0.0, %v14569_v17  ;;  %v3904_v63 = vadd.f32 1.0, %v11438_v31  ;;  %v11440_v27 = vpop.eup %11439 }
 0x41f   : > { %11447 = vpow2.f32 %v3851_v0  ;;  %v11442_v26 = vpop.eup %11441  ;;  %v3965_v35 = vmul.f32 %v11440_v27, %v14542_v36 }
 0x420   : > { %v3853_v18 = vmul.f32 1.442695, %v3811_v60  ;;  %11449 = vrcp.f32 %v3904_v63  ;;  %v3773_v29 = vpop.f32.mrf.mxu1  ;;  %v11444_v51 = vpop.eup %11443  ;;  %v3966_v4 = vmul.f32 %v11442_v26, %v14546_v20 }
 0x421   : > { %v3774_v6 = vadd.f32 %v3773_v29, %v14530_v19  ;;  %v11446_v3 = vpop.eup %11445  ;;  %v3905_v0 = vadd.f32 1.0, %v11444_v51 }
 0x422   : > { %11451 = vpow2.f32 %v3853_v18  ;;  %v3967_v23 = vmul.f32 %v11446_v3, %v14549_v39 }
 0x423   : > { %v3727_v22 = vpop.f32.mrf.mxu0  ;;  %v3812_v14 = vsub.f32 0.0, %v3774_v6 }
 0x424   : > { %v14574_v47 = vadd.f32 %v3727_v22, %v14520_v59  ;;  %v4028_v60 = vpack.c.bf16 %v3967_v23, %v3965_v35 }
 0x425   : > { %v11448_v48 = vpop.eup %11447  ;;  %v3855_v55 = vmul.f32 1.442695, %v3812_v14 }
 0x426   : > { %v11450_v33 = vpop.eup %11449  ;;  %v3813_v42 = vsub.f32 0.0, %v14574_v47  ;;  %v3906_v29 = vadd.f32 1.0, %v11448_v48 }
 0x427   : > { %v3968_v31 = vmul.f32 %v11450_v33, %v14554_v54  ;;  %11453 = vpow2.f32 %v3855_v55  ;;  %4220 = vmatmul.bf16.gmra.mxu2 %v4028_v60  ;;  %4318 = vmatmul.bf16.gmra.mxu0 %v4028_v60 }
 0x428   : > { %v11452_v13 = vpop.eup %11451  ;;  %v3776_v18 = vpop.f32.mrf.mxu1  ;;  %v3857_v39 = vmul.f32 1.442695, %v3813_v42 }
 0x429   : > { %v3907_v63 = vadd.f32 1.0, %v11452_v13  ;;  %v14582_v22 = vadd.f32 %v3776_v18, %v14530_v19  ;;  %v4029_v36 = vpack.c.bf16 %v3968_v31, %v3966_v4 }
 0x42b   : > { %11455 = vrcp.f32 %v3907_v63  ;;  %v3729_v20 = vpop.f32.mrf.mxu0  ;;  %v3814_v27 = vsub.f32 0.0, %v14582_v22  ;;  %4269 = vmatmul.bf16.gmra.mxu3 %v4029_v36  ;;  %4367 = vmatmul.bf16.gmra.mxu1 %v4029_v36 }
 0x42c   : > { %11457 = vrcp.f32 %v3905_v0  ;;  %v14586_v54 = vadd.f32 %v3729_v20, %v14520_v59 }
 0x42d   : > { %v11454_v26 = vpop.eup %11453  ;;  %11459 = vrcp.f32 %v3906_v29  ;;  %v3859_v51 = vmul.f32 1.442695, %v3814_v27 }
 0x42e   : > { %v3815_v14 = vsub.f32 0.0, %v14586_v54  ;;  %v3908_v3 = vadd.f32 1.0, %v11454_v26  ;;  %11461 = vpow2.f32 %v3857_v39 }
 0x42f   : > { %11463 = vpow2.f32 %v3859_v51 }
 0x430   : > { %v3861_v48 = vmul.f32 1.442695, %v3815_v14  ;;  %11465 = vrcp.f32 %v3908_v3  ;;  %v3778_v23 = vpop.f32.mrf.mxu1  ;;  %v9727_v14 = vld [vmem:[#allocation19 + $0x170] sm:$0xf]  ;;  %v10672_v3 = vld [vmem:[#allocation19 + $0x174] sm:$0xf0] }
 0x431   : > { %v11456_v35 = vpop.eup %11455  ;;  %v14590_v33 = vadd.f32 %v3778_v23, %v14530_v19  ;;  %v9728_v23 = vor.u32 %v10672_v3, %v9727_v14 }
 0x432   : > { %v11458_v55 = vpop.eup %11457  ;;  %11467 = vpow2.f32 %v3861_v48  ;;  %v3971_v4 = vmul.f32 %v11456_v35, %v14569_v17 }
 0x433   : > { %v3732_v42 = vpop.f32.mrf.mxu0  ;;  %v11460_v13 = vpop.eup %11459  ;;  %v3816_v31 = vsub.f32 0.0, %v14590_v33  ;;  %v3969_v63 = vmul.f32 %v11458_v55, %v14558_v43  ;;  %4811 = vmatpush.bf16.msra.mxu2 %v9728_v23 }
 0x434   : > { %v14595_v0 = vadd.f32 %v3732_v42, %v14520_v59  ;;  %v11462_v60 = vpop.eup %11461  ;;  %v3970_v26 = vmul.f32 %v11460_v13, %v14565_v2 }
 0x435   : > { %v11464_v18 = vpop.eup %11463  ;;  %v3863_v29 = vmul.f32 1.442695, %v3816_v31  ;;  %v4030_v20 = vpack.c.bf16 %v3971_v4, %v3969_v63  ;;  %v3909_v51 = vadd.f32 1.0, %v11462_v60  ;;  %v9791_v31 = vld [vmem:[#allocation19 + $0x1f0] sm:$0xf] }
 0x436   : > { %v11466_v36 = vpop.eup %11465  ;;  %v3817_v39 = vsub.f32 0.0, %v14595_v0  ;;  %v3910_v42 = vadd.f32 1.0, %v11464_v18 }
 0x437   : > { %v3972_v17 = vmul.f32 %v11466_v36, %v3774_v6  ;;  %11469 = vpow2.f32 %v3863_v29  ;;  %4225 = vmatmul.bf16.gmra.mxu2 %v4030_v20  ;;  %4323 = vmatmul.bf16.gmra.mxu0 %v4030_v20  ;;  %v9792_v6 = vor.u32 %v10688_v62, %v9791_v31 }
 0x438   : > { %v11468_v27 = vpop.eup %11467  ;;  %v3781_v35 = vpop.f32.mrf.mxu1  ;;  %v3865_v4 = vmul.f32 1.442695, %v3817_v39 }
 0x439   : > { %v3911_v48 = vadd.f32 1.0, %v11468_v27  ;;  %v14601_v43 = vadd.f32 %v3781_v35, %v14530_v19  ;;  %v4031_v55 = vpack.c.bf16 %v3972_v17, %v3970_v26  ;;  %4860 = vmatpush.bf16.msra.mxu3 %v9792_v6 }
 0x43b   : > { %11471 = vrcp.f32 %v3911_v48  ;;  %v3734_v2 = vpop.f32.mrf.mxu0  ;;  %v3818_v13 = vsub.f32 0.0, %v14601_v43  ;;  %4274 = vmatmul.bf16.gmra.mxu3 %v4031_v55  ;;  %4372 = vmatmul.bf16.gmra.mxu1 %v4031_v55 }
 0x43c   : > { %11473 = vrcp.f32 %v3909_v51  ;;  %v14605_v60 = vadd.f32 %v3734_v2, %v14520_v59 }
 0x43d   : > { %v11470_v63 = vpop.eup %11469  ;;  %11475 = vrcp.f32 %v3910_v42  ;;  %v3867_v18 = vmul.f32 1.442695, %v3818_v13 }
 0x43e   : > { %v3819_v29 = vsub.f32 0.0, %v14605_v60  ;;  %v3912_v36 = vadd.f32 1.0, %v11470_v63  ;;  %11477 = vpow2.f32 %v3865_v4 }
 0x43f   : > { %11479 = vpow2.f32 %v3867_v18  ;;  %v9719_v18 = vld [vmem:[#allocation19 + $0x160] sm:$0xf] }
 0x440   : > { %v3869_v39 = vmul.f32 1.442695, %v3819_v29  ;;  %11481 = vrcp.f32 %v3912_v36  ;;  %v3783_v20 = vpop.f32.mrf.mxu1  ;;  %v10670_v29 = vld [vmem:[#allocation19 + $0x164] sm:$0xf0] }
 0x441   : > { %v11472_v62 = vpop.eup %11471  ;;  %v14609_v26 = vadd.f32 %v3783_v20, %v14530_v19 }
 0x442   : > { %v11474_v27 = vpop.eup %11473  ;;  %11483 = vpow2.f32 %v3869_v39  ;;  %v3975_v17 = vmul.f32 %v11472_v62, %v14586_v54  ;;  %v9720_v62 = vor.u32 %v10670_v29, %v9719_v18 }
 0x443   : > { %v3737_v51 = vpop.f32.mrf.mxu0  ;;  %v11476_v14 = vpop.eup %11475  ;;  %v3820_v3 = vsub.f32 0.0, %v14609_v26  ;;  %v3973_v23 = vmul.f32 %v11474_v27, %v14574_v47 }
 0x444   : > { %v14614_v48 = vadd.f32 %v3737_v51, %v14520_v59  ;;  %v11478_v35 = vpop.eup %11477  ;;  %v3974_v13 = vmul.f32 %v11476_v14, %v14582_v22  ;;  %v9783_v51 = vld [vmem:[#allocation19 + $0x1e0] sm:$0xf]  ;;  %4812 = vmatpush.bf16.msra.mxu2 %v9720_v62 }
 0x445   : > { %v11480_v42 = vpop.eup %11479  ;;  %v3871_v55 = vmul.f32 1.442695, %v3820_v3  ;;  %v4032_v2 = vpack.c.bf16 %v3975_v17, %v3973_v23  ;;  %v3913_v63 = vadd.f32 1.0, %v11478_v35  ;;  %v10686_v3 = vld [vmem:[#allocation19 + $0x1e4] sm:$0xf0] }
 0x446   : > { %v11482_v31 = vpop.eup %11481  ;;  %v3821_v4 = vsub.f32 0.0, %v14614_v48  ;;  %v3914_v20 = vadd.f32 1.0, %v11480_v42 }
 0x447   : > { %v3976_v54 = vmul.f32 %v11482_v31, %v14590_v33  ;;  %11485 = vpow2.f32 %v3871_v55  ;;  %4230 = vmatmul.bf16.gmra.mxu2 %v4032_v2  ;;  %4328 = vmatmul.bf16.gmra.mxu0 %v4032_v2  ;;  %v9784_v33 = vor.u32 %v10686_v3, %v9783_v51 }
 0x448   : > { %v11484_v6 = vpop.eup %11483  ;;  %v3786_v39 = vpop.f32.mrf.mxu1  ;;  %v3873_v17 = vmul.f32 1.442695, %v3821_v4 }
 0x449   : > { %v3915_v36 = vadd.f32 1.0, %v11484_v6  ;;  %v14621_v47 = vadd.f32 %v3786_v39, %v14530_v19  ;;  %v4033_v27 = vpack.c.bf16 %v3976_v54, %v3974_v13  ;;  %4861 = vmatpush.bf16.msra.mxu3 %v9784_v33 }
 0x44b   : > { %11487 = vrcp.f32 %v3915_v36  ;;  %v3739_v22 = vpop.f32.mrf.mxu0  ;;  %v3822_v14 = vsub.f32 0.0, %v14621_v47  ;;  %4279 = vmatmul.bf16.gmra.mxu3 %v4033_v27  ;;  %4377 = vmatmul.bf16.gmra.mxu1 %v4033_v27 }
 0x44c   : > { %11489 = vrcp.f32 %v3913_v63  ;;  %v14625_v35 = vadd.f32 %v3739_v22, %v14520_v59 }
 0x44d   : > { %v11486_v23 = vpop.eup %11485  ;;  %11491 = vrcp.f32 %v3914_v20  ;;  %v3875_v42 = vmul.f32 1.442695, %v3822_v14 }
 0x44e   : > { %v3823_v55 = vsub.f32 0.0, %v14625_v35  ;;  %v3916_v31 = vadd.f32 1.0, %v11486_v23  ;;  %11493 = vpow2.f32 %v3873_v17 }
 0x44f   : > { %11495 = vpow2.f32 %v3875_v42  ;;  %v9711_v42 = vld [vmem:[#allocation19 + $0x150] sm:$0xf] }
 0x450   : > { %v3877_v4 = vmul.f32 1.442695, %v3823_v55  ;;  %11497 = vrcp.f32 %v3916_v31  ;;  %v3788_v6 = vpop.f32.mrf.mxu1  ;;  %v10668_v55 = vld [vmem:[#allocation19 + $0x154] sm:$0xf0] }
 0x451   : > { %v11488_v2 = vpop.eup %11487  ;;  %v14629_v54 = vadd.f32 %v3788_v6, %v14530_v19 }
 0x452   : > { %v11490_v13 = vpop.eup %11489  ;;  %11499 = vpow2.f32 %v3877_v4  ;;  %v3979_v63 = vmul.f32 %v11488_v2, %v14605_v60  ;;  %v9712_v2 = vor.u32 %v10668_v55, %v9711_v42 }
 0x453   : > { %v3742_v18 = vpop.f32.mrf.mxu0  ;;  %v11492_v29 = vpop.eup %11491  ;;  %v3824_v36 = vsub.f32 0.0, %v14629_v54  ;;  %v3977_v20 = vmul.f32 %v11490_v13, %v14595_v0 }
 0x454   : > { %v14634_v39 = vadd.f32 %v3742_v18, %v14520_v59  ;;  %v11494_v62 = vpop.eup %11493  ;;  %v3978_v14 = vmul.f32 %v11492_v29, %v14601_v43  ;;  %v9775_v18 = vld [vmem:[#allocation19 + $0x1d0] sm:$0xf]  ;;  %4813 = vmatpush.bf16.msra.mxu2 %v9712_v2 }
 0x455   : > { %v11496_v27 = vpop.eup %11495  ;;  %v3879_v51 = vmul.f32 1.442695, %v3824_v36  ;;  %v4034_v22 = vpack.c.bf16 %v3979_v63, %v3977_v20  ;;  %v3917_v23 = vadd.f32 1.0, %v11494_v62  ;;  %v10684_v36 = vld [vmem:[#allocation19 + $0x1d4] sm:$0xf0] }
 0x456   : > { %v3825_v3 = vsub.f32 0.0, %v14634_v39  ;;  %v11498_v17 = vpop.eup %11497  ;;  %v3918_v63 = vadd.f32 1.0, %v11496_v27 }
 0x457   : > { %v3980_v60 = vmul.f32 %v11498_v17, %v14609_v26  ;;  %11501 = vpow2.f32 %v3879_v51  ;;  %4235 = vmatmul.bf16.gmra.mxu2 %v4034_v22  ;;  %4333 = vmatmul.bf16.gmra.mxu0 %v4034_v22  ;;  %v9776_v26 = vor.u32 %v10684_v36, %v9775_v18  ;;  %v10671_v22 = vld [vmem:[#allocation19 + $0x174] sm:$0xf] }
 0x458   : > { %v11500_v33 = vpop.eup %11499  ;;  %v3791_v4 = vpop.f32.mrf.mxu1  ;;  %v3881_v6 = vmul.f32 1.442695, %v3825_v3 }
 0x459   : > { %v3919_v31 = vadd.f32 1.0, %v11500_v33  ;;  %v14641_v0 = vadd.f32 %v3791_v4, %v14530_v19  ;;  %v4035_v13 = vpack.c.bf16 %v3980_v60, %v3978_v14  ;;  %4862 = vmatpush.bf16.msra.mxu3 %v9776_v26  ;;  %v9729_v33 = vld [vmem:[#allocation19 + $0x178] sm:$0xf0] }
 0x45b   : > { %11503 = vrcp.f32 %v3919_v31  ;;  %v3744_v43 = vpop.f32.mrf.mxu0  ;;  %v3826_v29 = vsub.f32 0.0, %v14641_v0  ;;  %4284 = vmatmul.bf16.gmra.mxu3 %v4035_v13  ;;  %4382 = vmatmul.bf16.gmra.mxu1 %v4035_v13 }
 0x45c   : > { %11505 = vrcp.f32 %v3917_v23  ;;  %v14645_v62 = vadd.f32 %v3744_v43, %v14520_v59  ;;  %v9732_v23 = vor.u32 %v10671_v22, %v9729_v33  ;;  %v9703_v22 = vld [vmem:[#allocation19 + $0x140] sm:$0xf]  ;;  %v10666_v33 = vld [vmem:[#allocation19 + $0x144] sm:$0xf0] }
 0x45d   : > { %v11502_v20 = vpop.eup %11501  ;;  %11507 = vpow2.f32 %v3881_v6  ;;  %v3883_v51 = vmul.f32 1.442695, %v3826_v29 }
 0x45e   : > { %v3827_v3 = vsub.f32 0.0, %v14645_v62  ;;  %11509 = vrcp.f32 %v3918_v63  ;;  %v3920_v27 = vadd.f32 1.0, %v11502_v20  ;;  %4909 = vmatpush.bf16.msra.mxu0 %v9732_v23 }
 0x45f   : > { %11511 = vpow2.f32 %v3883_v51 }
 0x460   : > { %v3885_v17 = vmul.f32 1.442695, %v3827_v3  ;;  %11513 = vrcp.f32 %v3920_v27  ;;  %v3793_v60 = vpop.f32.mrf.mxu1 }
 0x461   : > { %v11504_v14 = vpop.eup %11503  ;;  %v14649_v55 = vadd.f32 %v3793_v60, %v14530_v19 }
 0x462   : > { %v11506_v42 = vpop.eup %11505  ;;  %11515 = vpow2.f32 %v3885_v17  ;;  %v3983_v31 = vmul.f32 %v11504_v14, %v14625_v35 }
 0x463   : > { %v3747_v4 = vpop.f32.mrf.mxu0  ;;  %v11508_v2 = vpop.eup %11507  ;;  %v3828_v6 = vsub.f32 0.0, %v14649_v55  ;;  %v3981_v36 = vmul.f32 %v11506_v42, %v14614_v48  ;;  %v9704_v48 = vor.u32 %v10666_v33, %v9703_v22  ;;  %v9767_v42 = vld [vmem:[#allocation19 + $0x1c0] sm:$0xf]  ;;  %v9713_v22 = vld [vmem:[#allocation19 + $0x158] sm:$0xf0] }
 0x464   : > { %v14654_v13 = vadd.f32 %v3747_v4, %v14520_v59  ;;  %v11510_v18 = vpop.eup %11509  ;;  %v3921_v20 = vadd.f32 1.0, %v11508_v2  ;;  %v10682_v4 = vld [vmem:[#allocation19 + $0x1c4] sm:$0xf0] }
 0x465   : > { %v11512_v63 = vpop.eup %11511  ;;  %v3887_v43 = vmul.f32 1.442695, %v3828_v6  ;;  %v4036_v51 = vpack.c.bf16 %v3983_v31, %v3981_v36  ;;  %v3982_v35 = vmul.f32 %v11510_v18, %v14621_v47  ;;  %v10669_v31 = vld [vmem:[#allocation19 + $0x164] sm:$0xf]  ;;  %v9721_v36 = vld [vmem:[#allocation19 + $0x168] sm:$0xf0]  ;;  %4814 = vmatpush.bf16.msra.mxu2 %v9704_v48 }
 0x466   : > { %v3829_v26 = vsub.f32 0.0, %v14654_v13  ;;  %v11514_v29 = vpop.eup %11513  ;;  %v3922_v14 = vadd.f32 1.0, %v11512_v63  ;;  %v9724_v18 = vor.u32 %v10669_v31, %v9721_v36  ;;  %v9759_v63 = vld [vmem:[#allocation19 + $0x1b0] sm:$0xf]  ;;  %v10662_v33 = vld [vmem:[#allocation19 + $0x124] sm:$0xf0] }
 0x467   : > { %v3984_v27 = vmul.f32 %v11514_v29, %v14629_v54  ;;  %11517 = vpow2.f32 %v3887_v43  ;;  %4240 = vmatmul.bf16.gmra.mxu2 %v4036_v51  ;;  %4338 = vmatmul.bf16.gmra.mxu0 %v4036_v51  ;;  %v9768_v54 = vor.u32 %v10682_v4, %v9767_v42  ;;  %v10664_v43 = vld [vmem:[#allocation19 + $0x134] sm:$0xf0]  ;;  %v9687_v51 = vld [vmem:[#allocation19 + $0x120] sm:$0xf] }
 0x468   : > { %v11516_v3 = vpop.eup %11515  ;;  %v3889_v17 = vmul.f32 1.442695, %v3829_v26  ;;  %v3796_v23 = vpop.f32.mrf.mxu1  ;;  %v10680_v26 = vld [vmem:[#allocation19 + $0x1b4] sm:$0xf0]  ;;  %4910 = vmatpush.bf16.msra.mxu0 %v9724_v18 }
 0x469   : > { %v3923_v60 = vadd.f32 1.0, %v11516_v3  ;;  %v14661_v6 = vadd.f32 %v3796_v23, %v14530_v19  ;;  %v4037_v2 = vpack.c.bf16 %v3984_v27, %v3982_v35  ;;  %v9696_v35 = vor.u32 %v10664_v43, %v9695_v34  ;;  %v10667_v27 = vld [vmem:[#allocation19 + $0x154] sm:$0xf]  ;;  %4863 = vmatpush.bf16.msra.mxu3 %v9768_v54 }
 0x46a   : > { %v9716_v4 = vor.u32 %v10667_v27, %v9713_v22  ;;  %v9688_v34 = vor.u32 %v10662_v33, %v9687_v51 }
 0x46b   : > { %11519 = vrcp.f32 %v3923_v60  ;;  %v3749_v47 = vpop.f32.mrf.mxu0  ;;  %v3830_v29 = vsub.f32 0.0, %v14661_v6  ;;  %4289 = vmatmul.bf16.gmra.mxu3 %v4037_v2  ;;  %4387 = vmatmul.bf16.gmra.mxu1 %v4037_v2 }
 0x46c   : > { %11521 = vrcp.f32 %v3921_v20  ;;  %v14665_v3 = vadd.f32 %v3749_v47, %v14520_v59  ;;  %v9760_v20 = vor.u32 %v10680_v26, %v9759_v63  ;;  %4815 = vmatpush.bf16.msra.mxu2 %v9696_v35  ;;  %4911 = vmatpush.bf16.msra.mxu0 %v9716_v4  ;;  %v10687_v4 = vld [vmem:[#allocation19 + $0x1f4] sm:$0xf] }
 0x46d   : > { %11523 = vrcp.f32 %v3922_v14  ;;  %v11518_v60 = vpop.eup %11517  ;;  %v3891_v23 = vmul.f32 1.442695, %v3830_v29 }
 0x46e   : > { %v3831_v42 = vsub.f32 0.0, %v14665_v3  ;;  %v3924_v31 = vadd.f32 1.0, %v11518_v60  ;;  %11525 = vpow2.f32 %v3889_v17  ;;  %4864 = vmatpush.bf16.msra.mxu3 %v9760_v20  ;;  %v9751_v60 = vld [vmem:[#allocation19 + $0x1a0] sm:$0xf] }
 0x46f   : > { %11527 = vpow2.f32 %v3891_v23  ;;  %v10678_v23 = vld [vmem:[#allocation19 + $0x1a4] sm:$0xf0] }
 0x470   : > { %v3893_v59 = vmul.f32 1.442695, %v3831_v42  ;;  %11529 = vrcp.f32 %v3924_v31  ;;  %v3798_v14 = vpop.f32.mrf.mxu1  ;;  %4816 = vmatpush.bf16.msra.mxu2 %v9688_v34  ;;  %v9752_v42 = vor.u32 %v10678_v23, %v9751_v60  ;;  %v10665_v60 = vld [vmem:[#allocation19 + $0x144] sm:$0xf]  ;;  %v9705_v23 = vld [vmem:[#allocation19 + $0x148] sm:$0xf0] }
 0x471   : > { %v11520_v48 = vpop.eup %11519  ;;  %v3799_v36 = vadd.f32 %v3798_v14, %v14530_v19  ;;  %v10685_v14 = vld [vmem:[#allocation19 + $0x1e4] sm:$0xf] }
 0x472   : > { %v11522_v2 = vpop.eup %11521  ;;  %11531 = vpow2.f32 %v3893_v59  ;;  %v3987_v54 = vmul.f32 %v11520_v48, %v14645_v62  ;;  %4865 = vmatpush.bf16.msra.mxu3 %v9752_v42  ;;  %v10677_v42 = vld [vmem:[#allocation19 + $0x1a4] sm:$0xf] }
 0x473   : > { %v11524_v47 = vpop.eup %11523  ;;  %v3832_v18 = vsub.f32 0.0, %v3799_v36  ;;  %v3985_v17 = vmul.f32 %v11522_v2, %v14634_v39  ;;  %v9785_v2 = vld [vmem:[#allocation19 + $0x1e8] sm:$0xf0] }
 0x474   : > { %v11526_v43 = vpop.eup %11525  ;;  %v3986_v22 = vmul.f32 %v11524_v47, %v14641_v0 }
 0x475   : > { %v11528_v63 = vpop.eup %11527  ;;  %v3895_v26 = vmul.f32 1.442695, %v3832_v18  ;;  %v4038_v35 = vpack.c.bf16 %v3987_v54, %v3985_v17  ;;  %v3925_v19 = vadd.f32 1.0, %v11526_v43  ;;  %v9788_v18 = vor.u32 %v10685_v14, %v9785_v2  ;;  %v9743_v14 = vld [vmem:[#allocation19 + $0x190] sm:$0xf] }
 0x476   : > { %v11530_v29 = vpop.eup %11529  ;;  %v3926_v20 = vadd.f32 1.0, %v11528_v63  ;;  %v10676_v2 = vld [vmem:[#allocation19 + $0x194] sm:$0xf0] }
 0x477   : > { %v3988_v51 = vmul.f32 %v11530_v29, %v14649_v55  ;;  %11533 = vpow2.f32 %v3895_v26  ;;  %4245 = vmatmul.bf16.gmra.mxu2 %v4038_v35  ;;  %4343 = vmatmul.bf16.gmra.mxu0 %v4038_v35  ;;  %v9793_v55 = vld [vmem:[#allocation19 + $0x1f8] sm:$0xf0]  ;;  %v10683_v29 = vld [vmem:[#allocation19 + $0x1d4] sm:$0xf] }
 0x478   : > { %v11532_v27 = vpop.eup %11531  ;;  %v9796_v59 = vor.u32 %v10687_v4, %v9793_v55  ;;  %v9777_v35 = vld [vmem:[#allocation19 + $0x1d8] sm:$0xf0]  ;;  %v14681_v4 = vpop.f32.mrf.mxu2  ;;  %v10663_v55 = vld [vmem:[#allocation19 + $0x134] sm:$0xf] }
 0x479   : > { %v3927_v33 = vadd.f32 1.0, %v11532_v27  ;;  %v4039_v62 = vpack.c.bf16 %v3988_v51, %v3986_v22  ;;  %v9780_v27 = vor.u32 %v10683_v29, %v9777_v35  ;;  %v9769_v51 = vld [vmem:[#allocation19 + $0x1c8] sm:$0xf0]  ;;  %16774 = vst [vmem:[#allocation65_spill] sm:$0xff] %v14681_v4 }
 0x47a   : > { %4958 = vmatpush.bf16.msrb.mxu1 %v9796_v59  ;;  %v9689_v29 = vld [vmem:[#allocation19 + $0x128] sm:$0xf0] }
 0x47b   : > { %11535 = vrcp.f32 %v3927_v33  ;;  %4294 = vmatmul.bf16.gmra.mxu3 %v4039_v62  ;;  %4392 = vmatmul.bf16.gmra.mxu1 %v4039_v62  ;;  %v9761_v33 = vld [vmem:[#allocation19 + $0x1b8] sm:$0xf0]  ;;  %v10694_v4 = vld [vmem:[#allocation28 + $0x28] sm:$0xff] }
 0x47c   : > { %11537 = vrcp.f32 %v3925_v19 }
 0x47d   : > { %v11534_v39 = vpop.eup %11533  ;;  %11539 = vrcp.f32 %v3926_v20  ;;  %v9753_v20 = vld [vmem:[#allocation19 + $0x1a8] sm:$0xf0] }
 0x47e   : > { %v3928_v0 = vadd.f32 1.0, %v11534_v39  ;;  %4959 = vmatpush.bf16.msrb.mxu1 %v9788_v18  ;;  %v9744_v18 = vor.u32 %v10676_v2, %v9743_v14 }
 0x480   : > { %11541 = vrcp.f32 %v3928_v0  ;;  %v9756_v0 = vor.u32 %v10677_v42, %v9753_v20  ;;  %4866 = vmatpush.bf16.msra.mxu3 %v9744_v18  ;;  %v10659_v20 = vld [vmem:[#allocation19 + $0x114] sm:$0xf]  ;;  %v9671_v18 = vld [vmem:[#allocation19 + $0x100] sm:$0xf] }
 0x481   : > { %v11536_v31 = vpop.eup %11535 }
 0x482   : > { %v11538_v34 = vpop.eup %11537  ;;  %v3991_v48 = vmul.f32 %v11536_v31, %v14665_v3  ;;  %4960 = vmatpush.bf16.msrb.mxu1 %v9780_v27  ;;  %v10681_v3 = vld [vmem:[#allocation19 + $0x1c4] sm:$0xf]  ;;  %v9697_v31 = vld [vmem:[#allocation19 + $0x138] sm:$0xf0] }
 0x483   : > { %v11540_v47 = vpop.eup %11539  ;;  %v3989_v54 = vmul.f32 %v11538_v34, %v14654_v13  ;;  %v9772_v19 = vor.u32 %v10681_v3, %v9769_v51  ;;  %v10679_v13 = vld [vmem:[#allocation19 + $0x1b4] sm:$0xf]  ;;  %v9700_v59 = vor.u32 %v10663_v55, %v9697_v31  ;;  %v14683_v34 = vpop.f32.mrf.mxu3  ;;  %v10660_v3 = vld [vmem:[#allocation19 + $0x114] sm:$0xf0] }
 0x484   : > { %v3990_v63 = vmul.f32 %v11540_v47, %v14661_v6  ;;  %v9764_v62 = vor.u32 %v10679_v13, %v9761_v33  ;;  %v4025_v6 = vld [vmem:[%s16773_s22] sm:$0x3]  ;;  %16775 = vst [vmem:[#allocation66_spill] sm:$0xff] %v14683_v34  ;;  %v10675_v47 = vld [vmem:[#allocation19 + $0x194] sm:$0xf] }
 0x485   : > { %v4040_v17 = vpack.c.bf16 %v3991_v48, %v3989_v54  ;;  %v14679_v39 = vperm.slane %v4025_v6, 1  ;;  %v14686_v35 = vperm.slane %v4025_v6, 0  ;;  %v9735_v13 = vld [vmem:[#allocation19 + $0x180] sm:$0xf]  ;;  %v10674_v33 = vld [vmem:[#allocation19 + $0x184] sm:$0xf0] }
 0x486   : > { %v11542_v43 = vpop.eup %11541  ;;  %4961 = vmatpush.bf16.msrb.mxu1 %v9772_v19 }
 0x487   : > { %v3992_v26 = vmul.f32 %v11542_v43, %v3799_v36  ;;  %4250 = vmatmul.bf16.gmra.mxu2 %v4040_v17  ;;  %4348 = vmatmul.bf16.gmra.mxu0 %v4040_v17  ;;  %v9708_v36 = vor.u32 %v10665_v60, %v9705_v23  ;;  %v9745_v43 = vld [vmem:[#allocation19 + $0x198] sm:$0xf0]  ;;  %v10673_v60 = vld [vmem:[#allocation19 + $0x184] sm:$0xf] }
 0x489   : > { %v4041_v22 = vpack.c.bf16 %v3992_v26, %v3990_v63  ;;  %4912 = vmatpush.bf16.msra.mxu0 %v9708_v36  ;;  %v9748_v63 = vor.u32 %v10675_v47, %v9745_v43  ;;  %v10661_v26 = vld [vmem:[#allocation19 + $0x124] sm:$0xf]  ;;  %v9737_v36 = vld [vmem:[#allocation19 + $0x188] sm:$0xf0]  ;;  %v10658_v43 = vld [vmem:[#allocation19 + $0x104] sm:$0xf0] }
 0x48a   : > { %4962 = vmatpush.bf16.msrb.mxu1 %v9764_v62  ;;  %v9692_v51 = vor.u32 %v10661_v26, %v9689_v29  ;;  %v9736_v62 = vor.u32 %v10674_v33, %v9735_v13  ;;  %v9740_v6 = vor.u32 %v10673_v60, %v9737_v36  ;;  %v9672_v29 = vor.u32 %v10658_v43, %v9671_v18 }
 0x48b   : > { %4299 = vmatmul.bf16.gmra.mxu3 %v4041_v22  ;;  %4397 = vmatmul.bf16.gmra.mxu1 %v4041_v22  ;;  %v9679_v22 = vld [vmem:[#allocation19 + $0x110] sm:$0xf] }
 0x48c   : > { %v9680_v19 = vor.u32 %v10660_v3, %v9679_v22  ;;  %4867 = vmatpush.bf16.msra.mxu3 %v9736_v62  ;;  %v9673_v22 = vld [vmem:[#allocation19 + $0x108] sm:$0xf0] }
 0x48d   : > { %4913 = vmatpush.bf16.msra.mxu0 %v9700_v59 }
 0x48e   : > { %4963 = vmatpush.bf16.msrb.mxu1 %v9756_v0  ;;  %4817 = vmatpush.bf16.msra.mxu2 %v9680_v19  ;;  %v9681_v0 = vld [vmem:[#allocation19 + $0x118] sm:$0xf0] }
 0x48f   : > { %v9684_v59 = vor.u32 %v10659_v20, %v9681_v0 }
 0x491   : > { %4914 = vmatpush.bf16.msra.mxu0 %v9692_v51 }
 0x492   : > { %4964 = vmatpush.bf16.msrb.mxu1 %v9748_v63  ;;  %4818 = vmatpush.bf16.msra.mxu2 %v9672_v29 }
 0x494   : > { %v4314_v48 = vpop.f32.mrf.mxu0 }
 0x495   : > { %v4315_v54 = vadd.f32 %v4314_v48, %v14679_v39  ;;  %4915 = vmatpush.bf16.msra.mxu0 %v9684_v59 }
 0x496   : > { %4965 = vmatpush.bf16.msrb.mxu1 %v9740_v6 }
 0x498   : > { %v4363_v17 = vpop.f32.mrf.mxu1 }
 0x499   : > { %v14688_v27 = vadd.f32 %v4363_v17, %v4315_v54  ;;  %v10657_v17 = vld [vmem:[#allocation19 + $0x104] sm:$0xf] }
 0x49a   : > { %v4216_v42 = vpop.f32.mrf.mxu2  ;;  %v9676_v3 = vor.u32 %v10657_v17, %v9673_v22 }
 0x49b   : > { %v4404_v23 = vsub.f32 0.0, %v14688_v27  ;;  %v4217_v55 = vadd.f32 %v4216_v42, %v14686_v35 }
 0x49c   : > { %v4316_v48 = vpop.f32.mrf.mxu0  ;;  %4916 = vmatpush.bf16.msra.mxu0 %v9676_v3 }
 0x49d   : > { %v4437_v31 = vmul.f32 1.442695, %v4404_v23  ;;  %v4317_v2 = vadd.f32 %v4316_v48, %v14679_v39 }
 0x49e   : > { %v4265_v14 = vpop.f32.mrf.mxu3 }
 0x49f   : > { %11543 = vpow2.f32 %v4437_v31  ;;  %v14693_v47 = vadd.f32 %v4265_v14, %v4217_v55 }
 0x4a0   : > { %v4365_v54 = vpop.f32.mrf.mxu1 }
 0x4a1   : > { %v4403_v63 = vsub.f32 0.0, %v14693_v47  ;;  %v4366_v26 = vadd.f32 %v4365_v54, %v4317_v2 }
 0x4a2   : > { %v4218_v13 = vpop.f32.mrf.mxu2 }
 0x4a3   : > { %v4435_v51 = vmul.f32 1.442695, %v4403_v63  ;;  %v4406_v19 = vsub.f32 0.0, %v4366_v26  ;;  %v4219_v60 = vadd.f32 %v4218_v13, %v14686_v35 }
 0x4a4   : > { %v4319_v62 = vpop.f32.mrf.mxu0 }
 0x4a5   : > { %v11544_v33 = vpop.eup %11543  ;;  %v4441_v23 = vmul.f32 1.442695, %v4406_v19  ;;  %11545 = vpow2.f32 %v4435_v51  ;;  %v4320_v42 = vadd.f32 %v4319_v62, %v14679_v39 }
 0x4a6   : > { %v4267_v36 = vpop.f32.mrf.mxu3  ;;  %v4500_v20 = vadd.f32 1.0, %v11544_v33 }
 0x4a7   : > { %11547 = vpow2.f32 %v4441_v23  ;;  %v4268_v6 = vadd.f32 %v4267_v36, %v4219_v60 }
 0x4a8   : > { %v4368_v0 = vpop.f32.mrf.mxu1  ;;  %11549 = vrcp.f32 %v4500_v20 }
 0x4a9   : > { %v4405_v55 = vsub.f32 0.0, %v4268_v6  ;;  %v14698_v31 = vadd.f32 %v4368_v0, %v4320_v42 }
 0x4aa   : > { %v4221_v2 = vpop.f32.mrf.mxu2 }
 0x4ab   : > { %v4439_v59 = vmul.f32 1.442695, %v4405_v55  ;;  %v4408_v48 = vsub.f32 0.0, %v14698_v31  ;;  %v11546_v14 = vpop.eup %11545  ;;  %v4222_v18 = vadd.f32 %v4221_v2, %v14686_v35 }
 0x4ac   : > { %v4321_v63 = vpop.f32.mrf.mxu0  ;;  %v4499_v51 = vadd.f32 1.0, %v11546_v14 }
 0x4ad   : > { %v11548_v54 = vpop.eup %11547  ;;  %11551 = vpow2.f32 %v4439_v59  ;;  %v4445_v43 = vmul.f32 1.442695, %v4408_v48  ;;  %v4322_v22 = vadd.f32 %v4321_v63, %v14679_v39 }
 0x4ae   : > { %v4502_v17 = vadd.f32 1.0, %v11548_v54  ;;  %v4270_v29 = vpop.f32.mrf.mxu3  ;;  %v11550_v60 = vpop.eup %11549 }
 0x4af   : > { %11553 = vpow2.f32 %v4445_v43  ;;  %v14703_v3 = vadd.f32 %v4270_v29, %v4222_v18  ;;  %v4564_v14 = vmul.f32 %v11550_v60, %v14688_v27 }
 0x4b0   : > { %11555 = vrcp.f32 %v4502_v17  ;;  %v4370_v19 = vpop.f32.mrf.mxu1 }
 0x4b1   : > { %v4407_v13 = vsub.f32 0.0, %v14703_v3  ;;  %v14706_v33 = vadd.f32 %v4370_v19, %v4322_v22  ;;  %11557 = vrcp.f32 %v4499_v51 }
 0x4b2   : > { %v4223_v20 = vpop.f32.mrf.mxu2 }
 0x4b3   : > { %v11552_v23 = vpop.eup %11551  ;;  %v4410_v62 = vsub.f32 0.0, %v14706_v33  ;;  %v4443_v42 = vmul.f32 1.442695, %v4407_v13  ;;  %v4224_v55 = vadd.f32 %v4223_v20, %v14686_v35 }
 0x4b4   : > { %v4501_v36 = vadd.f32 1.0, %v11552_v23  ;;  %v4324_v2 = vpop.f32.mrf.mxu0 }
 0x4b5   : > { %v11554_v0 = vpop.eup %11553  ;;  %v4449_v59 = vmul.f32 1.442695, %v4410_v62  ;;  %v4325_v43 = vadd.f32 %v4324_v2, %v14679_v39 }
 0x4b6   : > { %v11556_v48 = vpop.eup %11555  ;;  %11559 = vrcp.f32 %v4501_v36  ;;  %v4272_v54 = vpop.f32.mrf.mxu3  ;;  %v4504_v63 = vadd.f32 1.0, %v11554_v0 }
 0x4b7   : > { %v4566_v18 = vmul.f32 %v11556_v48, %v4366_v26  ;;  %11561 = vpow2.f32 %v4449_v59  ;;  %v14712_v17 = vadd.f32 %v4272_v54, %v4224_v55  ;;  %v11558_v13 = vpop.eup %11557 }
 0x4b8   : > { %11563 = vpow2.f32 %v4443_v42  ;;  %v4373_v29 = vpop.f32.mrf.mxu1  ;;  %v4563_v36 = vmul.f32 %v11558_v13, %v14693_v47 }
 0x4b9   : > { %v4631_v22 = vpack.c.bf16 %v4566_v18, %v4564_v14  ;;  %v4409_v51 = vsub.f32 0.0, %v14712_v17  ;;  %v14715_v19 = vadd.f32 %v4373_v29, %v4325_v43  ;;  %11565 = vrcp.f32 %v4504_v63 }
 0x4ba   : > { %v4226_v60 = vpop.f32.mrf.mxu2 }
 0x4bb   : > { %v4447_v23 = vmul.f32 1.442695, %v4409_v51  ;;  %v4412_v27 = vsub.f32 0.0, %v14715_v19  ;;  %4868 = vmatmul.bf16.vlgmr.msra.gmra.mxu3 %v4631_v22  ;;  %4966 = vmatmul.bf16.vlgmr.msrb.gmra.mxu1 %v4631_v22  ;;  %v4227_v55 = vadd.f32 %v4226_v60, %v14686_v35 }
 0x4bc   : > { %v11560_v26 = vpop.eup %11559  ;;  %v4326_v59 = vpop.f32.mrf.mxu0 }
 0x4bd   : > { %v11562_v62 = vpop.eup %11561  ;;  %v4565_v20 = vmul.f32 %v11560_v26, %v4268_v6  ;;  %11567 = vpow2.f32 %v4447_v23  ;;  %v4453_v2 = vmul.f32 1.442695, %v4412_v27  ;;  %v4327_v54 = vadd.f32 %v4326_v59, %v14679_v39 }
 0x4be   : > { %v11564_v42 = vpop.eup %11563  ;;  %v4506_v0 = vadd.f32 1.0, %v11562_v62  ;;  %v4275_v48 = vpop.f32.mrf.mxu3 }
 0x4bf   : > { %v4630_v14 = vpack.c.bf16 %v4565_v20, %v4563_v36  ;;  %v14721_v18 = vadd.f32 %v4275_v48, %v4227_v55  ;;  %v4503_v63 = vadd.f32 1.0, %v11564_v42  ;;  %v11566_v47 = vpop.eup %11565 }
 0x4c0   : > { %11569 = vrcp.f32 %v4506_v0  ;;  %v4375_v43 = vpop.f32.mrf.mxu1  ;;  %v4568_v36 = vmul.f32 %v11566_v47, %v14698_v31 }
 0x4c1   : > { %v14723_v29 = vadd.f32 %v4375_v43, %v4327_v54  ;;  %4819 = vmatmul.bf16.vlgmr.msra.gmra.mxu2 %v4630_v14  ;;  %4917 = vmatmul.bf16.vlgmr.msra.gmra.mxu0 %v4630_v14  ;;  %v4411_v6 = vsub.f32 0.0, %v14721_v18  ;;  %11571 = vpow2.f32 %v4453_v2 }
 0x4c2   : > { %v4228_v27 = vpop.f32.mrf.mxu2  ;;  %11573 = vrcp.f32 %v4503_v63 }
 0x4c3   : > { %v11568_v22 = vpop.eup %11567  ;;  %v4414_v51 = vsub.f32 0.0, %v14723_v29  ;;  %v4451_v23 = vmul.f32 1.442695, %v4411_v6  ;;  %v4229_v26 = vadd.f32 %v4228_v27, %v14686_v35 }
 0x4c4   : > { %v4505_v13 = vadd.f32 1.0, %v11568_v22  ;;  %v4329_v20 = vpop.f32.mrf.mxu0 }
 0x4c5   : > { %v4457_v60 = vmul.f32 1.442695, %v4414_v51  ;;  %v4330_v55 = vadd.f32 %v4329_v20, %v14679_v39 }
 0x4c6   : > { %v11570_v62 = vpop.eup %11569  ;;  %11575 = vrcp.f32 %v4505_v13  ;;  %v4277_v42 = vpop.f32.mrf.mxu3 }
 0x4c7   : > { %v4570_v0 = vmul.f32 %v11570_v62, %v14706_v33  ;;  %11577 = vpow2.f32 %v4451_v23  ;;  %v14731_v59 = vadd.f32 %v4277_v42, %v4229_v26  ;;  %v11572_v14 = vpop.eup %11571 }
 0x4c8   : > { %v4378_v48 = vpop.f32.mrf.mxu1  ;;  %11579 = vpow2.f32 %v4457_v60  ;;  %v11574_v63 = vpop.eup %11573  ;;  %v4508_v6 = vadd.f32 1.0, %v11572_v14 }
 0x4c9   : > { %v4413_v2 = vsub.f32 0.0, %v14731_v59  ;;  %v14734_v54 = vadd.f32 %v4378_v48, %v4330_v55  ;;  %v4633_v43 = vpack.c.bf16 %v4570_v0, %v4568_v36  ;;  %v4567_v26 = vmul.f32 %v11574_v63, %v14703_v3 }
 0x4ca   : > { %v4231_v22 = vpop.f32.mrf.mxu2 }
 0x4cb   : > { %v4455_v31 = vmul.f32 1.442695, %v4413_v2  ;;  %v4416_v47 = vsub.f32 0.0, %v14734_v54  ;;  %4873 = vmatmul.bf16.gmra.mxu3 %v4633_v43  ;;  %4971 = vmatmul.bf16.gmra.mxu1 %v4633_v43  ;;  %v4232_v23 = vadd.f32 %v4231_v22, %v14686_v35 }
 0x4cc   : > { %v11576_v33 = vpop.eup %11575  ;;  %v4331_v60 = vpop.f32.mrf.mxu0 }
 0x4cd   : > { %v11578_v51 = vpop.eup %11577  ;;  %v4569_v13 = vmul.f32 %v11576_v33, %v14712_v17  ;;  %11581 = vpow2.f32 %v4455_v31  ;;  %v4461_v27 = vmul.f32 1.442695, %v4416_v47  ;;  %v4332_v20 = vadd.f32 %v4331_v60, %v14679_v39 }
 0x4ce   : > { %v4280_v62 = vpop.f32.mrf.mxu3  ;;  %v11580_v36 = vpop.eup %11579  ;;  %v4507_v0 = vadd.f32 1.0, %v11578_v51 }
 0x4cf   : > { %11583 = vpow2.f32 %v4461_v27  ;;  %v14741_v42 = vadd.f32 %v4280_v62, %v4232_v23  ;;  %v4510_v55 = vadd.f32 1.0, %v11580_v36  ;;  %v4632_v14 = vpack.c.bf16 %v4569_v13, %v4567_v26 }
 0x4d0   : > { %11585 = vrcp.f32 %v4508_v6  ;;  %v4380_v48 = vpop.f32.mrf.mxu1 }
 0x4d1   : > { %v4415_v17 = vsub.f32 0.0, %v14741_v42  ;;  %v14744_v2 = vadd.f32 %v4380_v48, %v4332_v20  ;;  %11587 = vrcp.f32 %v4510_v55  ;;  %4824 = vmatmul.bf16.gmra.mxu2 %v4632_v14  ;;  %4922 = vmatmul.bf16.gmra.mxu0 %v4632_v14 }
 0x4d2   : > { %11589 = vrcp.f32 %v4507_v0  ;;  %v4233_v47 = vpop.f32.mrf.mxu2 }
 0x4d3   : > { %v11582_v3 = vpop.eup %11581  ;;  %v4459_v43 = vmul.f32 1.442695, %v4415_v17  ;;  %v4418_v63 = vsub.f32 0.0, %v14744_v2  ;;  %v4234_v6 = vadd.f32 %v4233_v47, %v14686_v35 }
 0x4d4   : > { %v4509_v31 = vadd.f32 1.0, %v11582_v3  ;;  %v4334_v13 = vpop.f32.mrf.mxu0 }
 0x4d5   : > { %v11584_v33 = vpop.eup %11583  ;;  %11591 = vpow2.f32 %v4459_v43  ;;  %v4465_v22 = vmul.f32 1.442695, %v4418_v63  ;;  %v4335_v27 = vadd.f32 %v4334_v13, %v14679_v39 }
 0x4d6   : > { %v11586_v51 = vpop.eup %11585  ;;  %11593 = vrcp.f32 %v4509_v31  ;;  %v4282_v23 = vpop.f32.mrf.mxu3  ;;  %v4512_v62 = vadd.f32 1.0, %v11584_v33 }
 0x4d7   : > { %11595 = vpow2.f32 %v4465_v22  ;;  %v14749_v26 = vadd.f32 %v4282_v23, %v4234_v6  ;;  %v11588_v60 = vpop.eup %11587  ;;  %v4572_v20 = vmul.f32 %v11586_v51, %v14715_v19 }
 0x4d8   : > { %v4383_v36 = vpop.f32.mrf.mxu1  ;;  %v4574_v0 = vmul.f32 %v11588_v60, %v14723_v29  ;;  %v11590_v14 = vpop.eup %11589  ;;  %11597 = vrcp.f32 %v4512_v62  ;;  %v10598_v62 = vld [vmem:[#allocation20 + $0xac] sm:$0xf] }
 0x4d9   : > { %v4417_v55 = vsub.f32 0.0, %v14749_v26  ;;  %v14754_v48 = vadd.f32 %v4383_v36, %v4335_v27  ;;  %v4571_v22 = vmul.f32 %v11590_v14, %v14721_v18  ;;  %v9885_v36 = vld [vmem:[#allocation20 + $0xb4] sm:$0xf0] }
 0x4da   : > { %v4635_v63 = vpack.c.bf16 %v4574_v0, %v4572_v20  ;;  %v4236_v47 = vpop.f32.mrf.mxu2 }
 0x4db   : > { %v11592_v17 = vpop.eup %11591  ;;  %v4463_v3 = vmul.f32 1.442695, %v4417_v55  ;;  %v4420_v43 = vsub.f32 0.0, %v14754_v48  ;;  %v4237_v19 = vadd.f32 %v4236_v47, %v14686_v35  ;;  %v9888_v55 = vor.u32 %v10598_v62, %v9885_v36 }
 0x4dc   : > { %v11594_v31 = vpop.eup %11593  ;;  %4878 = vmatmul.bf16.gmra.mxu3 %v4635_v63  ;;  %4976 = vmatmul.bf16.gmra.mxu1 %v4635_v63  ;;  %v4336_v13 = vpop.f32.mrf.mxu0  ;;  %v4511_v20 = vadd.f32 1.0, %v11592_v17 }
 0x4dd   : > { %v11596_v6 = vpop.eup %11595  ;;  %v4573_v33 = vmul.f32 %v11594_v31, %v14731_v59  ;;  %11599 = vpow2.f32 %v4463_v3  ;;  %v4469_v29 = vmul.f32 1.442695, %v4420_v43  ;;  %v4337_v27 = vadd.f32 %v4336_v13, %v14679_v39  ;;  %5576 = vmatpush.bf16.msrb.mxu0 %v9888_v55 }
 0x4de   : > { %v4514_v51 = vadd.f32 1.0, %v11596_v6  ;;  %v4285_v23 = vpop.f32.mrf.mxu3  ;;  %v11598_v18 = vpop.eup %11597 }
 0x4df   : > { %11601 = vpow2.f32 %v4469_v29  ;;  %v14761_v60 = vadd.f32 %v4285_v23, %v4237_v19  ;;  %v4634_v0 = vpack.c.bf16 %v4573_v33, %v4571_v22  ;;  %v4576_v22 = vmul.f32 %v11598_v18, %v14734_v54 }
 0x4e0   : > { %11603 = vrcp.f32 %v4514_v51  ;;  %v4385_v59 = vpop.f32.mrf.mxu1 }
 0x4e1   : > { %v4419_v3 = vsub.f32 0.0, %v14761_v60  ;;  %v14764_v43 = vadd.f32 %v4385_v59, %v4337_v27  ;;  %4829 = vmatmul.bf16.gmra.mxu2 %v4634_v0  ;;  %4927 = vmatmul.bf16.gmra.mxu0 %v4634_v0  ;;  %11605 = vrcp.f32 %v4511_v20 }
 0x4e2   : > { %v4238_v6 = vpop.f32.mrf.mxu2 }
 0x4e3   : > { %v11600_v14 = vpop.eup %11599  ;;  %v4467_v63 = vmul.f32 1.442695, %v4419_v3  ;;  %v4422_v31 = vsub.f32 0.0, %v14764_v43  ;;  %v4239_v33 = vadd.f32 %v4238_v6, %v14686_v35 }
 0x4e4   : > { %v4513_v47 = vadd.f32 1.0, %v11600_v14  ;;  %v4339_v51 = vpop.f32.mrf.mxu0 }
 0x4e5   : > { %v11602_v17 = vpop.eup %11601  ;;  %11607 = vpow2.f32 %v4467_v63  ;;  %v4473_v19 = vmul.f32 1.442695, %v4422_v31  ;;  %v4340_v27 = vadd.f32 %v4339_v51, %v14679_v39 }
 0x4e6   : > { %v11604_v29 = vpop.eup %11603  ;;  %11609 = vrcp.f32 %v4513_v47  ;;  %v4287_v13 = vpop.f32.mrf.mxu3  ;;  %v4516_v36 = vadd.f32 1.0, %v11602_v17 }
 0x4e7   : > { %v4578_v23 = vmul.f32 %v11604_v29, %v14744_v2  ;;  %11611 = vpow2.f32 %v4473_v19  ;;  %v14771_v62 = vadd.f32 %v4287_v13, %v4239_v33  ;;  %v11606_v3 = vpop.eup %11605  ;;  %v9883_v33 = vld [vmem:[#allocation20 + $0xa8] sm:$0xf]  ;;  %v10599_v19 = vld [vmem:[#allocation20 + $0xb0] sm:$0xf0] }
 0x4e8   : > { %v4388_v20 = vpop.f32.mrf.mxu1  ;;  %11613 = vrcp.f32 %v4516_v36  ;;  %v4575_v29 = vmul.f32 %v11606_v3, %v14741_v42 }
 0x4e9   : > { %v4421_v59 = vsub.f32 0.0, %v14771_v62  ;;  %v14774_v0 = vadd.f32 %v4388_v20, %v4340_v27  ;;  %v4637_v55 = vpack.c.bf16 %v4578_v23, %v4576_v22  ;;  %v9884_v23 = vor.u32 %v10599_v19, %v9883_v33  ;;  %v9873_v20 = vld [vmem:[#allocation20 + $0x9c] sm:$0xf0] }
 0x4ea   : > { %v4241_v2 = vpop.f32.mrf.mxu2 }
 0x4eb   : > { %v11608_v14 = vpop.eup %11607  ;;  %v4471_v54 = vmul.f32 1.442695, %v4421_v59  ;;  %v4424_v18 = vsub.f32 0.0, %v14774_v0  ;;  %v4242_v6 = vadd.f32 %v4241_v2, %v14686_v35  ;;  %5478 = vmatpush.bf16.msrb.mxu2 %v9884_v23 }
 0x4ec   : > { %v11610_v63 = vpop.eup %11609  ;;  %4883 = vmatmul.bf16.gmra.mxu3 %v4637_v55  ;;  %4981 = vmatmul.bf16.gmra.mxu1 %v4637_v55  ;;  %v4341_v51 = vpop.f32.mrf.mxu0  ;;  %v4515_v59 = vadd.f32 1.0, %v11608_v14 }
 0x4ed   : > { %v11612_v31 = vpop.eup %11611  ;;  %v4577_v47 = vmul.f32 %v11610_v63, %v14749_v26  ;;  %11615 = vpow2.f32 %v4471_v54  ;;  %v4477_v17 = vmul.f32 1.442695, %v4424_v18  ;;  %v4342_v27 = vadd.f32 %v4341_v51, %v14679_v39  ;;  %v10595_v26 = vld [vmem:[#allocation20 + $0x94] sm:$0xf] }
 0x4ee   : > { %v4518_v22 = vadd.f32 1.0, %v11612_v31  ;;  %v4290_v13 = vpop.f32.mrf.mxu3  ;;  %v9876_v55 = vor.u32 %v10595_v26, %v9873_v20  ;;  %v11614_v3 = vpop.eup %11613 }
 0x4ef   : > { %11617 = vpow2.f32 %v4477_v17  ;;  %v14781_v36 = vadd.f32 %v4290_v13, %v4242_v6  ;;  %v4636_v18 = vpack.c.bf16 %v4577_v47, %v4575_v29 }
 0x4f0   : > { %11619 = vrcp.f32 %v4518_v22  ;;  %v4390_v54 = vpop.f32.mrf.mxu1  ;;  %5577 = vmatpush.bf16.msrb.mxu0 %v9876_v55  ;;  %v4580_v22 = vmul.f32 %v11614_v3, %v14754_v48 }
 0x4f1   : > { %v4423_v63 = vsub.f32 0.0, %v14781_v36  ;;  %v14784_v42 = vadd.f32 %v4390_v54, %v4342_v27  ;;  %4834 = vmatmul.bf16.gmra.mxu2 %v4636_v18  ;;  %4932 = vmatmul.bf16.gmra.mxu0 %v4636_v18  ;;  %11621 = vrcp.f32 %v4515_v59 }
 0x4f2   : > { %v4243_v14 = vpop.f32.mrf.mxu2 }
 0x4f3   : > { %v11616_v2 = vpop.eup %11615  ;;  %v4475_v31 = vmul.f32 1.442695, %v4423_v63  ;;  %v4426_v6 = vsub.f32 0.0, %v14784_v42  ;;  %v4244_v47 = vadd.f32 %v4243_v14, %v14686_v35 }
 0x4f4   : > { %v4517_v17 = vadd.f32 1.0, %v11616_v2  ;;  %v4344_v51 = vpop.f32.mrf.mxu0 }
 0x4f5   : > { %v11618_v33 = vpop.eup %11617  ;;  %11623 = vpow2.f32 %v4475_v31  ;;  %v4481_v19 = vmul.f32 1.442695, %v4426_v6  ;;  %v4345_v27 = vadd.f32 %v4344_v51, %v14679_v39 }
 0x4f6   : > { %v11620_v29 = vpop.eup %11619  ;;  %11625 = vrcp.f32 %v4517_v17  ;;  %v4292_v13 = vpop.f32.mrf.mxu3  ;;  %v4520_v20 = vadd.f32 1.0, %v11618_v33 }
 0x4f7   : > { %v4582_v23 = vmul.f32 %v11620_v29, %v14764_v43  ;;  %11627 = vpow2.f32 %v4481_v19  ;;  %v14791_v26 = vadd.f32 %v4292_v13, %v4244_v47  ;;  %v11622_v63 = vpop.eup %11621  ;;  %v9871_v47 = vld [vmem:[#allocation20 + $0x90] sm:$0xf]  ;;  %v10596_v19 = vld [vmem:[#allocation20 + $0x98] sm:$0xf0] }
 0x4f8   : > { %v4393_v59 = vpop.f32.mrf.mxu1  ;;  %11629 = vrcp.f32 %v4520_v20  ;;  %v4579_v29 = vmul.f32 %v11622_v63, %v14761_v60 }
 0x4f9   : > { %v4425_v54 = vsub.f32 0.0, %v14791_v26  ;;  %v14794_v18 = vadd.f32 %v4393_v59, %v4345_v27  ;;  %v4639_v55 = vpack.c.bf16 %v4582_v23, %v4580_v22  ;;  %v9872_v23 = vor.u32 %v10596_v19, %v9871_v47  ;;  %v10592_v59 = vld [vmem:[#allocation20 + $0x7c] sm:$0xf] }
 0x4fa   : > { %v4246_v43 = vpop.f32.mrf.mxu2 }
 0x4fb   : > { %v11624_v2 = vpop.eup %11623  ;;  %v4479_v48 = vmul.f32 1.442695, %v4425_v54  ;;  %v4428_v3 = vsub.f32 0.0, %v14794_v18  ;;  %v4247_v14 = vadd.f32 %v4246_v43, %v14686_v35  ;;  %5479 = vmatpush.bf16.msrb.mxu2 %v9872_v23 }
 0x4fc   : > { %v11626_v31 = vpop.eup %11625  ;;  %4888 = vmatmul.bf16.gmra.mxu3 %v4639_v55  ;;  %4986 = vmatmul.bf16.gmra.mxu1 %v4639_v55  ;;  %v4346_v51 = vpop.f32.mrf.mxu0  ;;  %v4519_v54 = vadd.f32 1.0, %v11624_v2 }
 0x4fd   : > { %v11628_v6 = vpop.eup %11627  ;;  %v4581_v17 = vmul.f32 %v11626_v31, %v14771_v62  ;;  %11631 = vpow2.f32 %v4479_v48  ;;  %v4485_v33 = vmul.f32 1.442695, %v4428_v3  ;;  %v4347_v27 = vadd.f32 %v4346_v51, %v14679_v39  ;;  %v9861_v62 = vld [vmem:[#allocation20 + $0x84] sm:$0xf0] }
 0x4fe   : > { %v4522_v22 = vadd.f32 1.0, %v11628_v6  ;;  %v4295_v13 = vpop.f32.mrf.mxu3  ;;  %v9864_v55 = vor.u32 %v10592_v59, %v9861_v62  ;;  %v11630_v63 = vpop.eup %11629 }
 0x4ff   : > { %v14801_v20 = vadd.f32 %v4295_v13, %v4247_v14  ;;  %v4638_v3 = vpack.c.bf16 %v4581_v17, %v4579_v29  ;;  %v4584_v29 = vmul.f32 %v11630_v63, %v14774_v0 }
 0x500   : > { %11633 = vrcp.f32 %v4522_v22  ;;  %v4395_v48 = vpop.f32.mrf.mxu1  ;;  %5578 = vmatpush.bf16.msrb.mxu0 %v9864_v55 }
 0x501   : > { %11635 = vpow2.f32 %v4485_v33  ;;  %v4427_v31 = vsub.f32 0.0, %v14801_v20  ;;  %v14804_v60 = vadd.f32 %v4395_v48, %v4347_v27  ;;  %4839 = vmatmul.bf16.gmra.mxu2 %v4638_v3  ;;  %4937 = vmatmul.bf16.gmra.mxu0 %v4638_v3 }
 0x502   : > { %11637 = vrcp.f32 %v4519_v54  ;;  %v4248_v47 = vpop.f32.mrf.mxu2 }
 0x503   : > { %v11632_v43 = vpop.eup %11631  ;;  %v4483_v6 = vmul.f32 1.442695, %v4427_v31  ;;  %v4430_v14 = vsub.f32 0.0, %v14804_v60  ;;  %v4249_v17 = vadd.f32 %v4248_v47, %v14686_v35 }
 0x504   : > { %v4521_v2 = vadd.f32 1.0, %v11632_v43  ;;  %v4349_v22 = vpop.f32.mrf.mxu0 }
 0x505   : > { %11639 = vpow2.f32 %v4483_v6  ;;  %v4489_v19 = vmul.f32 1.442695, %v4430_v14  ;;  %v4350_v27 = vadd.f32 %v4349_v22, %v14679_v39 }
 0x506   : > { %v11634_v33 = vpop.eup %11633  ;;  %11641 = vrcp.f32 %v4521_v2  ;;  %v4297_v51 = vpop.f32.mrf.mxu3 }
 0x507   : > { %v11636_v13 = vpop.eup %11635  ;;  %v4586_v23 = vmul.f32 %v11634_v33, %v14784_v42  ;;  %11643 = vpow2.f32 %v4489_v19  ;;  %v14811_v59 = vadd.f32 %v4297_v51, %v4249_v17  ;;  %v9859_v19 = vld [vmem:[#allocation20 + $0x78] sm:$0xf]  ;;  %v10593_v33 = vld [vmem:[#allocation20 + $0x80] sm:$0xf0] }
 0x508   : > { %v4398_v62 = vpop.f32.mrf.mxu1  ;;  %v11638_v55 = vpop.eup %11637  ;;  %v4524_v31 = vadd.f32 1.0, %v11636_v13 }
 0x509   : > { %v4429_v54 = vsub.f32 0.0, %v14811_v59  ;;  %v14814_v48 = vadd.f32 %v4398_v62, %v4350_v27  ;;  %v4641_v3 = vpack.c.bf16 %v4586_v23, %v4584_v29  ;;  %v4583_v29 = vmul.f32 %v11638_v55, %v14781_v36  ;;  %v10589_v27 = vld [vmem:[#allocation20 + $0x64] sm:$0xf]  ;;  %v9849_v62 = vld [vmem:[#allocation20 + $0x6c] sm:$0xf0] }
 0x50a   : > { %v4251_v14 = vpop.f32.mrf.mxu2  ;;  %v9860_v23 = vor.u32 %v10593_v33, %v9859_v19  ;;  %v9852_v34 = vor.u32 %v10589_v27, %v9849_v62  ;;  %v10586_v55 = vld [vmem:[#allocation20 + $0x4c] sm:$0xf] }
 0x50b   : > { %v11640_v0 = vpop.eup %11639  ;;  %v4487_v63 = vmul.f32 1.442695, %v4429_v54  ;;  %v4432_v43 = vsub.f32 0.0, %v14814_v48  ;;  %v4252_v47 = vadd.f32 %v4251_v14, %v14686_v35 }
 0x50c   : > { %v11642_v6 = vpop.eup %11641  ;;  %4893 = vmatmul.bf16.gmra.mxu3 %v4641_v3  ;;  %4991 = vmatmul.bf16.gmra.mxu1 %v4641_v3  ;;  %v4351_v51 = vpop.f32.mrf.mxu0  ;;  %v4523_v54 = vadd.f32 1.0, %v11640_v0  ;;  %v10587_v0 = vld [vmem:[#allocation20 + $0x50] sm:$0xf0] }
 0x50d   : > { %v11644_v42 = vpop.eup %11643  ;;  %v4585_v2 = vmul.f32 %v11642_v6, %v14791_v26  ;;  %11645 = vpow2.f32 %v4487_v63  ;;  %v4493_v17 = vmul.f32 1.442695, %v4432_v43  ;;  %v4352_v26 = vadd.f32 %v4351_v51, %v14679_v39  ;;  %v9847_v6 = vld [vmem:[#allocation20 + $0x60] sm:$0xf]  ;;  %v10590_v43 = vld [vmem:[#allocation20 + $0x68] sm:$0xf0]  ;;  %5480 = vmatpush.bf16.msrb.mxu2 %v9860_v23  ;;  %5579 = vmatpush.bf16.msrb.mxu0 %v9852_v34 }
 0x50e   : > { %11647 = vrcp.f32 %v4524_v31  ;;  %v4526_v22 = vadd.f32 1.0, %v11644_v42  ;;  %v4300_v13 = vpop.f32.mrf.mxu3  ;;  %v9848_v36 = vor.u32 %v10590_v43, %v9847_v6  ;;  %v9837_v31 = vld [vmem:[#allocation20 + $0x54] sm:$0xf0]  ;;  %v9835_v39 = vld [vmem:[#allocation20 + $0x48] sm:$0xf] }
 0x50f   : > { %v14821_v63 = vadd.f32 %v4300_v13, %v4252_v47  ;;  %v4640_v14 = vpack.c.bf16 %v4585_v2, %v4583_v29  ;;  %v9840_v2 = vor.u32 %v10586_v55, %v9837_v31 }
 0x510   : > { %11649 = vrcp.f32 %v4526_v22  ;;  %v4400_v3 = vpop.f32.mrf.mxu1 }
 0x511   : > { %11651 = vpow2.f32 %v4493_v17  ;;  %v4431_v42 = vsub.f32 0.0, %v14821_v63  ;;  %v14824_v19 = vadd.f32 %v4400_v3, %v4352_v26  ;;  %4844 = vmatmul.bf16.gmra.mxu2 %v4640_v14  ;;  %4942 = vmatmul.bf16.gmra.mxu0 %v4640_v14  ;;  %v9836_v17 = vor.u32 %v10587_v0, %v9835_v39  ;;  %v9825_v14 = vld [vmem:[#allocation20 + $0x3c] sm:$0xf0] }
 0x512   : > { %11653 = vrcp.f32 %v4523_v54  ;;  %v4253_v13 = vpop.f32.mrf.mxu2  ;;  %5481 = vmatpush.bf16.msrb.mxu2 %v9848_v36  ;;  %5580 = vmatpush.bf16.msrb.mxu0 %v9840_v2  ;;  %v10583_v54 = vld [vmem:[#allocation20 + $0x34] sm:$0xf] }
 0x513   : > { %v11646_v47 = vpop.eup %11645  ;;  %v4491_v33 = vmul.f32 1.442695, %v4431_v42  ;;  %v4434_v22 = vsub.f32 0.0, %v14824_v19  ;;  %v4254_v23 = vadd.f32 %v4253_v13, %v14686_v35  ;;  %v9828_v31 = vor.u32 %v10583_v54, %v9825_v14 }
 0x514   : > { %v11648_v29 = vpop.eup %11647  ;;  %v4525_v51 = vadd.f32 1.0, %v11646_v47 }
 0x515   : > { %11655 = vpow2.f32 %v4491_v33  ;;  %v4497_v27 = vmul.f32 1.442695, %v4434_v22  ;;  %v4588_v43 = vmul.f32 %v11648_v29, %v14794_v18 }
 0x516   : > { %v11650_v62 = vpop.eup %11649  ;;  %11657 = vrcp.f32 %v4525_v51  ;;  %v4302_v26 = vpop.f32.mrf.mxu3  ;;  %5482 = vmatpush.bf16.msrb.mxu2 %v9836_v17  ;;  %5581 = vmatpush.bf16.msrb.mxu0 %v9828_v31  ;;  %v10619_v31 = vld [vmem:[#allocation20 + $0x154] sm:$0xf] }
 0x517   : > { %v11652_v6 = vpop.eup %11651  ;;  %v4590_v3 = vmul.f32 %v11650_v62, %v14804_v60  ;;  %11659 = vpow2.f32 %v4497_v27  ;;  %v4303_v34 = vadd.f32 %v4302_v26, %v4254_v23  ;;  %v9979_v27 = vld [vmem:[#allocation20 + $0x168] sm:$0xf]  ;;  %v10622_v62 = vld [vmem:[#allocation20 + $0x16c] sm:$0xf] }
 0x518   : > { %v11654_v42 = vpop.eup %11653  ;;  %v4528_v35 = vadd.f32 1.0, %v11652_v6 }
 0x519   : > { %v4433_v36 = vsub.f32 0.0, %v4303_v34  ;;  %v4643_v55 = vpack.c.bf16 %v4590_v3, %v4588_v43  ;;  %v4587_v18 = vmul.f32 %v11654_v42, %v14801_v20  ;;  %v10623_v20 = vld [vmem:[#allocation20 + $0x170] sm:$0xf0]  ;;  %v9981_v43 = vld [vmem:[#allocation20 + $0x174] sm:$0xf0] }
 0x51a   : > { %v9980_v6 = vor.u32 %v10623_v20, %v9979_v27  ;;  %v9984_v3 = vor.u32 %v10622_v62, %v9981_v43  ;;  %v9931_v27 = vld [vmem:[#allocation20 + $0x108] sm:$0xf]  ;;  %v10611_v20 = vld [vmem:[#allocation20 + $0x110] sm:$0xf0]  ;;  %v10610_v62 = vld [vmem:[#allocation20 + $0x10c] sm:$0xf] }
 0x51b   : > { %v11656_v39 = vpop.eup %11655  ;;  %v4495_v0 = vmul.f32 1.442695, %v4433_v36  ;;  %v9967_v36 = vld [vmem:[#allocation20 + $0x150] sm:$0xf]  ;;  %v9668_v43 = vld [vmem:[%s16773_s22 + $0x2] sm:$0x3] }
 0x51c   : > { %v11658_v47 = vpop.eup %11657  ;;  %4898 = vmatmul.bf16.gmra.mxu3 %v4643_v55  ;;  %4996 = vmatmul.bf16.gmra.mxu1 %v4643_v55  ;;  %v4527_v29 = vadd.f32 1.0, %v11656_v39  ;;  %v10620_v55 = vld [vmem:[#allocation20 + $0x158] sm:$0xf0] }
 0x51d   : > { %v11660_v33 = vpop.eup %11659  ;;  %v4589_v60 = vmul.f32 %v11658_v47, %v14811_v59  ;;  %11661 = vpow2.f32 %v4495_v0  ;;  %5527 = vmatpush.bf16.msrb.mxu3 %v9980_v6  ;;  %5625 = vmatpush.bf16.msra.mxu1 %v9984_v3  ;;  %v9968_v42 = vor.u32 %v10620_v55, %v9967_v36  ;;  %v10607_v36 = vld [vmem:[#allocation20 + $0xf4] sm:$0xf]  ;;  %v14838_v55 = vperm.slane %v9668_v43, 1 }
 0x51e   : > { %11663 = vrcp.f32 %v4528_v35  ;;  %v4530_v22 = vadd.f32 1.0, %v11660_v33  ;;  %v9969_v35 = vld [vmem:[#allocation20 + $0x15c] sm:$0xf0] }
 0x51f   : > { %v4642_v2 = vpack.c.bf16 %v4589_v60, %v4587_v18  ;;  %v9972_v0 = vor.u32 %v10619_v31, %v9969_v35  ;;  %v10616_v18 = vld [vmem:[#allocation20 + $0x13c] sm:$0xf] }
 0x520   : > { %11665 = vrcp.f32 %v4530_v22 }
 0x521   : > { %4849 = vmatmul.bf16.gmra.mxu2 %v4642_v2  ;;  %4947 = vmatmul.bf16.gmra.mxu0 %v4642_v2  ;;  %11667 = vrcp.f32 %v4527_v29  ;;  %v9957_v2 = vld [vmem:[#allocation20 + $0x144] sm:$0xf0] }
 0x522   : > { %5528 = vmatpush.bf16.msrb.mxu3 %v9968_v42  ;;  %5626 = vmatpush.bf16.msra.mxu1 %v9972_v0  ;;  %v9960_v29 = vor.u32 %v10616_v18, %v9957_v2  ;;  %v9921_v42 = vld [vmem:[#allocation20 + $0xfc] sm:$0xf0]  ;;  %v9823_v2 = vld [vmem:[#allocation20 + $0x30] sm:$0xf] }
 0x523   : > { %v11662_v51 = vpop.eup %11661  ;;  %v9924_v35 = vor.u32 %v10607_v36, %v9921_v42  ;;  %v9811_v36 = vld [vmem:[#allocation20 + $0x18] sm:$0xf] }
 0x524   : > { %v11664_v13 = vpop.eup %11663  ;;  %v4529_v17 = vadd.f32 1.0, %v11662_v51  ;;  %v9943_v51 = vld [vmem:[#allocation20 + $0x120] sm:$0xf] }
 0x525   : > { %v4592_v59 = vmul.f32 %v11664_v13, %v14814_v48  ;;  %v9955_v48 = vld [vmem:[#allocation20 + $0x138] sm:$0xf]  ;;  %v10614_v13 = vld [vmem:[#allocation20 + $0x128] sm:$0xf0] }
 0x526   : > { %v11666_v23 = vpop.eup %11665  ;;  %11669 = vrcp.f32 %v4529_v17  ;;  %v10613_v17 = vld [vmem:[#allocation20 + $0x124] sm:$0xf]  ;;  %5627 = vmatpush.bf16.msra.mxu1 %v9960_v29  ;;  %v10584_v29 = vld [vmem:[#allocation20 + $0x38] sm:$0xf0] }
 0x527   : > { %v4594_v26 = vmul.f32 %v11666_v23, %v14824_v19  ;;  %v11668_v14 = vpop.eup %11667  ;;  %v10617_v19 = vld [vmem:[#allocation20 + $0x140] sm:$0xf0] }
 0x528   : > { %v4591_v47 = vmul.f32 %v11668_v14, %v14821_v63  ;;  %v9956_v22 = vor.u32 %v10617_v19, %v9955_v48  ;;  %v9944_v63 = vor.u32 %v10614_v13, %v9943_v51  ;;  %v10608_v14 = vld [vmem:[#allocation20 + $0xf8] sm:$0xf0] }
 0x529   : > { %v4645_v54 = vpack.c.bf16 %v4594_v26, %v4592_v59  ;;  %v9932_v59 = vor.u32 %v10611_v20, %v9931_v27  ;;  %v9933_v26 = vld [vmem:[#allocation20 + $0x114] sm:$0xf0]  ;;  %v10604_v48 = vld [vmem:[#allocation20 + $0xdc] sm:$0xf]  ;;  %v9895_v20 = vld [vmem:[#allocation20 + $0xc0] sm:$0xf] }
 0x52a   : > { %5529 = vmatpush.bf16.msrb.mxu3 %v9956_v22  ;;  %v9936_v3 = vor.u32 %v10610_v62, %v9933_v26  ;;  %v10602_v62 = vld [vmem:[#allocation20 + $0xc8] sm:$0xf0] }
 0x52c   : > { %v11670_v39 = vpop.eup %11669  ;;  %4903 = vmatmul.bf16.gmra.mxu3 %v4645_v54  ;;  %5001 = vmatmul.bf16.gmra.mxu1 %v4645_v54  ;;  %v9919_v54 = vld [vmem:[#allocation20 + $0xf0] sm:$0xf] }
 0x52d   : > { %v4593_v33 = vmul.f32 %v11670_v39, %v4303_v34  ;;  %v9945_v34 = vld [vmem:[#allocation20 + $0x12c] sm:$0xf0]  ;;  %v9920_v31 = vor.u32 %v10608_v14, %v9919_v54 }
 0x52e   : > { %v9948_v23 = vor.u32 %v10613_v17, %v9945_v34  ;;  %5530 = vmatpush.bf16.msrb.mxu3 %v9944_v63  ;;  %v14843_v17 = vperm.slane %v9668_v43, 0  ;;  %v9824_v63 = vor.u32 %v10584_v29, %v9823_v2  ;;  %v10580_v34 = vld [vmem:[#allocation20 + $0x1c] sm:$0xf]  ;;  %v9897_v54 = vld [vmem:[#allocation20 + $0xcc] sm:$0xf0] }
 0x52f   : > { %v4644_v60 = vpack.c.bf16 %v4593_v33, %v4591_v47  ;;  %v9907_v47 = vld [vmem:[#allocation20 + $0xd8] sm:$0xf]  ;;  %v10605_v33 = vld [vmem:[#allocation20 + $0xe0] sm:$0xf0]  ;;  %v9799_v2 = vld [vmem:[#allocation20] sm:$0xf] }
 0x530   : > { %5628 = vmatpush.bf16.msra.mxu1 %v9948_v23  ;;  %v9908_v18 = vor.u32 %v10605_v33, %v9907_v47  ;;  %v9813_v23 = vld [vmem:[#allocation20 + $0x24] sm:$0xf0]  ;;  %5483 = vmatpush.bf16.msrb.mxu2 %v9824_v63 }
 0x531   : > { %4854 = vmatmul.bf16.gmra.mxu2 %v4644_v60  ;;  %4952 = vmatmul.bf16.gmra.mxu0 %v4644_v60  ;;  %v9909_v60 = vld [vmem:[#allocation20 + $0xe4] sm:$0xf0]  ;;  %v9816_v27 = vor.u32 %v10580_v34, %v9813_v23  ;;  %v10578_v34 = vld [vmem:[#allocation20 + $0x8] sm:$0xf0] }
 0x532   : > { %5531 = vmatpush.bf16.msrb.mxu3 %v9932_v59  ;;  %v9912_v51 = vor.u32 %v10604_v48, %v9909_v60  ;;  %v10601_v59 = vld [vmem:[#allocation20 + $0xc4] sm:$0xf]  ;;  %v9801_v60 = vld [vmem:[#allocation20 + $0xc] sm:$0xf0]  ;;  %v9800_v23 = vor.u32 %v10578_v34, %v9799_v2 }
 0x533   : > { %5582 = vmatpush.bf16.msrb.mxu0 %v9816_v27  ;;  %v9900_v43 = vor.u32 %v10601_v59, %v9897_v54 }
 0x534   : > { %5629 = vmatpush.bf16.msra.mxu1 %v9936_v3  ;;  %v9896_v3 = vor.u32 %v10602_v62, %v9895_v20 }
 0x536   : > { %5532 = vmatpush.bf16.msrb.mxu3 %v9920_v31 }
 0x538   : > { %v4967_v6 = vpop.f32.mrf.mxu1  ;;  %5630 = vmatpush.bf16.msra.mxu1 %v9924_v35 }
 0x53a   : > { %5533 = vmatpush.bf16.msrb.mxu3 %v9908_v18  ;;  %v10577_v18 = vld [vmem:[#allocation20 + $0x4] sm:$0xf] }
 0x53b   : > { %v9804_v63 = vor.u32 %v10577_v18, %v9801_v60 }
 0x53c   : > { %5631 = vmatpush.bf16.msra.mxu1 %v9912_v51 }
 0x53d   : > { %5583 = vmatpush.bf16.msrb.mxu0 %v9804_v63 }
 0x53e   : > { %v4869_v39 = vpop.f32.mrf.mxu3  ;;  %v4918_v0 = vpop.f32.mrf.mxu0  ;;  %5534 = vmatpush.bf16.msrb.mxu3 %v9896_v3 }
 0x53f   : > { %v4919_v19 = vadd.f32 %v4918_v0, %v14838_v55 }
 0x540   : > { %v4969_v22 = vpop.f32.mrf.mxu1  ;;  %5632 = vmatpush.bf16.msra.mxu1 %v9900_v43 }
 0x541   : > { %v14841_v13 = vadd.f32 %v4967_v6, %v4919_v19  ;;  %v10581_v6 = vld [vmem:[#allocation20 + $0x20] sm:$0xf0] }
 0x542   : > { %v9812_v35 = vor.u32 %v10581_v6, %v9811_v36 }
 0x543   : > { %v5008_v26 = vsub.f32 0.0, %v14841_v13 }
 0x544   : > { %v4820_v14 = vpop.f32.mrf.mxu2  ;;  %5484 = vmatpush.bf16.msrb.mxu2 %v9812_v35 }
 0x545   : > { %v5041_v31 = vmul.f32 1.442695, %v5008_v26  ;;  %v4821_v42 = vadd.f32 %v4820_v14, %v14843_v17 }
 0x546   : > { %v4871_v0 = vpop.f32.mrf.mxu3  ;;  %v4920_v47 = vpop.f32.mrf.mxu0 }
 0x547   : > { %v14847_v33 = vadd.f32 %v4869_v39, %v4821_v42  ;;  %v4921_v48 = vadd.f32 %v4920_v47, %v14838_v55  ;;  %11671 = vpow2.f32 %v5041_v31 }
 0x548   : > { %v4972_v19 = vpop.f32.mrf.mxu1  ;;  %5485 = vmatpush.bf16.msrb.mxu2 %v9800_v23 }
 0x549   : > { %v5007_v29 = vsub.f32 0.0, %v14847_v33  ;;  %v4970_v51 = vadd.f32 %v4969_v22, %v4921_v48 }
 0x54b   : > { %v5039_v27 = vmul.f32 1.442695, %v5007_v29  ;;  %v5010_v20 = vsub.f32 0.0, %v4970_v51 }
 0x54c   : > { %v4822_v39 = vpop.f32.mrf.mxu2 }
 0x54d   : > { %v5045_v62 = vmul.f32 1.442695, %v5010_v20  ;;  %v4823_v59 = vadd.f32 %v4822_v39, %v14843_v17  ;;  %11673 = vpow2.f32 %v5039_v27  ;;  %v11672_v3 = vpop.eup %11671 }
 0x54e   : > { %v4874_v26 = vpop.f32.mrf.mxu3  ;;  %v4923_v14 = vpop.f32.mrf.mxu0  ;;  %v5104_v43 = vadd.f32 1.0, %v11672_v3 }
 0x54f   : > { %11675 = vpow2.f32 %v5045_v62  ;;  %v4872_v54 = vadd.f32 %v4871_v0, %v4823_v59  ;;  %v4924_v36 = vadd.f32 %v4923_v14, %v14838_v55 }
 0x550   : > { %v4974_v22 = vpop.f32.mrf.mxu1 }
 0x551   : > { %v5009_v6 = vsub.f32 0.0, %v4872_v54  ;;  %v14853_v31 = vadd.f32 %v4972_v19, %v4924_v36 }
 0x553   : > { %v5043_v42 = vmul.f32 1.442695, %v5009_v6  ;;  %v11674_v35 = vpop.eup %11673  ;;  %v5012_v47 = vsub.f32 0.0, %v14853_v31 }
 0x554   : > { %v4825_v18 = vpop.f32.mrf.mxu2  ;;  %v5103_v34 = vadd.f32 1.0, %v11674_v35 }
 0x555   : > { %v11676_v48 = vpop.eup %11675  ;;  %11677 = vpow2.f32 %v5043_v42  ;;  %v5049_v2 = vmul.f32 1.442695, %v5012_v47  ;;  %v4826_v0 = vadd.f32 %v4825_v18, %v14843_v17 }
 0x556   : > { %11679 = vrcp.f32 %v5104_v43  ;;  %v5106_v60 = vadd.f32 1.0, %v11676_v48  ;;  %v4876_v29 = vpop.f32.mrf.mxu3  ;;  %v4925_v63 = vpop.f32.mrf.mxu0 }
 0x557   : > { %v14857_v23 = vadd.f32 %v4874_v26, %v4826_v0  ;;  %v4926_v19 = vadd.f32 %v4925_v63, %v14838_v55  ;;  %v10696_v0 = vld [vmem:[#allocation28 + $0x38] sm:$0xff] }
 0x558   : > { %11681 = vrcp.f32 %v5106_v60  ;;  %6216 = vmatpush.bf16.msra.mxu0 %v10696_v0 }
 0x559   : > { %11683 = vpow2.f32 %v5049_v2  ;;  %v5011_v27 = vsub.f32 0.0, %v14857_v23  ;;  %v14861_v20 = vadd.f32 %v4974_v22, %v4926_v19  ;;  %v4977_v39 = vpop.f32.mrf.mxu1 }
 0x55a   : > { %11685 = vrcp.f32 %v5103_v34 }
 0x55b   : > { %v11678_v62 = vpop.eup %11677  ;;  %v5047_v14 = vmul.f32 1.442695, %v5011_v27  ;;  %v5014_v36 = vsub.f32 0.0, %v14861_v20 }
 0x55c   : > { %v11680_v59 = vpop.eup %11679  ;;  %v5105_v3 = vadd.f32 1.0, %v11678_v62  ;;  %v4827_v6 = vpop.f32.mrf.mxu2 }
 0x55d   : > { %v5053_v26 = vmul.f32 1.442695, %v5014_v36  ;;  %v4828_v42 = vadd.f32 %v4827_v6, %v14843_v17  ;;  %v5168_v47 = vmul.f32 %v11680_v59, %v14841_v13 }
 0x55e   : > { %v11682_v43 = vpop.eup %11681  ;;  %11687 = vrcp.f32 %v5105_v3  ;;  %v4928_v22 = vpop.f32.mrf.mxu0 }
 0x55f   : > { %v11684_v35 = vpop.eup %11683  ;;  %v5170_v48 = vmul.f32 %v11682_v43, %v4970_v51  ;;  %11689 = vpow2.f32 %v5047_v14  ;;  %v14866_v18 = vadd.f32 %v4876_v29, %v4828_v42  ;;  %v4879_v60 = vpop.f32.mrf.mxu3  ;;  %v4929_v2 = vadd.f32 %v4928_v22, %v14838_v55 }
 0x560   : > { %11691 = vpow2.f32 %v5053_v26  ;;  %v5108_v34 = vadd.f32 1.0, %v11684_v35  ;;  %v11686_v19 = vpop.eup %11685 }
 0x561   : > { %v14869_v63 = vpack.c.bf16 %v5170_v48, %v5168_v47  ;;  %v5013_v27 = vsub.f32 0.0, %v14866_v18  ;;  %v14872_v62 = vadd.f32 %v4977_v39, %v4929_v2  ;;  %v4979_v3 = vpop.f32.mrf.mxu1  ;;  %v5167_v14 = vmul.f32 %v11686_v19, %v14847_v33 }
 0x562   : > { %11693 = vrcp.f32 %v5108_v34 }
 0x563   : > { %5535 = vmatmul.bf16.vlgmr.msrb.gmra.mxu3 %v14869_v63  ;;  %5633 = vmatmul.bf16.vlgmr.msra.gmra.mxu1 %v14869_v63  ;;  %v5051_v51 = vmul.f32 1.442695, %v5013_v27  ;;  %v5016_v29 = vsub.f32 0.0, %v14872_v62 }
 0x564   : > { %v11688_v13 = vpop.eup %11687  ;;  %v4830_v6 = vpop.f32.mrf.mxu2 }
 0x565   : > { %v11690_v59 = vpop.eup %11689  ;;  %v5169_v36 = vmul.f32 %v11688_v13, %v4872_v54  ;;  %11695 = vpow2.f32 %v5051_v51  ;;  %v5057_v39 = vmul.f32 1.442695, %v5016_v29  ;;  %v4831_v26 = vadd.f32 %v4830_v6, %v14843_v17 }
 0x566   : > { %v11692_v43 = vpop.eup %11691  ;;  %v4930_v47 = vpop.f32.mrf.mxu0  ;;  %v5107_v48 = vadd.f32 1.0, %v11690_v59 }
 0x567   : > { %v14879_v42 = vpack.c.bf16 %v5169_v36, %v5167_v14  ;;  %v5110_v35 = vadd.f32 1.0, %v11692_v43  ;;  %v14881_v22 = vadd.f32 %v4879_v60, %v4831_v26  ;;  %v4881_v2 = vpop.f32.mrf.mxu3  ;;  %v4931_v0 = vadd.f32 %v4930_v47, %v14838_v55 }
 0x568   : > { %v11694_v19 = vpop.eup %11693 }
 0x569   : > { %11697 = vrcp.f32 %v5110_v35  ;;  %5486 = vmatmul.bf16.vlgmr.msrb.gmra.mxu2 %v14879_v42  ;;  %5584 = vmatmul.bf16.vlgmr.msrb.gmra.mxu0 %v14879_v42  ;;  %v5015_v33 = vsub.f32 0.0, %v14881_v22  ;;  %v14887_v54 = vadd.f32 %v4979_v3, %v4931_v0  ;;  %v4982_v34 = vpop.f32.mrf.mxu1  ;;  %v5172_v6 = vmul.f32 %v11694_v19, %v14853_v31  ;;  %v10600_v0 = vld [vmem:[#allocation20 + $0xb8] sm:$0xf0] }
 0x56a   : > { %11699 = vpow2.f32 %v5057_v39 }
 0x56b   : > { %v11696_v27 = vpop.eup %11695  ;;  %11701 = vrcp.f32 %v5107_v48  ;;  %v5055_v13 = vmul.f32 1.442695, %v5015_v33  ;;  %v5018_v60 = vsub.f32 0.0, %v14887_v54  ;;  %v9891_v48 = vld [vmem:[#allocation20 + $0xb0] sm:$0xf]  ;;  %v10695_v33 = vld [vmem:[#allocation28 + $0x30] sm:$0xff] }
 0x56c   : > { %v5109_v51 = vadd.f32 1.0, %v11696_v27  ;;  %v4832_v29 = vpop.f32.mrf.mxu2  ;;  %6217 = vmatpush.bf16.msra.mxu0 %v10695_v33 }
 0x56d   : > { %11703 = vpow2.f32 %v5055_v13  ;;  %v5061_v59 = vmul.f32 1.442695, %v5018_v60  ;;  %v4833_v14 = vadd.f32 %v4832_v29, %v14843_v17  ;;  %v9892_v13 = vor.u32 %v10600_v0, %v9891_v48 }
 0x56e   : > { %11705 = vrcp.f32 %v5109_v51  ;;  %v4933_v43 = vpop.f32.mrf.mxu0 }
 0x56f   : > { %v11698_v36 = vpop.eup %11697  ;;  %11707 = vpow2.f32 %v5061_v59  ;;  %v14893_v26 = vadd.f32 %v4881_v2, %v4833_v14  ;;  %v4884_v35 = vpop.f32.mrf.mxu3  ;;  %v4934_v47 = vadd.f32 %v4933_v43, %v14838_v55  ;;  %5674 = vmatpush.bf16.msra.mxu2 %v9892_v13 }
 0x570   : > { %v11700_v3 = vpop.eup %11699  ;;  %v5174_v39 = vmul.f32 %v11698_v36, %v14861_v20  ;;  %6218 = vmatpush.bf16.msra.mxu0 %v10694_v4 }
 0x571   : > { %v5112_v27 = vadd.f32 1.0, %v11700_v3  ;;  %v11702_v60 = vpop.eup %11701  ;;  %v5017_v29 = vsub.f32 0.0, %v14893_v26  ;;  %v14897_v31 = vadd.f32 %v4982_v34, %v4934_v47  ;;  %v4984_v19 = vpop.f32.mrf.mxu1 }
 0x572   : > { %v14899_v51 = vpack.c.bf16 %v5174_v39, %v5172_v6  ;;  %v5171_v36 = vmul.f32 %v11702_v60, %v14857_v23 }
 0x573   : > { %v11704_v20 = vpop.eup %11703  ;;  %v5059_v2 = vmul.f32 1.442695, %v5017_v29  ;;  %v5020_v59 = vsub.f32 0.0, %v14897_v31  ;;  %11709 = vrcp.f32 %v5112_v27 }
 0x574   : > { %5540 = vmatmul.bf16.gmra.mxu3 %v14899_v51  ;;  %5638 = vmatmul.bf16.gmra.mxu1 %v14899_v51  ;;  %v11706_v14 = vpop.eup %11705  ;;  %v4835_v43 = vpop.f32.mrf.mxu2  ;;  %v5111_v23 = vadd.f32 1.0, %v11704_v20 }
 0x575   : > { %v11708_v34 = vpop.eup %11707  ;;  %v5173_v3 = vmul.f32 %v11706_v14, %v14866_v18  ;;  %11711 = vpow2.f32 %v5059_v2  ;;  %v5065_v6 = vmul.f32 1.442695, %v5020_v59  ;;  %v4836_v39 = vadd.f32 %v4835_v43, %v14843_v17 }
 0x576   : > { %v5114_v47 = vadd.f32 1.0, %v11708_v34  ;;  %v4935_v48 = vpop.f32.mrf.mxu0 }
 0x577   : > { %11713 = vpow2.f32 %v5065_v6  ;;  %v14907_v0 = vadd.f32 %v4884_v35, %v4836_v39  ;;  %v4886_v33 = vpop.f32.mrf.mxu3  ;;  %v4936_v13 = vadd.f32 %v4935_v48, %v14838_v55  ;;  %v14910_v29 = vpack.c.bf16 %v5173_v3, %v5171_v36 }
 0x578   : > { %11715 = vrcp.f32 %v5114_v47 }
 0x579   : > { %v5019_v27 = vsub.f32 0.0, %v14907_v0  ;;  %v14913_v60 = vadd.f32 %v4984_v19, %v4936_v13  ;;  %v4987_v18 = vpop.f32.mrf.mxu1  ;;  %5491 = vmatmul.bf16.gmra.mxu2 %v14910_v29  ;;  %5589 = vmatmul.bf16.gmra.mxu0 %v14910_v29  ;;  %v11710_v2 = vpop.eup %11709  ;;  %11717 = vrcp.f32 %v5111_v23 }
 0x57a   : > { %v5176_v6 = vmul.f32 %v11710_v2, %v14872_v62 }
 0x57b   : > { %v11712_v59 = vpop.eup %11711  ;;  %v5063_v35 = vmul.f32 1.442695, %v5019_v27  ;;  %v5022_v14 = vsub.f32 0.0, %v14913_v60  ;;  %v9879_v27 = vld [vmem:[#allocation20 + $0x98] sm:$0xf] }
 0x57c   : > { %v5113_v43 = vadd.f32 1.0, %v11712_v59  ;;  %v4837_v36 = vpop.f32.mrf.mxu2  ;;  %v10597_v59 = vld [vmem:[#allocation20 + $0xa0] sm:$0xf0] }
 0x57d   : > { %v11714_v34 = vpop.eup %11713  ;;  %11719 = vpow2.f32 %v5063_v35  ;;  %v5069_v20 = vmul.f32 1.442695, %v5022_v14  ;;  %v4838_v3 = vadd.f32 %v4837_v36, %v14843_v17  ;;  %v9880_v14 = vor.u32 %v10597_v59, %v9879_v27 }
 0x57e   : > { %v11716_v19 = vpop.eup %11715  ;;  %11721 = vrcp.f32 %v5113_v43  ;;  %v4938_v39 = vpop.f32.mrf.mxu0  ;;  %v5116_v35 = vadd.f32 1.0, %v11714_v34 }
 0x57f   : > { %v5178_v47 = vmul.f32 %v11716_v19, %v14887_v54  ;;  %11723 = vpow2.f32 %v5069_v20  ;;  %v14921_v48 = vadd.f32 %v4886_v33, %v4838_v3  ;;  %v4889_v13 = vpop.f32.mrf.mxu3  ;;  %v4939_v23 = vadd.f32 %v4938_v39, %v14838_v55  ;;  %v11718_v54 = vpop.eup %11717  ;;  %5675 = vmatpush.bf16.msra.mxu2 %v9880_v14 }
 0x580   : > { %11725 = vrcp.f32 %v5116_v35  ;;  %v5175_v39 = vmul.f32 %v11718_v54, %v14881_v22 }
 0x581   : > { %v5021_v36 = vsub.f32 0.0, %v14921_v48  ;;  %v14925_v9 = vadd.f32 %v4987_v18, %v4939_v23  ;;  %v4989_v62 = vpop.f32.mrf.mxu1  ;;  %v14927_v2 = vpack.c.bf16 %v5178_v47, %v5176_v6 }
 0x583   : > { %16776 = vst [vmem:[#allocation67_spill] sm:$0xff] %v14927_v2  ;;  %v11720_v33 = vpop.eup %11719  ;;  %v5067_v43 = vmul.f32 1.442695, %v5021_v36  ;;  %v5024_v20 = vsub.f32 0.0, %v14925_v9 }
 0x584   : > { %5545 = vmatmul.bf16.gmra.mxu3 %v14927_v2  ;;  %5643 = vmatmul.bf16.gmra.mxu1 %v14927_v2  ;;  %v11722_v34 = vpop.eup %11721  ;;  %v4840_v3 = vpop.f32.mrf.mxu2  ;;  %v5115_v36 = vadd.f32 1.0, %v11720_v33 }
 0x585   : > { %v11724_v19 = vpop.eup %11723  ;;  %v5177_v18 = vmul.f32 %v11722_v34, %v14893_v26  ;;  %11727 = vpow2.f32 %v5067_v43  ;;  %v5073_v6 = vmul.f32 1.442695, %v5024_v20  ;;  %v4841_v4 = vadd.f32 %v4840_v3, %v14843_v17 }
 0x586   : > { %v5118_v47 = vadd.f32 1.0, %v11724_v19  ;;  %v4940_v23 = vpop.f32.mrf.mxu0  ;;  %v11726_v34 = vpop.eup %11725 }
 0x587   : > { %11729 = vpow2.f32 %v5073_v6  ;;  %v14935_v27 = vadd.f32 %v4889_v13, %v4841_v4  ;;  %v4891_v59 = vpop.f32.mrf.mxu3  ;;  %v4941_v14 = vadd.f32 %v4940_v23, %v14838_v55  ;;  %v14938_v35 = vpack.c.bf16 %v5177_v18, %v5175_v39 }
 0x588   : > { %11731 = vrcp.f32 %v5118_v47  ;;  %v5180_v4 = vmul.f32 %v11726_v34, %v14897_v31 }
 0x589   : > { %16777 = vst [vmem:[#allocation68_spill] sm:$0xff] %v14938_v35  ;;  %v5023_v26 = vsub.f32 0.0, %v14935_v27  ;;  %v14941_v43 = vadd.f32 %v4989_v62, %v4941_v14  ;;  %v4992_v20 = vpop.f32.mrf.mxu1  ;;  %5496 = vmatmul.bf16.gmra.mxu2 %v14938_v35  ;;  %5594 = vmatmul.bf16.gmra.mxu0 %v14938_v35  ;;  %11733 = vrcp.f32 %v5115_v36  ;;  %v10693_v35 = vld [vmem:[#allocation28 + $0x20] sm:$0xff] }
 0x58a   : > { %6219 = vmatpush.bf16.msra.mxu0 %v10693_v35 }
 0x58b   : > { %v11728_v22 = vpop.eup %11727  ;;  %v5071_v13 = vmul.f32 1.442695, %v5023_v26  ;;  %v5026_v54 = vsub.f32 0.0, %v14941_v43  ;;  %v9867_v26 = vld [vmem:[#allocation20 + $0x80] sm:$0xf] }
 0x58c   : > { %v5117_v3 = vadd.f32 1.0, %v11728_v22  ;;  %v4842_v33 = vpop.f32.mrf.mxu2  ;;  %v10594_v22 = vld [vmem:[#allocation20 + $0x88] sm:$0xf0] }
 0x58d   : > { %v11730_v19 = vpop.eup %11729  ;;  %11735 = vpow2.f32 %v5071_v13  ;;  %v5077_v18 = vmul.f32 1.442695, %v5026_v54  ;;  %v4843_v6 = vadd.f32 %v4842_v33, %v14843_v17  ;;  %v9868_v54 = vor.u32 %v10594_v22, %v9867_v26 }
 0x58e   : > { %v11732_v62 = vpop.eup %11731  ;;  %11737 = vrcp.f32 %v5117_v3  ;;  %v4943_v39 = vpop.f32.mrf.mxu0  ;;  %v5120_v13 = vadd.f32 1.0, %v11730_v19 }
 0x58f   : > { %v5182_v47 = vmul.f32 %v11732_v62, %v14913_v60  ;;  %11739 = vpow2.f32 %v5077_v18  ;;  %v14949_v23 = vadd.f32 %v4891_v59, %v4843_v6  ;;  %v4894_v14 = vpop.f32.mrf.mxu3  ;;  %v4944_v36 = vadd.f32 %v4943_v39, %v14838_v55  ;;  %v11734_v60 = vpop.eup %11733  ;;  %5676 = vmatpush.bf16.msra.mxu2 %v9868_v54 }
 0x590   : > { %11741 = vrcp.f32 %v5120_v13  ;;  %v5179_v39 = vmul.f32 %v11734_v60, %v14907_v0 }
 0x591   : > { %v5025_v33 = vsub.f32 0.0, %v14949_v23  ;;  %v14953_v2 = vadd.f32 %v4992_v20, %v4944_v36  ;;  %v4994_v31 = vpop.f32.mrf.mxu1  ;;  %v14955_v34 = vpack.c.bf16 %v5182_v47, %v5180_v4 }
 0x593   : > { %16778 = vst [vmem:[#allocation69_spill] sm:$0xff] %v14955_v34  ;;  %v11736_v59 = vpop.eup %11735  ;;  %v5075_v3 = vmul.f32 1.442695, %v5025_v33  ;;  %v5028_v18 = vsub.f32 0.0, %v14953_v2 }
 0x594   : > { %5550 = vmatmul.bf16.gmra.mxu3 %v14955_v34  ;;  %5648 = vmatmul.bf16.gmra.mxu1 %v14955_v34  ;;  %v11738_v19 = vpop.eup %11737  ;;  %v4845_v6 = vpop.f32.mrf.mxu2  ;;  %v5119_v33 = vadd.f32 1.0, %v11736_v59 }
 0x595   : > { %v11740_v62 = vpop.eup %11739  ;;  %v5181_v20 = vmul.f32 %v11738_v19, %v14921_v48  ;;  %11743 = vpow2.f32 %v5075_v3  ;;  %v5081_v4 = vmul.f32 1.442695, %v5028_v18  ;;  %v4846_v35 = vadd.f32 %v4845_v6, %v14843_v17 }
 0x596   : > { %v5122_v47 = vadd.f32 1.0, %v11740_v62  ;;  %v4945_v36 = vpop.f32.mrf.mxu0  ;;  %v11742_v18 = vpop.eup %11741 }
 0x597   : > { %11745 = vpow2.f32 %v5081_v4  ;;  %v14963_v26 = vadd.f32 %v4894_v14, %v4846_v35  ;;  %v4896_v22 = vpop.f32.mrf.mxu3  ;;  %v4946_v54 = vadd.f32 %v4945_v36, %v14838_v55  ;;  %v14966_v13 = vpack.c.bf16 %v5181_v20, %v5179_v39 }
 0x598   : > { %11747 = vrcp.f32 %v5122_v47  ;;  %v5184_v35 = vmul.f32 %v11742_v18, %v14925_v9 }
 0x599   : > { %16779 = vst [vmem:[#allocation70_spill] sm:$0xff] %v14966_v13  ;;  %v5027_v48 = vsub.f32 0.0, %v14963_v26  ;;  %v14969_v3 = vadd.f32 %v4994_v31, %v4946_v54  ;;  %v4997_v19 = vpop.f32.mrf.mxu1  ;;  %5501 = vmatmul.bf16.gmra.mxu2 %v14966_v13  ;;  %5599 = vmatmul.bf16.gmra.mxu0 %v14966_v13  ;;  %11749 = vrcp.f32 %v5119_v33  ;;  %v9855_v33 = vld [vmem:[#allocation20 + $0x68] sm:$0xf] }
 0x59b   : > { %v11744_v0 = vpop.eup %11743  ;;  %v5079_v14 = vmul.f32 1.442695, %v5027_v48  ;;  %v5030_v60 = vsub.f32 0.0, %v14969_v3  ;;  %v10591_v48 = vld [vmem:[#allocation20 + $0x70] sm:$0xf0] }
 0x59c   : > { %v5121_v6 = vadd.f32 1.0, %v11744_v0  ;;  %v4847_v59 = vpop.f32.mrf.mxu2  ;;  %v10692_v0 = vld [vmem:[#allocation28 + $0x18] sm:$0xff] }
 0x59d   : > { %v11746_v62 = vpop.eup %11745  ;;  %11751 = vpow2.f32 %v5079_v14  ;;  %v5085_v20 = vmul.f32 1.442695, %v5030_v60  ;;  %v4848_v4 = vadd.f32 %v4847_v59, %v14843_v17  ;;  %v9856_v60 = vor.u32 %v10591_v48, %v9855_v33  ;;  %6220 = vmatpush.bf16.msra.mxu0 %v10692_v0 }
 0x59e   : > { %v11748_v31 = vpop.eup %11747  ;;  %11753 = vrcp.f32 %v5121_v6  ;;  %v4948_v39 = vpop.f32.mrf.mxu0  ;;  %v5124_v13 = vadd.f32 1.0, %v11746_v62  ;;  %v3258_v33 = vadd.f32 %v14413_v32, %v14406_v46 }
 0x59f   : > { %v5186_v47 = vmul.f32 %v11748_v31, %v14941_v43  ;;  %11755 = vpow2.f32 %v5085_v20  ;;  %v14977_v36 = vadd.f32 %v4896_v22, %v4848_v4  ;;  %v4949_v54 = vadd.f32 %v4948_v39, %v14838_v55  ;;  %v4899_v14 = vpop.f32.mrf.mxu3  ;;  %v11750_v18 = vpop.eup %11749  ;;  %5677 = vmatpush.bf16.msra.mxu2 %v9856_v60 }
 0x5a0   : > { %11757 = vrcp.f32 %v5124_v13  ;;  %v5183_v48 = vmul.f32 %v11750_v18, %v14935_v27  ;;  %v9975_v27 = vld [vmem:[#allocation20 + $0x158] sm:$0xf]  ;;  %v10621_v18 = vld [vmem:[#allocation20 + $0x160] sm:$0xf0] }
 0x5a1   : > { %v5029_v59 = vsub.f32 0.0, %v14977_v36  ;;  %v14981_v34 = vadd.f32 %v4997_v19, %v4949_v54  ;;  %v14983_v9 = vpack.c.bf16 %v5186_v47, %v5184_v35  ;;  %v4999_v20 = vpop.f32.mrf.mxu1  ;;  %v9987_v47 = vld [vmem:[#allocation20 + $0x170] sm:$0xf]  ;;  %v10624_v54 = vld [vmem:[#allocation20 + $0x178] sm:$0xf0] }
 0x5a3   : > { %16780 = vst [vmem:[#allocation71_spill] sm:$0xff] %v14983_v9  ;;  %v11752_v43 = vpop.eup %11751  ;;  %v5083_v22 = vmul.f32 1.442695, %v5029_v59  ;;  %v5032_v6 = vsub.f32 0.0, %v14981_v34  ;;  %v9988_v59 = vor.u32 %v10624_v54, %v9987_v47 }
 0x5a4   : > { %5555 = vmatmul.bf16.gmra.mxu3 %v14983_v9  ;;  %5653 = vmatmul.bf16.gmra.mxu1 %v14983_v9  ;;  %v11754_v62 = vpop.eup %11753  ;;  %v4850_v4 = vpop.f32.mrf.mxu2 }
 0x5a5   : > { %v11756_v31 = vpop.eup %11755  ;;  %v5185_v19 = vmul.f32 %v11754_v62, %v14949_v23  ;;  %11759 = vpow2.f32 %v5083_v22  ;;  %v5089_v35 = vmul.f32 1.442695, %v5032_v6  ;;  %v4851_v39 = vadd.f32 %v4850_v4, %v14843_v17  ;;  %5723 = vmatpush.bf16.msra.mxu3 %v9988_v59 }
 0x5a6   : > { %v5126_v0 = vadd.f32 1.0, %v11756_v31  ;;  %v4950_v60 = vpop.f32.mrf.mxu0  ;;  %v14997_v23 = vadd.f32 %v14418_v40, %v3258_v33  ;;  %v5123_v22 = vadd.f32 1.0, %v11752_v43  ;;  %v11758_v4 = vpop.eup %11757  ;;  %v9976_v40 = vor.u32 %v10621_v18, %v9975_v27  ;;  %v9963_v33 = vld [vmem:[#allocation20 + $0x140] sm:$0xf] }
 0x5a7   : > { %v14993_v13 = vadd.f32 %v4899_v14, %v4851_v39  ;;  %v4951_v9 = vadd.f32 %v4950_v60, %v14838_v55  ;;  %v14999_v6 = vpack.c.bf16 %v5185_v19, %v5183_v48  ;;  %v3345_v14 = vsub.f32 0.0, %v14411_v56  ;;  %v4901_v31 = vpop.f32.mrf.mxu3  ;;  %v10618_v48 = vld [vmem:[#allocation20 + $0x148] sm:$0xf0] }
 0x5a8   : > { %11761 = vrcp.f32 %v5126_v0  ;;  %v5188_v59 = vmul.f32 %v11758_v4, %v14953_v2  ;;  %v9964_v18 = vor.u32 %v10618_v48, %v9963_v33 }
 0x5a9   : > { %16781 = vst [vmem:[#allocation72_spill] sm:$0xff] %v14999_v6  ;;  %11763 = vpow2.f32 %v5089_v35  ;;  %v5031_v32 = vsub.f32 0.0, %v14993_v13  ;;  %v15002_v62 = vadd.f32 %v4999_v20, %v4951_v9  ;;  %5506 = vmatmul.bf16.gmra.mxu2 %v14999_v6  ;;  %5604 = vmatmul.bf16.gmra.mxu0 %v14999_v6  ;;  %v3347_v35 = vsub.f32 0.0, %v14997_v23 }
 0x5aa   : > { %11765 = vrcp.f32 %v5123_v22  ;;  %5724 = vmatpush.bf16.msra.mxu3 %v9976_v40  ;;  %v3378_v60 = vmul.f32 1.442695, %v3345_v14 }
 0x5ab   : > { %v11760_v43 = vpop.eup %11759  ;;  %v5087_v19 = vmul.f32 1.442695, %v5031_v32  ;;  %v5034_v39 = vsub.f32 0.0, %v15002_v62  ;;  %v5002_v32 = vpop.f32.mrf.mxu1  ;;  %v3382_v45 = vmul.f32 1.442695, %v3347_v35 }
 0x5ac   : > { %v5125_v9 = vadd.f32 1.0, %v11760_v43  ;;  %v4852_v20 = vpop.f32.mrf.mxu2 }
 0x5ad   : > { %11767 = vpow2.f32 %v5087_v19  ;;  %v5093_v47 = vmul.f32 1.442695, %v5034_v39  ;;  %v4853_v54 = vadd.f32 %v4852_v20, %v14843_v17  ;;  %v9843_v19 = vld [vmem:[#allocation20 + $0x50] sm:$0xf]  ;;  %v10588_v39 = vld [vmem:[#allocation20 + $0x58] sm:$0xf0] }
 0x5ae   : > { %v11762_v0 = vpop.eup %11761  ;;  %11769 = vrcp.f32 %v5125_v9  ;;  %v4953_v27 = vpop.f32.mrf.mxu0  ;;  %v10691_v20 = vld [vmem:[#allocation28 + $0x10] sm:$0xff]  ;;  %v9844_v28 = vor.u32 %v10588_v39, %v9843_v19  ;;  %5725 = vmatpush.bf16.msra.mxu3 %v9964_v18  ;;  %v9951_v9 = vld [vmem:[#allocation20 + $0x128] sm:$0xf] }
 0x5af   : > { %v11764_v6 = vpop.eup %11763  ;;  %v5190_v22 = vmul.f32 %v11762_v0, %v14969_v3  ;;  %11771 = vpow2.f32 %v5093_v47  ;;  %v15012_v43 = vadd.f32 %v4901_v31, %v4853_v54  ;;  %v4954_v40 = vadd.f32 %v4953_v27, %v14838_v55  ;;  %6221 = vmatpush.bf16.msra.mxu0 %v10691_v20  ;;  %v10615_v3 = vld [vmem:[#allocation20 + $0x130] sm:$0xf0] }
 0x5b0   : > { %v11766_v47 = vpop.eup %11765  ;;  %v5128_v31 = vadd.f32 1.0, %v11764_v6  ;;  %5678 = vmatpush.bf16.msra.mxu2 %v9844_v28  ;;  %v9952_v54 = vor.u32 %v10615_v3, %v9951_v9  ;;  %11773 = vpow2.f32 %v3378_v60  ;;  %v10612_v9 = vld [vmem:[#allocation20 + $0x118] sm:$0xf0] }
 0x5b1   : > { %v5033_v2 = vsub.f32 0.0, %v15012_v43  ;;  %v15016_v4 = vadd.f32 %v5002_v32, %v4954_v40  ;;  %v15018_v14 = vpack.c.bf16 %v5190_v22, %v5188_v59  ;;  %11775 = vpow2.f32 %v3382_v45  ;;  %v4904_v32 = vpop.f32.mrf.mxu3  ;;  %v9831_v22 = vld [vmem:[#allocation20 + $0x38] sm:$0xf]  ;;  %v10585_v40 = vld [vmem:[#allocation20 + $0x40] sm:$0xf0] }
 0x5b2   : > { %v3263_v59 = vadd.f32 %v14428_v1, %v14406_v46  ;;  %5726 = vmatpush.bf16.msra.mxu3 %v9952_v54  ;;  %v5187_v19 = vmul.f32 %v11766_v47, %v14963_v26  ;;  %v9832_v20 = vor.u32 %v10585_v40, %v9831_v22  ;;  %v9939_v1 = vld [vmem:[#allocation20 + $0x110] sm:$0xf]  ;;  %v10609_v22 = vld [vmem:[#allocation20 + $0x100] sm:$0xf0] }
 0x5b3   : > { %v11768_v33 = vpop.eup %11767  ;;  %v5091_v48 = vmul.f32 1.442695, %v5033_v2  ;;  %v5036_v35 = vsub.f32 0.0, %v15016_v4  ;;  %v10690_v2 = vld [vmem:[#allocation28 + $0x8] sm:$0xff]  ;;  %v9940_v47 = vor.u32 %v10612_v9, %v9939_v1  ;;  %v9915_v9 = vld [vmem:[#allocation20 + $0xe0] sm:$0xf] }
 0x5b4   : > { %5560 = vmatmul.bf16.gmra.mxu3 %v15018_v14  ;;  %5658 = vmatmul.bf16.gmra.mxu1 %v15018_v14  ;;  %v11770_v0 = vpop.eup %11769  ;;  %v4855_v27 = vpop.f32.mrf.mxu2  ;;  %v15029_v3 = vadd.f32 %v14433_v57, %v3263_v59  ;;  %v5127_v54 = vadd.f32 1.0, %v11768_v33 }
 0x5b5   : > { %v11772_v6 = vpop.eup %11771  ;;  %v5189_v28 = vmul.f32 %v11770_v0, %v14977_v36  ;;  %11777 = vpow2.f32 %v5091_v48  ;;  %v5097_v60 = vmul.f32 1.442695, %v5036_v35  ;;  %v4856_v18 = vadd.f32 %v4855_v27, %v14843_v17  ;;  %v9819_v35 = vld [vmem:[#allocation20 + $0x20] sm:$0xf]  ;;  %v10582_v0 = vld [vmem:[#allocation20 + $0x28] sm:$0xf0]  ;;  %v5004_v27 = vpop.f32.mrf.mxu1  ;;  %5679 = vmatpush.bf16.msra.mxu2 %v9832_v20  ;;  %6222 = vmatpush.bf16.msra.mxu0 %v10690_v2 }
 0x5b6   : > { %11779 = vrcp.f32 %v5128_v31  ;;  %v5130_v39 = vadd.f32 1.0, %v11772_v6  ;;  %v4955_v45 = vpop.f32.mrf.mxu0  ;;  %v9820_v31 = vor.u32 %v10582_v0, %v9819_v35  ;;  %v9927_v6 = vld [vmem:[#allocation20 + $0xf8] sm:$0xf]  ;;  %v11774_v40 = vpop.eup %11773  ;;  %5727 = vmatpush.bf16.msra.mxu3 %v9940_v47  ;;  %v3349_v47 = vsub.f32 0.0, %v14426_v12 }
 0x5b7   : > { %v15031_v36 = vadd.f32 %v4904_v32, %v4856_v18  ;;  %v4956_v48 = vadd.f32 %v4955_v45, %v14838_v55  ;;  %v15034_v26 = vpack.c.bf16 %v5189_v28, %v5187_v19  ;;  %v11776_v59 = vpop.eup %11775  ;;  %v10689_v55 = vld [vmem:[#allocation28] sm:$0xff]  ;;  %v9928_v19 = vor.u32 %v10609_v22, %v9927_v6 }
 0x5b8   : > { %11781 = vrcp.f32 %v5130_v39  ;;  %v3351_v45 = vsub.f32 0.0, %v15029_v3  ;;  %v3441_v0 = vadd.f32 1.0, %v11774_v40  ;;  %v9903_v40 = vld [vmem:[#allocation20 + $0xc8] sm:$0xf] }
 0x5b9   : > { %11783 = vpow2.f32 %v5097_v60  ;;  %v5035_v57 = vsub.f32 0.0, %v15031_v36  ;;  %v15037_v33 = vadd.f32 %v5004_v27, %v4956_v48  ;;  %5511 = vmatmul.bf16.gmra.mxu2 %v15034_v26  ;;  %5609 = vmatmul.bf16.gmra.mxu0 %v15034_v26  ;;  %v10606_v48 = vld [vmem:[#allocation20 + $0xe8] sm:$0xf0]  ;;  %v3443_v27 = vadd.f32 1.0, %v11776_v59  ;;  %v4906_v6 = vpop.f32.mrf.mxu3  ;;  %v10603_v59 = vld [vmem:[#allocation20 + $0xd0] sm:$0xf0] }
 0x5ba   : > { %11785 = vrcp.f32 %v5127_v54  ;;  %5680 = vmatpush.bf16.msra.mxu2 %v9820_v31  ;;  %6223 = vmatpush.bf16.msra.mxu0 %v10689_v55  ;;  %v3390_v55 = vmul.f32 1.442695, %v3351_v45  ;;  %v9904_v45 = vor.u32 %v10603_v59, %v9903_v40 }
 0x5bb   : > { %v11778_v32 = vpop.eup %11777  ;;  %v5095_v28 = vmul.f32 1.442695, %v5035_v57  ;;  %v5038_v18 = vsub.f32 0.0, %v15037_v33  ;;  %5728 = vmatpush.bf16.msra.mxu3 %v9928_v19 }
 0x5bc   : > { %v11780_v39 = vpop.eup %11779  ;;  %v5129_v60 = vadd.f32 1.0, %v11778_v32  ;;  %v4857_v20 = vpop.f32.mrf.mxu2 }
 0x5bd   : > { %11787 = vpow2.f32 %v5095_v28  ;;  %v5101_v2 = vmul.f32 1.442695, %v5038_v18  ;;  %v4858_v1 = vadd.f32 %v4857_v20, %v14843_v17  ;;  %v5192_v54 = vmul.f32 %v11780_v39, %v14981_v34 }
 0x5be   : > { %v11782_v35 = vpop.eup %11781  ;;  %11789 = vrcp.f32 %v5129_v60  ;;  %v9916_v17 = vor.u32 %v10606_v48, %v9915_v9  ;;  %v3346_v34 = vsub.f32 0.0, %v14415_v49 }
 0x5bf   : > { %v11784_v22 = vpop.eup %11783  ;;  %v5194_v57 = vmul.f32 %v11782_v35, %v15002_v62  ;;  %11791 = vpow2.f32 %v5101_v2  ;;  %v15047_v31 = vadd.f32 %v4906_v6, %v4858_v1  ;;  %v3386_v62 = vmul.f32 1.442695, %v3349_v47  ;;  %v9807_v6 = vld [vmem:[#allocation20 + $0x8] sm:$0xf] }
 0x5c0   : > { %v11786_v18 = vpop.eup %11785  ;;  %11793 = vrcp.f32 %v3443_v27  ;;  %v5132_v60 = vadd.f32 1.0, %v11784_v22  ;;  %5729 = vmatpush.bf16.msra.mxu3 %v9916_v17  ;;  %v3344_v1 = vsub.f32 0.0, %v14404_v61  ;;  %v3268_v27 = vadd.f32 %v14443_v24, %v14406_v46  ;;  %v10579_v22 = vld [vmem:[#allocation20 + $0x10] sm:$0xf0] }
 0x5c1   : > { %v5037_v32 = vsub.f32 0.0, %v15047_v31  ;;  %v15050_v28 = vpack.c.bf16 %v5194_v57, %v5192_v54  ;;  %11795 = vrcp.f32 %v3441_v0  ;;  %v5191_v9 = vmul.f32 %v11786_v18, %v14993_v13 }
 0x5c2   : > { %11797 = vpow2.f32 %v3390_v55  ;;  %v3380_v0 = vmul.f32 1.442695, %v3346_v34  ;;  %v9808_v55 = vor.u32 %v10579_v22, %v9807_v6  ;;  %v3376_v17 = vmul.f32 1.442695, %v3344_v1 }
 0x5c3   : > { %v11788_v20 = vpop.eup %11787  ;;  %v5099_v39 = vmul.f32 1.442695, %v5037_v32  ;;  %v3350_v22 = vsub.f32 0.0, %v14430_v52 }
 0x5c4   : > { %5565 = vmatmul.bf16.gmra.mxu3 %v15050_v28  ;;  %5663 = vmatmul.bf16.gmra.mxu1 %v15050_v28  ;;  %v11790_v19 = vpop.eup %11789  ;;  %v5131_v57 = vadd.f32 1.0, %v11788_v20 }
 0x5c5   : > { %v11792_v2 = vpop.eup %11791  ;;  %v5193_v48 = vmul.f32 %v11790_v19, %v15012_v43  ;;  %11799 = vpow2.f32 %v5099_v39  ;;  %5730 = vmatpush.bf16.msra.mxu3 %v9904_v45  ;;  %v15063_v43 = vadd.f32 %v14448_v5, %v3268_v27  ;;  %5681 = vmatpush.bf16.msra.mxu2 %v9808_v55  ;;  %v3353_v39 = vsub.f32 0.0, %v14441_v7 }
 0x5c6   : > { %11801 = vrcp.f32 %v5132_v60  ;;  %v5134_v35 = vadd.f32 1.0, %v11792_v2  ;;  %v11794_v54 = vpop.eup %11793 }
 0x5c7   : > { %11803 = vpow2.f32 %v3386_v62  ;;  %v15060_v47 = vpack.c.bf16 %v5193_v48, %v5191_v9  ;;  %v11796_v13 = vpop.eup %11795  ;;  %v15068_v40 = vmul.f32 %v11794_v54, %v14997_v23  ;;  %v3355_v5 = vsub.f32 0.0, %v15063_v43 }
 0x5c8   : > { %11805 = vrcp.f32 %v5134_v35  ;;  %v11798_v32 = vpop.eup %11797  ;;  %v15071_v20 = vmul.f32 %v11796_v13, %v14411_v56  ;;  %v3348_v54 = vsub.f32 0.0, %v14421_v38 }
 0x5c9   : > { %5516 = vmatmul.bf16.gmra.mxu2 %v15060_v47  ;;  %5614 = vmatmul.bf16.gmra.mxu0 %v15060_v47  ;;  %11807 = vpow2.f32 %v3380_v0  ;;  %v3447_v62 = vadd.f32 1.0, %v11798_v32  ;;  %v6061_v19 = vmul.f32 0.5, %v15068_v40  ;;  %v3398_v48 = vmul.f32 1.442695, %v3355_v5 }
 0x5ca   : > { %11809 = vrcp.f32 %v5131_v57  ;;  %v6060_v9 = vmul.f32 0.5, %v15071_v20  ;;  %v3394_v0 = vmul.f32 1.442695, %v3353_v39  ;;  %v3273_v32 = vadd.f32 %v14458_v11, %v14406_v46 }
 0x5cb   : > { %v11800_v24 = vpop.eup %11799  ;;  %11811 = vpow2.f32 %v3376_v17  ;;  %v6078_v6 = vmul.f32 1.442695, %v6061_v19  ;;  %v3384_v5 = vmul.f32 1.442695, %v3348_v54  ;;  %v1111_v19 = vld [vmem:[%s13804_s15 + $0x8] sm:$0xff] }
 0x5cc   : > { %v11802_v59 = vpop.eup %11801  ;;  %v5133_v18 = vadd.f32 1.0, %v11800_v24  ;;  %v6076_v57 = vmul.f32 1.442695, %v6060_v9  ;;  %v3388_v24 = vmul.f32 1.442695, %v3350_v22  ;;  %v1110_v9 = vld [vmem:[%s13804_s15] sm:$0xff] }
 0x5cd   : > { %v11804_v60 = vpop.eup %11803  ;;  %v5196_v23 = vmul.f32 %v11802_v59, %v15016_v4 }
 0x5ce   : > { %v11806_v34 = vpop.eup %11805  ;;  %11813 = vrcp.f32 %v5133_v18  ;;  %v3445_v2 = vadd.f32 1.0, %v11804_v60  ;;  %v15092_v60 = vadd.f32 %v14463_v8, %v3273_v32 }
 0x5cf   : > { %v5198_v45 = vmul.f32 %v11806_v34, %v15037_v33  ;;  %v11808_v1 = vpop.eup %11807  ;;  %11815 = vrcp.f32 %v3447_v62 }
 0x5d0   : > { %v11810_v35 = vpop.eup %11809  ;;  %v3442_v33 = vadd.f32 1.0, %v11808_v1  ;;  %11817 = vrcp.f32 %v3445_v2  ;;  %v3359_v62 = vsub.f32 0.0, %v15092_v60  ;;  %v3357_v2 = vsub.f32 0.0, %v14456_v25 }
 0x5d1   : > { %v15079_v56 = vpack.c.bf16 %v5198_v45, %v5196_v23  ;;  %v11812_v27 = vpop.eup %11811  ;;  %11819 = vpow2.f32 %v3398_v48  ;;  %v5195_v55 = vmul.f32 %v11810_v35, %v15031_v36 }
 0x5d2   : > { %v3440_v17 = vadd.f32 1.0, %v11812_v27  ;;  %11821 = vpow2.f32 %v3394_v0  ;;  %v3406_v0 = vmul.f32 1.442695, %v3359_v62 }
 0x5d3   : > { %11823 = vpow2.f32 %v6078_v6 }
 0x5d4   : > { %5570 = vmatmul.bf16.gmra.mxu3 %v15079_v56  ;;  %5668 = vmatmul.bf16.gmra.mxu1 %v15079_v56  ;;  %v11814_v4 = vpop.eup %11813  ;;  %11825 = vrcp.f32 %v3442_v33  ;;  %v3402_v33 = vmul.f32 1.442695, %v3357_v2 }
 0x5d5   : > { %v5197_v13 = vmul.f32 %v11814_v4, %v15047_v31  ;;  %v11816_v18 = vpop.eup %11815  ;;  %11827 = vpow2.f32 %v6076_v57 }
 0x5d6   : > { %v11818_v36 = vpop.eup %11817  ;;  %11829 = vrcp.f32 %v3440_v17  ;;  %v15097_v31 = vmul.f32 %v11816_v18, %v15029_v3 }
 0x5d7   : > { %v15089_v59 = vpack.c.bf16 %v5197_v13, %v5195_v55  ;;  %v11820_v11 = vpop.eup %11819  ;;  %11831 = vpow2.f32 %v3388_v24  ;;  %v15101_v8 = vmul.f32 %v11818_v36, %v14426_v12  ;;  %v3352_v55 = vsub.f32 0.0, %v14436_v44 }
 0x5d8   : > { %16782 = vst [vmem:[#allocation73_spill] sm:$0xff] %v15097_v31  ;;  %v11822_v34 = vpop.eup %11821  ;;  %11833 = vpow2.f32 %v3384_v5  ;;  %v3451_v45 = vadd.f32 1.0, %v11820_v11  ;;  %v6063_v48 = vmul.f32 0.5, %v15097_v31  ;;  %v3354_v13 = vsub.f32 0.0, %v14445_v53 }
 0x5d9   : > { %5521 = vmatmul.bf16.gmra.mxu2 %v15089_v59  ;;  %5619 = vmatmul.bf16.gmra.mxu0 %v15089_v59  ;;  %v11824_v39 = vpop.eup %11823  ;;  %16783 = vst [vmem:[#allocation74_spill] sm:$0xff] %v15101_v8  ;;  %v3449_v35 = vadd.f32 1.0, %v11822_v34  ;;  %v6062_v22 = vmul.f32 0.5, %v15101_v8  ;;  %v3278_v11 = vadd.f32 %v14476_v37, %v14406_v46 }
 0x5da   : > { %v11826_v23 = vpop.eup %11825  ;;  %v6109_v27 = vmul.f32 %v11824_v39, %v1111_v19  ;;  %11835 = vrcp.f32 %v3451_v45  ;;  %v6082_v57 = vmul.f32 1.442695, %v6063_v48  ;;  %v3396_v62 = vmul.f32 1.442695, %v3354_v13 }
 0x5db   : > { %v11828_v1 = vpop.eup %11827  ;;  %v15109_v12 = vmul.f32 %v11826_v23, %v14415_v49  ;;  %11837 = vrcp.f32 %v3449_v35  ;;  %v6080_v49 = vmul.f32 1.442695, %v6062_v22  ;;  %v15126_v19 = vadd.f32 %v14479_v15, %v3278_v11 }
 0x5dc   : > { %v11830_v3 = vpop.eup %11829  ;;  %v6108_v4 = vmul.f32 %v11828_v1, %v1110_v9  ;;  %11839 = vpow2.f32 %v3406_v0  ;;  %v10712_v0 = vld [vmem:[#allocation23 + $0x74] sm:$0xf0] }
 0x5dd   : > { %v11832_v6 = vpop.eup %11831  ;;  %16784 = vst [vmem:[#allocation75_spill] sm:$0xff] %v15109_v12  ;;  %v15115_v17 = vmul.f32 %v11830_v3, %v14404_v61  ;;  %v6125_v24 = vadd.f32 %v6109_v27, %v15109_v12  ;;  %11841 = vpow2.f32 %v3402_v33  ;;  %v15123_v61 = vld [vmem:[#allocation22] sm:$0x7]  ;;  %v3363_v15 = vsub.f32 0.0, %v15126_v19  ;;  %v10079_v3 = vld [vmem:[#allocation23 + $0x70] sm:$0xf] }
 0x5de   : > { %v11834_v54 = vpop.eup %11833  ;;  %v3446_v32 = vadd.f32 1.0, %v11832_v6  ;;  %11843 = vpow2.f32 %v6082_v57  ;;  %v15129_v45 = vperm.slane %v15123_v61, 0  ;;  %v1113_v33 = vld [vmem:[%s13804_s15 + $0x18] sm:$0xff]  ;;  %v3361_v57 = vsub.f32 0.0, %v14472_v50 }
 0x5df   : > { %16785 = vst [vmem:[#allocation76_spill] sm:$0xff] %v15115_v17  ;;  %v3444_v36 = vadd.f32 1.0, %v11834_v54  ;;  %v6124_v34 = vadd.f32 %v6108_v4, %v15115_v17 }
 0x5e0   : > { %v11836_v39 = vpop.eup %11835  ;;  %11845 = vrcp.f32 %v3446_v32 }
 0x5e1   : > { %v6157_v23 = vpack.c.bf16 %v6125_v24, %v6124_v34  ;;  %v11838_v2 = vpop.eup %11837  ;;  %11847 = vpow2.f32 %v6080_v49  ;;  %v15133_v37 = vmul.f32 %v11836_v39, %v15063_v43  ;;  %v10080_v43 = vor.u32 %v10712_v0, %v10079_v3  ;;  %v1112_v49 = vld [vmem:[%s13804_s15 + $0x10] sm:$0xff] }
 0x5e2   : > { %v11840_v1 = vpop.eup %11839  ;;  %11849 = vrcp.f32 %v3444_v36  ;;  %v15138_v6 = vmul.f32 %v11838_v2, %v14441_v7  ;;  %v3414_v7 = vmul.f32 1.442695, %v3363_v15 }
 0x5e3   : > { %11851 = vpow2.f32 %v3396_v62  ;;  %16786 = vst [vmem:[#allocation77_spill] sm:$0xff] %v15133_v37  ;;  %v11842_v48 = vpop.eup %11841  ;;  %v6065_v32 = vmul.f32 0.5, %v15133_v37  ;;  %6440 = vmatpush.bf16.msrb.mxu1 %v10080_v43 }
 0x5e4   : > { %5731 = vmatmul.bf16.vlgmr.msra.gmra.mxu3 %v14869_v63  ;;  %v3392_v63 = vmul.f32 1.442695, %v3352_v55  ;;  %v11844_v27 = vpop.eup %11843  ;;  %16787 = vst [vmem:[#allocation78_spill] sm:$0xff] %v15138_v6  ;;  %v3453_v24 = vadd.f32 1.0, %v11842_v48 }
 0x5e5   : > { %v6111_v11 = vmul.f32 %v11844_v27, %v1113_v33  ;;  %v3356_v27 = vsub.f32 0.0, %v14451_v58 }
 0x5e6   : > { %v5536_v18 = vpop.f32.mrf.mxu3  ;;  %v15118_v5 = vpop.f32.mrf.mxu0  ;;  %11853 = vpow2.f32 %v3392_v63  ;;  %v6064_v63 = vmul.f32 0.5, %v15138_v6 }
 0x5e7   : > { %v11846_v54 = vpop.eup %11845 }
 0x5e8   : > { %v11848_v13 = vpop.eup %11847  ;;  %v15150_v39 = vmul.f32 %v11846_v54, %v14430_v52  ;;  %v6084_v0 = vmul.f32 1.442695, %v6064_v63  ;;  %v10081_v54 = vld [vmem:[#allocation23 + $0x78] sm:$0xf0] }
 0x5e9   : > { %5682 = vmatmul.bf16.vlgmr.msra.gmra.mxu2 %v14879_v42  ;;  %6224 = vmatmul.bf16.vlgmr.msra.gmra.mxu0 %v6157_v23  ;;  %v3455_v42 = vadd.f32 1.0, %v11840_v1  ;;  %v11850_v36 = vpop.eup %11849  ;;  %v3410_v23 = vmul.f32 1.442695, %v3361_v57  ;;  %v6086_v1 = vmul.f32 1.442695, %v6065_v32 }
 0x5ea   : > { %v11852_v34 = vpop.eup %11851  ;;  %16788 = vst [vmem:[#allocation79_spill] sm:$0xff] %v15150_v39  ;;  %v15153_v2 = vmul.f32 %v11850_v36, %v14421_v38  ;;  %v6127_v3 = vadd.f32 %v6111_v11, %v15150_v39  ;;  %v3283_v38 = vadd.f32 %v14492_v41, %v14406_v46  ;;  %v3400_v41 = vmul.f32 1.442695, %v3356_v27 }
 0x5eb   : > { %11855 = vrcp.f32 %v3455_v42  ;;  %v3450_v15 = vadd.f32 1.0, %v11852_v34 }
 0x5ec   : > { %v5487_v9 = vpop.f32.mrf.mxu2  ;;  %v11854_v62 = vpop.eup %11853  ;;  %16789 = vst [vmem:[#allocation80_spill] sm:$0xff] %v15153_v2  ;;  %11857 = vrcp.f32 %v3453_v24 }
 0x5ed   : > { %v5488_v35 = vadd.f32 %v5487_v9, %v15129_v45  ;;  %v3358_v9 = vsub.f32 0.0, %v14460_v21  ;;  %11859 = vpow2.f32 %v3414_v7  ;;  %v3448_v52 = vadd.f32 1.0, %v11854_v62 }
 0x5ee   : > { %v5538_v22 = vpop.f32.mrf.mxu3  ;;  %v15140_v4 = vpop.f32.mrf.mxu0  ;;  %11861 = vpow2.f32 %v3410_v23 }
 0x5ef   : > { %v15144_v55 = vadd.f32 %v5536_v18, %v5488_v35  ;;  %v6110_v18 = vmul.f32 %v11848_v13, %v1112_v49  ;;  %11863 = vpow2.f32 %v6086_v1  ;;  %v3404_v32 = vmul.f32 1.442695, %v3358_v9  ;;  %v10071_v9 = vld [vmem:[#allocation23 + $0x60] sm:$0xf] }
 0x5f0   : > { %11865 = vrcp.f32 %v3450_v15  ;;  %v15168_v49 = vadd.f32 %v14495_v16, %v3283_v38  ;;  %v3180_v16 = vadd.f32 %v14468_v10, %v14400_v30 }
 0x5f1   : > { %v6126_v57 = vadd.f32 %v6110_v18, %v15153_v2  ;;  %v11856_v13 = vpop.eup %11855  ;;  %11867 = vpow2.f32 %v6084_v0  ;;  %v10710_v0 = vld [vmem:[#allocation23 + $0x64] sm:$0xf0] }
 0x5f2   : > { %v11858_v7 = vpop.eup %11857  ;;  %11869 = vrcp.f32 %v3448_v52  ;;  %v15171_v11 = vmul.f32 %v11856_v13, %v15092_v60  ;;  %v3367_v63 = vsub.f32 0.0, %v15168_v49  ;;  %v1114_v13 = vld [vmem:[%s13804_s15 + $0x20] sm:$0xff] }
 0x5f3   : > { %v6158_v36 = vpack.c.bf16 %v6127_v3, %v6126_v57  ;;  %11871 = vpow2.f32 %v3404_v32  ;;  %v15178_v18 = vmul.f32 %v11858_v7, %v14456_v25  ;;  %v16793_v25 = vld [vmem:[#allocation53_spill] sm:$0xff]  ;;  %v10072_v57 = vor.u32 %v10710_v0, %v10071_v9 }
 0x5f4   : > { %5736 = vmatmul.bf16.gmra.mxu3 %v14899_v51  ;;  %v5489_v48 = vpop.f32.mrf.mxu2  ;;  %v10711_v51 = vld [vmem:[#allocation23 + $0x74] sm:$0xf]  ;;  %16790 = vst [vmem:[#allocation81_spill] sm:$0xff] %v15171_v11  ;;  %11873 = vpow2.f32 %v3400_v41  ;;  %v6067_v15 = vmul.f32 0.5, %v15171_v11  ;;  %v16797_v9 = vld [vmem:[#allocation49_spill] sm:$0xff] }
 0x5f5   : > { %v5490_v35 = vadd.f32 %v5489_v48, %v15129_v45  ;;  %v10084_v24 = vor.u32 %v10711_v51, %v10081_v54  ;;  %16791 = vst [vmem:[#allocation82_spill] sm:$0xff] %v15178_v18  ;;  %v3365_v51 = vsub.f32 0.0, %v16793_v25  ;;  %v6066_v41 = vmul.f32 0.5, %v15178_v18  ;;  %6441 = vmatpush.bf16.msrb.mxu1 %v10072_v57 }
 0x5f6   : > { %v15164_v33 = vpop.f32.mrf.mxu0 }
 0x5f7   : > { %v15162_v42 = vadd.f32 %v5538_v22, %v5490_v35  ;;  %v5541_v43 = vpop.f32.mrf.mxu3  ;;  %6489 = vmatpush.bf16.msrb.mxu2 %v10084_v24  ;;  %v11860_v22 = vpop.eup %11859  ;;  %v16792_v35 = vld [vmem:[#allocation50_spill] sm:$0xff]  ;;  %v3422_v24 = vmul.f32 1.442695, %v3367_v63  ;;  %v16796_v63 = vld [vmem:[#allocation67_spill] sm:$0xff] }
 0x5f8   : > { %v11862_v34 = vpop.eup %11861  ;;  %v3459_v1 = vadd.f32 1.0, %v11860_v22  ;;  %v15184_v3 = vadd.f32 %v16792_v35, %v3180_v16  ;;  %v6090_v16 = vmul.f32 1.442695, %v6067_v15 }
 0x5f9   : > { %5687 = vmatmul.bf16.gmra.mxu2 %v14910_v29  ;;  %6229 = vmatmul.bf16.gmra.mxu0 %v6158_v36  ;;  %v11864_v23 = vpop.eup %11863  ;;  %v1115_v29 = vld [vmem:[%s13804_s15 + $0x28] sm:$0xff]  ;;  %v3457_v38 = vadd.f32 1.0, %v11862_v34 }
 0x5fa   : > { %v11866_v48 = vpop.eup %11865  ;;  %v6113_v36 = vmul.f32 %v11864_v23, %v1115_v29  ;;  %11875 = vrcp.f32 %v3459_v1  ;;  %v3360_v29 = vsub.f32 0.0, %v16797_v9 }
 0x5fb   : > { %v11868_v27 = vpop.eup %11867  ;;  %v15194_v22 = vmul.f32 %v11866_v48, %v14445_v53  ;;  %11877 = vrcp.f32 %v3457_v38  ;;  %v6088_v48 = vmul.f32 1.442695, %v6066_v41 }
 0x5fc   : > { %v5492_v62 = vpop.f32.mrf.mxu2  ;;  %v11870_v32 = vpop.eup %11869  ;;  %11879 = vpow2.f32 %v3422_v24  ;;  %v3408_v41 = vmul.f32 1.442695, %v3360_v29 }
 0x5fd   : > { %v5493_v60 = vadd.f32 %v5492_v62, %v15129_v45  ;;  %v11872_v7 = vpop.eup %11871  ;;  %16794 = vst [vmem:[#allocation50_spill] sm:$0xff] %v15194_v22  ;;  %v6112_v62 = vmul.f32 %v11868_v27, %v1114_v13  ;;  %v15197_v35 = vmul.f32 %v11870_v32, %v14436_v44  ;;  %v6129_v53 = vadd.f32 %v6113_v36, %v15194_v22  ;;  %v10073_v36 = vld [vmem:[#allocation23 + $0x68] sm:$0xf0] }
 0x5fe   : > { %v15186_v52 = vpop.f32.mrf.mxu0  ;;  %v11874_v34 = vpop.eup %11873  ;;  %v3454_v23 = vadd.f32 1.0, %v11872_v7  ;;  %11881 = vpow2.f32 %v6090_v16  ;;  %v10709_v7 = vld [vmem:[#allocation23 + $0x64] sm:$0xf] }
 0x5ff   : > { %v5543_v10 = vpop.f32.mrf.mxu3  ;;  %v15189_v54 = vadd.f32 %v5541_v43, %v5493_v60  ;;  %16795 = vst [vmem:[#allocation53_spill] sm:$0xff] %v15197_v35  ;;  %v3362_v43 = vsub.f32 0.0, %v15184_v3  ;;  %v3418_v60 = vmul.f32 1.442695, %v3365_v51  ;;  %v3452_v0 = vadd.f32 1.0, %v11874_v34  ;;  %v16798_v51 = vld [vmem:[#allocation59_spill] sm:$0xff] }
 0x600   : > { %v6128_v27 = vadd.f32 %v6112_v62, %v15197_v35  ;;  %v11876_v38 = vpop.eup %11875  ;;  %v3288_v13 = vadd.f32 %v16798_v51, %v14406_v46 }
 0x601   : > { %v3412_v57 = vmul.f32 1.442695, %v3362_v43  ;;  %11883 = vpow2.f32 %v3418_v60  ;;  %v11878_v16 = vpop.eup %11877  ;;  %v15215_v60 = vmul.f32 %v11876_v38, %v15126_v19  ;;  %v1117_v38 = vld [vmem:[%s13804_s15 + $0x38] sm:$0xff] }
 0x602   : > { %11885 = vrcp.f32 %v3454_v23  ;;  %v6159_v34 = vpack.c.bf16 %v6129_v53, %v6128_v27  ;;  %v11880_v43 = vpop.eup %11879  ;;  %v15219_v53 = vmul.f32 %v11878_v16, %v14472_v50  ;;  %v16805_v50 = vld [vmem:[#allocation57_spill] sm:$0xff] }
 0x603   : > { %11887 = vpow2.f32 %v6088_v48  ;;  %16800 = vst [vmem:[#allocation67_spill] sm:$0xff] %v15215_v60  ;;  %v16803_v48 = vld [vmem:[#allocation52_spill] sm:$0xff]  ;;  %v3463_v27 = vadd.f32 1.0, %v11880_v43 }
 0x604   : > { %5741 = vmatmul.bf16.gmra.mxu3 %v16796_v63  ;;  %v5494_v1 = vpop.f32.mrf.mxu2  ;;  %v10076_v63 = vor.u32 %v10709_v7, %v10073_v36  ;;  %11889 = vrcp.f32 %v3452_v0  ;;  %v11882_v23 = vpop.eup %11881  ;;  %16802 = vst [vmem:[#allocation49_spill] sm:$0xff] %v15219_v53  ;;  %v10708_v43 = vld [vmem:[#allocation23 + $0x54] sm:$0xf0] }
 0x605   : > { %v5495_v15 = vadd.f32 %v5494_v1, %v15129_v45  ;;  %v16799_v1 = vld [vmem:[#allocation60_spill] sm:$0xff]  ;;  %11891 = vpow2.f32 %v3412_v57  ;;  %v6069_v57 = vmul.f32 0.5, %v15215_v60  ;;  %v6115_v39 = vmul.f32 %v11882_v23, %v1117_v38  ;;  %v16810_v38 = vld [vmem:[#allocation51_spill] sm:$0xff] }
 0x606   : > { %v15209_v24 = vpop.f32.mrf.mxu0  ;;  %v15212_v62 = vadd.f32 %v16799_v1, %v3288_v13  ;;  %6490 = vmatpush.bf16.msrb.mxu2 %v10076_v63  ;;  %11893 = vpow2.f32 %v3408_v41  ;;  %v16804_v41 = vld [vmem:[#allocation54_spill] sm:$0xff]  ;;  %v10063_v1 = vld [vmem:[#allocation23 + $0x50] sm:$0xf] }
 0x607   : > { %v5546_v44 = vpop.f32.mrf.mxu3  ;;  %v15207_v32 = vadd.f32 %v5543_v10, %v5495_v15  ;;  %v16801_v10 = vld [vmem:[#allocation68_spill] sm:$0xff]  ;;  %v11884_v29 = vpop.eup %11883  ;;  %v3185_v15 = vadd.f32 %v16803_v48, %v14400_v30  ;;  %11895 = vrcp.f32 %v3463_v27  ;;  %v10064_v17 = vor.u32 %v10708_v43, %v10063_v1 }
 0x608   : > { %v3371_v0 = vsub.f32 0.0, %v15212_v62  ;;  %v11886_v51 = vpop.eup %11885  ;;  %v3461_v22 = vadd.f32 1.0, %v11884_v29  ;;  %v6094_v60 = vmul.f32 1.442695, %v6069_v57  ;;  %v3364_v27 = vsub.f32 0.0, %v16810_v38 }
 0x609   : > { %6234 = vmatmul.bf16.gmra.mxu0 %v6159_v34  ;;  %5692 = vmatmul.bf16.gmra.mxu2 %v16801_v10  ;;  %v11888_v36 = vpop.eup %11887  ;;  %v15228_v63 = vadd.f32 %v16804_v41, %v3185_v15  ;;  %v3369_v34 = vsub.f32 0.0, %v16805_v50  ;;  %v1116_v10 = vld [vmem:[%s13804_s15 + $0x30] sm:$0xff]  ;;  %v15238_v41 = vmul.f32 %v11886_v51, %v14460_v21 }
 0x60a   : > { %v11890_v48 = vpop.eup %11889  ;;  %v3430_v12 = vmul.f32 1.442695, %v3371_v0  ;;  %v6114_v11 = vmul.f32 %v11888_v36, %v1116_v10  ;;  %6442 = vmatpush.bf16.msrb.mxu1 %v10064_v17  ;;  %11897 = vrcp.f32 %v3461_v22  ;;  %v10707_v22 = vld [vmem:[#allocation23 + $0x54] sm:$0xf] }
 0x60b   : > { %v11892_v2 = vpop.eup %11891  ;;  %16807 = vst [vmem:[#allocation60_spill] sm:$0xff] %v15238_v41  ;;  %v15241_v18 = vmul.f32 %v11890_v48, %v14451_v58  ;;  %v3366_v29 = vsub.f32 0.0, %v15228_v63  ;;  %v6131_v0 = vadd.f32 %v6115_v39, %v15238_v41  ;;  %v3416_v39 = vmul.f32 1.442695, %v3364_v27 }
 0x60c   : > { %v5497_v19 = vpop.f32.mrf.mxu2  ;;  %v11894_v15 = vpop.eup %11893  ;;  %v3458_v23 = vadd.f32 1.0, %v11892_v2  ;;  %11899 = vpow2.f32 %v3430_v12  ;;  %v10065_v12 = vld [vmem:[#allocation23 + $0x58] sm:$0xf0] }
 0x60d   : > { %v5498_v13 = vadd.f32 %v5497_v19, %v15129_v45  ;;  %v6068_v19 = vmul.f32 0.5, %v15219_v53  ;;  %16808 = vst [vmem:[#allocation68_spill] sm:$0xff] %v15241_v18  ;;  %v3456_v51 = vadd.f32 1.0, %v11894_v15  ;;  %11901 = vpow2.f32 %v6094_v60  ;;  %v11896_v36 = vpop.eup %11895  ;;  %v16813_v60 = vld [vmem:[#allocation66_spill] sm:$0xff] }
 0x60e   : > { %v15231_v16 = vpop.f32.mrf.mxu0  ;;  %v6130_v58 = vadd.f32 %v6114_v11, %v15241_v18  ;;  %v3420_v43 = vmul.f32 1.442695, %v3366_v29  ;;  %v10068_v15 = vor.u32 %v10707_v22, %v10065_v12 }
 0x60f   : > { %v5548_v7 = vpop.f32.mrf.mxu3  ;;  %v15234_v35 = vadd.f32 %v5546_v44, %v5498_v13  ;;  %v3426_v44 = vmul.f32 1.442695, %v3369_v34  ;;  %v16809_v13 = vld [vmem:[#allocation69_spill] sm:$0xff]  ;;  %v6092_v1 = vmul.f32 1.442695, %v6068_v19 }
 0x610   : > { %v16811_v34 = vld [vmem:[#allocation65_spill] sm:$0xff]  ;;  %v6160_v48 = vpack.c.bf16 %v6131_v0, %v6130_v58  ;;  %v11898_v29 = vpop.eup %11897  ;;  %6491 = vmatpush.bf16.msrb.mxu2 %v10068_v15  ;;  %v10706_v15 = vld [vmem:[#allocation23 + $0x44] sm:$0xf0] }
 0x611   : > { %16806 = vst [vmem:[#allocation59_spill] sm:$0xff] %v15234_v35  ;;  %11903 = vpow2.f32 %v3426_v44  ;;  %v3293_v17 = vadd.f32 %v16811_v34, %v14406_v46  ;;  %v15259_v46 = vmul.f32 %v11896_v36, %v15168_v49  ;;  %v15263_v0 = vmul.f32 %v11898_v29, %v16793_v25  ;;  %v16820_v25 = vld [vmem:[#allocation63_spill] sm:$0xff] }
 0x612   : > { %11905 = vrcp.f32 %v3458_v23  ;;  %v11900_v44 = vpop.eup %11899  ;;  %v16816_v23 = vld [vmem:[#allocation70_spill] sm:$0xff]  ;;  %v3373_v12 = vsub.f32 0.0, %v16820_v25  ;;  %v1118_v29 = vld [vmem:[%s13804_s15 + $0x40] sm:$0xff] }
 0x613   : > { %11907 = vpow2.f32 %v6092_v1  ;;  %v15254_v19 = vadd.f32 %v16813_v60, %v3293_v17  ;;  %16815 = vst [vmem:[#allocation57_spill] sm:$0xff] %v15259_v46  ;;  %v6071_v36 = vmul.f32 0.5, %v15259_v46  ;;  %v10055_v60 = vld [vmem:[#allocation23 + $0x40] sm:$0xf] }
 0x614   : > { %5746 = vmatmul.bf16.gmra.mxu3 %v16809_v13  ;;  %v5499_v21 = vpop.f32.mrf.mxu2  ;;  %11909 = vrcp.f32 %v3456_v51  ;;  %v11902_v13 = vpop.eup %11901  ;;  %16817 = vst [vmem:[#allocation69_spill] sm:$0xff] %v15263_v0  ;;  %v1119_v51 = vld [vmem:[%s13804_s15 + $0x48] sm:$0xff]  ;;  %v10056_v46 = vor.u32 %v10706_v15, %v10055_v60  ;;  %v3434_v35 = vmul.f32 1.442695, %v3373_v12 }
 0x615   : > { %v5500_v2 = vadd.f32 %v5499_v21, %v15129_v45  ;;  %11911 = vpow2.f32 %v3420_v43  ;;  %v3375_v21 = vsub.f32 0.0, %v15254_v19  ;;  %v3467_v43 = vadd.f32 1.0, %v11900_v44 }
 0x616   : > { %v15251_v10 = vpop.f32.mrf.mxu0  ;;  %11913 = vpow2.f32 %v3416_v39  ;;  %v16819_v39 = vld [vmem:[#allocation58_spill] sm:$0xff]  ;;  %v6117_v44 = vmul.f32 %v11902_v13, %v1119_v51  ;;  %6443 = vmatpush.bf16.msrb.mxu1 %v10056_v46 }
 0x617   : > { %v5551_v57 = vpop.f32.mrf.mxu3  ;;  %16812 = vst [vmem:[#allocation52_spill] sm:$0xff] %v15251_v10  ;;  %v15256_v11 = vadd.f32 %v5548_v7, %v5500_v2  ;;  %v11904_v27 = vpop.eup %11903  ;;  %v16818_v7 = vld [vmem:[#allocation56_spill] sm:$0xff]  ;;  %v3438_v53 = vmul.f32 1.442695, %v3375_v21  ;;  %11915 = vrcp.f32 %v3467_v43 }
 0x618   : > { %v3190_v1 = vadd.f32 %v16818_v7, %v14400_v30  ;;  %v11906_v58 = vpop.eup %11905  ;;  %v3465_v7 = vadd.f32 1.0, %v11904_v27  ;;  %v16823_v27 = vld [vmem:[#allocation71_spill] sm:$0xff] }
 0x619   : > { %16814 = vst [vmem:[#allocation54_spill] sm:$0xff] %v15256_v11  ;;  %6239 = vmatmul.bf16.gmra.mxu0 %v6160_v48  ;;  %5697 = vmatmul.bf16.gmra.mxu2 %v16816_v23  ;;  %v11908_v2 = vpop.eup %11907 }
 0x61a   : > { %v15272_v22 = vadd.f32 %v16819_v39, %v3190_v1  ;;  %v11910_v23 = vpop.eup %11909  ;;  %v15282_v1 = vmul.f32 %v11906_v58, %v15184_v3  ;;  %v6098_v39 = vmul.f32 1.442695, %v6071_v36  ;;  %11917 = vrcp.f32 %v3465_v7  ;;  %v16825_v3 = vld [vmem:[#allocation55_spill] sm:$0xff] }
 0x61b   : > { %v11912_v18 = vpop.eup %11911  ;;  %v3368_v58 = vsub.f32 0.0, %v16825_v3  ;;  %11919 = vpow2.f32 %v3438_v53 }
 0x61c   : > { %v5502_v49 = vpop.f32.mrf.mxu2  ;;  %16822 = vst [vmem:[#allocation65_spill] sm:$0xff] %v15282_v1  ;;  %v11914_v11 = vpop.eup %11913  ;;  %v3370_v10 = vsub.f32 0.0, %v15272_v22  ;;  %v3462_v13 = vadd.f32 1.0, %v11912_v18  ;;  %v6133_v21 = vadd.f32 %v6117_v44, %v15282_v1  ;;  %11921 = vpow2.f32 %v6098_v39  ;;  %v10057_v18 = vld [vmem:[#allocation23 + $0x48] sm:$0xf0] }
 0x61d   : > { %v5503_v34 = vadd.f32 %v5502_v49, %v15129_v45  ;;  %v6070_v49 = vmul.f32 0.5, %v15263_v0  ;;  %v3460_v46 = vadd.f32 1.0, %v11914_v11  ;;  %11923 = vpow2.f32 %v3434_v35  ;;  %v11916_v15 = vpop.eup %11915 }
 0x61e   : > { %v15275_v48 = vpop.f32.mrf.mxu0  ;;  %v3428_v60 = vmul.f32 1.442695, %v3370_v10  ;;  %11925 = vrcp.f32 %v3462_v13  ;;  %v3424_v53 = vmul.f32 1.442695, %v3368_v58  ;;  %v15298_v10 = vmul.f32 %v11916_v15, %v15212_v62 }
 0x61f   : > { %v5553_v17 = vpop.f32.mrf.mxu3  ;;  %16821 = vst [vmem:[#allocation51_spill] sm:$0xff] %v15275_v48  ;;  %v15278_v41 = vadd.f32 %v5551_v57, %v5503_v34  ;;  %v6116_v48 = vmul.f32 %v11908_v2, %v1118_v29  ;;  %v15287_v57 = vmul.f32 %v11910_v23, %v16797_v9  ;;  %v6096_v51 = vmul.f32 1.442695, %v6070_v49  ;;  %v10705_v2 = vld [vmem:[#allocation23 + $0x44] sm:$0xf]  ;;  %v16827_v49 = vld [vmem:[#allocation72_spill] sm:$0xff] }
 0x620   : > { %v10060_v11 = vor.u32 %v10705_v2, %v10057_v18  ;;  %v11918_v7 = vpop.eup %11917  ;;  %16826 = vst [vmem:[#allocation70_spill] sm:$0xff] %v15298_v10  ;;  %v6073_v2 = vmul.f32 0.5, %v15298_v10 }
 0x621   : > { %16824 = vst [vmem:[#allocation66_spill] sm:$0xff] %v15287_v57  ;;  %v6132_v12 = vadd.f32 %v6116_v48, %v15287_v57  ;;  %11927 = vpow2.f32 %v6096_v51  ;;  %v11920_v44 = vpop.eup %11919  ;;  %v15300_v48 = vpop.f32.mrf.mxu1  ;;  %v15304_v39 = vmul.f32 %v11918_v7, %v16805_v50  ;;  %v1121_v51 = vld [vmem:[%s13804_s15 + $0x58] sm:$0xff]  ;;  %v1120_v50 = vld [vmem:[%s13804_s15 + $0x50] sm:$0xff] }
 0x622   : > { %11929 = vrcp.f32 %v3460_v46  ;;  %6492 = vmatpush.bf16.msrb.mxu2 %v10060_v11  ;;  %v11922_v35 = vpop.eup %11921  ;;  %v3471_v62 = vadd.f32 1.0, %v11920_v44  ;;  %v10704_v11 = vld [vmem:[#allocation23 + $0x34] sm:$0xf0]  ;;  %v6102_v10 = vmul.f32 1.442695, %v6073_v2  ;;  %v16852_v57 = vld [vmem:[#allocation59_spill] sm:$0xff] }
 0x623   : > { %v6161_v23 = vpack.c.bf16 %v6133_v21, %v6132_v12  ;;  %11931 = vpow2.f32 %v3428_v60  ;;  %16828 = vst [vmem:[#allocation56_spill] sm:$0xff] %v15304_v39  ;;  %v16830_v12 = vld [vmem:[#allocation64_spill] sm:$0xff]  ;;  %v6119_v7 = vmul.f32 %v11922_v35, %v1121_v51 }
 0x624   : > { %5751 = vmatmul.bf16.gmra.mxu3 %v16823_v27  ;;  %v5504_v36 = vpop.f32.mrf.mxu2  ;;  %11933 = vpow2.f32 %v3424_v53  ;;  %v16829_v27 = vld [vmem:[#allocation62_spill] sm:$0xff]  ;;  %v10047_v53 = vld [vmem:[#allocation23 + $0x30] sm:$0xf] }
 0x625   : > { %v5505_v43 = vadd.f32 %v5504_v36, %v15129_v45  ;;  %v3195_v13 = vadd.f32 %v16829_v27, %v14400_v30  ;;  %v10048_v27 = vor.u32 %v10704_v11, %v10047_v53  ;;  %11935 = vrcp.f32 %v3471_v62 }
 0x626   : > { %v15293_v9 = vpop.f32.mrf.mxu0 }
 0x627   : > { %v5556_v34 = vpop.f32.mrf.mxu3  ;;  %v15295_v29 = vadd.f32 %v5553_v17, %v5505_v43  ;;  %v11924_v17 = vpop.eup %11923  ;;  %v15314_v60 = vadd.f32 %v16830_v12, %v3195_v13  ;;  %6444 = vmatpush.bf16.msrb.mxu1 %v10048_v27 }
 0x628   : > { %v11926_v58 = vpop.eup %11925 }
 0x629   : > { %6244 = vmatmul.bf16.gmra.mxu0 %v6161_v23  ;;  %5702 = vmatmul.bf16.gmra.mxu2 %v16827_v49  ;;  %v11928_v43 = vpop.eup %11927  ;;  %v3469_v23 = vadd.f32 1.0, %v11924_v17  ;;  %v6072_v49 = vmul.f32 0.5, %v15304_v39  ;;  %v3374_v1 = vsub.f32 0.0, %v15314_v60 }
 0x62a   : > { %v11930_v15 = vpop.eup %11929  ;;  %v6118_v13 = vmul.f32 %v11928_v43, %v1120_v50  ;;  %v15334_v43 = vpop.f32.mrf.mxu1 }
 0x62b   : > { %v11932_v44 = vpop.eup %11931  ;;  %11937 = vrcp.f32 %v3469_v23  ;;  %v6100_v51 = vmul.f32 1.442695, %v6072_v49  ;;  %v10049_v23 = vld [vmem:[#allocation23 + $0x38] sm:$0xf0] }
 0x62c   : > { %v5507_v21 = vpop.f32.mrf.mxu2  ;;  %v11934_v12 = vpop.eup %11933  ;;  %v3466_v35 = vadd.f32 1.0, %v11932_v44  ;;  %11939 = vpow2.f32 %v6102_v10 }
 0x62d   : > { %v5508_v36 = vadd.f32 %v5507_v21, %v15129_v45  ;;  %v15323_v21 = vmul.f32 %v11926_v58, %v15228_v63  ;;  %v3464_v63 = vadd.f32 1.0, %v11934_v12  ;;  %v16833_v58 = vld [vmem:[#allocation61_spill] sm:$0xff] }
 0x62e   : > { %v15316_v18 = vpop.f32.mrf.mxu0  ;;  %v3372_v62 = vsub.f32 0.0, %v16833_v58  ;;  %11941 = vrcp.f32 %v3466_v35  ;;  %v1123_v12 = vld [vmem:[%s13804_s15 + $0x68] sm:$0xff] }
 0x62f   : > { %v15310_v46 = vpop.f32.mrf.mxu3  ;;  %v15319_v30 = vadd.f32 %v5556_v34, %v5508_v36  ;;  %16831 = vst [vmem:[#allocation58_spill] sm:$0xff] %v15323_v21  ;;  %v15328_v34 = vmul.f32 %v11930_v15, %v16810_v38  ;;  %v6135_v17 = vadd.f32 %v6119_v7, %v15323_v21  ;;  %v11936_v38 = vpop.eup %11935  ;;  %v10703_v15 = vld [vmem:[#allocation23 + $0x34] sm:$0xf]  ;;  %11943 = vpow2.f32 %v6100_v51 }
 0x630   : > { %v10052_v7 = vor.u32 %v10703_v15, %v10049_v23  ;;  %11945 = vrcp.f32 %v3464_v63  ;;  %v3432_v49 = vmul.f32 1.442695, %v3372_v62  ;;  %v15340_v27 = vmul.f32 %v11936_v38, %v15254_v19  ;;  %v10702_v15 = vld [vmem:[#allocation23 + $0x24] sm:$0xf0] }
 0x631   : > { %16832 = vst [vmem:[#allocation63_spill] sm:$0xff] %v15328_v34  ;;  %v6134_v50 = vadd.f32 %v6118_v13, %v15328_v34  ;;  %v11938_v44 = vpop.eup %11937 }
 0x632   : > { %16834 = vst [vmem:[#allocation71_spill] sm:$0xff] %v15340_v27  ;;  %6493 = vmatpush.bf16.msrb.mxu2 %v10052_v7  ;;  %v15344_v10 = vmul.f32 %v11938_v44, %v16820_v25  ;;  %v6075_v62 = vmul.f32 0.5, %v15340_v27  ;;  %v10039_v25 = vld [vmem:[#allocation23 + $0x20] sm:$0xf] }
 0x633   : > { %v6162_v11 = vpack.c.bf16 %v6135_v17, %v6134_v50  ;;  %v1122_v50 = vld [vmem:[%s13804_s15 + $0x60] sm:$0xff]  ;;  %v10040_v44 = vor.u32 %v10702_v15, %v10039_v25  ;;  %v15370_v25 = vperm.slane %v15123_v61, 1 }
 0x634   : > { %5756 = vmatmul.bf16.gmra.mxu3 %v15018_v14  ;;  %v15331_v36 = vpop.f32.mrf.mxu2  ;;  %v3436_v14 = vmul.f32 1.442695, %v3374_v1  ;;  %v11940_v1 = vpop.eup %11939  ;;  %16835 = vst [vmem:[#allocation55_spill] sm:$0xff] %v15344_v10  ;;  %v6074_v7 = vmul.f32 0.5, %v15344_v10  ;;  %v6106_v27 = vmul.f32 1.442695, %v6075_v62 }
 0x635   : > { %v11942_v35 = vpop.eup %11941  ;;  %v6121_v23 = vmul.f32 %v11940_v1, %v1123_v12  ;;  %6445 = vmatpush.bf16.msrb.mxu1 %v10040_v44  ;;  %v10701_v62 = vld [vmem:[#allocation23 + $0x24] sm:$0xf]  ;;  %v5586_v61 = vadd.f32 %v15118_v5, %v15370_v25 }
 0x636   : > { %v15337_v53 = vpop.f32.mrf.mxu0  ;;  %11947 = vpow2.f32 %v3436_v14  ;;  %v11944_v63 = vpop.eup %11943  ;;  %v6104_v1 = vmul.f32 1.442695, %v6074_v7  ;;  %v5588_v7 = vadd.f32 %v15140_v4, %v15370_v25 }
 0x637   : > { %v5561_v2 = vpop.f32.mrf.mxu3  ;;  %11949 = vpow2.f32 %v3432_v49  ;;  %v11946_v14 = vpop.eup %11945  ;;  %v15360_v49 = vmul.f32 %v11942_v35, %v15272_v22 }
 0x638   : > { %v15364_v21 = vmul.f32 %v11946_v14, %v16825_v3  ;;  %11951 = vpow2.f32 %v6106_v27  ;;  %v10041_v3 = vld [vmem:[#allocation23 + $0x28] sm:$0xf0]  ;;  %v5772_v14 = vsub.f32 0.0, %v15144_v55 }
 0x639   : > { %6249 = vmatmul.bf16.gmra.mxu0 %v6162_v11  ;;  %5707 = vmatmul.bf16.gmra.mxu2 %v15034_v26  ;;  %v15354_v26 = vpop.f32.mrf.mxu1  ;;  %16836 = vst [vmem:[#allocation72_spill] sm:$0xff] %v15360_v49  ;;  %v10044_v15 = vor.u32 %v10701_v62, %v10041_v3  ;;  %v10031_v62 = vld [vmem:[#allocation23 + $0x10] sm:$0xf]  ;;  %v10700_v3 = vld [vmem:[#allocation23 + $0x14] sm:$0xf0] }
 0x63a   : > { %16837 = vst [vmem:[#allocation62_spill] sm:$0xff] %v15364_v21  ;;  %v10032_v10 = vor.u32 %v10700_v3, %v10031_v62 }
 0x63b   : > { %6494 = vmatpush.bf16.msrb.mxu2 %v10044_v15  ;;  %v10699_v15 = vld [vmem:[#allocation23 + $0x14] sm:$0xf] }
 0x63c   : > { %v5512_v13 = vpop.f32.mrf.mxu2  ;;  %v11948_v11 = vpop.eup %11947  ;;  %6446 = vmatpush.bf16.msrb.mxu1 %v10032_v10 }
 0x63d   : > { %v5513_v17 = vadd.f32 %v5512_v13, %v15129_v45  ;;  %v6120_v13 = vmul.f32 %v11944_v63, %v1122_v50  ;;  %v11950_v39 = vpop.eup %11949 }
 0x63e   : > { %v15351_v19 = vpop.f32.mrf.mxu0  ;;  %v3468_v63 = vadd.f32 1.0, %v11950_v39  ;;  %v5775_v39 = vsub.f32 0.0, %v15162_v42  ;;  %v11952_v27 = vpop.eup %11951 }
 0x63f   : > { %v15348_v51 = vpop.f32.mrf.mxu3  ;;  %v15356_v38 = vadd.f32 %v5561_v2, %v5513_v17  ;;  %v3470_v2 = vadd.f32 1.0, %v11948_v11  ;;  %v6137_v17 = vadd.f32 %v6121_v23, %v15360_v49  ;;  %v6136_v35 = vadd.f32 %v6120_v13, %v15364_v21  ;;  %v1125_v13 = vld [vmem:[%s13804_s15 + $0x78] sm:$0xff]  ;;  %v10033_v49 = vld [vmem:[#allocation23 + $0x18] sm:$0xf0] }
 0x640   : > { %v5820_v11 = vmul.f32 1.442695, %v5772_v14  ;;  %v5826_v4 = vmul.f32 1.442695, %v5775_v39  ;;  %v10036_v21 = vor.u32 %v10699_v15, %v10033_v49  ;;  %v5593_v39 = vadd.f32 %v15186_v52, %v15370_v25  ;;  %v10025_v52 = vld [vmem:[#allocation23 + $0x8] sm:$0xf0] }
 0x641   : > { %11953 = vrcp.f32 %v3470_v2  ;;  %v6163_v50 = vpack.c.bf16 %v6137_v17, %v6136_v35  ;;  %v5641_v23 = vpop.f32.mrf.mxu1  ;;  %v15384_v17 = vadd.f32 %v15300_v48, %v5586_v61  ;;  %v6123_v48 = vmul.f32 %v11952_v27, %v1125_v13  ;;  %v10023_v27 = vld [vmem:[#allocation23] sm:$0xf] }
 0x642   : > { %11955 = vpow2.f32 %v6104_v1  ;;  %6495 = vmatpush.bf16.msrb.mxu2 %v10036_v21 }
 0x643   : > { %11957 = vrcp.f32 %v3468_v63  ;;  %v5591_v63 = vadd.f32 %v15164_v33, %v15370_v25  ;;  %v5773_v34 = vsub.f32 0.0, %v15384_v17 }
 0x644   : > { %5761 = vmatmul.bf16.gmra.mxu3 %v15050_v28  ;;  %v15367_v12 = vpop.f32.mrf.mxu2  ;;  %11959 = vpow2.f32 %v5820_v11  ;;  %v10697_v11 = vld [vmem:[#allocation23 + $0x4] sm:$0xf] }
 0x645   : > { %11961 = vpow2.f32 %v5826_v4 }
 0x646   : > { %v15373_v28 = vpop.f32.mrf.mxu0 }
 0x647   : > { %v5566_v22 = vpop.f32.mrf.mxu3  ;;  %16838 = vst [vmem:[#allocation64_spill] sm:$0xff] %v15373_v28  ;;  %v11954_v2 = vpop.eup %11953 }
 0x648   : > { %v11956_v35 = vpop.eup %11955  ;;  %v15400_v33 = vmul.f32 %v11954_v2, %v15314_v60  ;;  %v8389_v2 = vmul.f32 1.442695, %v15071_v20 }
 0x649   : > { %6254 = vmatmul.bf16.gmra.mxu0 %v6163_v50  ;;  %5712 = vmatmul.bf16.gmra.mxu2 %v15060_v47  ;;  %v1124_v50 = vld [vmem:[%s13804_s15 + $0x70] sm:$0xff]  ;;  %v11958_v61 = vpop.eup %11957  ;;  %v5644_v60 = vpop.f32.mrf.mxu1  ;;  %s16901_s15 = sld [smem:[#allocation107_spill]] }
 0x64a   : > { %16842 = vst [vmem:[#allocation85_spill] sm:$0xff] %v15400_v33  ;;  %v15410_v49 = vmul.f32 %v11958_v61, %v16833_v58  ;;  %v8391_v58 = vmul.f32 1.442695, %v15068_v40  ;;  %v11960_v3 = vpop.eup %11959  ;;  %11963 = vpow2.f32 %v8389_v2 }
 0x64c   : > { %v5517_v44 = vpop.f32.mrf.mxu2  ;;  %16843 = vst [vmem:[#allocation86_spill] sm:$0xff] %v15410_v49  ;;  %11965 = vpow2.f32 %v8391_v58 }
 0x64d   : > { %v5518_v5 = vadd.f32 %v5517_v44, %v15129_v45  ;;  %v15397_v44 = vadd.f32 %v15334_v43, %v5588_v7  ;;  %v10698_v43 = vld [vmem:[#allocation23 + $0x4] sm:$0xf0]  ;;  %v6139_v7 = vadd.f32 %v6123_v48, %v15400_v33  ;;  %v8393_v48 = vmul.f32 1.442695, %v15101_v8 }
 0x64e   : > { %v15391_v47 = vpop.f32.mrf.mxu0  ;;  %v10024_v13 = vor.u32 %v10698_v43, %v10023_v27 }
 0x64f   : > { %v15387_v1 = vpop.f32.mrf.mxu3  ;;  %16840 = vst [vmem:[#allocation83_spill] sm:$0xff] %v15391_v47  ;;  %v15394_v14 = vadd.f32 %v5566_v22, %v5518_v5  ;;  %v6122_v22 = vmul.f32 %v11956_v35, %v1124_v50  ;;  %v15406_v5 = vadd.f32 %v15354_v26, %v5591_v63  ;;  %v5776_v26 = vsub.f32 0.0, %v15397_v44 }
 0x650   : > { %16839 = vst [vmem:[#allocation61_spill] sm:$0xff] %v15387_v1  ;;  %v10028_v35 = vor.u32 %v10697_v11, %v10025_v52  ;;  %v15420_v63 = vadd.f32 %v5641_v23, %v5593_v39  ;;  %v5822_v50 = vmul.f32 1.442695, %v5773_v34  ;;  %6447 = vmatpush.bf16.msrb.mxu1 %v10024_v13  ;;  %v11962_v39 = vpop.eup %11961  ;;  %v5781_v13 = vsub.f32 0.0, %v15207_v32 }
 0x651   : > { %16841 = vst [vmem:[#allocation84_spill] sm:$0xff] %v15394_v14  ;;  %v6138_v21 = vadd.f32 %v6122_v22, %v15410_v49  ;;  %v5779_v4 = vsub.f32 0.0, %v15406_v5  ;;  %v5828_v27 = vmul.f32 1.442695, %v5776_v26  ;;  %v5916_v22 = vadd.f32 1.0, %v11960_v3  ;;  %v5646_v26 = vpop.f32.mrf.mxu1  ;;  %v15437_v58 = vpop.eup %11963  ;;  %v12729_v14 = vld [vmem:[%s13789_s9 + $0x8] sm:$0xff] }
 0x652   : > { %6496 = vmatpush.bf16.msrb.mxu2 %v10028_v35  ;;  %v5782_v34 = vsub.f32 0.0, %v15420_v63  ;;  %11967 = vpow2.f32 %v5822_v50  ;;  %v5838_v50 = vmul.f32 1.442695, %v5781_v13 }
 0x653   : > { %v6164_v61 = vpack.c.bf16 %v6139_v7, %v6138_v21  ;;  %v5834_v43 = vmul.f32 1.442695, %v5779_v4  ;;  %11969 = vpow2.f32 %v8393_v48  ;;  %v5919_v7 = vadd.f32 1.0, %v11962_v39 }
 0x654   : > { %5766 = vmatmul.bf16.gmra.mxu3 %v15079_v56  ;;  %v5596_v56 = vadd.f32 %v15209_v24, %v15370_v25  ;;  %v15417_v10 = vpop.f32.mrf.mxu2  ;;  %v5778_v24 = vsub.f32 0.0, %v15189_v54  ;;  %11971 = vpow2.f32 %v5828_v27  ;;  %v5840_v2 = vmul.f32 1.442695, %v5782_v34 }
 0x655   : > { %16844 = vst [vmem:[#allocation87_spill] sm:$0xff] %v15417_v10  ;;  %11973 = vrcp.f32 %v5916_v22  ;;  %v8395_v21 = vmul.f32 1.442695, %v15097_v31  ;;  %v5598_v4 = vadd.f32 %v15231_v16, %v15370_v25  ;;  %v8397_v39 = vmul.f32 1.442695, %v15138_v6 }
 0x656   : > { %v15424_v15 = vpop.f32.mrf.mxu0  ;;  %v15428_v23 = vadd.f32 %v5644_v60, %v5596_v56  ;;  %v5832_v11 = vmul.f32 1.442695, %v5778_v24  ;;  %11975 = vpow2.f32 %v5834_v43  ;;  %v8399_v34 = vmul.f32 1.442695, %v15133_v37 }
 0x657   : > { %v5571_v62 = vpop.f32.mrf.mxu3  ;;  %16845 = vst [vmem:[#allocation88_spill] sm:$0xff] %v15424_v15  ;;  %v15452_v13 = vadd.f32 %v5646_v26, %v5598_v4 }
 0x658   : > { %v5785_v52 = vsub.f32 0.0, %v15428_v23  ;;  %11977 = vpow2.f32 %v5832_v11 }
 0x659   : > { %6259 = vmatmul.bf16.gmra.mxu0 %v6164_v61  ;;  %5717 = vmatmul.bf16.gmra.mxu2 %v15089_v59  ;;  %v15442_v59 = vpop.eup %11965  ;;  %11979 = vrcp.f32 %v5919_v7  ;;  %v5649_v26 = vpop.f32.mrf.mxu1 }
 0x65a   : > { %v11968_v24 = vpop.eup %11967  ;;  %v5846_v61 = vmul.f32 1.442695, %v5785_v52  ;;  %11981 = vpow2.f32 %v5840_v2 }
 0x65b   : > { %v15448_v27 = vpop.eup %11969  ;;  %11983 = vpow2.f32 %v8395_v21  ;;  %v5917_v11 = vadd.f32 1.0, %v11968_v24 }
 0x65c   : > { %v5522_v60 = vpop.f32.mrf.mxu2  ;;  %v11972_v22 = vpop.eup %11971  ;;  %11985 = vpow2.f32 %v5838_v50  ;;  %v5788_v50 = vsub.f32 0.0, %v15452_v13 }
 0x65d   : > { %v5523_v56 = vadd.f32 %v5522_v60, %v15129_v45  ;;  %v11974_v43 = vpop.eup %11973  ;;  %11987 = vpow2.f32 %v5846_v61 }
 0x65e   : > { %v15440_v3 = vpop.f32.mrf.mxu0  ;;  %v11976_v16 = vpop.eup %11975  ;;  %11989 = vpow2.f32 %v8397_v39  ;;  %v15464_v39 = vld [vmem:[%s16851_s10] ss:$0 sm:$0xff] }
 0x65f   : > { %v15435_v35 = vpop.f32.mrf.mxu3  ;;  %16847 = vst [vmem:[#allocation90_spill] sm:$0xff] %v15440_v3  ;;  %v15446_v48 = vadd.f32 %v5571_v62, %v5523_v56  ;;  %v16849_v62 = vld [vmem:[#allocation82_spill] sm:$0xff]  ;;  %v11978_v52 = vpop.eup %11977  ;;  %v5920_v56 = vadd.f32 1.0, %v11972_v22  ;;  %11991 = vpow2.f32 %v8399_v34  ;;  %v5923_v3 = vadd.f32 1.0, %v11976_v16  ;;  %v12727_v22 = vld [vmem:[#allocation22] sm:$0x7] }
 0x660   : > { %16846 = vst [vmem:[#allocation89_spill] sm:$0xff] %v15435_v35  ;;  %v8401_v60 = vmul.f32 1.442695, %v16849_v62  ;;  %v11980_v2 = vpop.eup %11979  ;;  %11993 = vrcp.f32 %v5917_v11  ;;  %v5922_v24 = vadd.f32 1.0, %v11978_v52  ;;  %v6012_v62 = vmul.f32 %v11974_v43, %v15144_v55  ;;  %v16853_v52 = vld [vmem:[#allocation52_spill] sm:$0xff] }
 0x661   : > { %16848 = vst [vmem:[#allocation91_spill] sm:$0xff] %v15446_v48  ;;  %v11982_v49 = vpop.eup %11981  ;;  %v15466_v34 = vperm.slane %v12727_v22, 2  ;;  %v6015_v16 = vmul.f32 %v11980_v2, %v15162_v42  ;;  %v5601_v37 = vadd.f32 %v16853_v52, %v15370_v25  ;;  %v5852_v43 = vmul.f32 1.442695, %v5788_v50  ;;  %v12728_v2 = vld [vmem:[%s13789_s9] sm:$0xff] }
 0x662   : > { %v15458_v4 = vpop.eup %11983  ;;  %11995 = vpow2.f32 %v8401_v60  ;;  %v5926_v15 = vadd.f32 1.0, %v11982_v49  ;;  %v5784_v60 = vsub.f32 0.0, %v16852_v57  ;;  %v6265_v47 = vadd.f32 %v12728_v2, %v6012_v62  ;;  %v16856_v62 = vld [vmem:[#allocation81_spill] sm:$0xff] }
 0x663   : > { %v11986_v61 = vpop.eup %11985  ;;  %11997 = vrcp.f32 %v5920_v56  ;;  %v16854_v56 = vld [vmem:[#allocation54_spill] sm:$0xff]  ;;  %v15482_v50 = vadd.f32 %v5649_v26, %v5601_v37  ;;  %v8403_v2 = vmul.f32 1.442695, %v16856_v62  ;;  %v5651_v37 = vpop.f32.mrf.mxu1 }
 0x664   : > { %v15455_v7 = vpop.f32.mrf.mxu2  ;;  %v11988_v11 = vpop.eup %11987  ;;  %11999 = vrcp.f32 %v5923_v3  ;;  %v5787_v48 = vsub.f32 0.0, %v16854_v56  ;;  %v5925_v22 = vadd.f32 1.0, %v11986_v61  ;;  %v5844_v3 = vmul.f32 1.442695, %v5784_v60 }
 0x665   : > { %16850 = vst [vmem:[#allocation92_spill] sm:$0xff] %v15455_v7  ;;  %v15472_v55 = vpop.eup %11989  ;;  %12001 = vrcp.f32 %v5922_v24  ;;  %v5929_v42 = vadd.f32 1.0, %v11988_v11  ;;  %v6266_v24 = vadd.f32 %v12729_v14, %v6015_v16 }
 0x666   : > { %v6225_v21 = vpop.f32.mrf.mxu0  ;;  %v15475_v6 = vpop.eup %11991  ;;  %12003 = vrcp.f32 %v5926_v15  ;;  %v5850_v8 = vmul.f32 1.442695, %v5787_v48  ;;  %v16860_v48 = vld [vmem:[#allocation67_spill] sm:$0xff] }
 0x667   : > { %v5732_v33 = vpop.f32.mrf.mxu3  ;;  %v11994_v7 = vpop.eup %11993  ;;  %v6226_v49 = vadd.f32 %v15464_v39, %v6225_v21  ;;  %12005 = vpow2.f32 %v5852_v43  ;;  %v8407_v60 = vmul.f32 1.442695, %v16860_v48  ;;  %v16861_v43 = vld [vmem:[#allocation51_spill] sm:$0xff] }
 0x668   : > { %v15480_v28 = vpop.eup %11995  ;;  %12007 = vrcp.f32 %v5925_v22 }
 0x669   : > { %16855 = vst [vmem:[#allocation59_spill] sm:$0xff] %v15480_v28  ;;  %v11998_v61 = vpop.eup %11997  ;;  %v6013_v28 = vmul.f32 %v11994_v7, %v15384_v17  ;;  %12009 = vrcp.f32 %v5929_v42  ;;  %v15491_v26 = vadd.f32 %v6265_v47, %v6226_v49  ;;  %v5790_v17 = vsub.f32 0.0, %v15278_v41  ;;  %v16862_v42 = vld [vmem:[#allocation76_spill] sm:$0xff] }
 0x66a   : > { %v12000_v15 = vpop.eup %11999  ;;  %12011 = vpow2.f32 %v5844_v3 }
 0x66b   : > { %16858 = vst [vmem:[#allocation52_spill] sm:$0xff] %v15491_v26  ;;  %12013 = vpow2.f32 %v5850_v8  ;;  %v8421_v49 = vsub.f32 %v16862_v42, %v6013_v28  ;;  %v6019_v48 = vmul.f32 %v12000_v15, %v15406_v5  ;;  %v5856_v5 = vmul.f32 1.442695, %v5790_v17 }
 0x66c   : > { %v5683_v35 = vpop.f32.mrf.mxu2  ;;  %12015 = vpow2.f32 %v8403_v2 }
 0x66d   : > { %v5684_v52 = vadd.f32 %v5683_v35, %v15466_v34  ;;  %v16857_v35 = vld [vmem:[#allocation49_spill] sm:$0xff] }
 0x66e   : > { %v6227_v1 = vpop.f32.mrf.mxu0  ;;  %v8405_v10 = vmul.f32 1.442695, %v16857_v35 }
 0x66f   : > { %v5734_v31 = vpop.f32.mrf.mxu3  ;;  %v15485_v11 = vadd.f32 %v5732_v33, %v5684_v52  ;;  %v6228_v21 = vadd.f32 %v15464_v39, %v6227_v1  ;;  %v12002_v33 = vpop.eup %12001  ;;  %v5791_v1 = vsub.f32 0.0, %v15482_v50  ;;  %v5603_v52 = vadd.f32 %v16861_v43, %v15370_v25 }
 0x670   : > { %v12004_v22 = vpop.eup %12003  ;;  %v6018_v35 = vmul.f32 %v12002_v33, %v15189_v54  ;;  %v8437_v33 = vmul.f32 %v8421_v49, %v8421_v49 }
 0x671   : > { %v5774_v14 = vsub.f32 0.0, %v15485_v11  ;;  %v15494_v16 = vadd.f32 %v6266_v24, %v6228_v21  ;;  %v6016_v24 = vmul.f32 %v11998_v61, %v15397_v44  ;;  %v12006_v3 = vpop.eup %12005  ;;  %v15508_v2 = vadd.f32 %v5651_v37, %v5603_v52  ;;  %v16865_v37 = vld [vmem:[#allocation80_spill] sm:$0xff] }
 0x672   : > { %v12008_v43 = vpop.eup %12007  ;;  %v15511_v61 = vmul.f32 1.442695, %v15263_v0  ;;  %v6022_v42 = vmul.f32 %v12004_v22, %v15420_v63  ;;  %v8423_v52 = vsub.f32 %v16865_v37, %v6019_v48  ;;  %v5606_v63 = vadd.f32 %v15293_v9, %v15370_v25  ;;  %v5654_v48 = vpop.f32.mrf.mxu1  ;;  %v16868_v37 = vld [vmem:[#allocation53_spill] sm:$0xff] }
 0x673   : > { %16859 = vst [vmem:[#allocation54_spill] sm:$0xff] %v15494_v16  ;;  %v5824_v7 = vmul.f32 1.442695, %v5774_v14  ;;  %v6347_v47 = vpack.c.bf16 %v15494_v16, %v15491_v26  ;;  %v5858_v16 = vmul.f32 1.442695, %v5791_v1  ;;  %v12010_v44 = vpop.eup %12009  ;;  %v12730_v26 = vld [vmem:[%s13789_s9 + $0x10] sm:$0xff] }
 0x674   : > { %v5685_v21 = vpop.f32.mrf.mxu2  ;;  %16863 = vst [vmem:[#allocation51_spill] sm:$0xff] %v15511_v61  ;;  %v12012_v15 = vpop.eup %12011  ;;  %v6267_v0 = vadd.f32 %v12730_v26, %v6018_v35  ;;  %v5794_v17 = vsub.f32 0.0, %v15508_v2  ;;  %v16867_v35 = vld [vmem:[#allocation79_spill] sm:$0xff] }
 0x675   : > { %12017 = vpow2.f32 %v5824_v7  ;;  %v5686_v8 = vadd.f32 %v5685_v21, %v15466_v34  ;;  %6448 = vmatmul.bf16.vlgmr.msrb.gmra.mxu1 %v6347_v47  ;;  %6497 = vmatmul.bf16.vlgmr.msrb.gmra.mxu2 %v6347_v47  ;;  %v16864_v7 = vld [vmem:[#allocation75_spill] sm:$0xff]  ;;  %v12014_v1 = vpop.eup %12013  ;;  %v6021_v21 = vmul.f32 %v12008_v43, %v15207_v32  ;;  %v5928_v49 = vadd.f32 1.0, %v12012_v15 }
 0x676   : > { %12019 = vpow2.f32 %v8405_v10  ;;  %v6230_v28 = vpop.f32.mrf.mxu0  ;;  %v8422_v47 = vsub.f32 %v16864_v7, %v6016_v24  ;;  %v5932_v10 = vadd.f32 1.0, %v12006_v3  ;;  %v15521_v61 = vpop.eup %12015  ;;  %v5793_v32 = vsub.f32 0.0, %v15295_v29  ;;  %v12731_v15 = vld [vmem:[%s13789_s9 + $0x18] sm:$0xff] }
 0x677   : > { %v5737_v14 = vpop.f32.mrf.mxu3  ;;  %12021 = vpow2.f32 %v8407_v60  ;;  %v15513_v54 = vadd.f32 %v5734_v31, %v5686_v8  ;;  %v6025_v31 = vmul.f32 %v12010_v44, %v15428_v23  ;;  %v8424_v26 = vsub.f32 %v16867_v35, %v6022_v42 }
 0x678   : > { %12023 = vpow2.f32 %v5858_v16  ;;  %v5931_v23 = vadd.f32 1.0, %v12014_v1  ;;  %v6231_v9 = vadd.f32 %v15464_v39, %v6230_v28  ;;  %v6268_v7 = vadd.f32 %v12731_v15, %v6021_v21 }
 0x679   : > { %v5777_v60 = vsub.f32 0.0, %v15513_v54  ;;  %12025 = vpow2.f32 %v5856_v5  ;;  %v5864_v62 = vmul.f32 1.442695, %v5794_v17  ;;  %v15543_v28 = vadd.f32 %v15437_v58, %v8437_v33 }
 0x67a   : > { %12027 = vrcp.f32 %v5932_v10  ;;  %v5862_v10 = vmul.f32 1.442695, %v5793_v32  ;;  %v8438_v35 = vmul.f32 %v8422_v47, %v8422_v47  ;;  %v15547_v17 = vadd.f32 %v6267_v0, %v6231_v9 }
 0x67b   : > { %v12018_v22 = vpop.eup %12017  ;;  %v5830_v24 = vmul.f32 1.442695, %v5777_v60  ;;  %v8425_v60 = vsub.f32 %v16868_v37, %v6025_v31  ;;  %v5510_v31 = vadd.f32 %v15331_v36, %v15129_v45  ;;  %v5608_v47 = vadd.f32 %v15316_v18, %v15370_v25 }
 0x67c   : > { %v15528_v3 = vpop.eup %12019  ;;  %v5918_v16 = vadd.f32 1.0, %v12018_v22  ;;  %v5688_v8 = vpop.f32.mrf.mxu2  ;;  %v5796_v9 = vsub.f32 0.0, %v15319_v30 }
 0x67d   : > { %16866 = vst [vmem:[#allocation76_spill] sm:$0xff] %v15528_v3  ;;  %v15531_v43 = vpop.eup %12021  ;;  %12029 = vpow2.f32 %v5830_v24  ;;  %v5689_v44 = vadd.f32 %v5688_v8, %v15466_v34  ;;  %v15537_v3 = vadd.f32 %v5654_v48, %v5606_v63  ;;  %v8439_v8 = vmul.f32 %v8423_v52, %v8423_v52 }
 0x67e   : > { %12031 = vrcp.f32 %v5918_v16  ;;  %v6232_v42 = vpop.f32.mrf.mxu0  ;;  %v12024_v24 = vpop.eup %12023  ;;  %v8440_v48 = vmul.f32 %v8424_v26, %v8424_v26  ;;  %v8441_v32 = vmul.f32 %v8425_v60, %v8425_v60 }
 0x67f   : > { %v5739_v5 = vpop.f32.mrf.mxu3  ;;  %12033 = vrcp.f32 %v5928_v49  ;;  %v15539_v1 = vadd.f32 %v5737_v14, %v5689_v44  ;;  %v6233_v22 = vadd.f32 %v15464_v39, %v6232_v42  ;;  %v12026_v21 = vpop.eup %12025  ;;  %v5797_v58 = vsub.f32 0.0, %v15537_v3 }
 0x680   : > { %12035 = vrcp.f32 %v5931_v23  ;;  %v12028_v14 = vpop.eup %12027  ;;  %v5935_v23 = vadd.f32 1.0, %v12024_v24  ;;  %v5934_v16 = vadd.f32 1.0, %v12026_v21 }
 0x681   : > { %v5780_v63 = vsub.f32 0.0, %v15539_v1  ;;  %v15550_v49 = vadd.f32 %v6268_v7, %v6233_v22  ;;  %12037 = vpow2.f32 %v5864_v62  ;;  %v5656_v62 = vpop.f32.mrf.mxu1  ;;  %v15559_v7 = vadd.f32 %v15310_v46, %v5510_v31 }
 0x682   : > { %12039 = vpow2.f32 %v5862_v10  ;;  %v15566_v10 = vadd.f32 %v15442_v59, %v8438_v35  ;;  %v6028_v22 = vmul.f32 %v12028_v14, %v15452_v13  ;;  %v5870_v24 = vmul.f32 1.442695, %v5797_v58 }
 0x683   : > { %v12030_v33 = vpop.eup %12029  ;;  %v5836_v52 = vmul.f32 1.442695, %v5780_v63  ;;  %v6348_v0 = vpack.c.bf16 %v15550_v49, %v15547_v17  ;;  %v15570_v46 = vadd.f32 %v15448_v27, %v8439_v8  ;;  %v15581_v59 = vadd.f32 %v15472_v55, %v8441_v32 }
 0x684   : > { %v12032_v36 = vpop.eup %12031  ;;  %v5921_v44 = vadd.f32 1.0, %v12030_v33  ;;  %v5690_v26 = vpop.f32.mrf.mxu2  ;;  %v5868_v13 = vmul.f32 1.442695, %v5796_v9  ;;  %v5799_v27 = vsub.f32 0.0, %v15559_v7 }
 0x685   : > { %v12034_v15 = vpop.eup %12033  ;;  %v15562_v37 = vmul.f32 %v12032_v36, %v15485_v11  ;;  %12041 = vpow2.f32 %v5836_v52  ;;  %v5691_v18 = vadd.f32 %v5690_v26, %v15466_v34  ;;  %6453 = vmatmul.bf16.gmra.mxu1 %v6348_v0  ;;  %6502 = vmatmul.bf16.gmra.mxu2 %v6348_v0  ;;  %v15572_v11 = vadd.f32 %v5656_v62, %v5608_v47 }
 0x686   : > { %v12036_v42 = vpop.eup %12035  ;;  %12043 = vrcp.f32 %v5921_v44  ;;  %v6235_v21 = vpop.f32.mrf.mxu0  ;;  %v15578_v52 = vadd.f32 %v15458_v4, %v8440_v48  ;;  %v6024_v58 = vmul.f32 %v12034_v15, %v16852_v57  ;;  %v5874_v57 = vmul.f32 1.442695, %v5799_v27 }
 0x687   : > { %v5742_v60 = vpop.f32.mrf.mxu3  ;;  %v8469_v31 = vsub.f32 0.0, %v15562_v37  ;;  %v15575_v63 = vadd.f32 %v5739_v5, %v5691_v18  ;;  %v12038_v33 = vpop.eup %12037  ;;  %12045 = vrcp.f32 %v5935_v23  ;;  %v16869_v5 = vld [vmem:[#allocation50_spill] sm:$0xff]  ;;  %v6027_v0 = vmul.f32 %v12036_v42, %v16854_v56  ;;  %v12732_v42 = vld [vmem:[%s13789_s9 + $0x20] sm:$0xff] }
 0x688   : > { %v12040_v35 = vpop.eup %12039  ;;  %12047 = vrcp.f32 %v5934_v16  ;;  %v8426_v47 = vsub.f32 %v16869_v5, %v6028_v22  ;;  %v5938_v48 = vadd.f32 1.0, %v12038_v33  ;;  %v5800_v55 = vsub.f32 0.0, %v15572_v11 }
 0x689   : > { %v8485_v8 = vmul.f32 1.442695, %v8469_v31  ;;  %v5783_v14 = vsub.f32 0.0, %v15575_v63  ;;  %12049 = vpow2.f32 %v5870_v24  ;;  %v5937_v23 = vadd.f32 1.0, %v12040_v35  ;;  %v5659_v33 = vpop.f32.mrf.mxu1  ;;  %v12733_v35 = vld [vmem:[%s13789_s9 + $0x28] sm:$0xff] }
 0x68a   : > { %v5611_v16 = vadd.f32 %v15337_v53, %v15370_v25  ;;  %v6236_v56 = vadd.f32 %v15464_v39, %v6235_v21  ;;  %v8442_v18 = vmul.f32 %v8426_v47, %v8426_v47  ;;  %v6269_v22 = vadd.f32 %v12732_v42, %v6024_v58 }
 0x68b   : > { %v12042_v4 = vpop.eup %12041  ;;  %12051 = vpow2.f32 %v8485_v8  ;;  %v5842_v32 = vmul.f32 1.442695, %v5783_v14  ;;  %v6270_v21 = vadd.f32 %v12733_v35, %v6027_v0  ;;  %v5876_v8 = vmul.f32 1.442695, %v5800_v55  ;;  %v16870_v35 = vld [vmem:[#allocation68_spill] sm:$0xff] }
 0x68c   : > { %v12044_v36 = vpop.eup %12043  ;;  %12053 = vpow2.f32 %v5868_v13  ;;  %v5924_v9 = vadd.f32 1.0, %v12042_v4  ;;  %v5693_v26 = vpop.f32.mrf.mxu2  ;;  %v15602_v14 = vadd.f32 %v5659_v33, %v5611_v16  ;;  %v15606_v4 = vadd.f32 %v6269_v22, %v6236_v56 }
 0x68d   : > { %v15592_v44 = vmul.f32 %v12044_v36, %v15513_v54  ;;  %12055 = vpow2.f32 %v5842_v32  ;;  %v12046_v62 = vpop.eup %12045  ;;  %v5694_v24 = vadd.f32 %v5693_v26, %v15466_v34  ;;  %v5515_v36 = vadd.f32 %v15367_v12, %v15129_v45 }
 0x68e   : > { %12057 = vrcp.f32 %v5924_v9  ;;  %v6237_v53 = vpop.f32.mrf.mxu0  ;;  %v12048_v31 = vpop.eup %12047  ;;  %v8373_v0 = vsub.f32 %v15562_v37, %v15071_v20  ;;  %v15617_v16 = vadd.f32 %v15475_v6, %v8442_v18  ;;  %v6031_v9 = vmul.f32 %v12046_v62, %v15482_v50 }
 0x68f   : > { %v15595_v15 = vpop.f32.mrf.mxu3  ;;  %12059 = vrcp.f32 %v5938_v48  ;;  %v8470_v54 = vsub.f32 0.0, %v15592_v44  ;;  %v6238_v13 = vadd.f32 %v15464_v39, %v6237_v53  ;;  %v12050_v27 = vpop.eup %12049  ;;  %v15604_v5 = vadd.f32 %v5742_v60, %v5694_v24 }
 0x690   : > { %12061 = vrcp.f32 %v5937_v23  ;;  %v5803_v12 = vsub.f32 0.0, %v15602_v14  ;;  %v5802_v22 = vsub.f32 0.0, %v15356_v38  ;;  %v15632_v24 = vadd.f32 %v15348_v51, %v5515_v36 }
 0x691   : > { %v12052_v58 = vpop.eup %12051  ;;  %12063 = vpow2.f32 %v5874_v57  ;;  %v8487_v47 = vmul.f32 1.442695, %v8470_v54  ;;  %v15608_v48 = vadd.f32 %v6270_v21, %v6238_v13  ;;  %v5786_v23 = vsub.f32 0.0, %v15604_v5 }
 0x692   : > { %v12054_v32 = vpop.eup %12053  ;;  %v8517_v55 = vmul.f32 %v12052_v58, %v15543_v28  ;;  %v15636_v21 = vsub.f32 %v16870_v35, %v6031_v9  ;;  %v5882_v58 = vmul.f32 1.442695, %v5803_v12  ;;  %v5613_v51 = vadd.f32 %v15351_v19, %v15370_v25 }
 0x693   : > { %v12056_v60 = vpop.eup %12055  ;;  %12065 = vpow2.f32 %v8487_v47  ;;  %v6349_v57 = vpack.c.bf16 %v15608_v48, %v15606_v4  ;;  %v5848_v20 = vmul.f32 1.442695, %v5786_v23  ;;  %v5940_v28 = vadd.f32 1.0, %v12054_v32 }
 0x694   : > { %v12058_v56 = vpop.eup %12057  ;;  %v8533_v26 = vadd.f32 %v8517_v55, %v8373_v0  ;;  %v5927_v42 = vadd.f32 1.0, %v12056_v60  ;;  %12067 = vpow2.f32 %v5876_v8  ;;  %v5695_v50 = vpop.f32.mrf.mxu2  ;;  %v5880_v55 = vmul.f32 1.442695, %v5802_v22 }
 0x695   : > { %v15623_v37 = vpop.eup %12059  ;;  %v15627_v6 = vmul.f32 %v12058_v56, %v15539_v1  ;;  %6458 = vmatmul.bf16.gmra.mxu1 %v6349_v57  ;;  %6507 = vmatmul.bf16.gmra.mxu2 %v6349_v57  ;;  %v5696_v33 = vadd.f32 %v5695_v50, %v15466_v34  ;;  %v6030_v1 = vmul.f32 %v12048_v31, %v15278_v41  ;;  %v5805_v41 = vsub.f32 0.0, %v15632_v24  ;;  %v5661_v57 = vpop.f32.mrf.mxu1  ;;  %v12734_v56 = vld [vmem:[%s13789_s9 + $0x30] sm:$0xff] }
 0x696   : > { %v12062_v18 = vpop.eup %12061  ;;  %v10406_v53 = vadd.f32 -1.0, %v8533_v26  ;;  %12069 = vrcp.f32 %v5927_v42  ;;  %v6240_v54 = vpop.f32.mrf.mxu0  ;;  %v8374_v19 = vsub.f32 %v15592_v44, %v15068_v40  ;;  %v5941_v9 = vadd.f32 1.0, %v12050_v27  ;;  %v12735_v27 = vld [vmem:[%s13789_s9 + $0x38] sm:$0xff] }
 0x697   : > { %v15629_v62 = vpop.f32.mrf.mxu3  ;;  %v12064_v13 = vpop.eup %12063  ;;  %v8471_v8 = vsub.f32 0.0, %v15627_v6  ;;  %12071 = vpow2.f32 %v5848_v20  ;;  %v15643_v32 = vadd.f32 %v15595_v15, %v5696_v33  ;;  %v6033_v0 = vmul.f32 %v12062_v18, %v15295_v29 }
 0x698   : > { %v8565_v47 = vmul.f32 0.5, %v10406_v53  ;;  %12073 = vrcp.f32 %v5940_v28  ;;  %v5943_v29 = vadd.f32 1.0, %v12064_v13  ;;  %v6271_v12 = vadd.f32 %v12734_v56, %v6030_v1 }
 0x699   : > { %v12066_v36 = vpop.eup %12065  ;;  %v8489_v23 = vmul.f32 1.442695, %v8471_v8  ;;  %v5789_v15 = vsub.f32 0.0, %v15643_v32  ;;  %v15656_v42 = vadd.f32 %v5661_v57, %v5613_v51  ;;  %v6272_v50 = vadd.f32 %v12735_v27, %v6033_v0  ;;  %v16871_v51 = vld [vmem:[#allocation87_spill] sm:$0xff] }
 0x69a   : > { %8581 = vst [vmem:[%s15648_s0] sm:$0xff] %v8565_v47  ;;  %v8518_v31 = vmul.f32 %v12066_v36, %v15566_v10  ;;  %v12068_v60 = vpop.eup %12067  ;;  %v6241_v10 = vadd.f32 %v15464_v39, %v6240_v54  ;;  %v5886_v18 = vmul.f32 1.442695, %v5805_v41  ;;  %v5520_v47 = vadd.f32 %v16871_v51, %v15129_v45 }
 0x69b   : > { %12075 = vpow2.f32 %v8489_v23  ;;  %v5854_v28 = vmul.f32 1.442695, %v5789_v15  ;;  %v5806_v54 = vsub.f32 0.0, %v15656_v42  ;;  %v5944_v15 = vadd.f32 1.0, %v12068_v60 }
 0x69c   : > { %v12070_v26 = vpop.eup %12069  ;;  %12077 = vpow2.f32 %v5882_v58  ;;  %v8534_v20 = vadd.f32 %v8518_v31, %v8374_v19  ;;  %v5698_v13 = vpop.f32.mrf.mxu2  ;;  %v15671_v23 = vadd.f32 %v6271_v12, %v6241_v10  ;;  %v10143_v12 = vld [vmem:[#allocation25 + $0x70] sm:$0xf]  ;;  %v16873_v10 = vld [vmem:[#allocation84_spill] sm:$0xff] }
 0x69d   : > { %v12072_v22 = vpop.eup %12071  ;;  %12079 = vpow2.f32 %v5880_v55  ;;  %v15659_v40 = vmul.f32 %v12070_v26, %v15575_v63  ;;  %v5699_v63 = vadd.f32 %v5698_v13, %v15466_v34  ;;  %v5808_v27 = vsub.f32 0.0, %v16873_v10 }
 0x69e   : > { %v10407_v53 = vadd.f32 -1.0, %v8534_v20  ;;  %v5930_v33 = vadd.f32 1.0, %v12072_v22  ;;  %12081 = vpow2.f32 %v5854_v28  ;;  %v6242_v35 = vpop.f32.mrf.mxu0  ;;  %v12074_v1 = vpop.eup %12073  ;;  %v15684_v20 = vmul.f32 %v15636_v21, %v15636_v21 }
 0x69f   : > { %v15662_v44 = vpop.f32.mrf.mxu3  ;;  %12083 = vrcp.f32 %v5943_v29  ;;  %v8472_v8 = vsub.f32 0.0, %v15659_v40  ;;  %v6243_v58 = vadd.f32 %v15464_v39, %v6242_v35  ;;  %v15674_v41 = vadd.f32 %v15629_v62, %v5699_v63  ;;  %v16872_v29 = vld [vmem:[#allocation74_spill] sm:$0xff]  ;;  %v10744_v62 = vld [vmem:[#allocation25 + $0x74] sm:$0xf0] }
 0x6a0   : > { %v8566_v36 = vmul.f32 0.5, %v10407_v53  ;;  %12085 = vrcp.f32 %v5930_v33  ;;  %v8375_v57 = vsub.f32 %v15627_v6, %v16872_v29  ;;  %v5888_v21 = vmul.f32 1.442695, %v5806_v54 }
 0x6a1   : > { %v12076_v0 = vpop.eup %12075  ;;  %v8491_v55 = vmul.f32 1.442695, %v8472_v8  ;;  %v15676_v19 = vadd.f32 %v6272_v50, %v6243_v58  ;;  %12087 = vpow2.f32 %v5886_v18  ;;  %v5792_v28 = vsub.f32 0.0, %v15674_v41  ;;  %v16874_v50 = vld [vmem:[#allocation61_spill] sm:$0xff]  ;;  %v16875_v58 = vld [vmem:[#allocation64_spill] sm:$0xff] }
 0x6a2   : > { %v12078_v31 = vpop.eup %12077  ;;  %8582 = vst [vmem:[%s15648_s0 + $0x8] sm:$0xff] %v8566_v36  ;;  %v8519_v56 = vmul.f32 %v12076_v0, %v15570_v46  ;;  %v15691_v6 = vadd.f32 %v16874_v50, %v5520_v47  ;;  %v10144_v18 = vor.u32 %v10744_v62, %v10143_v12  ;;  %v6036_v63 = vmul.f32 %v12074_v1, %v15319_v30  ;;  %v5664_v62 = vpop.f32.mrf.mxu1 }
 0x6a3   : > { %v12080_v26 = vpop.eup %12079  ;;  %12089 = vpow2.f32 %v8491_v55  ;;  %v6350_v60 = vpack.c.bf16 %v15676_v19, %v15671_v23  ;;  %v5860_v13 = vmul.f32 1.442695, %v5792_v28  ;;  %v5616_v51 = vadd.f32 %v16875_v58, %v15370_v25  ;;  %v16876_v28 = vld [vmem:[#allocation73_spill] sm:$0xff] }
 0x6a4   : > { %v12082_v22 = vpop.eup %12081  ;;  %v8535_v46 = vadd.f32 %v8519_v56, %v8375_v57  ;;  %12091 = vrcp.f32 %v5941_v9  ;;  %6944 = vmatpush.bf16.msrb.mxu3 %v10144_v18  ;;  %v5700_v36 = vpop.f32.mrf.mxu2  ;;  %v5946_v55 = vadd.f32 1.0, %v12080_v26  ;;  %v5892_v57 = vmul.f32 1.442695, %v5808_v27  ;;  %v12736_v27 = vld [vmem:[%s13789_s9 + $0x40] sm:$0xff] }
 0x6a5   : > { %v12084_v53 = vpop.eup %12083  ;;  %v5933_v33 = vadd.f32 1.0, %v12082_v22  ;;  %6463 = vmatmul.bf16.gmra.mxu1 %v6350_v60  ;;  %6512 = vmatmul.bf16.gmra.mxu2 %v6350_v60  ;;  %12093 = vrcp.f32 %v5944_v15  ;;  %v5701_v54 = vadd.f32 %v5700_v36, %v15466_v34  ;;  %v5811_v30 = vsub.f32 0.0, %v15691_v6  ;;  %v10759_v36 = vld [vmem:[#allocation25 + $0xf4] sm:$0xf] }
 0x6a6   : > { %v12086_v8 = vpop.eup %12085  ;;  %v10408_v47 = vadd.f32 -1.0, %v8535_v46  ;;  %v6245_v0 = vpop.f32.mrf.mxu0  ;;  %v15705_v56 = vmul.f32 %v15623_v37, %v15508_v2  ;;  %v15711_v12 = vadd.f32 1.0, %v12078_v31  ;;  %v8376_v60 = vsub.f32 %v15659_v40, %v16876_v28 }
 0x6a7   : > { %v15693_v35 = vpop.f32.mrf.mxu3  ;;  %v15699_v9 = vmul.f32 %v12086_v8, %v15604_v5  ;;  %12095 = vrcp.f32 %v5933_v33  ;;  %v12088_v29 = vpop.eup %12087  ;;  %v15709_v5 = vadd.f32 %v15662_v44, %v5701_v54  ;;  %v6273_v50 = vadd.f32 %v12736_v27, %v6036_v63  ;;  %v16878_v63 = vld [vmem:[#allocation92_spill] sm:$0xff] }
 0x6a8   : > { %v8567_v1 = vmul.f32 0.5, %v10408_v47  ;;  %12097 = vpow2.f32 %v5860_v13  ;;  %v15720_v2 = vadd.f32 %v5664_v62, %v5616_v51  ;;  %v5949_v31 = vadd.f32 1.0, %v12088_v29  ;;  %v10207_v51 = vld [vmem:[#allocation25 + $0xf0] sm:$0xf]  ;;  %v10760_v47 = vld [vmem:[#allocation25 + $0xf4] sm:$0xf0] }
 0x6a9   : > { %v12090_v15 = vpop.eup %12089  ;;  %12099 = vpow2.f32 %v5888_v21  ;;  %v8473_v26 = vsub.f32 0.0, %v15699_v9  ;;  %v5795_v44 = vsub.f32 0.0, %v15709_v5  ;;  %v5898_v21 = vmul.f32 1.442695, %v5811_v30 }
 0x6aa   : > { %8583 = vst [vmem:[%s15648_s0 + $0x10] sm:$0xff] %v8567_v1  ;;  %v8520_v22 = vmul.f32 %v12090_v15, %v15578_v52  ;;  %v15718_v46 = vpop.eup %12091  ;;  %12101 = vrcp.f32 %v5946_v55  ;;  %v6039_v40 = vmul.f32 %v12084_v53, %v15559_v7  ;;  %v16877_v52 = vld [vmem:[#allocation83_spill] sm:$0xff]  ;;  %v5525_v58 = vadd.f32 %v16878_v63, %v15129_v45  ;;  %v10209_v1 = vld [vmem:[#allocation25 + $0xf8] sm:$0xf0] }
 0x6ab   : > { %v8493_v37 = vmul.f32 1.442695, %v8473_v26  ;;  %v15723_v18 = vpop.eup %12093  ;;  %12103 = vpow2.f32 %v5892_v57  ;;  %v5618_v8 = vadd.f32 %v16877_v52, %v15370_v25  ;;  %v10208_v30 = vor.u32 %v10760_v47, %v10207_v51  ;;  %v10743_v7 = vld [vmem:[#allocation25 + $0x74] sm:$0xf]  ;;  %v12737_v63 = vld [vmem:[%s13789_s9 + $0x48] sm:$0xff] }
 0x6ac   : > { %v8536_v33 = vadd.f32 %v8520_v22, %v8376_v60  ;;  %v6246_v53 = vadd.f32 %v15464_v39, %v6245_v0  ;;  %v5703_v15 = vpop.f32.mrf.mxu2  ;;  %v10212_v28 = vor.u32 %v10759_v36, %v10209_v1  ;;  %v10145_v60 = vld [vmem:[#allocation25 + $0x78] sm:$0xf0]  ;;  %v5866_v22 = vmul.f32 1.442695, %v5795_v44  ;;  %v16879_v36 = vld [vmem:[#allocation89_spill] sm:$0xff] }
 0x6ad   : > { %v12096_v13 = vpop.eup %12095  ;;  %12105 = vpow2.f32 %v8493_v37  ;;  %v5704_v27 = vadd.f32 %v5703_v15, %v15466_v34  ;;  %6993 = vmatpush.bf16.msrb.mxu0 %v10208_v30  ;;  %v6274_v51 = vadd.f32 %v12737_v63, %v6039_v40  ;;  %v5809_v47 = vsub.f32 0.0, %v15720_v2  ;;  %v16880_v40 = vld [vmem:[#allocation60_spill] sm:$0xff]  ;;  %v5666_v15 = vpop.f32.mrf.mxu1  ;;  %v10135_v63 = vld [vmem:[#allocation25 + $0x60] sm:$0xf] }
 0x6ae   : > { %v12098_v54 = vpop.eup %12097  ;;  %v10409_v29 = vadd.f32 -1.0, %v8536_v33  ;;  %v15733_v57 = vmul.f32 %v12096_v13, %v15643_v32  ;;  %v6247_v26 = vpop.f32.mrf.mxu0  ;;  %12107 = vrcp.f32 %v5949_v31  ;;  %v10148_v33 = vor.u32 %v10743_v7, %v10145_v60  ;;  %7091 = vmatpush.bf16.msra.mxu2 %v10212_v28 }
 0x6af   : > { %v15730_v55 = vpop.f32.mrf.mxu3  ;;  %v12100_v62 = vpop.eup %12099  ;;  %v5936_v45 = vadd.f32 1.0, %v12098_v54  ;;  %v15739_v0 = vadd.f32 %v15693_v35, %v5704_v27  ;;  %v6248_v52 = vadd.f32 %v15464_v39, %v6247_v26  ;;  %v15745_v31 = vadd.f32 %v16879_v36, %v5525_v58  ;;  %v16881_v26 = vld [vmem:[#allocation78_spill] sm:$0xff] }
 0x6b0   : > { %v8568_v37 = vmul.f32 0.5, %v10409_v29  ;;  %v8474_v32 = vsub.f32 0.0, %v15733_v57  ;;  %v12102_v13 = vpop.eup %12101  ;;  %7042 = vmatpush.bf16.msra.mxu1 %v10148_v33  ;;  %v15748_v30 = vadd.f32 %v6273_v50, %v6246_v53  ;;  %v15755_v7 = vsub.f32 %v16880_v40, %v15705_v56 }
 0x6b1   : > { %12109 = vrcp.f32 %v5936_v45  ;;  %v12104_v44 = vpop.eup %12103  ;;  %v5798_v35 = vsub.f32 0.0, %v15739_v0  ;;  %v15751_v1 = vadd.f32 %v6274_v51, %v6248_v52  ;;  %v8377_v58 = vsub.f32 %v15699_v9, %v16881_v26  ;;  %v10742_v51 = vld [vmem:[#allocation25 + $0x64] sm:$0xf0] }
 0x6b2   : > { %8584 = vst [vmem:[%s15648_s0 + $0x18] sm:$0xff] %v8568_v37  ;;  %v8495_v54 = vmul.f32 1.442695, %v8474_v32  ;;  %12111 = vpow2.f32 %v5866_v22  ;;  %v15760_v28 = vadd.f32 %v5666_v15, %v5618_v8  ;;  %v15768_v56 = vmul.f32 1.442695, %v5809_v47 }
 0x6b3   : > { %v12106_v29 = vpop.eup %12105  ;;  %12113 = vpow2.f32 %v5898_v21  ;;  %v16882_v21 = vld [vmem:[#allocation91_spill] sm:$0xff]  ;;  %v5872_v53 = vmul.f32 1.442695, %v5798_v35  ;;  %v6351_v60 = vpack.c.bf16 %v15751_v1, %v15748_v30  ;;  %v5817_v9 = vsub.f32 0.0, %v15745_v31 }
 0x6b4   : > { %v8521_v45 = vmul.f32 %v12106_v29, %v15581_v59  ;;  %12115 = vpow2.f32 %v8495_v54  ;;  %v5814_v50 = vsub.f32 0.0, %v16882_v21  ;;  %v12108_v27 = vpop.eup %12107  ;;  %v5705_v59 = vpop.f32.mrf.mxu2  ;;  %v6037_v33 = vmul.f32 %v15718_v46, %v15537_v3 }
 0x6b5   : > { %12117 = vrcp.f32 %v15711_v12  ;;  %v15773_v52 = vadd.f32 1.0, %v12100_v62  ;;  %v5706_v36 = vadd.f32 %v5705_v59, %v15466_v34  ;;  %6468 = vmatmul.bf16.gmra.mxu1 %v6351_v60  ;;  %6517 = vmatmul.bf16.gmra.mxu2 %v6351_v60  ;;  %v5952_v47 = vadd.f32 1.0, %v12104_v44 }
 0x6b6   : > { %v8537_v37 = vadd.f32 %v8521_v45, %v8377_v58  ;;  %v6250_v32 = vpop.f32.mrf.mxu0  ;;  %12119 = vpow2.f32 %v5872_v53  ;;  %v10136_v35 = vor.u32 %v10742_v51, %v10135_v63  ;;  %v5812_v15 = vsub.f32 0.0, %v15760_v28  ;;  %v16884_v63 = vld [vmem:[#allocation66_spill] sm:$0xff] }
 0x6b7   : > { %v15765_v22 = vpop.f32.mrf.mxu3  ;;  %v12110_v8 = vpop.eup %12109  ;;  %v5904_v3 = vmul.f32 1.442695, %v5814_v50  ;;  %v15781_v62 = vadd.f32 %v15730_v55, %v5706_v36  ;;  %v6042_v58 = vmul.f32 %v12102_v13, %v15356_v38  ;;  %v5910_v45 = vmul.f32 1.442695, %v5817_v9  ;;  %v10199_v13 = vld [vmem:[#allocation25 + $0xe0] sm:$0xf] }
 0x6b8   : > { %v12112_v12 = vpop.eup %12111  ;;  %v10410_v54 = vadd.f32 -1.0, %v8537_v37  ;;  %v15777_v29 = vmul.f32 %v12110_v8, %v15674_v41  ;;  %6945 = vmatpush.bf16.msrb.mxu3 %v10136_v35  ;;  %v16883_v41 = vld [vmem:[#allocation77_spill] sm:$0xff]  ;;  %v6045_v55 = vmul.f32 %v12108_v27, %v15632_v24  ;;  %v8429_v51 = vsub.f32 %v16884_v63, %v6037_v33  ;;  %v16885_v63 = vld [vmem:[#allocation88_spill] sm:$0xff] }
 0x6b9   : > { %v12114_v40 = vpop.eup %12113  ;;  %v5939_v46 = vadd.f32 1.0, %v12112_v12  ;;  %v8378_v60 = vsub.f32 %v15733_v57, %v16883_v41  ;;  %v5801_v50 = vsub.f32 0.0, %v15781_v62  ;;  %v10758_v57 = vld [vmem:[#allocation25 + $0xe4] sm:$0xf0]  ;;  %v10757_v12 = vld [vmem:[#allocation25 + $0xe4] sm:$0xf] }
 0x6ba   : > { %v12116_v26 = vpop.eup %12115  ;;  %v8569_v53 = vmul.f32 0.5, %v10410_v54  ;;  %v8475_v44 = vsub.f32 0.0, %v15777_v29  ;;  %v5955_v8 = vadd.f32 1.0, %v12114_v40  ;;  %v6251_v54 = vadd.f32 %v15464_v39, %v6250_v32  ;;  %v10741_v27 = vld [vmem:[#allocation25 + $0x64] sm:$0xf] }
 0x6bb   : > { %v8522_v37 = vmul.f32 %v12116_v26, %v15617_v16  ;;  %12121 = vrcp.f32 %v5939_v46  ;;  %v15789_v59 = vpop.eup %12117  ;;  %v10201_v16 = vld [vmem:[#allocation25 + $0xe8] sm:$0xf0]  ;;  %v10200_v46 = vor.u32 %v10758_v57, %v10199_v13  ;;  %v5878_v33 = vmul.f32 1.442695, %v5801_v50 }
 0x6bc   : > { %12123 = vrcp.f32 %v5952_v47  ;;  %8585 = vst [vmem:[%s15648_s0 + $0x20] sm:$0xff] %v8569_v53  ;;  %v8497_v38 = vmul.f32 1.442695, %v8475_v44  ;;  %v12120_v9 = vpop.eup %12119  ;;  %v10204_v24 = vor.u32 %v10757_v12, %v10201_v16  ;;  %v10137_v47 = vld [vmem:[#allocation25 + $0x68] sm:$0xf0]  ;;  %v5708_v40 = vpop.f32.mrf.mxu2 }
 0x6bd   : > { %12125 = vpow2.f32 %v5904_v3  ;;  %v8538_v36 = vadd.f32 %v8522_v37, %v8378_v60  ;;  %v5942_v35 = vadd.f32 1.0, %v12120_v9  ;;  %v10140_v44 = vor.u32 %v10741_v27, %v10137_v47  ;;  %6994 = vmatpush.bf16.msrb.mxu0 %v10200_v46  ;;  %v12738_v32 = vld [vmem:[%s13789_s9 + $0x50] sm:$0xff] }
 0x6be   : > { %12127 = vpow2.f32 %v8497_v38  ;;  %v6252_v26 = vpop.f32.mrf.mxu0  ;;  %v5709_v3 = vadd.f32 %v5708_v40, %v15466_v34  ;;  %7092 = vmatpush.bf16.msra.mxu2 %v10204_v24  ;;  %v6275_v60 = vadd.f32 %v12738_v32, %v6042_v58  ;;  %v12739_v38 = vld [vmem:[%s13789_s9 + $0x58] sm:$0xff]  ;;  %v8444_v24 = vmul.f32 %v15755_v7, %v15755_v7 }
 0x6bf   : > { %v10411_v53 = vadd.f32 -1.0, %v8538_v36  ;;  %v15796_v41 = vpop.f32.mrf.mxu3  ;;  %12129 = vrcp.f32 %v5942_v35  ;;  %v6253_v37 = vadd.f32 %v15464_v39, %v6252_v26  ;;  %v6276_v13 = vadd.f32 %v12739_v38, %v6045_v55  ;;  %7043 = vmatpush.bf16.msra.mxu1 %v10140_v44  ;;  %v16886_v35 = vld [vmem:[#allocation59_spill] sm:$0xff]  ;;  %v16887_v40 = vld [vmem:[#allocation82_spill] sm:$0xff] }
 0x6c0   : > { %v5621_v36 = vadd.f32 %v16885_v63, %v15370_v25  ;;  %12131 = vpow2.f32 %v5878_v33  ;;  %v15804_v50 = vadd.f32 %v15765_v22, %v5709_v3  ;;  %v15809_v58 = vadd.f32 %v6275_v60, %v6251_v54  ;;  %v10127_v33 = vld [vmem:[#allocation25 + $0x50] sm:$0xf]  ;;  %v10740_v3 = vld [vmem:[#allocation25 + $0x54] sm:$0xf0] }
 0x6c1   : > { %v12122_v9 = vpop.eup %12121  ;;  %v8570_v57 = vmul.f32 0.5, %v10411_v53  ;;  %12133 = vpow2.f32 %v5910_v45  ;;  %v15811_v39 = vadd.f32 %v6276_v13, %v6253_v37  ;;  %v8459_v46 = vadd.f32 %v16886_v35, %v15684_v20  ;;  %v5669_v20 = vpop.f32.mrf.mxu1 }
 0x6c2   : > { %v12124_v12 = vpop.eup %12123  ;;  %v15807_v16 = vmul.f32 %v12122_v9, %v15709_v5  ;;  %12135 = vrcp.f32 %v5955_v8  ;;  %v5804_v22 = vsub.f32 0.0, %v15804_v50  ;;  %v8445_v45 = vmul.f32 %v8429_v51, %v8429_v51 }
 0x6c3   : > { %v12126_v55 = vpop.eup %12125  ;;  %8586 = vst [vmem:[%s15648_s0 + $0x28] sm:$0xff] %v8570_v57  ;;  %12137 = vrcp.f32 %v15773_v52  ;;  %v6352_v54 = vpack.c.bf16 %v15811_v39, %v15809_v58  ;;  %v5900_v47 = vmul.f32 1.442695, %v5812_v15  ;;  %v8379_v7 = vsub.f32 %v15777_v29, %v16887_v40 }
 0x6c4   : > { %v12128_v27 = vpop.eup %12127  ;;  %v8476_v5 = vsub.f32 0.0, %v15807_v16  ;;  %v5884_v26 = vmul.f32 1.442695, %v5804_v22  ;;  %v6040_v51 = vmul.f32 %v15723_v18, %v15572_v11  ;;  %12139 = vpow2.f32 %v15768_v56  ;;  %v5710_v32 = vpop.f32.mrf.mxu2 }
 0x6c5   : > { %v8523_v8 = vmul.f32 %v12128_v27, %v8459_v46  ;;  %v12130_v53 = vpop.eup %12129  ;;  %v15830_v52 = vadd.f32 %v5669_v20, %v5621_v36  ;;  %v10128_v29 = vor.u32 %v10740_v3, %v10127_v33  ;;  %6473 = vmatmul.bf16.gmra.mxu1 %v6352_v54  ;;  %6522 = vmatmul.bf16.gmra.mxu2 %v6352_v54  ;;  %v5958_v11 = vadd.f32 1.0, %v12126_v55  ;;  %v16888_v46 = vld [vmem:[#allocation76_spill] sm:$0xff]  ;;  %v16889_v27 = vld [vmem:[#allocation65_spill] sm:$0xff] }
 0x6c6   : > { %v8499_v44 = vmul.f32 1.442695, %v8476_v5  ;;  %v6255_v60 = vpop.f32.mrf.mxu0  ;;  %v12132_v15 = vpop.eup %12131  ;;  %v15833_v38 = vmul.f32 %v12130_v53, %v15739_v0  ;;  %12141 = vpow2.f32 %v5884_v26  ;;  %v5711_v56 = vadd.f32 %v5710_v32, %v15466_v34  ;;  %v10756_v26 = vld [vmem:[#allocation25 + $0xd4] sm:$0xf0]  ;;  %v10755_v53 = vld [vmem:[#allocation25 + $0xd4] sm:$0xf] }
 0x6c7   : > { %v8539_v37 = vadd.f32 %v8523_v8, %v8379_v7  ;;  %v12134_v13 = vpop.eup %12133  ;;  %v5945_v18 = vadd.f32 1.0, %v12132_v15  ;;  %v8460_v63 = vadd.f32 %v15521_v61, %v8444_v24  ;;  %6946 = vmatpush.bf16.msrb.mxu3 %v10128_v29  ;;  %v5762_v0 = vpop.f32.mrf.mxu3  ;;  %v15841_v22 = vadd.f32 %v16888_v46, %v8445_v45  ;;  %v10191_v8 = vld [vmem:[#allocation25 + $0xd0] sm:$0xf]  ;;  %v10193_v3 = vld [vmem:[#allocation25 + $0xd8] sm:$0xf0] }
 0x6c8   : > { %12143 = vpow2.f32 %v8499_v44  ;;  %v12136_v9 = vpop.eup %12135  ;;  %v8477_v57 = vsub.f32 0.0, %v15833_v38  ;;  %v15844_v55 = vsub.f32 %v16889_v27, %v6040_v51  ;;  %v15847_v5 = vadd.f32 %v15796_v41, %v5711_v56  ;;  %v16890_v41 = vld [vmem:[#allocation90_spill] sm:$0xff]  ;;  %v10739_v32 = vld [vmem:[#allocation25 + $0x54] sm:$0xf] }
 0x6c9   : > { %12145 = vpow2.f32 %v5900_v47  ;;  %v10412_v36 = vadd.f32 -1.0, %v8539_v37  ;;  %v15838_v35 = vpop.eup %12137  ;;  %v5815_v61 = vsub.f32 0.0, %v15830_v52  ;;  %v5961_v24 = vadd.f32 1.0, %v12134_v13  ;;  %v10129_v37 = vld [vmem:[#allocation25 + $0x58] sm:$0xf0] }
 0x6ca   : > { %12147 = vrcp.f32 %v5945_v18  ;;  %v8501_v47 = vmul.f32 1.442695, %v8477_v57  ;;  %v12140_v20 = vpop.eup %12139  ;;  %v6043_v40 = vmul.f32 %v15789_v59, %v15602_v14  ;;  %v6048_v45 = vmul.f32 %v12124_v12, %v16873_v10  ;;  %v16891_v59 = vld [vmem:[#allocation81_spill] sm:$0xff]  ;;  %v15863_v29 = vld [vmem:[%s16851_s10] ss:$0 sm:$0xff] }
 0x6cb   : > { %v8571_v54 = vmul.f32 0.5, %v10412_v36  ;;  %v6051_v7 = vmul.f32 %v12136_v9, %v15691_v6  ;;  %12149 = vrcp.f32 %v5958_v11  ;;  %v5623_v44 = vadd.f32 %v16890_v41, %v15370_v25  ;;  %v12741_v46 = vld [vmem:[%s13789_s9 + $0x60] sm:$0xff] }
 0x6cc   : > { %v12142_v51 = vpop.eup %12141  ;;  %12151 = vpow2.f32 %v8501_v47  ;;  %v10192_v33 = vor.u32 %v10756_v26, %v10191_v8  ;;  %v5807_v15 = vsub.f32 0.0, %v15847_v5  ;;  %v8380_v10 = vsub.f32 %v15807_v16, %v16891_v59  ;;  %v5713_v13 = vpop.f32.mrf.mxu2  ;;  %v12742_v47 = vld [vmem:[%s13789_s9 + $0x68] sm:$0xff] }
 0x6cd   : > { %8587 = vst [vmem:[%s15648_s0 + $0x30] sm:$0xff] %v8571_v54  ;;  %v5948_v6 = vadd.f32 1.0, %v12142_v51  ;;  %v10196_v12 = vor.u32 %v10755_v53, %v10193_v3  ;;  %v6256_v25 = vadd.f32 %v15863_v29, %v6255_v60  ;;  %v10132_v9 = vor.u32 %v10739_v32, %v10129_v37  ;;  %v16892_v51 = vld [vmem:[#allocation63_spill] sm:$0xff] }
 0x6ce   : > { %v12144_v14 = vpop.eup %12143  ;;  %v6257_v11 = vpop.f32.mrf.mxu0  ;;  %6995 = vmatpush.bf16.msrb.mxu0 %v10192_v33  ;;  %v5890_v36 = vmul.f32 1.442695, %v5807_v15  ;;  %v5714_v16 = vadd.f32 %v5713_v13, %v15466_v34  ;;  %v6277_v27 = vadd.f32 %v12741_v46, %v6048_v45  ;;  %v6278_v8 = vadd.f32 %v12742_v47, %v6051_v7 }
 0x6cf   : > { %v12146_v18 = vpop.eup %12145  ;;  %v8524_v56 = vmul.f32 %v12144_v14, %v8460_v63  ;;  %12153 = vrcp.f32 %v5948_v6  ;;  %7093 = vmatpush.bf16.msra.mxu2 %v10196_v12  ;;  %v6258_v54 = vadd.f32 %v15863_v29, %v6257_v11  ;;  %7044 = vmatpush.bf16.msra.mxu1 %v10132_v9  ;;  %v8431_v41 = vsub.f32 %v16892_v51, %v6043_v40  ;;  %v5671_v15 = vpop.f32.mrf.mxu1  ;;  %v16894_v11 = vld [vmem:[#allocation51_spill] sm:$0xff] }
 0x6d0   : > { %v12148_v57 = vpop.eup %12147  ;;  %12155 = vpow2.f32 %v5890_v36  ;;  %v15873_v63 = vadd.f32 %v5762_v0, %v5714_v16  ;;  %v5906_v33 = vmul.f32 1.442695, %v5815_v61  ;;  %v15876_v3 = vadd.f32 %v6277_v27, %v6256_v25  ;;  %v5764_v59 = vpop.f32.mrf.mxu3  ;;  %v16893_v0 = vld [vmem:[#allocation49_spill] sm:$0xff] }
 0x6d1   : > { %v8540_v26 = vadd.f32 %v8524_v56, %v8380_v10  ;;  %v15871_v60 = vmul.f32 %v12148_v57, %v15781_v62  ;;  %v12150_v53 = vpop.eup %12149  ;;  %v15878_v32 = vadd.f32 %v6278_v8, %v6258_v54  ;;  %12157 = vrcp.f32 %v5961_v24  ;;  %v10119_v36 = vld [vmem:[#allocation25 + $0x40] sm:$0xf] }
 0x6d2   : > { %v12152_v45 = vpop.eup %12151  ;;  %v5810_v62 = vsub.f32 0.0, %v15873_v63  ;;  %v15882_v10 = vadd.f32 %v5671_v15, %v5623_v44  ;;  %v8381_v6 = vsub.f32 %v15833_v38, %v16893_v0  ;;  %v5953_v12 = vadd.f32 1.0, %v12140_v20  ;;  %v10738_v38 = vld [vmem:[#allocation25 + $0x44] sm:$0xf0]  ;;  %v16895_v15 = vld [vmem:[#allocation57_spill] sm:$0xff] }
 0x6d3   : > { %v10413_v7 = vadd.f32 -1.0, %v8540_v26  ;;  %v8478_v14 = vsub.f32 0.0, %v15871_v60  ;;  %v8525_v61 = vmul.f32 %v12152_v45, %v15841_v22  ;;  %v6353_v40 = vpack.c.bf16 %v15878_v32, %v15876_v3 }
 0x6d4   : > { %v5896_v25 = vmul.f32 1.442695, %v5810_v62  ;;  %12159 = vpow2.f32 %v16894_v11  ;;  %v8446_v44 = vmul.f32 %v15844_v55, %v15844_v55  ;;  %v5956_v56 = vadd.f32 1.0, %v12146_v18  ;;  %v5715_v16 = vpop.f32.mrf.mxu2 }
 0x6d5   : > { %v8572_v37 = vmul.f32 0.5, %v10413_v7  ;;  %v8503_v24 = vmul.f32 1.442695, %v8478_v14  ;;  %v12154_v13 = vpop.eup %12153  ;;  %v8541_v9 = vadd.f32 %v8525_v61, %v8381_v6  ;;  %v10120_v46 = vor.u32 %v10738_v38, %v10119_v36  ;;  %6478 = vmatmul.bf16.gmra.mxu1 %v6353_v40  ;;  %6527 = vmatmul.bf16.gmra.mxu2 %v6353_v40  ;;  %v10183_v40 = vld [vmem:[#allocation25 + $0xc0] sm:$0xf]  ;;  %v12743_v36 = vld [vmem:[%s13789_s9 + $0x70] sm:$0xff] }
 0x6d6   : > { %v6260_v22 = vpop.f32.mrf.mxu0  ;;  %v12156_v57 = vpop.eup %12155  ;;  %v15894_v20 = vmul.f32 %v12154_v13, %v15804_v50  ;;  %v5716_v27 = vadd.f32 %v5715_v16, %v15466_v34  ;;  %v5818_v54 = vsub.f32 0.0, %v15882_v10  ;;  %v8447_v8 = vmul.f32 %v8431_v41, %v8431_v41 }
 0x6d7   : > { %8588 = vst [vmem:[%s15648_s0 + $0x38] sm:$0xff] %v8572_v37  ;;  %12161 = vpow2.f32 %v8503_v24  ;;  %v10414_v47 = vadd.f32 -1.0, %v8541_v9  ;;  %v5951_v55 = vadd.f32 1.0, %v12156_v57  ;;  %v12158_v18 = vpop.eup %12157  ;;  %6947 = vmatpush.bf16.msrb.mxu3 %v10120_v46  ;;  %v6054_v50 = vmul.f32 %v12150_v53, %v16882_v21  ;;  %v10753_v37 = vld [vmem:[#allocation25 + $0xc4] sm:$0xf] }
 0x6d8   : > { %12163 = vpow2.f32 %v5896_v25  ;;  %v8479_v26 = vsub.f32 0.0, %v15894_v20  ;;  %v15899_v51 = vadd.f32 %v5764_v59, %v5716_v27  ;;  %v15903_v7 = vmul.f32 1.442695, %v16895_v15  ;;  %v5767_v24 = vpop.f32.mrf.mxu3  ;;  %v10121_v9 = vld [vmem:[#allocation25 + $0x48] sm:$0xf0] }
 0x6d9   : > { %12165 = vrcp.f32 %v5953_v12  ;;  %v8573_v45 = vmul.f32 0.5, %v10414_v47  ;;  %v8462_v41 = vadd.f32 %v15531_v43, %v8446_v44  ;;  %v5912_v6 = vmul.f32 1.442695, %v5818_v54  ;;  %v10754_v12 = vld [vmem:[#allocation25 + $0xc4] sm:$0xf0]  ;;  %v16896_v43 = vld [vmem:[#allocation67_spill] sm:$0xff] }
 0x6da   : > { %12167 = vrcp.f32 %v5951_v55  ;;  %v8505_v14 = vmul.f32 1.442695, %v8479_v26  ;;  %v5813_v62 = vsub.f32 0.0, %v15899_v51  ;;  %v12160_v0 = vpop.eup %12159  ;;  %v6057_v61 = vmul.f32 %v12158_v18, %v15745_v31  ;;  %v10185_v44 = vld [vmem:[#allocation25 + $0xc8] sm:$0xf0] }
 0x6db   : > { %12169 = vrcp.f32 %v5956_v56  ;;  %8589 = vst [vmem:[%s15648_s0 + $0x40] sm:$0xff] %v8573_v45  ;;  %v8463_v21 = vadd.f32 %v12160_v0, %v8447_v8  ;;  %v6046_v53 = vmul.f32 %v15838_v35, %v15656_v42  ;;  %v6261_v25 = vadd.f32 %v15863_v29, %v6260_v22  ;;  %v10737_v56 = vld [vmem:[#allocation25 + $0x44] sm:$0xf]  ;;  %v12744_v18 = vld [vmem:[%s13789_s9 + $0x78] sm:$0xff]  ;;  %s8631_s9 = scalar_lea.hbm %s16913_s24, %s10793_s25 }
 0x6dc   : > { %12171 = vpow2.f32 %v5906_v33  ;;  %v8382_v33 = vsub.f32 %v15871_v60, %v16896_v43  ;;  %v10184_v31 = vor.u32 %v10754_v12, %v10183_v40  ;;  %v6279_v38 = vadd.f32 %v12743_v36, %v6054_v50  ;;  %v5718_v42 = vpop.f32.mrf.mxu2  ;;  %v16897_v45 = vld [vmem:[#allocation58_spill] sm:$0xff]  ;;  %v10736_v36 = vld [vmem:[#allocation25 + $0x34] sm:$0xf0]  ;;  %s8634_s19 = sshll.u32 %s8631_s9, 4  ;;  %s8635_s19 = int_to_ptr.hbm [resolvable:$true] %s8634_s19 }
 0x6dd   : > { %v12162_v59 = vpop.eup %12161  ;;  %12173 = vpow2.f32 %v8505_v14  ;;  %v10188_v46 = vor.u32 %v10753_v37, %v10185_v44  ;;  %v10124_v27 = vor.u32 %v10737_v56, %v10121_v9  ;;  %v5902_v54 = vmul.f32 1.442695, %v5813_v62  ;;  %v16900_v56 = vld [vmem:[#allocation62_spill] sm:$0xff] }
 0x6de   : > { %v12164_v13 = vpop.eup %12163  ;;  %v8526_v11 = vmul.f32 %v12162_v59, %v8462_v41  ;;  %v6262_v35 = vpop.f32.mrf.mxu0  ;;  %6996 = vmatpush.bf16.msrb.mxu0 %v10184_v31  ;;  %v5719_v60 = vadd.f32 %v5718_v42, %v15466_v34  ;;  %v6280_v8 = vadd.f32 %v12744_v18, %v6057_v61  ;;  %v8432_v50 = vsub.f32 %v16897_v45, %v6046_v53  ;;  %v16898_v53 = vld [vmem:[#allocation69_spill] sm:$0xff]  ;;  %v6313_v45 = vld [vmem:[%s16901_s15] sm:$0x3] }
 0x6df   : > { %v12166_v16 = vpop.eup %12165  ;;  %v5954_v57 = vadd.f32 1.0, %v12164_v13  ;;  %v6263_v55 = vadd.f32 %v15863_v29, %v6262_v35  ;;  %7094 = vmatpush.bf16.msra.mxu2 %v10188_v46  ;;  %7045 = vmatpush.bf16.msra.mxu1 %v10124_v27  ;;  %v15924_v62 = vadd.f32 %v6279_v38, %v6261_v25  ;;  %v10735_v46 = vld [vmem:[#allocation25 + $0x34] sm:$0xf]  ;;  %v10113_v27 = vld [vmem:[#allocation25 + $0x38] sm:$0xf0] }
 0x6e0   : > { %v12168_v22 = vpop.eup %12167  ;;  %v8542_v47 = vadd.f32 %v8526_v11, %v8382_v33  ;;  %v15926_v59 = vadd.f32 %v5767_v24, %v5719_v60  ;;  %v6049_v40 = vmul.f32 %v12166_v16, %v15720_v2  ;;  %v16899_v33 = vld [vmem:[#allocation56_spill] sm:$0xff]  ;;  %v10116_v60 = vor.u32 %v10735_v46, %v10113_v27  ;;  %v16903_v46 = vld [vmem:[#allocation55_spill] sm:$0xff] }
 0x6e1   : > { %v15918_v26 = vpop.eup %12169  ;;  %v15922_v14 = vmul.f32 %v12168_v22, %v15847_v5  ;;  %12175 = vrcp.f32 %v5954_v57  ;;  %v15928_v29 = vadd.f32 %v6280_v8, %v6263_v55  ;;  %v8383_v5 = vsub.f32 %v15894_v20, %v16898_v53  ;;  %v5769_v57 = vpop.f32.mrf.mxu3 }
 0x6e2   : > { %v12172_v0 = vpop.eup %12171  ;;  %v10415_v41 = vadd.f32 -1.0, %v8542_v47  ;;  %12177 = vpow2.f32 %v5902_v54  ;;  %v5816_v13 = vsub.f32 0.0, %v15926_v59  ;;  %v8413_v11 = vmul.f32 1.442695, %v16899_v33 }
 0x6e3   : > { %v12174_v61 = vpop.eup %12173  ;;  %12179 = vpow2.f32 %v5912_v6  ;;  %v8480_v12 = vsub.f32 0.0, %v15922_v14  ;;  %v6354_v43 = vpack.c.bf16 %v15928_v29, %v15924_v62  ;;  %v8448_v20 = vmul.f32 %v8432_v50, %v8432_v50  ;;  %7046 = vmatpush.bf16.msra.mxu1 %v10116_v60 }
 0x6e4   : > { %v8574_v37 = vmul.f32 0.5, %v10415_v41  ;;  %v8527_v25 = vmul.f32 %v12174_v61, %v8463_v21  ;;  %12181 = vpow2.f32 %v15903_v7  ;;  %v5908_v6 = vmul.f32 1.442695, %v5816_v13  ;;  %v5720_v31 = vpop.f32.mrf.mxu2  ;;  %v10111_v21 = vld [vmem:[#allocation25 + $0x30] sm:$0xf] }
 0x6e5   : > { %v8507_v24 = vmul.f32 1.442695, %v8480_v12  ;;  %v8433_v9 = vsub.f32 %v16900_v56, %v6049_v40  ;;  %v5721_v38 = vadd.f32 %v5720_v31, %v15466_v34  ;;  %6483 = vmatmul.bf16.gmra.mxu1 %v6354_v43  ;;  %v10112_v16 = vor.u32 %v10736_v36, %v10111_v21  ;;  %6532 = vmatmul.bf16.gmra.mxu2 %v6354_v43  ;;  %v10103_v61 = vld [vmem:[#allocation25 + $0x20] sm:$0xf]  ;;  %v10751_v13 = vld [vmem:[#allocation25 + $0xb4] sm:$0xf] }
 0x6e6   : > { %8590 = vst [vmem:[%s15648_s0 + $0x48] sm:$0xff] %v8574_v37  ;;  %v8543_v2 = vadd.f32 %v8527_v25, %v8383_v5  ;;  %v5959_v22 = vadd.f32 1.0, %v12172_v0  ;;  %v6052_v5 = vmul.f32 %v15918_v26, %v15760_v28  ;;  %v8384_v12 = vsub.f32 %v15922_v14, %v16895_v15  ;;  %v10175_v37 = vld [vmem:[#allocation25 + $0xb0] sm:$0xf]  ;;  %v10752_v25 = vld [vmem:[#allocation25 + $0xb4] sm:$0xf0] }
 0x6e7   : > { %v12176_v44 = vpop.eup %12175  ;;  %12183 = vpow2.f32 %v8507_v24  ;;  %v15945_v55 = vadd.f32 %v5769_v57, %v5721_v38  ;;  %6948 = vmatpush.bf16.msrb.mxu3 %v10112_v16  ;;  %v8449_v53 = vmul.f32 %v8433_v9, %v8433_v9  ;;  %v10734_v31 = vld [vmem:[#allocation25 + $0x24] sm:$0xf0]  ;;  %v15957_v9 = vperm.slane %v6313_v45, 0  ;;  %v10733_v28 = vld [vmem:[#allocation25 + $0x24] sm:$0xf] }
 0x6e8   : > { %v12178_v42 = vpop.eup %12177  ;;  %v10416_v35 = vadd.f32 -1.0, %v8543_v2  ;;  %v15943_v7 = vmul.f32 %v12176_v44, %v15873_v63  ;;  %12185 = vpow2.f32 %v5908_v6  ;;  %v10177_v2 = vld [vmem:[#allocation25 + $0xb8] sm:$0xf0]  ;;  %v10104_v56 = vor.u32 %v10734_v31, %v10103_v61  ;;  %v10105_v26 = vld [vmem:[#allocation25 + $0x28] sm:$0xf0] }
 0x6e9   : > { %v12180_v54 = vpop.eup %12179  ;;  %v5957_v47 = vadd.f32 1.0, %v12178_v42  ;;  %12187 = vpow2.f32 %v8413_v11  ;;  %v5819_v8 = vsub.f32 0.0, %v15945_v55  ;;  %v10176_v11 = vor.u32 %v10752_v25, %v10175_v37  ;;  %v10095_v14 = vld [vmem:[#allocation25 + $0x10] sm:$0xf]  ;;  %v10732_v38 = vld [vmem:[#allocation25 + $0x14] sm:$0xf0] }
 0x6ea   : > { %v8575_v34 = vmul.f32 0.5, %v10416_v35  ;;  %v8481_v18 = vsub.f32 0.0, %v15943_v7  ;;  %v12182_v63 = vpop.eup %12181  ;;  %v5962_v0 = vadd.f32 1.0, %v12180_v54  ;;  %v10108_v15 = vor.u32 %v10733_v28, %v10105_v26  ;;  %v10731_v42 = vld [vmem:[#allocation25 + $0x14] sm:$0xf]  ;;  %v16902_v16 = vld [vmem:[#allocation70_spill] sm:$0xff] }
 0x6eb   : > { %12189 = vrcp.f32 %v5957_v47  ;;  %v8464_v50 = vadd.f32 %v12182_v63, %v8448_v20  ;;  %v5914_v6 = vmul.f32 1.442695, %v5819_v8  ;;  %v10180_v20 = vor.u32 %v10751_v13, %v10177_v2  ;;  %6997 = vmatpush.bf16.msrb.mxu0 %v10176_v11  ;;  %6949 = vmatpush.bf16.msrb.mxu3 %v10104_v56  ;;  %v10750_v63 = vld [vmem:[#allocation25 + $0xa4] sm:$0xf0]  ;;  %v16904_v61 = vld [vmem:[#allocation72_spill] sm:$0xff] }
 0x6ec   : > { %8591 = vst [vmem:[%s15648_s0 + $0x50] sm:$0xff] %v8575_v34  ;;  %v8509_v41 = vmul.f32 1.442695, %v8481_v18  ;;  %12191 = vrcp.f32 %v5959_v22  ;;  %v8415_v57 = vmul.f32 1.442695, %v16902_v16  ;;  %v10096_v54 = vor.u32 %v10732_v38, %v10095_v14  ;;  %7047 = vmatpush.bf16.msra.mxu1 %v10108_v15 }
 0x6ed   : > { %v12184_v40 = vpop.eup %12183  ;;  %v15961_v27 = vmul.f32 1.442695, %v16903_v46  ;;  %7095 = vmatpush.bf16.msra.mxu2 %v10180_v20  ;;  %v10097_v22 = vld [vmem:[#allocation25 + $0x18] sm:$0xf0]  ;;  %v10167_v18 = vld [vmem:[#allocation25 + $0xa0] sm:$0xf] }
 0x6ee   : > { %v12186_v43 = vpop.eup %12185  ;;  %v8528_v24 = vmul.f32 %v12184_v40, %v8464_v50  ;;  %12193 = vpow2.f32 %v8509_v41  ;;  %v10100_v50 = vor.u32 %v10731_v42, %v10097_v22  ;;  %v8434_v40 = vsub.f32 %v16904_v61, %v6052_v5  ;;  %v10749_v37 = vld [vmem:[#allocation25 + $0xa4] sm:$0xf]  ;;  %v10169_v25 = vld [vmem:[#allocation25 + $0xa8] sm:$0xf0]  ;;  %v10087_v2 = vld [vmem:[#allocation25] sm:$0xf] }
 0x6ef   : > { %v5960_v44 = vadd.f32 1.0, %v12186_v43  ;;  %v12188_v21 = vpop.eup %12187  ;;  %12195 = vpow2.f32 %v5914_v6  ;;  %v15970_v43 = vperm.slane %v6313_v45, 1  ;;  %v10172_v11 = vor.u32 %v10749_v37, %v10169_v25  ;;  %v10730_v6 = vld [vmem:[#allocation25 + $0x4] sm:$0xf0]  ;;  %6950 = vmatpush.bf16.msrb.mxu3 %v10096_v54  ;;  %v10159_v20 = vld [vmem:[#allocation25 + $0x90] sm:$0xf] }
 0x6f0   : > { %v8544_v36 = vadd.f32 %v8528_v24, %v8384_v12  ;;  %v8465_v47 = vadd.f32 %v12188_v21, %v8449_v53  ;;  %v10168_v12 = vor.u32 %v10750_v63, %v10167_v18  ;;  %v8385_v5 = vsub.f32 %v15943_v7, %v16899_v33  ;;  %v10748_v45 = vld [vmem:[#allocation25 + $0x94] sm:$0xf0]  ;;  %7048 = vmatpush.bf16.msra.mxu1 %v10100_v50  ;;  %v10161_v38 = vld [vmem:[#allocation25 + $0x98] sm:$0xf0]  ;;  %v10729_v22 = vld [vmem:[#allocation25 + $0x4] sm:$0xf] }
 0x6f1   : > { %v12190_v35 = vpop.eup %12189  ;;  %12197 = vrcp.f32 %v5960_v44  ;;  %v10088_v56 = vor.u32 %v10730_v6, %v10087_v2  ;;  %7096 = vmatpush.bf16.msra.mxu2 %v10172_v11  ;;  %v10160_v21 = vor.u32 %v10748_v45, %v10159_v20  ;;  %v8450_v42 = vmul.f32 %v8434_v40, %v8434_v40  ;;  %v10151_v61 = vld [vmem:[#allocation25 + $0x80] sm:$0xf]  ;;  %v10746_v40 = vld [vmem:[#allocation25 + $0x84] sm:$0xf0]  ;;  %v16906_v45 = vld [vmem:[#allocation71_spill] sm:$0xff] }
 0x6f2   : > { %v10417_v60 = vadd.f32 -1.0, %v8544_v36  ;;  %v15964_v34 = vmul.f32 %v12190_v35, %v15899_v51  ;;  %v6449_v8 = vpop.f32.mrf.mxu1  ;;  %v12192_v41 = vpop.eup %12191  ;;  %12199 = vrcp.f32 %v5962_v0  ;;  %6998 = vmatpush.bf16.msrb.mxu0 %v10168_v12  ;;  %v10747_v36 = vld [vmem:[#allocation25 + $0x94] sm:$0xf] }
 0x6f3   : > { %v15968_v13 = vadd.f32 %v6449_v8, %v15957_v9  ;;  %12201 = vpow2.f32 %v8415_v57  ;;  %v6055_v0 = vmul.f32 %v12192_v41, %v15830_v52  ;;  %v10164_v57 = vor.u32 %v10747_v36, %v10161_v38  ;;  %v10089_v52 = vld [vmem:[#allocation25 + $0x8] sm:$0xf0]  ;;  %6951 = vmatpush.bf16.msrb.mxu3 %v10088_v56 }
 0x6f4   : > { %v12194_v53 = vpop.eup %12193  ;;  %v8576_v51 = vmul.f32 0.5, %v10417_v60  ;;  %v8482_v24 = vsub.f32 0.0, %v15964_v34  ;;  %v10092_v18 = vor.u32 %v10729_v22, %v10089_v52  ;;  %v16905_v8 = vld [vmem:[#allocation86_spill] sm:$0xff]  ;;  %v8419_v56 = vmul.f32 1.442695, %v16906_v45 }
 0x6f5   : > { %v8529_v31 = vmul.f32 %v12194_v53, %v8465_v47  ;;  %v6538_v44 = vsub.f32 0.0, %v15968_v13  ;;  %v12196_v28 = vpop.eup %12195  ;;  %v8435_v50 = vsub.f32 %v16905_v8, %v6055_v0  ;;  %7097 = vmatpush.bf16.msra.mxu2 %v10164_v57  ;;  %v10152_v53 = vor.u32 %v10746_v40, %v10151_v61 }
 0x6f6   : > { %8592 = vst [vmem:[%s15648_s0 + $0x58] sm:$0xff] %v8576_v51  ;;  %v8511_v26 = vmul.f32 1.442695, %v8482_v24  ;;  %v5963_v7 = vadd.f32 1.0, %v12196_v28  ;;  %6999 = vmatpush.bf16.msrb.mxu0 %v10160_v21  ;;  %v10745_v51 = vld [vmem:[#allocation25 + $0x84] sm:$0xf]  ;;  %7049 = vmatpush.bf16.msra.mxu1 %v10092_v18 }
 0x6f7   : > { %v12198_v15 = vpop.eup %12197  ;;  %v8545_v33 = vadd.f32 %v8529_v31, %v8385_v5  ;;  %v6570_v14 = vmul.f32 1.442695, %v6538_v44  ;;  %v10153_v24 = vld [vmem:[#allocation25 + $0x88] sm:$0xf0] }
 0x6f8   : > { %12203 = vpow2.f32 %v8511_v26  ;;  %v15979_v35 = vmul.f32 %v12198_v15, %v15926_v59  ;;  %v6498_v54 = vpop.f32.mrf.mxu2  ;;  %v12200_v63 = vpop.eup %12199  ;;  %v10156_v6 = vor.u32 %v10745_v51, %v10153_v24  ;;  %v8451_v26 = vmul.f32 %v8435_v50, %v8435_v50 }
 0x6f9   : > { %v10418_v47 = vadd.f32 -1.0, %v8545_v33  ;;  %12205 = vrcp.f32 %v5963_v7  ;;  %v15982_v60 = vadd.f32 %v6498_v54, %v15970_v43  ;;  %v12202_v11 = vpop.eup %12201  ;;  %v6058_v28 = vmul.f32 %v12200_v63, %v15882_v10  ;;  %v16907_v54 = vld [vmem:[#allocation85_spill] sm:$0xff] }
 0x6fa   : > { %v8483_v41 = vsub.f32 0.0, %v15979_v35  ;;  %12207 = vpow2.f32 %v6570_v14  ;;  %v6451_v59 = vpop.f32.mrf.mxu1  ;;  %v8466_v5 = vadd.f32 %v12202_v11, %v8450_v42  ;;  %7000 = vmatpush.bf16.msrb.mxu0 %v10152_v53  ;;  %7098 = vmatpush.bf16.msra.mxu2 %v10156_v6  ;;  %v8387_v63 = vsub.f32 %v15979_v35, %v16903_v46 }
 0x6fb   : > { %v8577_v12 = vmul.f32 0.5, %v10418_v47  ;;  %v6539_v37 = vsub.f32 0.0, %v15982_v60  ;;  %v15988_v25 = vadd.f32 %v6451_v59, %v15957_v9  ;;  %12209 = vpow2.f32 %v15961_v27 }
 0x6fc   : > { %v8513_v2 = vmul.f32 1.442695, %v8483_v41  ;;  %v8386_v27 = vsub.f32 %v15964_v34, %v16902_v16  ;;  %v8436_v57 = vsub.f32 %v16907_v54, %v6058_v28 }
 0x6fd   : > { %8593 = vst [vmem:[%s15648_s0 + $0x60] sm:$0xff] %v8577_v12  ;;  %v6572_v31 = vmul.f32 1.442695, %v6539_v37  ;;  %v6540_v44 = vsub.f32 0.0, %v15988_v25 }
 0x6fe   : > { %v12204_v20 = vpop.eup %12203  ;;  %12211 = vpow2.f32 %v8513_v2  ;;  %v8452_v12 = vmul.f32 %v8436_v57, %v8436_v57 }
 0x6ff   : > { %v12206_v0 = vpop.eup %12205  ;;  %v8530_v21 = vmul.f32 %v12204_v20, %v8466_v5  ;;  %v6574_v36 = vmul.f32 1.442695, %v6540_v44  ;;  %12213 = vpow2.f32 %v6572_v31 }
 0x700   : > { %v12208_v15 = vpop.eup %12207  ;;  %v6059_v33 = vmul.f32 %v12206_v0, %v15945_v55  ;;  %v6500_v7 = vpop.f32.mrf.mxu2 }
 0x701   : > { %v8546_v14 = vadd.f32 %v8530_v21, %v8386_v27  ;;  %v6634_v38 = vadd.f32 1.0, %v12208_v15  ;;  %12215 = vpow2.f32 %v6574_v36  ;;  %v15999_v42 = vadd.f32 %v6500_v7, %v15970_v43  ;;  %v12210_v10 = vpop.eup %12209 }
 0x702   : > { %12217 = vpow2.f32 %v8419_v56  ;;  %v8484_v22 = vsub.f32 0.0, %v6059_v33  ;;  %v6454_v52 = vpop.f32.mrf.mxu1  ;;  %v8467_v16 = vadd.f32 %v12210_v10, %v8451_v26  ;;  %v8388_v27 = vsub.f32 %v6059_v33, %v16906_v45 }
 0x703   : > { %v10419_v34 = vadd.f32 -1.0, %v8546_v14  ;;  %v6541_v47 = vsub.f32 0.0, %v15999_v42  ;;  %v16004_v55 = vadd.f32 %v6454_v52, %v15957_v9  ;;  %12219 = vrcp.f32 %v6634_v38 }
 0x704   : > { %v12212_v18 = vpop.eup %12211  ;;  %v8515_v8 = vmul.f32 1.442695, %v8484_v22 }
 0x705   : > { %v8578_v50 = vmul.f32 0.5, %v10419_v34  ;;  %v8531_v41 = vmul.f32 %v12212_v18, %v8467_v16  ;;  %v6576_v59 = vmul.f32 1.442695, %v6541_v47  ;;  %v6542_v61 = vsub.f32 0.0, %v16004_v55  ;;  %v12214_v40 = vpop.eup %12213 }
 0x706   : > { %12221 = vpow2.f32 %v8515_v8  ;;  %v6635_v31 = vadd.f32 1.0, %v12214_v40 }
 0x707   : > { %v12216_v37 = vpop.eup %12215  ;;  %8594 = vst [vmem:[%s15648_s0 + $0x68] sm:$0xff] %v8578_v50  ;;  %v8547_v53 = vadd.f32 %v8531_v41, %v8387_v63  ;;  %12223 = vpow2.f32 %v6576_v59  ;;  %v6578_v51 = vmul.f32 1.442695, %v6542_v61 }
 0x708   : > { %v12218_v24 = vpop.eup %12217  ;;  %v6636_v11 = vadd.f32 1.0, %v12216_v37  ;;  %v6503_v2 = vpop.f32.mrf.mxu2 }
 0x709   : > { %v10420_v46 = vadd.f32 -1.0, %v8547_v53  ;;  %v16011_v35 = vadd.f32 %v6503_v2, %v15970_v43  ;;  %v12220_v6 = vpop.eup %12219  ;;  %v8468_v5 = vadd.f32 %v12218_v24, %v8452_v12 }
 0x70a   : > { %12225 = vrcp.f32 %v6636_v11  ;;  %v6456_v44 = vpop.f32.mrf.mxu1  ;;  %v6698_v54 = vmul.f32 %v12220_v6, %v15968_v13 }
 0x70b   : > { %v8579_v20 = vmul.f32 0.5, %v10420_v46  ;;  %12227 = vpow2.f32 %v6578_v51  ;;  %v6543_v56 = vsub.f32 0.0, %v16011_v35  ;;  %v16015_v28 = vadd.f32 %v6456_v44, %v15957_v9 }
 0x70c   : > { %v12222_v0 = vpop.eup %12221  ;;  %12229 = vrcp.f32 %v6635_v31 }
 0x70d   : > { %v12224_v26 = vpop.eup %12223  ;;  %8595 = vst [vmem:[%s15648_s0 + $0x70] sm:$0xff] %v8579_v20  ;;  %v8532_v21 = vmul.f32 %v12222_v0, %v8468_v5  ;;  %v6580_v36 = vmul.f32 1.442695, %v6543_v56  ;;  %v6544_v15 = vsub.f32 0.0, %v16015_v28 }
 0x70e   : > { %v6637_v7 = vadd.f32 1.0, %v12224_v26 }
 0x70f   : > { %v8548_v14 = vadd.f32 %v8532_v21, %v8388_v27  ;;  %12231 = vpow2.f32 %v6580_v36  ;;  %v6582_v38 = vmul.f32 1.442695, %v6544_v15 }
 0x710   : > { %v12226_v10 = vpop.eup %12225  ;;  %12233 = vrcp.f32 %v6637_v7  ;;  %v6505_v57 = vpop.f32.mrf.mxu2 }
 0x711   : > { %v12228_v22 = vpop.eup %12227  ;;  %v10421_v52 = vadd.f32 -1.0, %v8548_v14  ;;  %v6700_v16 = vmul.f32 %v12226_v10, %v15988_v25  ;;  %12235 = vpow2.f32 %v6582_v38  ;;  %v16023_v45 = vadd.f32 %v6505_v57, %v15970_v43 }
 0x712   : > { %v6459_v33 = vpop.f32.mrf.mxu1  ;;  %v12230_v13 = vpop.eup %12229  ;;  %v6638_v8 = vadd.f32 1.0, %v12228_v22 }
 0x713   : > { %v8580_v34 = vmul.f32 0.5, %v10421_v52  ;;  %v6763_v47 = vpack.c.bf16 %v6700_v16, %v6698_v54  ;;  %v6545_v18 = vsub.f32 0.0, %v16023_v45  ;;  %v16027_v63 = vadd.f32 %v6459_v33, %v15957_v9 }
 0x714   : > { %v6699_v40 = vmul.f32 %v12230_v13, %v15982_v60 }
 0x715   : > { %v12232_v50 = vpop.eup %12231  ;;  %8596 = vst [vmem:[%s15648_s0 + $0x78] sm:$0xff] %v8580_v34  ;;  %v6584_v41 = vmul.f32 1.442695, %v6545_v18  ;;  %v6546_v59 = vsub.f32 0.0, %v16027_v63  ;;  %6952 = vmatmul.bf16.vlgmr.msrb.gmra.mxu3 %v6763_v47  ;;  %7050 = vmatmul.bf16.vlgmr.msra.gmra.mxu1 %v6763_v47  ;;  %s13275_s0 = scalar_lea.hbm %s16913_s24, 256 }
 0x716   : > { %v12234_v25 = vpop.eup %12233  ;;  %v6639_v2 = vadd.f32 1.0, %v12232_v50 }
 0x717   : > { %v12236_v61 = vpop.eup %12235  ;;  %v6701_v12 = vmul.f32 %v12234_v25, %v15999_v42  ;;  %12237 = vpow2.f32 %v6584_v41  ;;  %v6586_v37 = vmul.f32 1.442695, %v6546_v59 }
 0x718   : > { %12239 = vrcp.f32 %v6638_v8  ;;  %v6640_v53 = vadd.f32 1.0, %v12236_v61  ;;  %v6508_v51 = vpop.f32.mrf.mxu2 }
 0x719   : > { %v6764_v24 = vpack.c.bf16 %v6701_v12, %v6699_v40  ;;  %v16034_v11 = vadd.f32 %v6508_v51, %v15970_v43 }
 0x71a   : > { %12241 = vrcp.f32 %v6640_v53  ;;  %v6461_v46 = vpop.f32.mrf.mxu1 }
 0x71b   : > { %12243 = vpow2.f32 %v6586_v37  ;;  %v6547_v6 = vsub.f32 0.0, %v16034_v11  ;;  %v6462_v5 = vadd.f32 %v6461_v46, %v15957_v9  ;;  %7001 = vmatmul.bf16.vlgmr.msrb.gmra.mxu0 %v6764_v24  ;;  %7099 = vmatmul.bf16.vlgmr.msra.gmra.mxu2 %v6764_v24 }
 0x71c   : > { %12245 = vrcp.f32 %v6639_v2 }
 0x71d   : > { %v12238_v60 = vpop.eup %12237  ;;  %v6588_v42 = vmul.f32 1.442695, %v6547_v6  ;;  %v6548_v31 = vsub.f32 0.0, %v6462_v5 }
 0x71e   : > { %v12240_v44 = vpop.eup %12239  ;;  %v6641_v20 = vadd.f32 1.0, %v12238_v60 }
 0x71f   : > { %12247 = vpow2.f32 %v6588_v42  ;;  %v6590_v56 = vmul.f32 1.442695, %v6548_v31  ;;  %v6702_v21 = vmul.f32 %v12240_v44, %v16004_v55  ;;  %v10272_v44 = vld [vmem:[#allocation25 + $0x170] sm:$0xf] }
 0x720   : > { %v12242_v0 = vpop.eup %12241  ;;  %12249 = vrcp.f32 %v6641_v20  ;;  %v6510_v26 = vpop.f32.mrf.mxu2  ;;  %v10776_v20 = vld [vmem:[#allocation25 + $0x174] sm:$0xf0] }
 0x721   : > { %v12244_v27 = vpop.eup %12243  ;;  %v6704_v36 = vmul.f32 %v12242_v0, %v16015_v28  ;;  %12251 = vpow2.f32 %v6590_v56  ;;  %v16041_v15 = vadd.f32 %v6510_v26, %v15970_v43 }
 0x722   : > { %v6464_v7 = vpop.f32.mrf.mxu1  ;;  %v12246_v54 = vpop.eup %12245  ;;  %v6642_v57 = vadd.f32 1.0, %v12244_v27  ;;  %v10273_v27 = vor.u32 %v10776_v20, %v10272_v44  ;;  %v10264_v44 = vld [vmem:[#allocation25 + $0x160] sm:$0xf] }
 0x723   : > { %v6549_v14 = vsub.f32 0.0, %v16041_v15  ;;  %v16045_v38 = vadd.f32 %v6464_v7, %v15957_v9  ;;  %v6765_v10 = vpack.c.bf16 %v6704_v36, %v6702_v21  ;;  %v6703_v33 = vmul.f32 %v12246_v54, %v16011_v35 }
 0x724   : > { %7548 = vmatpush.bf16.msra.mxu3 %v10273_v27 }
 0x725   : > { %v12248_v22 = vpop.eup %12247  ;;  %v6592_v52 = vmul.f32 1.442695, %v6549_v14  ;;  %v6550_v16 = vsub.f32 0.0, %v16045_v38  ;;  %6957 = vmatmul.bf16.gmra.mxu3 %v6765_v10  ;;  %7055 = vmatmul.bf16.gmra.mxu1 %v6765_v10 }
 0x726   : > { %v12250_v55 = vpop.eup %12249  ;;  %v6643_v41 = vadd.f32 1.0, %v12248_v22 }
 0x727   : > { %v12252_v28 = vpop.eup %12251  ;;  %v6705_v34 = vmul.f32 %v12250_v55, %v16023_v45  ;;  %12253 = vpow2.f32 %v6592_v52  ;;  %v6594_v47 = vmul.f32 1.442695, %v6550_v16 }
 0x728   : > { %12255 = vrcp.f32 %v6642_v57  ;;  %v6644_v18 = vadd.f32 1.0, %v12252_v28  ;;  %v6513_v13 = vpop.f32.mrf.mxu2 }
 0x729   : > { %v16051_v8 = vadd.f32 %v6513_v13, %v15970_v43  ;;  %v6766_v50 = vpack.c.bf16 %v6705_v34, %v6703_v33  ;;  %v10336_v33 = vld [vmem:[#allocation25 + $0x1f0] sm:$0xf]  ;;  %v10792_v34 = vld [vmem:[#allocation25 + $0x1f4] sm:$0xf0] }
 0x72a   : > { %12257 = vrcp.f32 %v6644_v18  ;;  %v6466_v59 = vpop.f32.mrf.mxu1  ;;  %v10338_v18 = vld [vmem:[#allocation25 + $0x1f8] sm:$0xf0] }
 0x72b   : > { %12259 = vpow2.f32 %v6594_v47  ;;  %v6551_v25 = vsub.f32 0.0, %v16051_v8  ;;  %v16055_v61 = vadd.f32 %v6466_v59, %v15957_v9  ;;  %7006 = vmatmul.bf16.gmra.mxu0 %v6766_v50  ;;  %7104 = vmatmul.bf16.gmra.mxu2 %v6766_v50 }
 0x72c   : > { %12261 = vrcp.f32 %v6643_v41 }
 0x72d   : > { %v12254_v35 = vpop.eup %12253  ;;  %v6596_v45 = vmul.f32 1.442695, %v6551_v25  ;;  %v6552_v40 = vsub.f32 0.0, %v16055_v61 }
 0x72e   : > { %v12256_v12 = vpop.eup %12255  ;;  %v6645_v37 = vadd.f32 1.0, %v12254_v35 }
 0x72f   : > { %12263 = vpow2.f32 %v6596_v45  ;;  %v6598_v53 = vmul.f32 1.442695, %v6552_v40  ;;  %v6706_v46 = vmul.f32 %v12256_v12, %v16027_v63 }
 0x730   : > { %v12258_v51 = vpop.eup %12257  ;;  %12265 = vrcp.f32 %v6645_v37  ;;  %v6515_v24 = vpop.f32.mrf.mxu2 }
 0x731   : > { %v12260_v2 = vpop.eup %12259  ;;  %v6708_v6 = vmul.f32 %v12258_v51, %v6462_v5  ;;  %12267 = vpow2.f32 %v6598_v53  ;;  %v16060_v60 = vadd.f32 %v6515_v24, %v15970_v43 }
 0x732   : > { %v12262_v56 = vpop.eup %12261  ;;  %v6646_v0 = vadd.f32 1.0, %v12260_v2  ;;  %v6469_v26 = vpop.f32.mrf.mxu1 }
 0x733   : > { %v6553_v42 = vsub.f32 0.0, %v16060_v60  ;;  %v6767_v31 = vpack.c.bf16 %v6708_v6, %v6706_v46  ;;  %v16064_v7 = vadd.f32 %v6469_v26, %v15957_v9  ;;  %v6707_v14 = vmul.f32 %v12262_v56, %v16034_v11  ;;  %v10791_v11 = vld [vmem:[#allocation25 + $0x1f4] sm:$0xf]  ;;  %v10774_v26 = vld [vmem:[#allocation25 + $0x164] sm:$0xf0] }
 0x734   : > { %v10341_v59 = vor.u32 %v10791_v11, %v10338_v18  ;;  %v10265_v27 = vor.u32 %v10774_v26, %v10264_v44  ;;  %v10330_v18 = vld [vmem:[#allocation25 + $0x1e8] sm:$0xf0] }
 0x735   : > { %v12264_v21 = vpop.eup %12263  ;;  %v6600_v36 = vmul.f32 1.442695, %v6553_v42  ;;  %6962 = vmatmul.bf16.gmra.mxu3 %v6767_v31  ;;  %7060 = vmatmul.bf16.gmra.mxu1 %v6767_v31  ;;  %v6554_v54 = vsub.f32 0.0, %v16064_v7  ;;  %v10775_v42 = vld [vmem:[#allocation25 + $0x174] sm:$0xf] }
 0x736   : > { %v12266_v63 = vpop.eup %12265  ;;  %v6647_v16 = vadd.f32 1.0, %v12264_v21  ;;  %7695 = vmatpush.bf16.msrb.mxu2 %v10341_v59  ;;  %v10274_v31 = vld [vmem:[#allocation25 + $0x178] sm:$0xf0]  ;;  %7549 = vmatpush.bf16.msra.mxu3 %v10265_v27  ;;  %v10266_v26 = vld [vmem:[#allocation25 + $0x168] sm:$0xf0] }
 0x737   : > { %v12268_v5 = vpop.eup %12267  ;;  %v6709_v10 = vmul.f32 %v12266_v63, %v16041_v15  ;;  %12269 = vpow2.f32 %v6600_v36  ;;  %v6602_v22 = vmul.f32 1.442695, %v6554_v54  ;;  %v10337_v15 = vor.u32 %v10792_v34, %v10336_v33  ;;  %v10790_v34 = vld [vmem:[#allocation25 + $0x1e4] sm:$0xf0] }
 0x738   : > { %12271 = vrcp.f32 %v6646_v0  ;;  %v6648_v57 = vadd.f32 1.0, %v12268_v5  ;;  %v6518_v55 = vpop.f32.mrf.mxu2  ;;  %v10277_v0 = vor.u32 %v10775_v42, %v10274_v31 }
 0x739   : > { %v6768_v52 = vpack.c.bf16 %v6709_v10, %v6707_v14  ;;  %v16070_v28 = vadd.f32 %v6518_v55, %v15970_v43  ;;  %7597 = vmatpush.bf16.msra.mxu0 %v10337_v15 }
 0x73a   : > { %12273 = vrcp.f32 %v6648_v57  ;;  %v6471_v47 = vpop.f32.mrf.mxu1  ;;  %7646 = vmatpush.bf16.msrb.mxu1 %v10277_v0  ;;  %v10773_v0 = vld [vmem:[#allocation25 + $0x164] sm:$0xf] }
 0x73b   : > { %7011 = vmatmul.bf16.gmra.mxu0 %v6768_v52  ;;  %7109 = vmatmul.bf16.gmra.mxu2 %v6768_v52  ;;  %12275 = vpow2.f32 %v6602_v22  ;;  %v6555_v50 = vsub.f32 0.0, %v16070_v28  ;;  %v16074_v41 = vadd.f32 %v6471_v47, %v15957_v9 }
 0x73c   : > { %12277 = vrcp.f32 %v6647_v16 }
 0x73d   : > { %v12270_v13 = vpop.eup %12269  ;;  %v6604_v45 = vmul.f32 1.442695, %v6555_v50  ;;  %v6556_v40 = vsub.f32 0.0, %v16074_v41 }
 0x73e   : > { %v12272_v25 = vpop.eup %12271  ;;  %v6649_v35 = vadd.f32 1.0, %v12270_v13 }
 0x73f   : > { %v6710_v37 = vmul.f32 %v12272_v25, %v16045_v38  ;;  %v6606_v51 = vmul.f32 1.442695, %v6556_v40 }
 0x740   : > { %v12274_v12 = vpop.eup %12273  ;;  %12279 = vrcp.f32 %v6649_v35  ;;  %v6520_v24 = vpop.f32.mrf.mxu2 }
 0x741   : > { %v6712_v53 = vmul.f32 %v12274_v12, %v16055_v61  ;;  %12281 = vpow2.f32 %v6604_v45  ;;  %v12276_v2 = vpop.eup %12275  ;;  %v16080_v46 = vadd.f32 %v6520_v24, %v15970_v43 }
 0x742   : > { %12283 = vpow2.f32 %v6606_v51  ;;  %v12278_v20 = vpop.eup %12277  ;;  %v6474_v56 = vpop.f32.mrf.mxu1  ;;  %v6650_v36 = vadd.f32 1.0, %v12276_v2 }
 0x743   : > { %v6769_v6 = vpack.c.bf16 %v6712_v53, %v6710_v37  ;;  %v6557_v38 = vsub.f32 0.0, %v16080_v46  ;;  %v16084_v61 = vadd.f32 %v6474_v56, %v15957_v9  ;;  %v6711_v63 = vmul.f32 %v12278_v20, %v16051_v8  ;;  %v10328_v8 = vld [vmem:[#allocation25 + $0x1e0] sm:$0xf] }
 0x744   : > { %v10329_v15 = vor.u32 %v10790_v34, %v10328_v8  ;;  %v10320_v34 = vld [vmem:[#allocation25 + $0x1d0] sm:$0xf] }
 0x745   : > { %6967 = vmatmul.bf16.gmra.mxu3 %v6769_v6  ;;  %7065 = vmatmul.bf16.gmra.mxu1 %v6769_v6  ;;  %v6608_v14 = vmul.f32 1.442695, %v6557_v38  ;;  %v6558_v10 = vsub.f32 0.0, %v16084_v61 }
 0x746   : > { %v12280_v21 = vpop.eup %12279  ;;  %7598 = vmatpush.bf16.msra.mxu0 %v10329_v15 }
 0x747   : > { %v6713_v5 = vmul.f32 %v12280_v21, %v16060_v60  ;;  %v12282_v54 = vpop.eup %12281  ;;  %12285 = vpow2.f32 %v6608_v14  ;;  %v6610_v22 = vmul.f32 1.442695, %v6558_v10  ;;  %v10789_v60 = vld [vmem:[#allocation25 + $0x1e4] sm:$0xf]  ;;  %v10269_v21 = vor.u32 %v10773_v0, %v10266_v26 }
 0x748   : > { %v12284_v57 = vpop.eup %12283  ;;  %12287 = vrcp.f32 %v6650_v36  ;;  %v6523_v55 = vpop.f32.mrf.mxu2  ;;  %v6651_v11 = vadd.f32 1.0, %v12282_v54  ;;  %v10333_v59 = vor.u32 %v10789_v60, %v10330_v18  ;;  %v10256_v36 = vld [vmem:[#allocation25 + $0x150] sm:$0xf]  ;;  %v10788_v60 = vld [vmem:[#allocation25 + $0x1d4] sm:$0xf0] }
 0x749   : > { %v6770_v52 = vpack.c.bf16 %v6713_v5, %v6711_v63  ;;  %v6652_v16 = vadd.f32 1.0, %v12284_v57  ;;  %v16090_v33 = vadd.f32 %v6523_v55, %v15970_v43  ;;  %7647 = vmatpush.bf16.msrb.mxu1 %v10269_v21  ;;  %v10248_v21 = vld [vmem:[#allocation25 + $0x140] sm:$0xf] }
 0x74a   : > { %v6476_v47 = vpop.f32.mrf.mxu1  ;;  %7696 = vmatpush.bf16.msrb.mxu2 %v10333_v59 }
 0x74b   : > { %7016 = vmatmul.bf16.gmra.mxu0 %v6770_v52  ;;  %7114 = vmatmul.bf16.gmra.mxu2 %v6770_v52  ;;  %12289 = vrcp.f32 %v6652_v16  ;;  %v6559_v13 = vsub.f32 0.0, %v16090_v33  ;;  %v16094_v50 = vadd.f32 %v6476_v47, %v15957_v9 }
 0x74c   : > { %12291 = vpow2.f32 %v6610_v22 }
 0x74d   : > { %v12286_v25 = vpop.eup %12285  ;;  %v6612_v35 = vmul.f32 1.442695, %v6559_v13  ;;  %v6560_v45 = vsub.f32 0.0, %v16094_v50  ;;  %12293 = vrcp.f32 %v6651_v11  ;;  %v10787_v11 = vld [vmem:[#allocation25 + $0x1d4] sm:$0xf]  ;;  %v10321_v13 = vor.u32 %v10788_v60, %v10320_v34 }
 0x74e   : > { %v12288_v40 = vpop.eup %12287  ;;  %v6653_v12 = vadd.f32 1.0, %v12286_v25 }
 0x74f   : > { %12295 = vpow2.f32 %v6612_v35  ;;  %v6614_v37 = vmul.f32 1.442695, %v6560_v45  ;;  %v6714_v2 = vmul.f32 %v12288_v40, %v16064_v7  ;;  %v10772_v7 = vld [vmem:[#allocation25 + $0x154] sm:$0xf0]  ;;  %7599 = vmatpush.bf16.msra.mxu0 %v10321_v13  ;;  %v10769_v13 = vld [vmem:[#allocation25 + $0x144] sm:$0xf] }
 0x750   : > { %12297 = vrcp.f32 %v6653_v12  ;;  %v6525_v51 = vpop.f32.mrf.mxu2  ;;  %v10257_v14 = vor.u32 %v10772_v7, %v10256_v36 }
 0x751   : > { %v12290_v53 = vpop.eup %12289  ;;  %12299 = vpow2.f32 %v6614_v37  ;;  %v16100_v42 = vadd.f32 %v6525_v51, %v15970_v43 }
 0x752   : > { %v12292_v24 = vpop.eup %12291  ;;  %v6716_v6 = vmul.f32 %v12290_v53, %v16074_v41  ;;  %v6479_v31 = vpop.f32.mrf.mxu1  ;;  %7550 = vmatpush.bf16.msra.mxu3 %v10257_v14 }
 0x753   : > { %v6561_v44 = vsub.f32 0.0, %v16100_v42  ;;  %v16104_v20 = vadd.f32 %v6479_v31, %v15957_v9  ;;  %v12294_v38 = vpop.eup %12293  ;;  %v6654_v27 = vadd.f32 1.0, %v12292_v24 }
 0x754   : > { %v6771_v56 = vpack.c.bf16 %v6716_v6, %v6714_v2  ;;  %v6715_v57 = vmul.f32 %v12294_v38, %v16070_v28  ;;  %v10322_v28 = vld [vmem:[#allocation25 + $0x1d8] sm:$0xf0]  ;;  %v10771_v38 = vld [vmem:[#allocation25 + $0x154] sm:$0xf] }
 0x755   : > { %v12296_v63 = vpop.eup %12295  ;;  %v6616_v41 = vmul.f32 1.442695, %v6561_v44  ;;  %v6562_v5 = vsub.f32 0.0, %v16104_v20  ;;  %v10325_v59 = vor.u32 %v10787_v11, %v10322_v28 }
 0x756   : > { %6972 = vmatmul.bf16.gmra.mxu3 %v6771_v56  ;;  %7070 = vmatmul.bf16.gmra.mxu1 %v6771_v56  ;;  %v12298_v10 = vpop.eup %12297  ;;  %v6655_v47 = vadd.f32 1.0, %v12296_v63 }
 0x757   : > { %v12300_v54 = vpop.eup %12299  ;;  %v6717_v22 = vmul.f32 %v12298_v10, %v16080_v46  ;;  %12301 = vpow2.f32 %v6616_v41  ;;  %v6618_v16 = vmul.f32 1.442695, %v6562_v5  ;;  %7697 = vmatpush.bf16.msrb.mxu2 %v10325_v59 }
 0x758   : > { %12303 = vrcp.f32 %v6654_v27  ;;  %v6656_v52 = vadd.f32 1.0, %v12300_v54  ;;  %v6528_v55 = vpop.f32.mrf.mxu2  ;;  %v10258_v27 = vld [vmem:[#allocation25 + $0x158] sm:$0xf0] }
 0x759   : > { %v6772_v8 = vpack.c.bf16 %v6717_v22, %v6715_v57  ;;  %v16110_v15 = vadd.f32 %v6528_v55, %v15970_v43  ;;  %v10261_v7 = vor.u32 %v10771_v38, %v10258_v27  ;;  %v10786_v55 = vld [vmem:[#allocation25 + $0x1c4] sm:$0xf0]  ;;  %v10767_v38 = vld [vmem:[#allocation25 + $0x134] sm:$0xf]  ;;  %v10242_v27 = vld [vmem:[#allocation25 + $0x138] sm:$0xf0] }
 0x75a   : > { %12305 = vrcp.f32 %v6656_v52  ;;  %v6481_v18 = vpop.f32.mrf.mxu1 }
 0x75b   : > { %v16113_v46 = vadd.f32 %v6481_v18, %v15957_v9  ;;  %7021 = vmatmul.bf16.gmra.mxu0 %v6772_v8  ;;  %7119 = vmatmul.bf16.gmra.mxu2 %v6772_v8  ;;  %12307 = vpow2.f32 %v6618_v16  ;;  %v6563_v25 = vsub.f32 0.0, %v16110_v15  ;;  %v10312_v16 = vld [vmem:[#allocation25 + $0x1c0] sm:$0xf]  ;;  %v10314_v18 = vld [vmem:[#allocation25 + $0x1c8] sm:$0xf0] }
 0x75c   : > { %12309 = vrcp.f32 %v6655_v47  ;;  %7648 = vmatpush.bf16.msrb.mxu1 %v10261_v7  ;;  %v10313_v11 = vor.u32 %v10786_v55, %v10312_v16  ;;  %v10785_v47 = vld [vmem:[#allocation25 + $0x1c4] sm:$0xf]  ;;  %v10232_v7 = vld [vmem:[#allocation25 + $0x120] sm:$0xf] }
 0x75d   : > { %v12302_v35 = vpop.eup %12301  ;;  %v6564_v45 = vsub.f32 0.0, %v16113_v46  ;;  %v6620_v37 = vmul.f32 1.442695, %v6563_v25 }
 0x75e   : > { %v12304_v40 = vpop.eup %12303  ;;  %v6657_v12 = vadd.f32 1.0, %v12302_v35  ;;  %v10250_v35 = vld [vmem:[#allocation25 + $0x148] sm:$0xf0]  ;;  %7600 = vmatpush.bf16.msra.mxu0 %v10313_v11 }
 0x75f   : > { %v6622_v53 = vmul.f32 1.442695, %v6564_v45  ;;  %v6718_v24 = vmul.f32 %v12304_v40, %v16084_v61  ;;  %v10240_v45 = vld [vmem:[#allocation25 + $0x130] sm:$0xf] }
 0x760   : > { %v12306_v51 = vpop.eup %12305  ;;  %12311 = vrcp.f32 %v6657_v12  ;;  %v6530_v6 = vpop.f32.mrf.mxu2  ;;  %v10253_v12 = vor.u32 %v10769_v13, %v10250_v35 }
 0x761   : > { %v6720_v2 = vmul.f32 %v12306_v51, %v16094_v50  ;;  %12313 = vpow2.f32 %v6620_v37  ;;  %v12308_v31 = vpop.eup %12307  ;;  %v16120_v44 = vadd.f32 %v6530_v6, %v15970_v43  ;;  %v10770_v50 = vld [vmem:[#allocation25 + $0x144] sm:$0xf0]  ;;  %v10768_v37 = vld [vmem:[#allocation25 + $0x134] sm:$0xf0] }
 0x762   : > { %v6484_v56 = vpop.f32.mrf.mxu1  ;;  %12315 = vpow2.f32 %v6622_v53  ;;  %v12310_v36 = vpop.eup %12309  ;;  %v6658_v63 = vadd.f32 1.0, %v12308_v31  ;;  %v10249_v5 = vor.u32 %v10770_v50, %v10248_v21  ;;  %v10304_v53 = vld [vmem:[#allocation25 + $0x1b0] sm:$0xf]  ;;  %v10784_v51 = vld [vmem:[#allocation25 + $0x1b4] sm:$0xf0]  ;;  %7649 = vmatpush.bf16.msrb.mxu1 %v10253_v12 }
 0x763   : > { %v16123_v0 = vadd.f32 %v6484_v56, %v15957_v9  ;;  %v6773_v26 = vpack.c.bf16 %v6720_v2, %v6718_v24  ;;  %v6565_v61 = vsub.f32 0.0, %v16120_v44  ;;  %v6719_v57 = vmul.f32 %v12310_v36, %v16090_v33  ;;  %v10783_v31 = vld [vmem:[#allocation25 + $0x1b4] sm:$0xf]  ;;  %v10306_v56 = vld [vmem:[#allocation25 + $0x1b8] sm:$0xf0] }
 0x764   : > { %7551 = vmatpush.bf16.msra.mxu3 %v10249_v5  ;;  %v10241_v2 = vor.u32 %v10768_v37, %v10240_v45  ;;  %v10305_v6 = vor.u32 %v10784_v51, %v10304_v53  ;;  %v10766_v50 = vld [vmem:[#allocation25 + $0x124] sm:$0xf0] }
 0x765   : > { %v6566_v41 = vsub.f32 0.0, %v16123_v0  ;;  %v6624_v10 = vmul.f32 1.442695, %v6565_v61  ;;  %v10245_v61 = vor.u32 %v10767_v38, %v10242_v27  ;;  %v10765_v27 = vld [vmem:[#allocation25 + $0x124] sm:$0xf] }
 0x766   : > { %6977 = vmatmul.bf16.gmra.mxu3 %v6773_v26  ;;  %7075 = vmatmul.bf16.gmra.mxu1 %v6773_v26  ;;  %v12312_v14 = vpop.eup %12311 }
 0x767   : > { %v12314_v54 = vpop.eup %12313  ;;  %v6721_v22 = vmul.f32 %v12312_v14, %v16100_v42  ;;  %12317 = vpow2.f32 %v6624_v10  ;;  %v6626_v52 = vmul.f32 1.442695, %v6566_v41  ;;  %v10317_v42 = vor.u32 %v10785_v47, %v10314_v18  ;;  %7601 = vmatpush.bf16.msra.mxu0 %v10305_v6  ;;  %7650 = vmatpush.bf16.msrb.mxu1 %v10245_v61 }
 0x768   : > { %v12316_v8 = vpop.eup %12315  ;;  %12319 = vrcp.f32 %v6658_v63  ;;  %v6533_v34 = vpop.f32.mrf.mxu2  ;;  %v6659_v28 = vadd.f32 1.0, %v12314_v54  ;;  %7552 = vmatpush.bf16.msra.mxu3 %v10241_v2  ;;  %v10233_v14 = vor.u32 %v10766_v50, %v10232_v7  ;;  %v10296_v54 = vld [vmem:[#allocation25 + $0x1a0] sm:$0xf]  ;;  %v10764_v50 = vld [vmem:[#allocation25 + $0x114] sm:$0xf0] }
 0x769   : > { %v6774_v60 = vpack.c.bf16 %v6721_v22, %v6719_v57  ;;  %v6660_v59 = vadd.f32 1.0, %v12316_v8  ;;  %v16130_v25 = vadd.f32 %v6533_v34, %v15970_v43  ;;  %7698 = vmatpush.bf16.msrb.mxu2 %v10317_v42  ;;  %v10782_v57 = vld [vmem:[#allocation25 + $0x1a4] sm:$0xf0]  ;;  %v10781_v22 = vld [vmem:[#allocation25 + $0x1a4] sm:$0xf] }
 0x76a   : > { %v6486_v33 = vpop.f32.mrf.mxu1  ;;  %v10297_v55 = vor.u32 %v10782_v57, %v10296_v54  ;;  %v10298_v8 = vld [vmem:[#allocation25 + $0x1a8] sm:$0xf0] }
 0x76b   : > { %v16133_v40 = vadd.f32 %v6486_v33, %v15957_v9  ;;  %7026 = vmatmul.bf16.gmra.mxu0 %v6774_v60  ;;  %7124 = vmatmul.bf16.gmra.mxu2 %v6774_v60  ;;  %12321 = vrcp.f32 %v6660_v59  ;;  %v6567_v24 = vsub.f32 0.0, %v16130_v25  ;;  %v10309_v9 = vor.u32 %v10783_v31, %v10306_v56 }
 0x76c   : > { %12323 = vpow2.f32 %v6626_v52  ;;  %7553 = vmatpush.bf16.msra.mxu3 %v10233_v14  ;;  %v10301_v47 = vor.u32 %v10781_v22, %v10298_v8  ;;  %7602 = vmatpush.bf16.msra.mxu0 %v10297_v55  ;;  %v10226_v14 = vld [vmem:[#allocation25 + $0x118] sm:$0xf0]  ;;  %v10780_v55 = vld [vmem:[#allocation25 + $0x194] sm:$0xf0] }
 0x76d   : > { %v6568_v26 = vsub.f32 0.0, %v16133_v40  ;;  %v12318_v21 = vpop.eup %12317  ;;  %v6628_v36 = vmul.f32 1.442695, %v6567_v24  ;;  %12325 = vrcp.f32 %v6659_v28  ;;  %7699 = vmatpush.bf16.msrb.mxu2 %v10309_v9 }
 0x76e   : > { %v12320_v63 = vpop.eup %12319  ;;  %v6661_v41 = vadd.f32 1.0, %v12318_v21  ;;  %v10234_v21 = vld [vmem:[#allocation25 + $0x128] sm:$0xf0] }
 0x76f   : > { %v6630_v5 = vmul.f32 1.442695, %v6568_v26  ;;  %v6722_v60 = vmul.f32 %v12320_v63, %v16104_v20  ;;  %v10237_v7 = vor.u32 %v10765_v27, %v10234_v21 }
 0x770   : > { %12327 = vrcp.f32 %v6661_v41  ;;  %v6535_v10 = vpop.f32.mrf.mxu2 }
 0x771   : > { %v12322_v52 = vpop.eup %12321  ;;  %12329 = vpow2.f32 %v6628_v36  ;;  %v6536_v16 = vadd.f32 %v6535_v10, %v15970_v43  ;;  %7700 = vmatpush.bf16.msrb.mxu2 %v10301_v47  ;;  %v10224_v36 = vld [vmem:[#allocation25 + $0x110] sm:$0xf]  ;;  %7651 = vmatpush.bf16.msrb.mxu1 %v10237_v7 }
 0x772   : > { %v12324_v34 = vpop.eup %12323  ;;  %v6724_v11 = vmul.f32 %v12322_v52, %v16113_v46  ;;  %12331 = vpow2.f32 %v6630_v5  ;;  %v10763_v5 = vld [vmem:[#allocation25 + $0x114] sm:$0xf] }
 0x773   : > { %v6569_v18 = vsub.f32 0.0, %v6536_v16  ;;  %v12326_v13 = vpop.eup %12325  ;;  %v6662_v59 = vadd.f32 1.0, %v12324_v34  ;;  %v10229_v57 = vor.u32 %v10763_v5, %v10226_v14  ;;  %v10779_v34 = vld [vmem:[#allocation25 + $0x194] sm:$0xf] }
 0x774   : > { %v6775_v28 = vpack.c.bf16 %v6724_v11, %v6722_v60  ;;  %v6723_v35 = vmul.f32 %v12326_v13, %v16110_v15  ;;  %v10290_v60 = vld [vmem:[#allocation25 + $0x198] sm:$0xf0]  ;;  %v10216_v11 = vld [vmem:[#allocation25 + $0x100] sm:$0xf] }
 0x775   : > { %v6632_v33 = vmul.f32 1.442695, %v6569_v18  ;;  %7652 = vmatpush.bf16.msrb.mxu1 %v10229_v57  ;;  %v10293_v13 = vor.u32 %v10779_v34, %v10290_v60 }
 0x776   : > { %v12328_v42 = vpop.eup %12327  ;;  %6982 = vmatmul.bf16.gmra.mxu3 %v6775_v28  ;;  %7080 = vmatmul.bf16.gmra.mxu1 %v6775_v28  ;;  %v10762_v28 = vld [vmem:[#allocation25 + $0x104] sm:$0xf0] }
 0x777   : > { %v12330_v43 = vpop.eup %12329  ;;  %v6725_v45 = vmul.f32 %v12328_v42, %v16120_v44  ;;  %12333 = vpow2.f32 %v6632_v33  ;;  %v10217_v42 = vor.u32 %v10762_v28, %v10216_v11  ;;  %7701 = vmatpush.bf16.msrb.mxu2 %v10293_v13 }
 0x778   : > { %v12332_v20 = vpop.eup %12331  ;;  %12335 = vrcp.f32 %v6662_v59  ;;  %v6663_v37 = vadd.f32 1.0, %v12330_v43  ;;  %v10761_v59 = vld [vmem:[#allocation25 + $0x104] sm:$0xf]  ;;  %v10218_v43 = vld [vmem:[#allocation25 + $0x108] sm:$0xf0] }
 0x779   : > { %v6664_v46 = vadd.f32 1.0, %v12332_v20  ;;  %v6776_v12 = vpack.c.bf16 %v6725_v45, %v6723_v35  ;;  %v10221_v20 = vor.u32 %v10761_v59, %v10218_v43 }
 0x77b   : > { %12337 = vrcp.f32 %v6664_v46  ;;  %7031 = vmatmul.bf16.gmra.mxu0 %v6776_v12  ;;  %7129 = vmatmul.bf16.gmra.mxu2 %v6776_v12 }
 0x77c   : > { %12339 = vrcp.f32 %v6663_v37  ;;  %v10280_v37 = vld [vmem:[#allocation25 + $0x180] sm:$0xf]  ;;  %7653 = vmatpush.bf16.msrb.mxu1 %v10221_v20 }
 0x77d   : > { %v12334_v53 = vpop.eup %12333 }
 0x77e   : > { %v6665_v51 = vadd.f32 1.0, %v12334_v53  ;;  %v12336_v24 = vpop.eup %12335  ;;  %v10778_v53 = vld [vmem:[#allocation25 + $0x184] sm:$0xf0] }
 0x77f   : > { %v6726_v6 = vmul.f32 %v12336_v24, %v16123_v0  ;;  %v10225_v0 = vor.u32 %v10764_v50, %v10224_v36 }
 0x780   : > { %12341 = vrcp.f32 %v6665_v51  ;;  %v10777_v51 = vld [vmem:[#allocation25 + $0x184] sm:$0xf] }
 0x781   : > { %v12338_v2 = vpop.eup %12337  ;;  %7554 = vmatpush.bf16.msra.mxu3 %v10225_v0 }
 0x782   : > { %v6728_v15 = vmul.f32 %v12338_v2, %v16133_v40  ;;  %v12340_v44 = vpop.eup %12339  ;;  %v6762_v40 = vld [vmem:[%s16908_s5] sm:$0x3]  ;;  %s13269_s5 = sshra.s32 %s8635_s19, 4  ;;  %s13270_s5 = int_to_ptr.hbm [resolvable:$true] %s13269_s5 }
 0x783   : > { %v6727_v26 = vmul.f32 %v12340_v44, %v16130_v25  ;;  %v16148_v63 = vperm.slane %v6762_v40, 0  ;;  %v16150_v10 = vperm.slane %v6762_v40, 1  ;;  %s13271_s2 = scalar_lea.hbm %s13270_s5, 128  ;;  %p13276_p13 = scmp.lt.s32.totalorder %s13270_s5, %s16913_s24 }
 0x784   : > { %v6777_v31 = vpack.c.bf16 %v6728_v15, %v6726_v6  ;;  %v10281_v6 = vor.u32 %v10778_v53, %v10280_v37  ;;  %v10282_v15 = vld [vmem:[#allocation25 + $0x188] sm:$0xf0]  ;;  %p13272_p9 = scmp.ne.s32.totalorder %s13270_s5, %s13271_s2  ;;  %p13277_p1 = scmp.lt.s32.totalorder %s13275_s0, %s13271_s2 }
 0x785   : > { %7555 = vmatpush.bf16.msra.mxu3 %v10217_v42 }
 0x786   : > { %v12342_v56 = vpop.eup %12341  ;;  %6987 = vmatmul.bf16.gmra.mxu3 %v6777_v31  ;;  %7085 = vmatmul.bf16.gmra.mxu1 %v6777_v31  ;;  %v10285_v31 = vor.u32 %v10777_v51, %v10282_v15  ;;  %p13273_p2 = pnand %p13272_p9, %p13642_p0  ;;  %p13278_p7 = por %p13277_p1, %p13276_p13 }
 0x787   : > { %v6729_v9 = vmul.f32 %v12342_v56, %v6536_v16  ;;  %v10288_v16 = vld [vmem:[#allocation25 + $0x190] sm:$0xf] }
 0x788   : > { %v10289_v8 = vor.u32 %v10780_v55, %v10288_v16  ;;  %7702 = vmatpush.bf16.msrb.mxu2 %v10285_v31  ;;  %p13274_p4 = pneg %p13273_p2 }
 0x789   : > { %v6778_v38 = vpack.c.bf16 %v6729_v9, %v6727_v26 }
 0x78a   : > { %7603 = vmatpush.bf16.msra.mxu0 %v10289_v8  ;;  %p13279_p10 = pnand %p13278_p7, %p13274_p4 }
 0x78b   : > { %7036 = vmatmul.bf16.gmra.mxu0 %v6778_v38  ;;  %7134 = vmatmul.bf16.gmra.mxu2 %v6778_v38 }
 0x78e   : > { %7604 = vmatpush.bf16.msra.mxu0 %v10281_v6 }
 0x792   : > { %v7051_v61 = vpop.f32.mrf.mxu1 }
 0x793   : > { %v7052_v47 = vadd.f32 %v7051_v61, %v16150_v10 }
 0x798   : > { %v6953_v25 = vpop.f32.mrf.mxu3  ;;  %v7002_v41 = vpop.f32.mrf.mxu0 }
 0x799   : > { %v6954_v54 = vadd.f32 %v6953_v25, %v16148_v63 }
 0x79a   : > { %v7053_v22 = vpop.f32.mrf.mxu1 }
 0x79b   : > { %v16153_v52 = vadd.f32 %v7002_v41, %v6954_v54  ;;  %v7054_v9 = vadd.f32 %v7053_v22, %v16150_v10 }
 0x79d   : > { %v7140_v18 = vsub.f32 0.0, %v16153_v52 }
 0x79e   : > { %v7100_v33 = vpop.f32.mrf.mxu2 }
 0x79f   : > { %v7172_v35 = vmul.f32 1.442695, %v7140_v18  ;;  %v16157_v45 = vadd.f32 %v7100_v33, %v7052_v47 }
 0x7a0   : > { %v6955_v46 = vpop.f32.mrf.mxu3  ;;  %v7004_v12 = vpop.f32.mrf.mxu0 }
 0x7a1   : > { %v7141_v24 = vsub.f32 0.0, %v16157_v45  ;;  %v6956_v2 = vadd.f32 %v6955_v46, %v16148_v63  ;;  %12343 = vpow2.f32 %v7172_v35 }
 0x7a2   : > { %v7056_v44 = vpop.f32.mrf.mxu1 }
 0x7a3   : > { %v7174_v56 = vmul.f32 1.442695, %v7141_v24  ;;  %v7005_v26 = vadd.f32 %v7004_v12, %v6956_v2  ;;  %v7057_v57 = vadd.f32 %v7056_v44, %v16150_v10 }
 0x7a5   : > { %v7142_v38 = vsub.f32 0.0, %v7005_v26  ;;  %12345 = vpow2.f32 %v7174_v56 }
 0x7a6   : > { %v7102_v27 = vpop.f32.mrf.mxu2 }
 0x7a7   : > { %v7176_v21 = vmul.f32 1.442695, %v7142_v38  ;;  %v7103_v36 = vadd.f32 %v7102_v27, %v7054_v9  ;;  %v12344_v61 = vpop.eup %12343 }
 0x7a8   : > { %v6958_v7 = vpop.f32.mrf.mxu3  ;;  %v7007_v50 = vpop.f32.mrf.mxu0  ;;  %v7236_v41 = vadd.f32 1.0, %v12344_v61 }
 0x7a9   : > { %12347 = vpow2.f32 %v7176_v21  ;;  %v7143_v0 = vsub.f32 0.0, %v7103_v36  ;;  %v6959_v40 = vadd.f32 %v6958_v7, %v16148_v63 }
 0x7aa   : > { %v7058_v25 = vpop.f32.mrf.mxu1 }
 0x7ab   : > { %v7178_v5 = vmul.f32 1.442695, %v7143_v0  ;;  %v16163_v14 = vadd.f32 %v7007_v50, %v6959_v40  ;;  %v12346_v54 = vpop.eup %12345  ;;  %v7059_v46 = vadd.f32 %v7058_v25, %v16150_v10 }
 0x7ac   : > { %v7237_v60 = vadd.f32 1.0, %v12346_v54 }
 0x7ad   : > { %12349 = vpow2.f32 %v7178_v5  ;;  %v7144_v22 = vsub.f32 0.0, %v16163_v14 }
 0x7ae   : > { %v7105_v16 = vpop.f32.mrf.mxu2  ;;  %12351 = vrcp.f32 %v7236_v41 }
 0x7af   : > { %v12348_v55 = vpop.eup %12347  ;;  %v7180_v8 = vmul.f32 1.442695, %v7144_v22  ;;  %v16167_v34 = vadd.f32 %v7105_v16, %v7057_v57 }
 0x7b0   : > { %v7238_v11 = vadd.f32 1.0, %v12348_v55  ;;  %v6960_v47 = vpop.f32.mrf.mxu3  ;;  %v7009_v18 = vpop.f32.mrf.mxu0 }
 0x7b1   : > { %12353 = vpow2.f32 %v7180_v8  ;;  %v7145_v13 = vsub.f32 0.0, %v16167_v34  ;;  %v6961_v28 = vadd.f32 %v6960_v47, %v16148_v63 }
 0x7b2   : > { %12355 = vrcp.f32 %v7238_v11  ;;  %v7061_v59 = vpop.f32.mrf.mxu1 }
 0x7b3   : > { %v12350_v33 = vpop.eup %12349  ;;  %v7182_v42 = vmul.f32 1.442695, %v7145_v13  ;;  %v16171_v43 = vadd.f32 %v7009_v18, %v6961_v28  ;;  %12357 = vrcp.f32 %v7237_v60  ;;  %v7062_v40 = vadd.f32 %v7061_v59, %v16150_v10 }
 0x7b4   : > { %v7239_v35 = vadd.f32 1.0, %v12350_v33  ;;  %v12352_v20 = vpop.eup %12351 }
 0x7b5   : > { %v7146_v12 = vsub.f32 0.0, %v16171_v43  ;;  %v7300_v6 = vmul.f32 %v12352_v20, %v16153_v52 }
 0x7b6   : > { %12359 = vrcp.f32 %v7239_v35  ;;  %v7107_v37 = vpop.f32.mrf.mxu2 }
 0x7b7   : > { %v12354_v53 = vpop.eup %12353  ;;  %12361 = vpow2.f32 %v7182_v42  ;;  %v7184_v51 = vmul.f32 1.442695, %v7146_v12  ;;  %v16175_v24 = vadd.f32 %v7107_v37, %v7059_v46 }
 0x7b8   : > { %v12356_v2 = vpop.eup %12355  ;;  %v6963_v15 = vpop.f32.mrf.mxu3  ;;  %v7240_v61 = vadd.f32 1.0, %v12354_v53 }
 0x7b9   : > { %v7012_v44 = vpop.f32.mrf.mxu0  ;;  %v7302_v31 = vmul.f32 %v12356_v2, %v7005_v26  ;;  %12363 = vpow2.f32 %v7184_v51  ;;  %v7147_v56 = vsub.f32 0.0, %v16175_v24  ;;  %v6964_v9 = vadd.f32 %v6963_v15, %v16148_v63  ;;  %v12358_v38 = vpop.eup %12357 }
 0x7ba   : > { %v7063_v27 = vpop.f32.mrf.mxu1  ;;  %v7301_v52 = vmul.f32 %v12358_v38, %v16157_v45 }
 0x7bb   : > { %v7367_v21 = vpack.c.bf16 %v7302_v31, %v7300_v6  ;;  %v7186_v7 = vmul.f32 1.442695, %v7147_v56  ;;  %v16180_v50 = vadd.f32 %v7012_v44, %v6964_v9  ;;  %v7064_v42 = vadd.f32 %v7063_v27, %v16150_v10 }
 0x7bc   : > { %v12360_v0 = vpop.eup %12359 }
 0x7bd   : > { %v12362_v25 = vpop.eup %12361  ;;  %v7303_v41 = vmul.f32 %v12360_v0, %v7103_v36  ;;  %12365 = vpow2.f32 %v7186_v7  ;;  %v7148_v26 = vsub.f32 0.0, %v16180_v50  ;;  %7556 = vmatmul.bf16.vlgmr.msra.gmra.mxu3 %v7367_v21  ;;  %7654 = vmatmul.bf16.vlgmr.msrb.gmra.mxu1 %v7367_v21 }
 0x7be   : > { %v7110_v5 = vpop.f32.mrf.mxu2  ;;  %12367 = vrcp.f32 %v7240_v61  ;;  %v7241_v55 = vadd.f32 1.0, %v12362_v25 }
 0x7bf   : > { %v12364_v54 = vpop.eup %12363  ;;  %v7368_v57 = vpack.c.bf16 %v7303_v41, %v7301_v52  ;;  %v7188_v22 = vmul.f32 1.442695, %v7148_v26  ;;  %v16185_v16 = vadd.f32 %v7110_v5, %v7062_v40 }
 0x7c0   : > { %v7242_v8 = vadd.f32 1.0, %v12364_v54  ;;  %v6965_v60 = vpop.f32.mrf.mxu3 }
 0x7c1   : > { %v7014_v11 = vpop.f32.mrf.mxu0  ;;  %v7149_v47 = vsub.f32 0.0, %v16185_v16  ;;  %v6966_v45 = vadd.f32 %v6965_v60, %v16148_v63  ;;  %7605 = vmatmul.bf16.vlgmr.msra.gmra.mxu0 %v7368_v57  ;;  %7703 = vmatmul.bf16.vlgmr.msrb.gmra.mxu2 %v7368_v57 }
 0x7c2   : > { %12369 = vrcp.f32 %v7242_v8  ;;  %v7066_v36 = vpop.f32.mrf.mxu1 }
 0x7c3   : > { %v12366_v18 = vpop.eup %12365  ;;  %12371 = vpow2.f32 %v7188_v22  ;;  %v7190_v13 = vmul.f32 1.442695, %v7149_v47  ;;  %v16189_v28 = vadd.f32 %v7014_v11, %v6966_v45 }
 0x7c4   : > { %12373 = vrcp.f32 %v7241_v55  ;;  %v7243_v59 = vadd.f32 1.0, %v12366_v18  ;;  %v12368_v33 = vpop.eup %12367 }
 0x7c5   : > { %v7150_v35 = vsub.f32 0.0, %v16189_v28  ;;  %v7304_v53 = vmul.f32 %v12368_v33, %v16163_v14  ;;  %v7067_v14 = vadd.f32 %v7066_v36, %v16150_v10 }
 0x7c6   : > { %12375 = vrcp.f32 %v7243_v59  ;;  %v7112_v20 = vpop.f32.mrf.mxu2 }
 0x7c7   : > { %12377 = vpow2.f32 %v7190_v13  ;;  %v7192_v46 = vmul.f32 1.442695, %v7150_v35  ;;  %v16193_v12 = vadd.f32 %v7112_v20, %v7064_v42 }
 0x7c8   : > { %v12370_v37 = vpop.eup %12369  ;;  %v6968_v51 = vpop.f32.mrf.mxu3 }
 0x7c9   : > { %v7017_v2 = vpop.f32.mrf.mxu0  ;;  %v12372_v6 = vpop.eup %12371  ;;  %v7306_v15 = vmul.f32 %v12370_v37, %v16171_v43  ;;  %12379 = vpow2.f32 %v7192_v46  ;;  %v7151_v44 = vsub.f32 0.0, %v16193_v12  ;;  %v6969_v31 = vadd.f32 %v6968_v51, %v16148_v63 }
 0x7ca   : > { %v12374_v56 = vpop.eup %12373  ;;  %v7068_v9 = vpop.f32.mrf.mxu1  ;;  %v7244_v7 = vadd.f32 1.0, %v12372_v6 }
 0x7cb   : > { %v7194_v38 = vmul.f32 1.442695, %v7151_v44  ;;  %v16199_v27 = vadd.f32 %v7017_v2, %v6969_v31  ;;  %v7369_v21 = vpack.c.bf16 %v7306_v15, %v7304_v53  ;;  %v7305_v40 = vmul.f32 %v12374_v56, %v16167_v34 }
 0x7cc   : > { %v12376_v61 = vpop.eup %12375  ;;  %v7069_v18 = vadd.f32 %v7068_v9, %v16150_v10 }
 0x7cd   : > { %v12378_v0 = vpop.eup %12377  ;;  %v7307_v43 = vmul.f32 %v12376_v61, %v16175_v24  ;;  %12381 = vpow2.f32 %v7194_v38  ;;  %v7152_v25 = vsub.f32 0.0, %v16199_v27  ;;  %7561 = vmatmul.bf16.gmra.mxu3 %v7369_v21  ;;  %7659 = vmatmul.bf16.gmra.mxu1 %v7369_v21  ;;  %v10720_v38 = vld [vmem:[#allocation26 + $0x38] sm:$0xff] }
 0x7ce   : > { %v7115_v52 = vpop.f32.mrf.mxu2  ;;  %12383 = vrcp.f32 %v7244_v7  ;;  %v7245_v57 = vadd.f32 1.0, %v12378_v0  ;;  %8051 = vmatpush.bf16.msrb.mxu3 %v10720_v38 }
 0x7cf   : > { %v12380_v41 = vpop.eup %12379  ;;  %v7196_v26 = vmul.f32 1.442695, %v7152_v25  ;;  %v16205_v5 = vadd.f32 %v7115_v52, %v7067_v14  ;;  %v7370_v54 = vpack.c.bf16 %v7307_v43, %v7305_v40 }
 0x7d0   : > { %v7246_v22 = vadd.f32 1.0, %v12380_v41  ;;  %v6970_v55 = vpop.f32.mrf.mxu3 }
 0x7d1   : > { %v7019_v8 = vpop.f32.mrf.mxu0  ;;  %12385 = vpow2.f32 %v7196_v26  ;;  %v7153_v34 = vsub.f32 0.0, %v16205_v5  ;;  %v6971_v24 = vadd.f32 %v6970_v55, %v16148_v63  ;;  %7610 = vmatmul.bf16.gmra.mxu0 %v7370_v54  ;;  %7708 = vmatmul.bf16.gmra.mxu2 %v7370_v54 }
 0x7d2   : > { %12387 = vrcp.f32 %v7246_v22 }
 0x7d3   : > { %v12382_v60 = vpop.eup %12381  ;;  %v7198_v11 = vmul.f32 1.442695, %v7153_v34  ;;  %v16209_v47 = vadd.f32 %v7019_v8, %v6971_v24  ;;  %12389 = vrcp.f32 %v7245_v57  ;;  %v7071_v36 = vpop.f32.mrf.mxu1  ;;  %v10728_v34 = vld [vmem:[#allocation26 + $0x78] sm:$0xff] }
 0x7d4   : > { %v7247_v45 = vadd.f32 1.0, %v12382_v60  ;;  %v12384_v59 = vpop.eup %12383  ;;  %v7072_v40 = vadd.f32 %v7071_v36, %v16150_v10  ;;  %8100 = vmatpush.bf16.msrb.mxu0 %v10728_v34  ;;  %v10727_v34 = vld [vmem:[#allocation26 + $0x70] sm:$0xff] }
 0x7d5   : > { %v7154_v13 = vsub.f32 0.0, %v16209_v47  ;;  %v7308_v37 = vmul.f32 %v12384_v59, %v16180_v50 }
 0x7d6   : > { %12391 = vrcp.f32 %v7247_v45  ;;  %v7117_v33 = vpop.f32.mrf.mxu2 }
 0x7d7   : > { %v12386_v42 = vpop.eup %12385  ;;  %12393 = vpow2.f32 %v7198_v11  ;;  %v7200_v35 = vmul.f32 1.442695, %v7154_v13  ;;  %v16213_v20 = vadd.f32 %v7117_v33, %v7069_v18 }
 0x7d8   : > { %v12388_v46 = vpop.eup %12387  ;;  %v7248_v44 = vadd.f32 1.0, %v12386_v42  ;;  %8101 = vmatpush.bf16.msrb.mxu0 %v10727_v34 }
 0x7d9   : > { %v7310_v53 = vmul.f32 %v12388_v46, %v16189_v28  ;;  %12395 = vpow2.f32 %v7200_v35  ;;  %v7155_v51 = vsub.f32 0.0, %v16213_v20  ;;  %v12390_v2 = vpop.eup %12389  ;;  %v6973_v6 = vpop.f32.mrf.mxu3 }
 0x7da   : > { %v7022_v15 = vpop.f32.mrf.mxu0  ;;  %v6974_v56 = vadd.f32 %v6973_v6, %v16148_v63  ;;  %v7309_v14 = vmul.f32 %v12390_v2, %v16185_v16 }
 0x7db   : > { %v7202_v31 = vmul.f32 1.442695, %v7155_v51  ;;  %v7371_v9 = vpack.c.bf16 %v7310_v53, %v7308_v37  ;;  %v7073_v61 = vpop.f32.mrf.mxu1 }
 0x7dc   : > { %v12392_v21 = vpop.eup %12391  ;;  %v16221_v28 = vadd.f32 %v7022_v15, %v6974_v56  ;;  %v7074_v18 = vadd.f32 %v7073_v61, %v16150_v10  ;;  %v10719_v56 = vld [vmem:[#allocation26 + $0x30] sm:$0xff] }
 0x7dd   : > { %v12394_v7 = vpop.eup %12393  ;;  %v7311_v50 = vmul.f32 %v12392_v21, %v16193_v12  ;;  %12397 = vpow2.f32 %v7202_v31  ;;  %7566 = vmatmul.bf16.gmra.mxu3 %v7371_v9  ;;  %7664 = vmatmul.bf16.gmra.mxu1 %v7371_v9 }
 0x7de   : > { %12399 = vrcp.f32 %v7248_v44  ;;  %v7156_v43 = vsub.f32 0.0, %v16221_v28  ;;  %v7249_v52 = vadd.f32 1.0, %v12394_v7  ;;  %v7120_v26 = vpop.f32.mrf.mxu2  ;;  %8052 = vmatpush.bf16.msrb.mxu3 %v10719_v56 }
 0x7df   : > { %v12396_v0 = vpop.eup %12395  ;;  %v7372_v25 = vpack.c.bf16 %v7311_v50, %v7309_v14  ;;  %v16225_v16 = vadd.f32 %v7120_v26, %v7072_v40 }
 0x7e0   : > { %v7250_v41 = vadd.f32 1.0, %v12396_v0  ;;  %v7204_v54 = vmul.f32 1.442695, %v7156_v43 }
 0x7e1   : > { %7615 = vmatmul.bf16.gmra.mxu0 %v7372_v25  ;;  %7713 = vmatmul.bf16.gmra.mxu2 %v7372_v25  ;;  %v6975_v12 = vpop.f32.mrf.mxu3  ;;  %v7157_v55 = vsub.f32 0.0, %v16225_v16 }
 0x7e2   : > { %12401 = vrcp.f32 %v7250_v41  ;;  %v7024_v57 = vpop.f32.mrf.mxu0  ;;  %v6976_v8 = vadd.f32 %v6975_v12, %v16148_v63 }
 0x7e3   : > { %v12398_v22 = vpop.eup %12397  ;;  %12403 = vrcp.f32 %v7249_v52  ;;  %v7076_v60 = vpop.f32.mrf.mxu1  ;;  %v7206_v45 = vmul.f32 1.442695, %v7157_v55 }
 0x7e4   : > { %v7251_v24 = vadd.f32 1.0, %v12398_v22  ;;  %v12400_v11 = vpop.eup %12399  ;;  %12405 = vpow2.f32 %v7204_v54  ;;  %v16229_v36 = vadd.f32 %v7024_v57, %v6976_v8  ;;  %v7077_v50 = vadd.f32 %v7076_v60, %v16150_v10 }
 0x7e5   : > { %v7312_v33 = vmul.f32 %v12400_v11, %v16199_v27 }
 0x7e6   : > { %12407 = vrcp.f32 %v7251_v24  ;;  %v7158_v13 = vsub.f32 0.0, %v16229_v36  ;;  %v7122_v42 = vpop.f32.mrf.mxu2 }
 0x7e7   : > { %12409 = vpow2.f32 %v7206_v45  ;;  %v16235_v37 = vadd.f32 %v7122_v42, %v7074_v18 }
 0x7e8   : > { %v12402_v59 = vpop.eup %12401  ;;  %v7208_v46 = vmul.f32 1.442695, %v7158_v13 }
 0x7e9   : > { %v7314_v35 = vmul.f32 %v12402_v59, %v16209_v47  ;;  %v12404_v53 = vpop.eup %12403  ;;  %v6978_v51 = vpop.f32.mrf.mxu3  ;;  %v7159_v15 = vsub.f32 0.0, %v16235_v37 }
 0x7ea   : > { %v7027_v2 = vpop.f32.mrf.mxu0  ;;  %v12406_v6 = vpop.eup %12405  ;;  %12411 = vpow2.f32 %v7208_v46  ;;  %v6979_v44 = vadd.f32 %v6978_v51, %v16148_v63  ;;  %v7313_v27 = vmul.f32 %v12404_v53, %v16205_v5 }
 0x7eb   : > { %v7373_v31 = vpack.c.bf16 %v7314_v35, %v7312_v33  ;;  %v7210_v38 = vmul.f32 1.442695, %v7159_v15  ;;  %v7078_v61 = vpop.f32.mrf.mxu1  ;;  %v7252_v7 = vadd.f32 1.0, %v12406_v6 }
 0x7ec   : > { %v12408_v9 = vpop.eup %12407  ;;  %v16241_v21 = vadd.f32 %v7027_v2, %v6979_v44  ;;  %v7079_v60 = vadd.f32 %v7078_v61, %v16150_v10 }
 0x7ed   : > { %v7315_v47 = vmul.f32 %v12408_v9, %v16213_v20  ;;  %7571 = vmatmul.bf16.gmra.mxu3 %v7373_v31  ;;  %7669 = vmatmul.bf16.gmra.mxu1 %v7373_v31  ;;  %v12410_v14 = vpop.eup %12409  ;;  %12413 = vpow2.f32 %v7210_v38  ;;  %v10718_v9 = vld [vmem:[#allocation26 + $0x28] sm:$0xff] }
 0x7ee   : > { %v7160_v0 = vsub.f32 0.0, %v16241_v21  ;;  %v7125_v43 = vpop.f32.mrf.mxu2  ;;  %12415 = vrcp.f32 %v7252_v7  ;;  %v7253_v20 = vadd.f32 1.0, %v12410_v14  ;;  %8053 = vmatpush.bf16.msrb.mxu3 %v10718_v9 }
 0x7ef   : > { %v7374_v40 = vpack.c.bf16 %v7315_v47, %v7313_v27  ;;  %v16245_v52 = vadd.f32 %v7125_v43, %v7077_v50 }
 0x7f0   : > { %v12412_v25 = vpop.eup %12411  ;;  %v7212_v5 = vmul.f32 1.442695, %v7160_v0 }
 0x7f1   : > { %7620 = vmatmul.bf16.gmra.mxu0 %v7374_v40  ;;  %7718 = vmatmul.bf16.gmra.mxu2 %v7374_v40  ;;  %v7254_v41 = vadd.f32 1.0, %v12412_v25  ;;  %v6980_v26 = vpop.f32.mrf.mxu3  ;;  %v7161_v12 = vsub.f32 0.0, %v16245_v52 }
 0x7f2   : > { %v7029_v54 = vpop.f32.mrf.mxu0  ;;  %v6981_v57 = vadd.f32 %v6980_v26, %v16148_v63 }
 0x7f3   : > { %12417 = vrcp.f32 %v7254_v41  ;;  %v12414_v22 = vpop.eup %12413  ;;  %v7214_v55 = vmul.f32 1.442695, %v7161_v12  ;;  %v7081_v45 = vpop.f32.mrf.mxu1 }
 0x7f4   : > { %12419 = vpow2.f32 %v7212_v5  ;;  %v16249_v8 = vadd.f32 %v7029_v54, %v6981_v57  ;;  %v7255_v24 = vadd.f32 1.0, %v12414_v22  ;;  %v12416_v18 = vpop.eup %12415  ;;  %v7082_v7 = vadd.f32 %v7081_v45, %v16150_v10  ;;  %v10726_v57 = vld [vmem:[#allocation26 + $0x68] sm:$0xff] }
 0x7f5   : > { %12421 = vrcp.f32 %v7253_v20  ;;  %v7316_v46 = vmul.f32 %v12416_v18, %v16221_v28  ;;  %8102 = vmatpush.bf16.msrb.mxu0 %v10726_v57 }
 0x7f6   : > { %v7162_v11 = vsub.f32 0.0, %v16249_v8  ;;  %12423 = vrcp.f32 %v7255_v24  ;;  %v7127_v13 = vpop.f32.mrf.mxu2 }
 0x7f7   : > { %12425 = vpow2.f32 %v7214_v55  ;;  %v16253_v33 = vadd.f32 %v7127_v13, %v7079_v60 }
 0x7f8   : > { %v7216_v59 = vmul.f32 1.442695, %v7162_v11 }
 0x7f9   : > { %v12418_v42 = vpop.eup %12417  ;;  %v7163_v51 = vsub.f32 0.0, %v16253_v33  ;;  %v6983_v15 = vpop.f32.mrf.mxu3 }
 0x7fa   : > { %v12420_v35 = vpop.eup %12419  ;;  %v7318_v53 = vmul.f32 %v12418_v42, %v16229_v36  ;;  %12427 = vpow2.f32 %v7216_v59  ;;  %v7032_v2 = vpop.f32.mrf.mxu0  ;;  %v6984_v31 = vadd.f32 %v6983_v15, %v16148_v63 }
 0x7fb   : > { %v12422_v6 = vpop.eup %12421  ;;  %v7218_v44 = vmul.f32 1.442695, %v7163_v51  ;;  %v7256_v47 = vadd.f32 1.0, %v12420_v35  ;;  %v7083_v0 = vpop.f32.mrf.mxu1 }
 0x7fc   : > { %v7375_v56 = vpack.c.bf16 %v7318_v53, %v7316_v46  ;;  %v12424_v27 = vpop.eup %12423  ;;  %v7317_v61 = vmul.f32 %v12422_v6, %v16225_v16  ;;  %v16261_v36 = vadd.f32 %v7032_v2, %v6984_v31  ;;  %v7084_v60 = vadd.f32 %v7083_v0, %v16150_v10 }
 0x7fd   : > { %v12426_v38 = vpop.eup %12425  ;;  %v7319_v28 = vmul.f32 %v12424_v27, %v16235_v37  ;;  %12429 = vpow2.f32 %v7218_v44 }
 0x7fe   : > { %7576 = vmatmul.bf16.gmra.mxu3 %v7375_v56  ;;  %7674 = vmatmul.bf16.gmra.mxu1 %v7375_v56  ;;  %v7164_v50 = vsub.f32 0.0, %v16261_v36  ;;  %v7130_v40 = vpop.f32.mrf.mxu2  ;;  %12431 = vrcp.f32 %v7256_v47  ;;  %v7257_v25 = vadd.f32 1.0, %v12426_v38  ;;  %v10717_v56 = vld [vmem:[#allocation26 + $0x20] sm:$0xff] }
 0x7ff   : > { %v7376_v43 = vpack.c.bf16 %v7319_v28, %v7317_v61  ;;  %v16265_v16 = vadd.f32 %v7130_v40, %v7082_v7  ;;  %8054 = vmatpush.bf16.msrb.mxu3 %v10717_v56  ;;  %v10725_v7 = vld [vmem:[#allocation26 + $0x60] sm:$0xff] }
 0x800   : > { %v12428_v14 = vpop.eup %12427  ;;  %v7220_v37 = vmul.f32 1.442695, %v7164_v50  ;;  %8103 = vmatpush.bf16.msrb.mxu0 %v10725_v7 }
 0x801   : > { %v7258_v5 = vadd.f32 1.0, %v12428_v14  ;;  %7625 = vmatmul.bf16.gmra.mxu0 %v7376_v43  ;;  %7723 = vmatmul.bf16.gmra.mxu2 %v7376_v43  ;;  %v7165_v41 = vsub.f32 0.0, %v16265_v16  ;;  %v6985_v26 = vpop.f32.mrf.mxu3  ;;  %v10716_v14 = vld [vmem:[#allocation26 + $0x18] sm:$0xff] }
 0x802   : > { %v7034_v20 = vpop.f32.mrf.mxu0  ;;  %v6986_v12 = vadd.f32 %v6985_v26, %v16148_v63  ;;  %v10715_v26 = vld [vmem:[#allocation26 + $0x10] sm:$0xff] }
 0x803   : > { %12433 = vrcp.f32 %v7258_v5  ;;  %v12430_v54 = vpop.eup %12429  ;;  %v7222_v55 = vmul.f32 1.442695, %v7165_v41  ;;  %v7086_v46 = vpop.f32.mrf.mxu1  ;;  %8055 = vmatpush.bf16.msrb.mxu3 %v10716_v14 }
 0x804   : > { %12435 = vrcp.f32 %v7257_v25  ;;  %v7259_v22 = vadd.f32 1.0, %v12430_v54  ;;  %v16269_v34 = vadd.f32 %v7034_v20, %v6986_v12  ;;  %v12432_v24 = vpop.eup %12431  ;;  %v7087_v28 = vadd.f32 %v7086_v46, %v16150_v10 }
 0x805   : > { %12437 = vpow2.f32 %v7220_v37  ;;  %v7320_v59 = vmul.f32 %v12432_v24, %v16241_v21 }
 0x806   : > { %12439 = vrcp.f32 %v7259_v22  ;;  %v7166_v11 = vsub.f32 0.0, %v16269_v34  ;;  %v7132_v45 = vpop.f32.mrf.mxu2 }
 0x807   : > { %12441 = vpow2.f32 %v7222_v55  ;;  %v16273_v13 = vadd.f32 %v7132_v45, %v7084_v60  ;;  %8056 = vmatpush.bf16.msrb.mxu3 %v10715_v26 }
 0x808   : > { %v7224_v35 = vmul.f32 1.442695, %v7166_v11 }
 0x809   : > { %v12434_v18 = vpop.eup %12433  ;;  %v7167_v51 = vsub.f32 0.0, %v16273_v13  ;;  %v6988_v2 = vpop.f32.mrf.mxu3 }
 0x80a   : > { %v7322_v42 = vmul.f32 %v12434_v18, %v16249_v8  ;;  %v12436_v53 = vpop.eup %12435  ;;  %v7037_v6 = vpop.f32.mrf.mxu0  ;;  %12443 = vpow2.f32 %v7224_v35  ;;  %v6989_v44 = vadd.f32 %v6988_v2, %v16148_v63 }
 0x80b   : > { %v12438_v15 = vpop.eup %12437  ;;  %v7226_v27 = vmul.f32 1.442695, %v7167_v51  ;;  %v7321_v21 = vmul.f32 %v12436_v53, %v16245_v52  ;;  %v10724_v52 = vld [vmem:[#allocation26 + $0x58] sm:$0xff]  ;;  %v7088_v54 = vpop.f32.mrf.mxu1 }
 0x80c   : > { %v7377_v31 = vpack.c.bf16 %v7322_v42, %v7320_v59  ;;  %v12440_v9 = vpop.eup %12439  ;;  %v16281_v38 = vadd.f32 %v7037_v6, %v6989_v44  ;;  %v7260_v61 = vadd.f32 1.0, %v12438_v15  ;;  %8104 = vmatpush.bf16.msrb.mxu0 %v10724_v52  ;;  %v7089_v11 = vadd.f32 %v7088_v54, %v16150_v10 }
 0x80d   : > { %v12442_v47 = vpop.eup %12441  ;;  %v7323_v8 = vmul.f32 %v12440_v9, %v16253_v33  ;;  %12445 = vpow2.f32 %v7226_v27 }
 0x80e   : > { %7581 = vmatmul.bf16.gmra.mxu3 %v7377_v31  ;;  %7679 = vmatmul.bf16.gmra.mxu1 %v7377_v31  ;;  %v7261_v50 = vadd.f32 1.0, %v12442_v47  ;;  %v7168_v0 = vsub.f32 0.0, %v16281_v38  ;;  %v7135_v40 = vpop.f32.mrf.mxu2  ;;  %12447 = vrcp.f32 %v7260_v61 }
 0x80f   : > { %v7378_v43 = vpack.c.bf16 %v7323_v8, %v7321_v21  ;;  %v16285_v25 = vadd.f32 %v7135_v40, %v7087_v28 }
 0x810   : > { %v12444_v33 = vpop.eup %12443  ;;  %v7228_v5 = vmul.f32 1.442695, %v7168_v0  ;;  %12449 = vrcp.f32 %v7261_v50 }
 0x811   : > { %7630 = vmatmul.bf16.gmra.mxu0 %v7378_v43  ;;  %7728 = vmatmul.bf16.gmra.mxu2 %v7378_v43  ;;  %v7262_v37 = vadd.f32 1.0, %v12444_v33  ;;  %v7169_v20 = vsub.f32 0.0, %v16285_v25  ;;  %v6990_v41 = vpop.f32.mrf.mxu3 }
 0x812   : > { %v6991_v12 = vadd.f32 %v6990_v41, %v16148_v63  ;;  %v7039_v55 = vpop.f32.mrf.mxu0  ;;  %v10723_v63 = vld [vmem:[#allocation26 + $0x50] sm:$0xff] }
 0x813   : > { %v12446_v57 = vpop.eup %12445  ;;  %12451 = vrcp.f32 %v7262_v37  ;;  %v7230_v22 = vmul.f32 1.442695, %v7169_v20  ;;  %8105 = vmatpush.bf16.msrb.mxu0 %v10723_v63  ;;  %v10714_v37 = vld [vmem:[#allocation26 + $0x8] sm:$0xff]  ;;  %v10213_v20 = vld [vmem:[%s16909_s13 + $0x2] sm:$0x3] }
 0x814   : > { %v7263_v24 = vadd.f32 1.0, %v12446_v57  ;;  %12453 = vpow2.f32 %v7228_v5  ;;  %v7040_v60 = vadd.f32 %v7039_v55, %v6991_v12  ;;  %v12448_v59 = vpop.eup %12447  ;;  %v16299_v41 = vperm.slane %v10213_v20, 0  ;;  %8057 = vmatpush.bf16.msrb.mxu3 %v10714_v37  ;;  %v10722_v55 = vld [vmem:[#allocation26 + $0x48] sm:$0xff] }
 0x815   : > { %v7324_v6 = vmul.f32 %v12448_v59, %v16261_v36  ;;  %v16301_v26 = vperm.slane %v10213_v20, 1 }
 0x816   : > { %12455 = vrcp.f32 %v7263_v24  ;;  %v7170_v45 = vsub.f32 0.0, %v7040_v60  ;;  %v7137_v18 = vpop.f32.mrf.mxu2  ;;  %v12450_v35 = vpop.eup %12449 }
 0x817   : > { %12457 = vpow2.f32 %v7230_v22  ;;  %v7138_v42 = vadd.f32 %v7137_v18, %v7089_v11  ;;  %v7325_v9 = vmul.f32 %v12450_v35, %v16265_v16  ;;  %8106 = vmatpush.bf16.msrb.mxu0 %v10722_v55  ;;  %v10721_v35 = vld [vmem:[#allocation26 + $0x40] sm:$0xff] }
 0x818   : > { %v7232_v46 = vmul.f32 1.442695, %v7170_v45  ;;  %v10713_v45 = vld [vmem:[#allocation26] sm:$0xff] }
 0x819   : > { %v12452_v53 = vpop.eup %12451  ;;  %v7171_v51 = vsub.f32 0.0, %v7138_v42  ;;  %8058 = vmatpush.bf16.msrb.mxu3 %v10713_v45 }
 0x81a   : > { %v12454_v2 = vpop.eup %12453  ;;  %v7326_v15 = vmul.f32 %v12452_v53, %v16269_v34  ;;  %12459 = vpow2.f32 %v7232_v46 }
 0x81b   : > { %v7234_v10 = vmul.f32 1.442695, %v7171_v51  ;;  %v7264_v47 = vadd.f32 1.0, %v12454_v2  ;;  %8107 = vmatpush.bf16.msrb.mxu0 %v10721_v35 }
 0x81c   : > { %v12456_v44 = vpop.eup %12455  ;;  %v7379_v31 = vpack.c.bf16 %v7326_v15, %v7324_v6 }
 0x81d   : > { %v12458_v56 = vpop.eup %12457  ;;  %v7327_v27 = vmul.f32 %v12456_v44, %v16273_v13  ;;  %12461 = vpow2.f32 %v7234_v10 }
 0x81e   : > { %7586 = vmatmul.bf16.gmra.mxu3 %v7379_v31  ;;  %7684 = vmatmul.bf16.gmra.mxu1 %v7379_v31  ;;  %v7265_v61 = vadd.f32 1.0, %v12458_v56  ;;  %12463 = vrcp.f32 %v7264_v47 }
 0x81f   : > { %v7380_v21 = vpack.c.bf16 %v7327_v27, %v7325_v9 }
 0x820   : > { %v12460_v8 = vpop.eup %12459 }
 0x821   : > { %v7266_v36 = vadd.f32 1.0, %v12460_v8  ;;  %7635 = vmatmul.bf16.gmra.mxu0 %v7380_v21  ;;  %7733 = vmatmul.bf16.gmra.mxu2 %v7380_v21 }
 0x823   : > { %v12462_v34 = vpop.eup %12461  ;;  %12465 = vrcp.f32 %v7266_v36 }
 0x824   : > { %12467 = vrcp.f32 %v7265_v61  ;;  %v7267_v28 = vadd.f32 1.0, %v12462_v34  ;;  %v12464_v7 = vpop.eup %12463 }
 0x825   : > { %v7328_v13 = vmul.f32 %v12464_v7, %v16281_v38 }
 0x826   : > { %12469 = vrcp.f32 %v7267_v28 }
 0x829   : > { %v12466_v16 = vpop.eup %12465 }
 0x82a   : > { %v12468_v14 = vpop.eup %12467  ;;  %v7330_v50 = vmul.f32 %v12466_v16, %v7040_v60 }
 0x82b   : > { %v7329_v43 = vmul.f32 %v12468_v14, %v16285_v25 }
 0x82c   : > { %v12470_v0 = vpop.eup %12469  ;;  %v7381_v40 = vpack.c.bf16 %v7330_v50, %v7328_v13 }
 0x82d   : > { %v7331_v52 = vmul.f32 %v12470_v0, %v7138_v42 }
 0x82e   : > { %7591 = vmatmul.bf16.gmra.mxu3 %v7381_v40  ;;  %7689 = vmatmul.bf16.gmra.mxu1 %v7381_v40 }
 0x82f   : > { %v7382_v33 = vpack.c.bf16 %v7331_v52, %v7329_v43 }
 0x831   : > { %7640 = vmatmul.bf16.gmra.mxu0 %v7382_v33  ;;  %7738 = vmatmul.bf16.gmra.mxu2 %v7382_v33 }
 0x83a   : > { %v7655_v5 = vpop.f32.mrf.mxu1 }
 0x83b   : > { %v7656_v57 = vadd.f32 %v7655_v5, %v16301_v26 }
 0x83e   : > { %v7606_v38 = vpop.f32.mrf.mxu0 }
 0x840   : > { %v7557_v54 = vpop.f32.mrf.mxu3 }
 0x841   : > { %v7558_v25 = vadd.f32 %v7557_v54, %v16299_v41 }
 0x842   : > { %v7657_v12 = vpop.f32.mrf.mxu1 }
 0x843   : > { %v16305_v22 = vadd.f32 %v7606_v38, %v7558_v25  ;;  %v7658_v2 = vadd.f32 %v7657_v12, %v16301_v26 }
 0x844   : > { %v7704_v24 = vpop.f32.mrf.mxu2 }
 0x845   : > { %v7744_v60 = vsub.f32 0.0, %v16305_v22  ;;  %v16308_v11 = vadd.f32 %v7704_v24, %v7656_v57 }
 0x846   : > { %v7608_v18 = vpop.f32.mrf.mxu0 }
 0x847   : > { %v7776_v59 = vmul.f32 1.442695, %v7744_v60  ;;  %v7745_v42 = vsub.f32 0.0, %v16308_v11 }
 0x848   : > { %v7559_v46 = vpop.f32.mrf.mxu3 }
 0x849   : > { %v7778_v63 = vmul.f32 1.442695, %v7745_v42  ;;  %v7560_v53 = vadd.f32 %v7559_v46, %v16299_v41  ;;  %12471 = vpow2.f32 %v7776_v59 }
 0x84a   : > { %v7660_v51 = vpop.f32.mrf.mxu1 }
 0x84b   : > { %12473 = vpow2.f32 %v7778_v63  ;;  %v7609_v6 = vadd.f32 %v7608_v18, %v7560_v53  ;;  %v7661_v28 = vadd.f32 %v7660_v51, %v16301_v26 }
 0x84c   : > { %v7706_v15 = vpop.f32.mrf.mxu2 }
 0x84d   : > { %v7746_v10 = vsub.f32 0.0, %v7609_v6  ;;  %v7707_v44 = vadd.f32 %v7706_v15, %v7658_v2 }
 0x84e   : > { %v7611_v31 = vpop.f32.mrf.mxu0 }
 0x84f   : > { %v7780_v56 = vmul.f32 1.442695, %v7746_v10  ;;  %v7747_v9 = vsub.f32 0.0, %v7707_v44  ;;  %v12472_v27 = vpop.eup %12471 }
 0x850   : > { %v7562_v47 = vpop.f32.mrf.mxu3  ;;  %v7840_v34 = vadd.f32 1.0, %v12472_v27 }
 0x851   : > { %v12474_v21 = vpop.eup %12473  ;;  %12475 = vpow2.f32 %v7780_v56  ;;  %v7782_v8 = vmul.f32 1.442695, %v7747_v9  ;;  %v7563_v61 = vadd.f32 %v7562_v47, %v16299_v41 }
 0x852   : > { %v7662_v36 = vpop.f32.mrf.mxu1  ;;  %v7841_v16 = vadd.f32 1.0, %v12474_v21 }
 0x853   : > { %12477 = vpow2.f32 %v7782_v8  ;;  %v16315_v7 = vadd.f32 %v7611_v31, %v7563_v61  ;;  %v7663_v12 = vadd.f32 %v7662_v36, %v16301_v26 }
 0x854   : > { %v7709_v14 = vpop.f32.mrf.mxu2  ;;  %12479 = vrcp.f32 %v7840_v34 }
 0x855   : > { %v7748_v13 = vsub.f32 0.0, %v16315_v7  ;;  %v16318_v50 = vadd.f32 %v7709_v14, %v7661_v28  ;;  %12481 = vrcp.f32 %v7841_v16 }
 0x856   : > { %v7613_v0 = vpop.f32.mrf.mxu0 }
 0x857   : > { %v12476_v40 = vpop.eup %12475  ;;  %v7784_v43 = vmul.f32 1.442695, %v7748_v13  ;;  %v7749_v52 = vsub.f32 0.0, %v16318_v50 }
 0x858   : > { %v7842_v33 = vadd.f32 1.0, %v12476_v40  ;;  %v7564_v5 = vpop.f32.mrf.mxu3 }
 0x859   : > { %v12478_v37 = vpop.eup %12477  ;;  %12483 = vpow2.f32 %v7784_v43  ;;  %v7786_v20 = vmul.f32 1.442695, %v7749_v52  ;;  %v7565_v38 = vadd.f32 %v7564_v5, %v16299_v41 }
 0x85a   : > { %12485 = vrcp.f32 %v7842_v33  ;;  %v7843_v54 = vadd.f32 1.0, %v12478_v37  ;;  %v7665_v25 = vpop.f32.mrf.mxu1  ;;  %v12480_v24 = vpop.eup %12479 }
 0x85b   : > { %12487 = vpow2.f32 %v7786_v20  ;;  %v16323_v57 = vadd.f32 %v7613_v0, %v7565_v38  ;;  %v12482_v18 = vpop.eup %12481  ;;  %v7904_v53 = vmul.f32 %v12480_v24, %v16305_v22  ;;  %v7666_v47 = vadd.f32 %v7665_v25, %v16301_v26 }
 0x85c   : > { %12489 = vrcp.f32 %v7843_v54  ;;  %v7711_v55 = vpop.f32.mrf.mxu2  ;;  %v7905_v9 = vmul.f32 %v12482_v18, %v16308_v11 }
 0x85d   : > { %v7750_v60 = vsub.f32 0.0, %v16323_v57  ;;  %v16326_v45 = vadd.f32 %v7711_v55, %v7663_v12 }
 0x85e   : > { %v7616_v59 = vpop.f32.mrf.mxu0 }
 0x85f   : > { %v12484_v42 = vpop.eup %12483  ;;  %v7788_v35 = vmul.f32 1.442695, %v7750_v60  ;;  %v7751_v46 = vsub.f32 0.0, %v16326_v45 }
 0x860   : > { %v12486_v63 = vpop.eup %12485  ;;  %v7567_v51 = vpop.f32.mrf.mxu3  ;;  %v7844_v27 = vadd.f32 1.0, %v12484_v42 }
 0x861   : > { %v12488_v2 = vpop.eup %12487  ;;  %v7906_v15 = vmul.f32 %v12486_v63, %v7609_v6  ;;  %12491 = vpow2.f32 %v7788_v35  ;;  %v7790_v10 = vmul.f32 1.442695, %v7751_v46  ;;  %v7568_v31 = vadd.f32 %v7567_v51, %v16299_v41 }
 0x862   : > { %v12490_v56 = vpop.eup %12489  ;;  %v7667_v21 = vpop.f32.mrf.mxu1  ;;  %v7845_v22 = vadd.f32 1.0, %v12488_v2 }
 0x863   : > { %v7936_v8 = vpack.c.bf16 %v7906_v15, %v7904_v53  ;;  %v7907_v61 = vmul.f32 %v12490_v56, %v7707_v44  ;;  %12493 = vpow2.f32 %v7790_v10  ;;  %v16333_v36 = vadd.f32 %v7616_v59, %v7568_v31 }
 0x864   : > { %v7714_v34 = vpop.f32.mrf.mxu2  ;;  %12495 = vrcp.f32 %v7844_v27  ;;  %v7668_v20 = vadd.f32 %v7667_v21, %v16301_v26 }
 0x865   : > { %v7937_v28 = vpack.c.bf16 %v7907_v61, %v7905_v9  ;;  %v7752_v6 = vsub.f32 0.0, %v16333_v36  ;;  %v16336_v16 = vadd.f32 %v7714_v34, %v7666_v47  ;;  %8059 = vmatmul.bf16.vlgmr.msrb.gmra.mxu3 %v7936_v8  ;;  %12497 = vrcp.f32 %v7845_v22 }
 0x866   : > { %v7618_v14 = vpop.f32.mrf.mxu0 }
 0x867   : > { %v12492_v13 = vpop.eup %12491  ;;  %v7792_v11 = vmul.f32 1.442695, %v7752_v6  ;;  %v7753_v0 = vsub.f32 0.0, %v16336_v16  ;;  %8108 = vmatmul.bf16.vlgmr.msrb.gmra.mxu0 %v7937_v28 }
 0x868   : > { %v7846_v44 = vadd.f32 1.0, %v12492_v13  ;;  %v7569_v40 = vpop.f32.mrf.mxu3 }
 0x869   : > { %v12494_v43 = vpop.eup %12493  ;;  %12499 = vpow2.f32 %v7792_v11  ;;  %v7794_v52 = vmul.f32 1.442695, %v7753_v0  ;;  %v7570_v33 = vadd.f32 %v7569_v40, %v16299_v41 }
 0x86a   : > { %12501 = vrcp.f32 %v7846_v44  ;;  %v7847_v5 = vadd.f32 1.0, %v12494_v43  ;;  %v7670_v37 = vpop.f32.mrf.mxu1  ;;  %v12496_v25 = vpop.eup %12495 }
 0x86b   : > { %12503 = vpow2.f32 %v7794_v52  ;;  %v16341_v38 = vadd.f32 %v7618_v14, %v7570_v33  ;;  %v12498_v24 = vpop.eup %12497  ;;  %v7908_v10 = vmul.f32 %v12496_v25, %v16315_v7  ;;  %v7671_v56 = vadd.f32 %v7670_v37, %v16301_v26 }
 0x86c   : > { %12505 = vrcp.f32 %v7847_v5  ;;  %v7716_v54 = vpop.f32.mrf.mxu2  ;;  %v7909_v31 = vmul.f32 %v12498_v24, %v16318_v50 }
 0x86d   : > { %v7754_v12 = vsub.f32 0.0, %v16341_v38  ;;  %v16344_v55 = vadd.f32 %v7716_v54, %v7668_v20 }
 0x86e   : > { %v7621_v60 = vpop.f32.mrf.mxu0 }
 0x86f   : > { %v12500_v18 = vpop.eup %12499  ;;  %v7796_v59 = vmul.f32 1.442695, %v7754_v12  ;;  %v7755_v42 = vsub.f32 0.0, %v16344_v55 }
 0x870   : > { %v12502_v35 = vpop.eup %12501  ;;  %v7572_v46 = vpop.f32.mrf.mxu3  ;;  %v7848_v47 = vadd.f32 1.0, %v12500_v18 }
 0x871   : > { %v12504_v63 = vpop.eup %12503  ;;  %v7910_v53 = vmul.f32 %v12502_v35, %v16323_v57  ;;  %12507 = vpow2.f32 %v7796_v59  ;;  %v7798_v51 = vmul.f32 1.442695, %v7755_v42  ;;  %v7573_v2 = vadd.f32 %v7572_v46, %v16299_v41 }
 0x872   : > { %v12506_v15 = vpop.eup %12505  ;;  %v7672_v9 = vpop.f32.mrf.mxu1  ;;  %v7849_v8 = vadd.f32 1.0, %v12504_v63 }
 0x873   : > { %v7911_v27 = vmul.f32 %v12506_v15, %v16326_v45  ;;  %12509 = vpow2.f32 %v7798_v51  ;;  %v16353_v21 = vadd.f32 %v7621_v60, %v7573_v2  ;;  %v7938_v61 = vpack.c.bf16 %v7910_v53, %v7908_v10 }
 0x874   : > { %v7719_v57 = vpop.f32.mrf.mxu2  ;;  %12511 = vrcp.f32 %v7848_v47  ;;  %v7673_v43 = vadd.f32 %v7672_v9, %v16301_v26 }
 0x875   : > { %v7756_v22 = vsub.f32 0.0, %v16353_v21  ;;  %v16356_v34 = vadd.f32 %v7719_v57, %v7671_v56  ;;  %v7939_v28 = vpack.c.bf16 %v7911_v27, %v7909_v31  ;;  %8064 = vmatmul.bf16.gmra.mxu3 %v7938_v61  ;;  %12513 = vrcp.f32 %v7849_v8 }
 0x876   : > { %v7623_v7 = vpop.f32.mrf.mxu0 }
 0x877   : > { %v12508_v50 = vpop.eup %12507  ;;  %v7800_v6 = vmul.f32 1.442695, %v7756_v22  ;;  %v7757_v14 = vsub.f32 0.0, %v16356_v34  ;;  %8113 = vmatmul.bf16.gmra.mxu0 %v7939_v28 }
 0x878   : > { %v7850_v45 = vadd.f32 1.0, %v12508_v50  ;;  %v7574_v13 = vpop.f32.mrf.mxu3 }
 0x879   : > { %v12510_v11 = vpop.eup %12509  ;;  %12515 = vpow2.f32 %v7800_v6  ;;  %v7802_v0 = vmul.f32 1.442695, %v7757_v14  ;;  %v7575_v44 = vadd.f32 %v7574_v13, %v16299_v41 }
 0x87a   : > { %12517 = vrcp.f32 %v7850_v45  ;;  %v7851_v40 = vadd.f32 1.0, %v12510_v11  ;;  %v12512_v37 = vpop.eup %12511 }
 0x87b   : > { %12519 = vpow2.f32 %v7802_v0  ;;  %v16361_v52 = vadd.f32 %v7623_v7, %v7575_v44  ;;  %v7675_v33 = vpop.f32.mrf.mxu1  ;;  %v12514_v25 = vpop.eup %12513  ;;  %v7912_v35 = vmul.f32 %v12512_v37, %v16333_v36 }
 0x87c   : > { %12521 = vrcp.f32 %v7851_v40  ;;  %v7721_v5 = vpop.f32.mrf.mxu2  ;;  %v7913_v51 = vmul.f32 %v12514_v25, %v16336_v16  ;;  %v7676_v47 = vadd.f32 %v7675_v33, %v16301_v26 }
 0x87d   : > { %v7758_v20 = vsub.f32 0.0, %v16361_v52  ;;  %v16364_v54 = vadd.f32 %v7721_v5, %v7673_v43 }
 0x87e   : > { %v7626_v59 = vpop.f32.mrf.mxu0 }
 0x87f   : > { %v12516_v12 = vpop.eup %12515  ;;  %v7804_v24 = vmul.f32 1.442695, %v7758_v20  ;;  %v7759_v60 = vsub.f32 0.0, %v16364_v54 }
 0x880   : > { %v12518_v18 = vpop.eup %12517  ;;  %v7852_v56 = vadd.f32 1.0, %v12516_v12 }
 0x881   : > { %v12520_v42 = vpop.eup %12519  ;;  %v7914_v46 = vmul.f32 %v12518_v18, %v16341_v38  ;;  %12523 = vpow2.f32 %v7804_v24  ;;  %v7806_v63 = vmul.f32 1.442695, %v7759_v60  ;;  %v7577_v2 = vpop.f32.mrf.mxu3 }
 0x882   : > { %v12522_v53 = vpop.eup %12521  ;;  %v7578_v10 = vadd.f32 %v7577_v2, %v16299_v41  ;;  %v7853_v27 = vadd.f32 1.0, %v12520_v42 }
 0x883   : > { %v7915_v15 = vmul.f32 %v12522_v53, %v16344_v55  ;;  %12525 = vpow2.f32 %v7806_v63  ;;  %v7940_v31 = vpack.c.bf16 %v7914_v46, %v7912_v35  ;;  %v7677_v9 = vpop.f32.mrf.mxu1 }
 0x884   : > { %v16373_v36 = vadd.f32 %v7626_v59, %v7578_v10  ;;  %v7724_v8 = vpop.f32.mrf.mxu2  ;;  %12527 = vrcp.f32 %v7852_v56  ;;  %v7678_v0 = vadd.f32 %v7677_v9, %v16301_v26 }
 0x885   : > { %v7941_v38 = vpack.c.bf16 %v7915_v15, %v7913_v51  ;;  %8069 = vmatmul.bf16.gmra.mxu3 %v7940_v31  ;;  %v16376_v61 = vadd.f32 %v7724_v8, %v7676_v47  ;;  %12529 = vrcp.f32 %v7853_v27 }
 0x886   : > { %v7760_v16 = vsub.f32 0.0, %v16373_v36  ;;  %v7628_v22 = vpop.f32.mrf.mxu0 }
 0x887   : > { %v12524_v57 = vpop.eup %12523  ;;  %8118 = vmatmul.bf16.gmra.mxu0 %v7941_v38  ;;  %v7761_v50 = vsub.f32 0.0, %v16376_v61 }
 0x888   : > { %v7854_v55 = vadd.f32 1.0, %v12524_v57  ;;  %v7808_v7 = vmul.f32 1.442695, %v7760_v16 }
 0x889   : > { %v12526_v28 = vpop.eup %12525  ;;  %v7579_v14 = vpop.f32.mrf.mxu3  ;;  %v7810_v45 = vmul.f32 1.442695, %v7761_v50 }
 0x88a   : > { %12531 = vrcp.f32 %v7854_v55  ;;  %v7855_v6 = vadd.f32 1.0, %v12526_v28  ;;  %v7580_v13 = vadd.f32 %v7579_v14, %v16299_v41  ;;  %v12528_v40 = vpop.eup %12527 }
 0x88b   : > { %12533 = vpow2.f32 %v7808_v7  ;;  %v7680_v11 = vpop.f32.mrf.mxu1  ;;  %v12530_v33 = vpop.eup %12529  ;;  %v7916_v42 = vmul.f32 %v12528_v40, %v16353_v21 }
 0x88c   : > { %12535 = vrcp.f32 %v7855_v6  ;;  %v16381_v44 = vadd.f32 %v7628_v22, %v7580_v13  ;;  %v7726_v43 = vpop.f32.mrf.mxu2  ;;  %v7917_v35 = vmul.f32 %v12530_v33, %v16356_v34  ;;  %v7681_v15 = vadd.f32 %v7680_v11, %v16301_v26 }
 0x88d   : > { %12537 = vpow2.f32 %v7810_v45  ;;  %v16384_v37 = vadd.f32 %v7726_v43, %v7678_v0 }
 0x88e   : > { %v7762_v5 = vsub.f32 0.0, %v16381_v44  ;;  %v7631_v25 = vpop.f32.mrf.mxu0 }
 0x88f   : > { %v7763_v18 = vsub.f32 0.0, %v16384_v37 }
 0x890   : > { %v12532_v20 = vpop.eup %12531  ;;  %v7812_v60 = vmul.f32 1.442695, %v7762_v5 }
 0x891   : > { %v12534_v12 = vpop.eup %12533  ;;  %v7918_v24 = vmul.f32 %v12532_v20, %v16361_v52  ;;  %v7582_v46 = vpop.f32.mrf.mxu3  ;;  %v7814_v51 = vmul.f32 1.442695, %v7763_v18 }
 0x892   : > { %v12536_v59 = vpop.eup %12535  ;;  %12539 = vpow2.f32 %v7812_v60  ;;  %v7583_v2 = vadd.f32 %v7582_v46, %v16299_v41  ;;  %v7856_v31 = vadd.f32 1.0, %v12534_v12 }
 0x893   : > { %v12538_v63 = vpop.eup %12537  ;;  %v7919_v53 = vmul.f32 %v12536_v59, %v16364_v54  ;;  %v7682_v10 = vpop.f32.mrf.mxu1  ;;  %v7942_v52 = vpack.c.bf16 %v7918_v24, %v7916_v42  ;;  %12541 = vpow2.f32 %v7814_v51 }
 0x894   : > { %v16393_v56 = vadd.f32 %v7631_v25, %v7583_v2  ;;  %v7857_v21 = vadd.f32 1.0, %v12538_v63  ;;  %v7729_v27 = vpop.f32.mrf.mxu2  ;;  %12543 = vrcp.f32 %v7856_v31  ;;  %v7683_v6 = vadd.f32 %v7682_v10, %v16301_v26 }
 0x895   : > { %v7943_v9 = vpack.c.bf16 %v7919_v53, %v7917_v35  ;;  %8074 = vmatmul.bf16.gmra.mxu3 %v7942_v52  ;;  %v16396_v47 = vadd.f32 %v7729_v27, %v7681_v15 }
 0x896   : > { %v7764_v34 = vsub.f32 0.0, %v16393_v56  ;;  %v7633_v54 = vpop.f32.mrf.mxu0  ;;  %12545 = vrcp.f32 %v7857_v21 }
 0x897   : > { %8123 = vmatmul.bf16.gmra.mxu0 %v7943_v9  ;;  %v7765_v57 = vsub.f32 0.0, %v16396_v47 }
 0x898   : > { %v12540_v38 = vpop.eup %12539  ;;  %v7816_v8 = vmul.f32 1.442695, %v7764_v34 }
 0x899   : > { %v7858_v16 = vadd.f32 1.0, %v12540_v38  ;;  %v7584_v55 = vpop.f32.mrf.mxu3  ;;  %v12542_v22 = vpop.eup %12541  ;;  %v7818_v28 = vmul.f32 1.442695, %v7765_v57 }
 0x89a   : > { %12547 = vpow2.f32 %v7816_v8  ;;  %v7585_v7 = vadd.f32 %v7584_v55, %v16299_v41  ;;  %v7859_v50 = vadd.f32 1.0, %v12542_v22  ;;  %v12544_v11 = vpop.eup %12543 }
 0x89b   : > { %12549 = vrcp.f32 %v7858_v16  ;;  %v7685_v45 = vpop.f32.mrf.mxu1  ;;  %v7920_v60 = vmul.f32 %v12544_v11, %v16373_v36 }
 0x89c   : > { %12551 = vpow2.f32 %v7818_v28  ;;  %v16401_v14 = vadd.f32 %v7633_v54, %v7585_v7  ;;  %v7731_v13 = vpop.f32.mrf.mxu2  ;;  %v12546_v43 = vpop.eup %12545  ;;  %v7686_v15 = vadd.f32 %v7685_v45, %v16301_v26 }
 0x89d   : > { %12553 = vrcp.f32 %v7859_v50  ;;  %v16404_v40 = vadd.f32 %v7731_v13, %v7683_v6  ;;  %v7921_v35 = vmul.f32 %v12546_v43, %v16376_v61 }
 0x89e   : > { %v7766_v0 = vsub.f32 0.0, %v16401_v14  ;;  %v7636_v25 = vpop.f32.mrf.mxu0 }
 0x89f   : > { %v7767_v20 = vsub.f32 0.0, %v16404_v40 }
 0x8a0   : > { %v12548_v33 = vpop.eup %12547  ;;  %v7820_v5 = vmul.f32 1.442695, %v7766_v0 }
 0x8a1   : > { %v12550_v12 = vpop.eup %12549  ;;  %v7822_v59 = vmul.f32 1.442695, %v7767_v20  ;;  %v7587_v46 = vpop.f32.mrf.mxu3  ;;  %v7860_v2 = vadd.f32 1.0, %v12548_v33 }
 0x8a2   : > { %v12552_v24 = vpop.eup %12551  ;;  %v7922_v18 = vmul.f32 %v12550_v12, %v16381_v44  ;;  %12555 = vpow2.f32 %v7820_v5  ;;  %v7588_v53 = vadd.f32 %v7587_v46, %v16299_v41 }
 0x8a3   : > { %v12554_v42 = vpop.eup %12553  ;;  %12557 = vpow2.f32 %v7822_v59  ;;  %v7861_v10 = vadd.f32 1.0, %v12552_v24  ;;  %v7687_v36 = vpop.f32.mrf.mxu1 }
 0x8a4   : > { %v7923_v63 = vmul.f32 %v12554_v42, %v16384_v37  ;;  %v7944_v51 = vpack.c.bf16 %v7922_v18, %v7920_v60  ;;  %v16413_v52 = vadd.f32 %v7636_v25, %v7588_v53  ;;  %v7734_v44 = vpop.f32.mrf.mxu2  ;;  %12559 = vrcp.f32 %v7860_v2 }
 0x8a5   : > { %v16415_v9 = vadd.f32 %v7734_v44, %v7686_v15  ;;  %12561 = vrcp.f32 %v7861_v10  ;;  %v7688_v22 = vadd.f32 %v7687_v36, %v16301_v26 }
 0x8a6   : > { %8079 = vmatmul.bf16.gmra.mxu3 %v7944_v51  ;;  %v7945_v31 = vpack.c.bf16 %v7923_v63, %v7921_v35  ;;  %v7768_v21 = vsub.f32 0.0, %v16413_v52  ;;  %v7638_v34 = vpop.f32.mrf.mxu0 }
 0x8a7   : > { %v7769_v27 = vsub.f32 0.0, %v16415_v9 }
 0x8a8   : > { %v12556_v61 = vpop.eup %12555  ;;  %8128 = vmatmul.bf16.gmra.mxu0 %v7945_v31  ;;  %v7824_v38 = vmul.f32 1.442695, %v7768_v21 }
 0x8a9   : > { %v7862_v37 = vadd.f32 1.0, %v12556_v61  ;;  %v12558_v54 = vpop.eup %12557  ;;  %v7826_v57 = vmul.f32 1.442695, %v7769_v27  ;;  %v7589_v16 = vpop.f32.mrf.mxu3 }
 0x8aa   : > { %v7863_v8 = vadd.f32 1.0, %v12558_v54  ;;  %v7590_v55 = vadd.f32 %v7589_v16, %v16299_v41  ;;  %v12560_v50 = vpop.eup %12559 }
 0x8ab   : > { %12563 = vrcp.f32 %v7862_v37  ;;  %v12562_v45 = vpop.eup %12561  ;;  %v7690_v11 = vpop.f32.mrf.mxu1  ;;  %v7924_v5 = vmul.f32 %v12560_v50, %v16393_v56 }
 0x8ac   : > { %12565 = vpow2.f32 %v7824_v38  ;;  %v16421_v28 = vadd.f32 %v7638_v34, %v7590_v55  ;;  %v7736_v7 = vpop.f32.mrf.mxu2  ;;  %v7925_v24 = vmul.f32 %v12562_v45, %v16396_v47  ;;  %v7691_v53 = vadd.f32 %v7690_v11, %v16301_v26 }
 0x8ad   : > { %12567 = vrcp.f32 %v7863_v8  ;;  %v16423_v6 = vadd.f32 %v7736_v7, %v7688_v22 }
 0x8ae   : > { %12569 = vpow2.f32 %v7826_v57  ;;  %v7770_v13 = vsub.f32 0.0, %v16421_v28  ;;  %v7641_v18 = vpop.f32.mrf.mxu0 }
 0x8af   : > { %v7771_v43 = vsub.f32 0.0, %v16423_v6 }
 0x8b0   : > { %v7828_v25 = vmul.f32 1.442695, %v7770_v13 }
 0x8b1   : > { %v12564_v0 = vpop.eup %12563  ;;  %v7830_v60 = vmul.f32 1.442695, %v7771_v43  ;;  %v7592_v59 = vpop.f32.mrf.mxu3 }
 0x8b2   : > { %v12566_v33 = vpop.eup %12565  ;;  %v7926_v20 = vmul.f32 %v12564_v0, %v16401_v14  ;;  %12571 = vpow2.f32 %v7828_v25  ;;  %v7593_v46 = vadd.f32 %v7592_v59, %v16299_v41 }
 0x8b3   : > { %v12568_v12 = vpop.eup %12567  ;;  %v7864_v51 = vadd.f32 1.0, %v12566_v33  ;;  %12573 = vpow2.f32 %v7830_v60  ;;  %v7692_v31 = vpop.f32.mrf.mxu1 }
 0x8b4   : > { %v12570_v42 = vpop.eup %12569  ;;  %v7927_v35 = vmul.f32 %v12568_v12, %v16404_v40  ;;  %v7946_v63 = vpack.c.bf16 %v7926_v20, %v7924_v5  ;;  %v7642_v56 = vadd.f32 %v7641_v18, %v7593_v46  ;;  %v7739_v14 = vpop.f32.mrf.mxu2  ;;  %v7693_v38 = vadd.f32 %v7692_v31, %v16301_v26 }
 0x8b5   : > { %v7865_v15 = vadd.f32 1.0, %v12570_v42  ;;  %v7740_v47 = vadd.f32 %v7739_v14, %v7691_v53  ;;  %12575 = vrcp.f32 %v7864_v51 }
 0x8b6   : > { %8084 = vmatmul.bf16.gmra.mxu3 %v7946_v63  ;;  %v7947_v2 = vpack.c.bf16 %v7927_v35, %v7925_v24  ;;  %v7772_v10 = vsub.f32 0.0, %v7642_v56  ;;  %v7643_v8 = vpop.f32.mrf.mxu0 }
 0x8b7   : > { %v7773_v36 = vsub.f32 0.0, %v7740_v47  ;;  %12577 = vrcp.f32 %v7865_v15 }
 0x8b8   : > { %8133 = vmatmul.bf16.gmra.mxu0 %v7947_v2  ;;  %v12572_v44 = vpop.eup %12571  ;;  %v7832_v40 = vmul.f32 1.442695, %v7772_v10 }
 0x8b9   : > { %v7866_v61 = vadd.f32 1.0, %v12572_v44  ;;  %v7834_v21 = vmul.f32 1.442695, %v7773_v36  ;;  %v7594_v37 = vpop.f32.mrf.mxu3  ;;  %v12574_v27 = vpop.eup %12573  ;;  %v16442_v36 = vld [vmem:[%s16910_s16] ss:$0 sm:$0xff] }
 0x8ba   : > { %12579 = vpow2.f32 %v7832_v40  ;;  %v7595_v34 = vadd.f32 %v7594_v37, %v16299_v41  ;;  %v7867_v54 = vadd.f32 1.0, %v12574_v27 }
 0x8bb   : > { %12581 = vrcp.f32 %v7866_v61  ;;  %v12576_v22 = vpop.eup %12575 }
 0x8bc   : > { %12583 = vpow2.f32 %v7834_v21  ;;  %v7644_v57 = vadd.f32 %v7643_v8, %v7595_v34  ;;  %v7741_v16 = vpop.f32.mrf.mxu2  ;;  %v7928_v41 = vmul.f32 %v12576_v22, %v16413_v52 }
 0x8bd   : > { %12585 = vrcp.f32 %v7867_v54  ;;  %v7742_v55 = vadd.f32 %v7741_v16, %v7693_v38  ;;  %v12578_v50 = vpop.eup %12577 }
 0x8be   : > { %v7774_v7 = vsub.f32 0.0, %v7644_v57  ;;  %v7929_v20 = vmul.f32 %v12578_v50, %v16415_v9 }
 0x8bf   : > { %v7775_v45 = vsub.f32 0.0, %v7742_v55 }
 0x8c0   : > { %v12580_v13 = vpop.eup %12579  ;;  %v7836_v11 = vmul.f32 1.442695, %v7774_v7 }
 0x8c1   : > { %v12582_v0 = vpop.eup %12581  ;;  %v7838_v43 = vmul.f32 1.442695, %v7775_v45  ;;  %v7868_v24 = vadd.f32 1.0, %v12580_v13 }
 0x8c2   : > { %v12584_v33 = vpop.eup %12583  ;;  %v7930_v5 = vmul.f32 %v12582_v0, %v16421_v28  ;;  %12587 = vpow2.f32 %v7836_v11 }
 0x8c3   : > { %v12586_v26 = vpop.eup %12585  ;;  %12589 = vpow2.f32 %v7838_v43  ;;  %v7869_v60 = vadd.f32 1.0, %v12584_v33 }
 0x8c4   : > { %v7931_v25 = vmul.f32 %v12586_v26, %v16423_v6  ;;  %v7948_v12 = vpack.c.bf16 %v7930_v5, %v7928_v41  ;;  %12591 = vrcp.f32 %v7868_v24  ;;  %v16911_v5 = vld [vmem:[#allocation52_spill] sm:$0xff] }
 0x8c5   : > { %12593 = vrcp.f32 %v7869_v60 }
 0x8c6   : > { %8089 = vmatmul.bf16.gmra.mxu3 %v7948_v12  ;;  %v7949_v18 = vpack.c.bf16 %v7931_v25, %v7929_v20 }
 0x8c8   : > { %v12588_v59 = vpop.eup %12587  ;;  %8138 = vmatmul.bf16.gmra.mxu0 %v7949_v18 }
 0x8c9   : > { %v7870_v42 = vadd.f32 1.0, %v12588_v59  ;;  %v12590_v35 = vpop.eup %12589 }
 0x8ca   : > { %v7871_v52 = vadd.f32 1.0, %v12590_v35  ;;  %v12592_v28 = vpop.eup %12591 }
 0x8cb   : > { %12595 = vrcp.f32 %v7870_v42  ;;  %v12594_v46 = vpop.eup %12593  ;;  %v7932_v63 = vmul.f32 %v12592_v28, %v7642_v56 }
 0x8cc   : > { %12597 = vrcp.f32 %v7871_v52  ;;  %v7933_v51 = vmul.f32 %v12594_v46, %v7740_v47 }
 0x8d1   : > { %v12596_v9 = vpop.eup %12595 }
 0x8d2   : > { %v7934_v6 = vmul.f32 %v12596_v9, %v7644_v57  ;;  %v12598_v53 = vpop.eup %12597  ;;  %v16912_v9 = vld [vmem:[#allocation54_spill] sm:$0xff] }
 0x8d3   : > { %v7935_v14 = vmul.f32 %v12598_v53, %v7742_v55 }
 0x8d4   : > { %v7950_v2 = vpack.c.bf16 %v7934_v6, %v7932_v63 }
 0x8d5   : > { %v7951_v15 = vpack.c.bf16 %v7935_v14, %v7933_v51 }
 0x8d6   : > { %8094 = vmatmul.bf16.gmra.mxu3 %v7950_v2 }
 0x8d8   : > { %8143 = vmatmul.bf16.gmra.mxu0 %v7951_v15 }
 0x8e4   : > { %v8109_v10 = vpop.f32.mrf.mxu0 }
 0x8e8   : > { %v8060_v44 = vpop.f32.mrf.mxu3 }
 0x8e9   : > { %v8061_v40 = vadd.f32 %v16442_v36, %v8060_v44 }
 0x8eb   : > { %v8110_v31 = vadd.f32 %v8109_v10, %v8061_v40 }
 0x8ec   : > { %v8111_v61 = vpop.f32.mrf.mxu0 }
 0x8ed   : > { %v8149_v56 = vsub.f32 0.0, %v8110_v31 }
 0x8ef   : > { %v8165_v21 = vmul.f32 1.442695, %v8149_v56 }
 0x8f0   : > { %v8062_v37 = vpop.f32.mrf.mxu3 }
 0x8f1   : > { %12599 = vpow2.f32 %v8165_v21  ;;  %v8063_v47 = vadd.f32 %v16442_v36, %v8062_v37 }
 0x8f3   : > { %v8112_v27 = vadd.f32 %v8111_v61, %v8063_v47 }
 0x8f4   : > { %v8114_v34 = vpop.f32.mrf.mxu0 }
 0x8f5   : > { %v8150_v54 = vsub.f32 0.0, %v8112_v27 }
 0x8f7   : > { %v12600_v38 = vpop.eup %12599  ;;  %v8167_v8 = vmul.f32 1.442695, %v8150_v54 }
 0x8f8   : > { %v8197_v57 = vadd.f32 1.0, %v12600_v38  ;;  %v8065_v16 = vpop.f32.mrf.mxu3 }
 0x8f9   : > { %12601 = vpow2.f32 %v8167_v8  ;;  %v8066_v55 = vadd.f32 %v16442_v36, %v8065_v16 }
 0x8fa   : > { %12603 = vrcp.f32 %v8197_v57 }
 0x8fb   : > { %v8115_v22 = vadd.f32 %v8114_v34, %v8066_v55 }
 0x8fc   : > { %v8116_v7 = vpop.f32.mrf.mxu0 }
 0x8fd   : > { %v8151_v50 = vsub.f32 0.0, %v8115_v22 }
 0x8ff   : > { %v12602_v45 = vpop.eup %12601  ;;  %v8169_v0 = vmul.f32 1.442695, %v8151_v50 }
 0x900   : > { %v12604_v13 = vpop.eup %12603  ;;  %v8198_v11 = vadd.f32 1.0, %v12602_v45  ;;  %v8067_v33 = vpop.f32.mrf.mxu3 }
 0x901   : > { %v8229_v43 = vmul.f32 %v12604_v13, %v8110_v31  ;;  %v8068_v41 = vadd.f32 %v16442_v36, %v8067_v33 }
 0x902   : > { %12605 = vrcp.f32 %v8198_v11 }
 0x903   : > { %v8245_v26 = vadd.f32 %v8229_v43, %v16911_v5  ;;  %12607 = vpow2.f32 %v8169_v0  ;;  %v8117_v20 = vadd.f32 %v8116_v7, %v8068_v41 }
 0x904   : > { %v8119_v25 = vpop.f32.mrf.mxu0 }
 0x905   : > { %v8261_v12 = vsub.f32 0.0, %v8245_v26  ;;  %v8152_v24 = vsub.f32 0.0, %v8117_v20 }
 0x907   : > { %v8277_v60 = vmul.f32 1.442695, %v8261_v12  ;;  %v8171_v59 = vmul.f32 1.442695, %v8152_v24 }
 0x908   : > { %v12606_v18 = vpop.eup %12605  ;;  %v8070_v52 = vpop.f32.mrf.mxu3 }
 0x909   : > { %v12608_v42 = vpop.eup %12607  ;;  %12609 = vpow2.f32 %v8277_v60  ;;  %v8230_v35 = vmul.f32 %v12606_v18, %v8112_v27  ;;  %v8071_v46 = vadd.f32 %v16442_v36, %v8070_v52 }
 0x90a   : > { %v8199_v28 = vadd.f32 1.0, %v12608_v42  ;;  %12611 = vpow2.f32 %v8171_v59 }
 0x90b   : > { %v16451_v63 = vadd.f32 %v8230_v35, %v16912_v9  ;;  %v16453_v6 = vadd.f32 %v8119_v25, %v8071_v46 }
 0x90c   : > { %12613 = vrcp.f32 %v8199_v28  ;;  %v8121_v53 = vpop.f32.mrf.mxu0 }
 0x90d   : > { %v8262_v51 = vsub.f32 0.0, %v16451_v63  ;;  %v8153_v14 = vsub.f32 0.0, %v16453_v6 }
 0x90f   : > { %v12610_v2 = vpop.eup %12609  ;;  %v8279_v15 = vmul.f32 1.442695, %v8262_v51  ;;  %v8173_v40 = vmul.f32 1.442695, %v8153_v14 }
 0x910   : > { %v12612_v10 = vpop.eup %12611  ;;  %v8309_v44 = vadd.f32 1.0, %v12610_v2  ;;  %v8072_v61 = vpop.f32.mrf.mxu3 }
 0x911   : > { %12615 = vpow2.f32 %v8279_v15  ;;  %v8200_v31 = vadd.f32 1.0, %v12612_v10  ;;  %v8073_v21 = vadd.f32 %v16442_v36, %v8072_v61 }
 0x912   : > { %v12614_v56 = vpop.eup %12613  ;;  %12617 = vrcp.f32 %v8309_v44 }
 0x913   : > { %v8231_v37 = vmul.f32 %v12614_v56, %v8115_v22  ;;  %12619 = vrcp.f32 %v8200_v31  ;;  %v16458_v47 = vadd.f32 %v8121_v53, %v8073_v21 }
 0x914   : > { %12621 = vpow2.f32 %v8173_v40  ;;  %v8124_v27 = vpop.f32.mrf.mxu0 }
 0x915   : > { %v16461_v34 = vadd.f32 %v8231_v37, %v15547_v17  ;;  %v8154_v54 = vsub.f32 0.0, %v16458_v47 }
 0x917   : > { %v12616_v38 = vpop.eup %12615  ;;  %v8263_v8 = vsub.f32 0.0, %v16461_v34  ;;  %v8175_v55 = vmul.f32 1.442695, %v8154_v54 }
 0x918   : > { %v12618_v57 = vpop.eup %12617  ;;  %v8310_v16 = vadd.f32 1.0, %v12616_v38  ;;  %v8075_v45 = vpop.f32.mrf.mxu3 }
 0x919   : > { %v12620_v22 = vpop.eup %12619  ;;  %v8341_v7 = vmul.f32 %v12618_v57, %v8245_v26  ;;  %v8281_v50 = vmul.f32 1.442695, %v8263_v8  ;;  %v8076_v11 = vadd.f32 %v16442_v36, %v8075_v45 }
 0x91a   : > { %v12622_v17 = vpop.eup %12621  ;;  %12623 = vrcp.f32 %v8310_v16  ;;  %v8232_v13 = vmul.f32 %v12620_v22, %v8117_v20 }
 0x91b   : > { %8357 = vst [vmem:[%s16473_s20] sm:$0xff] %v8341_v7  ;;  %12625 = vpow2.f32 %v8281_v50  ;;  %v8201_v0 = vadd.f32 1.0, %v12622_v17  ;;  %v16479_v33 = vadd.f32 %v8124_v27, %v8076_v11 }
 0x91c   : > { %v16477_v43 = vadd.f32 %v8232_v13, %v15550_v49  ;;  %12627 = vpow2.f32 %v8175_v55  ;;  %v8126_v41 = vpop.f32.mrf.mxu0 }
 0x91d   : > { %12629 = vrcp.f32 %v8201_v0  ;;  %v8155_v26 = vsub.f32 0.0, %v16479_v33 }
 0x91e   : > { %v8264_v5 = vsub.f32 0.0, %v16477_v43 }
 0x91f   : > { %13282 = shalt.err (!%p13279_p10)
}
 0x920   : > { %s13407_s8 = smov 128   ;;  %s13408_s30 = smov 8   ;;  %v12624_v49 = vpop.eup %12623  ;;  %v8283_v20 = vmul.f32 1.442695, %v8264_v5  ;;  %v8177_v25 = vmul.f32 1.442695, %v8155_v26  ;;  %v8077_v60 = vpop.f32.mrf.mxu3 }
 0x921   : > { %10882 = dma.vmem_to_hbm [thread:$0]  (%p13642_p0), %s8633_s4, 2048, %s8635_s19, %s8603_s18, %s13407_s8, %s13407_s8, %s13408_s30   ;;  %v12626_v12 = vpop.eup %12625  ;;  %v8342_v24 = vmul.f32 %v12624_v49, %v16451_v63  ;;  %v8078_v42 = vadd.f32 %v16442_v36, %v8077_v60 }
 0x922   : > { %v12628_v18 = vpop.eup %12627  ;;  %v8311_v59 = vadd.f32 1.0, %v12626_v12  ;;  %12631 = vpow2.f32 %v8283_v20  ;;  %s16915_s19 = sld [smem:[#allocation112_spill]]  ;;  %s8615_s5 = sshll.u32 %s16473_s20, 4  ;;  %s8616_s5 = int_to_ptr.vmem [resolvable:$true] %s8615_s5 }
 0x923   : > { %v12630_v35 = vpop.eup %12629  ;;  %8358 = vst [vmem:[%s16473_s20 + $0x8] sm:$0xff] %v8342_v24  ;;  %v8202_v52 = vadd.f32 1.0, %v12628_v18  ;;  %12633 = vpow2.f32 %v8177_v25  ;;  %v8127_v46 = vadd.f32 %v8126_v41, %v8078_v42  ;;  %s8598_s29 = scalar_lea.sflag [#allocation4], %s13782_s12 }
 0x924   : > { %12635 = vrcp.f32 %v8311_v59  ;;  %v8233_v28 = vmul.f32 %v12630_v35, %v16453_v6 }
 0x925   : > { %12637 = vrcp.f32 %v8202_v52  ;;  %v8156_v53 = vsub.f32 0.0, %v8127_v46  ;;  %v8129_v51 = vpop.f32.mrf.mxu0 }
 0x926   : > { %v8249_v9 = vadd.f32 %v8233_v28, %v15606_v4 }
 0x927   : > { %v8179_v2 = vmul.f32 1.442695, %v8156_v53 }
 0x928   : > { %v12632_v63 = vpop.eup %12631  ;;  %v8265_v14 = vsub.f32 0.0, %v8249_v9  ;;  %s8614_s18 = scalar_lea.hbm %s16915_s19, %s10793_s25  ;;  %s13303_s16 = scalar_lea.hbm %s16915_s19, 256 }
 0x929   : > { %v12634_v15 = vpop.eup %12633  ;;  %v8312_v10 = vadd.f32 1.0, %v12632_v63  ;;  %12639 = vpow2.f32 %v8179_v2  ;;  %v8080_v61 = vpop.f32.mrf.mxu3  ;;  %s8617_s2 = sshll.u32 %s8614_s18, 4  ;;  %s8618_s2 = int_to_ptr.hbm [resolvable:$true] %s8617_s2 }
 0x92a   : > { %v12636_v44 = vpop.eup %12635  ;;  %v8285_v40 = vmul.f32 1.442695, %v8265_v14  ;;  %v8203_v31 = vadd.f32 1.0, %v12634_v15  ;;  %v8081_v21 = vadd.f32 %v16442_v36, %v8080_v61  ;;  %s13297_s23 = sshra.s32 %s8618_s2, 4  ;;  %s13298_s23 = int_to_ptr.hbm [resolvable:$true] %s13297_s23 }
 0x92b   : > { %v12638_v56 = vpop.eup %12637  ;;  %v8343_v6 = vmul.f32 %v12636_v44, %v16461_v34  ;;  %12641 = vrcp.f32 %v8312_v10  ;;  %s13299_s0 = scalar_lea.hbm %s13298_s23, 128  ;;  %p13304_p3 = scmp.lt.s32.totalorder %s13298_s23, %s16915_s19 }
 0x92c   : > { %12643 = vpow2.f32 %v8285_v40  ;;  %v8234_v4 = vmul.f32 %v12638_v56, %v16458_v47  ;;  %v16507_v37 = vadd.f32 %v8129_v51, %v8081_v21  ;;  %p13300_p6 = scmp.ne.s32.totalorder %s13298_s23, %s13299_s0  ;;  %p13305_p8 = scmp.lt.s32.totalorder %s13303_s16, %s13299_s0 }
 0x92d   : > { %8359 = vst [vmem:[%s16473_s20 + $0x10] sm:$0xff] %v8343_v6  ;;  %12645 = vrcp.f32 %v8203_v31  ;;  %v8131_v54 = vpop.f32.mrf.mxu0 }
 0x92e   : > { %v8250_v27 = vadd.f32 %v8234_v4, %v15608_v48  ;;  %v8157_v38 = vsub.f32 0.0, %v16507_v37  ;;  %p13301_p11 = pnand %p13300_p6, %p13642_p0  ;;  %p13306_p9 = por %p13305_p8, %p13304_p3 }
 0x92f   : > { %v12640_v8 = vpop.eup %12639 }
 0x930   : > { %v8266_v57 = vsub.f32 0.0, %v8250_v27  ;;  %v8204_v34 = vadd.f32 1.0, %v12640_v8  ;;  %v8181_v50 = vmul.f32 1.442695, %v8157_v38  ;;  %p13302_p12 = pneg %p13301_p11 }
 0x931   : > { %v12642_v16 = vpop.eup %12641  ;;  %v8082_v47 = vpop.f32.mrf.mxu3 }
 0x932   : > { %v12644_v55 = vpop.eup %12643  ;;  %v8344_v22 = vmul.f32 %v12642_v16, %v16477_v43  ;;  %v8287_v7 = vmul.f32 1.442695, %v8266_v57  ;;  %12647 = vrcp.f32 %v8204_v34  ;;  %v8083_v13 = vadd.f32 %v16442_v36, %v8082_v47  ;;  %p13307_p2 = pnand %p13306_p9, %p13302_p12 }
 0x933   : > { %v12646_v45 = vpop.eup %12645  ;;  %v8313_v17 = vadd.f32 1.0, %v12644_v55 }
 0x934   : > { %8360 = vst [vmem:[%s16473_s20 + $0x18] sm:$0xff] %v8344_v22  ;;  %12649 = vpow2.f32 %v8287_v7  ;;  %v8235_v48 = vmul.f32 %v12646_v45, %v16479_v33  ;;  %v8132_v11 = vadd.f32 %v8131_v54, %v8083_v13 }
 0x935   : > { %12651 = vrcp.f32 %v8313_v17  ;;  %v8134_v41 = vpop.f32.mrf.mxu0 }
 0x936   : > { %v8251_v0 = vadd.f32 %v8235_v48, %v15671_v23  ;;  %12653 = vpow2.f32 %v8181_v50  ;;  %v8158_v5 = vsub.f32 0.0, %v8132_v11 }
 0x938   : > { %v8267_v43 = vsub.f32 0.0, %v8251_v0  ;;  %v12648_v26 = vpop.eup %12647  ;;  %v8183_v49 = vmul.f32 1.442695, %v8158_v5 }
 0x939   : > { %v8236_v12 = vmul.f32 %v12648_v26, %v8127_v46  ;;  %v8085_v24 = vpop.f32.mrf.mxu3 }
 0x93a   : > { %v12650_v20 = vpop.eup %12649  ;;  %v8289_v25 = vmul.f32 1.442695, %v8267_v43  ;;  %12655 = vpow2.f32 %v8183_v49  ;;  %v8086_v33 = vadd.f32 %v16442_v36, %v8085_v24 }
 0x93b   : > { %v12652_v60 = vpop.eup %12651  ;;  %v8314_v18 = vadd.f32 1.0, %v12650_v20  ;;  %v8252_v23 = vadd.f32 %v8236_v12, %v15676_v19 }
 0x93c   : > { %v12654_v59 = vpop.eup %12653  ;;  %v8345_v42 = vmul.f32 %v12652_v60, %v8249_v9  ;;  %12657 = vpow2.f32 %v8289_v25  ;;  %v8135_v52 = vadd.f32 %v8134_v41, %v8086_v33 }
 0x93d   : > { %12659 = vrcp.f32 %v8314_v18  ;;  %v8205_v35 = vadd.f32 1.0, %v12654_v59  ;;  %v8268_v28 = vsub.f32 0.0, %v8252_v23  ;;  %v8136_v53 = vpop.f32.mrf.mxu0 }
 0x93e   : > { %8361 = vst [vmem:[%s16473_s20 + $0x20] sm:$0xff] %v8345_v42  ;;  %v8159_v51 = vsub.f32 0.0, %v8135_v52 }
 0x93f   : > { %12661 = vrcp.f32 %v8205_v35  ;;  %v8291_v46 = vmul.f32 1.442695, %v8268_v28 }
 0x940   : > { %v12656_v63 = vpop.eup %12655  ;;  %v8185_v14 = vmul.f32 1.442695, %v8159_v51 }
 0x941   : > { %12663 = vpow2.f32 %v8291_v46  ;;  %v8206_v15 = vadd.f32 1.0, %v12656_v63  ;;  %v8087_v10 = vpop.f32.mrf.mxu3 }
 0x942   : > { %v12658_v2 = vpop.eup %12657  ;;  %12665 = vpow2.f32 %v8185_v14  ;;  %v8088_v19 = vadd.f32 %v16442_v36, %v8087_v10 }
 0x943   : > { %v12660_v9 = vpop.eup %12659  ;;  %v8315_v44 = vadd.f32 1.0, %v12658_v2  ;;  %12667 = vrcp.f32 %v8206_v15 }
 0x944   : > { %v8346_v40 = vmul.f32 %v12660_v9, %v8250_v27  ;;  %v8137_v61 = vadd.f32 %v8136_v53, %v8088_v19 }
 0x945   : > { %v12662_v31 = vpop.eup %12661  ;;  %12669 = vrcp.f32 %v8315_v44  ;;  %v8139_v54 = vpop.f32.mrf.mxu0 }
 0x946   : > { %8362 = vst [vmem:[%s16473_s20 + $0x28] sm:$0xff] %v8346_v40  ;;  %v8237_v56 = vmul.f32 %v12662_v31, %v16507_v37  ;;  %v8160_v6 = vsub.f32 0.0, %v8137_v61 }
 0x947   : > { %v12664_v21 = vpop.eup %12663 }
 0x948   : > { %v8253_v4 = vadd.f32 %v8237_v56, %v15748_v30  ;;  %v12666_v38 = vpop.eup %12665  ;;  %v8316_v8 = vadd.f32 1.0, %v12664_v21  ;;  %v8187_v57 = vmul.f32 1.442695, %v8160_v6 }
 0x949   : > { %v12668_v16 = vpop.eup %12667  ;;  %v8207_v55 = vadd.f32 1.0, %v12666_v38  ;;  %v8090_v47 = vpop.f32.mrf.mxu3 }
 0x94a   : > { %v8269_v34 = vsub.f32 0.0, %v8253_v4  ;;  %12671 = vrcp.f32 %v8316_v8  ;;  %v8238_v22 = vmul.f32 %v12668_v16, %v8132_v11  ;;  %v8091_v30 = vadd.f32 %v16442_v36, %v8090_v47 }
 0x94b   : > { %v12670_v27 = vpop.eup %12669  ;;  %12673 = vrcp.f32 %v8207_v55 }
 0x94c   : > { %v8347_v7 = vmul.f32 %v12670_v27, %v8251_v0  ;;  %v8293_v50 = vmul.f32 1.442695, %v8269_v34  ;;  %v8254_v37 = vadd.f32 %v8238_v22, %v15751_v1  ;;  %12675 = vpow2.f32 %v8187_v57 }
 0x94d   : > { %v8140_v17 = vadd.f32 %v8139_v54, %v8091_v30  ;;  %v8141_v11 = vpop.f32.mrf.mxu0 }
 0x94e   : > { %8363 = vst [vmem:[%s16473_s20 + $0x30] sm:$0xff] %v8347_v7  ;;  %12677 = vpow2.f32 %v8293_v50  ;;  %v8270_v45 = vsub.f32 0.0, %v8254_v37 }
 0x94f   : > { %v8161_v41 = vsub.f32 0.0, %v8140_v17 }
 0x950   : > { %v12672_v13 = vpop.eup %12671  ;;  %v8295_v48 = vmul.f32 1.442695, %v8270_v45 }
 0x951   : > { %v12674_v5 = vpop.eup %12673  ;;  %v8348_v43 = vmul.f32 %v12672_v13, %v8252_v23  ;;  %v8189_v49 = vmul.f32 1.442695, %v8161_v41  ;;  %v8092_v25 = vpop.f32.mrf.mxu3 }
 0x952   : > { %v12676_v0 = vpop.eup %12675  ;;  %12679 = vpow2.f32 %v8295_v48  ;;  %v8239_v26 = vmul.f32 %v12674_v5, %v8135_v52  ;;  %v8093_v60 = vadd.f32 %v16442_v36, %v8092_v25 }
 0x953   : > { %8364 = vst [vmem:[%s16473_s20 + $0x38] sm:$0xff] %v8348_v43  ;;  %v8208_v1 = vadd.f32 1.0, %v12676_v0  ;;  %12681 = vpow2.f32 %v8189_v49 }
 0x954   : > { %v12678_v20 = vpop.eup %12677  ;;  %v8255_v24 = vadd.f32 %v8239_v26, %v15809_v58  ;;  %v8142_v33 = vadd.f32 %v8141_v11, %v8093_v60 }
 0x955   : > { %v8317_v12 = vadd.f32 1.0, %v12678_v20  ;;  %12683 = vrcp.f32 %v8208_v1  ;;  %v8144_v46 = vpop.f32.mrf.mxu0 }
 0x956   : > { %v8271_v18 = vsub.f32 0.0, %v8255_v24  ;;  %v8162_v23 = vsub.f32 0.0, %v8142_v33 }
 0x957   : > { %12685 = vrcp.f32 %v8317_v12 }
 0x958   : > { %v12680_v59 = vpop.eup %12679  ;;  %v8297_v42 = vmul.f32 1.442695, %v8271_v18  ;;  %v8191_v28 = vmul.f32 1.442695, %v8162_v23 }
 0x959   : > { %v8318_v35 = vadd.f32 1.0, %v12680_v59  ;;  %v12682_v52 = vpop.eup %12681  ;;  %v8095_v58 = vpop.f32.mrf.mxu3 }
 0x95a   : > { %12687 = vpow2.f32 %v8297_v42  ;;  %v8209_v51 = vadd.f32 1.0, %v12682_v52  ;;  %v8096_v2 = vadd.f32 %v16442_v36, %v8095_v58 }
 0x95b   : > { %v12684_v53 = vpop.eup %12683  ;;  %12689 = vrcp.f32 %v8318_v35 }
 0x95c   : > { %v8240_v14 = vmul.f32 %v12684_v53, %v8137_v61  ;;  %12691 = vpow2.f32 %v8191_v28  ;;  %v8145_v9 = vadd.f32 %v8144_v46, %v8096_v2 }
 0x95d   : > { %v12686_v63 = vpop.eup %12685  ;;  %12693 = vrcp.f32 %v8209_v51  ;;  %v8146_v16 = vpop.f32.mrf.mxu0 }
 0x95e   : > { %v8349_v15 = vmul.f32 %v12686_v63, %v8253_v4  ;;  %v8256_v10 = vadd.f32 %v8240_v14, %v15811_v39  ;;  %v8163_v40 = vsub.f32 0.0, %v8145_v9 }
 0x960   : > { %8365 = vst [vmem:[%s16473_s20 + $0x40] sm:$0xff] %v8349_v15  ;;  %v12688_v44 = vpop.eup %12687  ;;  %v8272_v19 = vsub.f32 0.0, %v8256_v10  ;;  %v8193_v38 = vmul.f32 1.442695, %v8163_v40 }
 0x961   : > { %v12690_v31 = vpop.eup %12689  ;;  %v8319_v56 = vadd.f32 1.0, %v12688_v44  ;;  %v8097_v57 = vpop.f32.mrf.mxu3 }
 0x962   : > { %v12692_v6 = vpop.eup %12691  ;;  %v8350_v21 = vmul.f32 %v12690_v31, %v8254_v37  ;;  %v8299_v54 = vmul.f32 1.442695, %v8272_v19  ;;  %v8098_v39 = vadd.f32 %v16442_v36, %v8097_v57 }
 0x963   : > { %v12694_v61 = vpop.eup %12693  ;;  %12695 = vrcp.f32 %v8319_v56  ;;  %v8210_v8 = vadd.f32 1.0, %v12692_v6 }
 0x964   : > { %8366 = vst [vmem:[%s16473_s20 + $0x48] sm:$0xff] %v8350_v21  ;;  %12697 = vpow2.f32 %v8299_v54  ;;  %v8241_v4 = vmul.f32 %v12694_v61, %v8140_v17  ;;  %v8147_v55 = vadd.f32 %v8146_v16, %v8098_v39 }
 0x965   : > { %12699 = vrcp.f32 %v8210_v8 }
 0x966   : > { %v8257_v34 = vadd.f32 %v8241_v4, %v15876_v3  ;;  %12701 = vpow2.f32 %v8193_v38  ;;  %v8164_v22 = vsub.f32 0.0, %v8147_v55 }
 0x968   : > { %v8273_v27 = vsub.f32 0.0, %v8257_v34  ;;  %v8195_v30 = vmul.f32 1.442695, %v8164_v22 }
 0x969   : > { %v12696_v7 = vpop.eup %12695 }
 0x96a   : > { %v12698_v50 = vpop.eup %12697  ;;  %v8351_v47 = vmul.f32 %v12696_v7, %v8255_v24  ;;  %v8301_v37 = vmul.f32 1.442695, %v8273_v27 }
 0x96b   : > { %v12700_v45 = vpop.eup %12699  ;;  %v8320_v13 = vadd.f32 1.0, %v12698_v50 }
 0x96c   : > { %v12702_v48 = vpop.eup %12701  ;;  %8367 = vst [vmem:[%s16473_s20 + $0x50] sm:$0xff] %v8351_v47  ;;  %12703 = vpow2.f32 %v8301_v37  ;;  %v8242_v36 = vmul.f32 %v12700_v45, %v8142_v33 }
 0x96d   : > { %12705 = vrcp.f32 %v8320_v13  ;;  %v8211_v17 = vadd.f32 1.0, %v12702_v48 }
 0x96e   : > { %v8258_v3 = vadd.f32 %v8242_v36, %v15878_v32  ;;  %12707 = vpow2.f32 %v8195_v30 }
 0x96f   : > { %12709 = vrcp.f32 %v8211_v17 }
 0x970   : > { %v8274_v41 = vsub.f32 0.0, %v8258_v3 }
 0x972   : > { %v12704_v5 = vpop.eup %12703  ;;  %v8303_v43 = vmul.f32 1.442695, %v8274_v41 }
 0x973   : > { %v12706_v11 = vpop.eup %12705  ;;  %v8321_v0 = vadd.f32 1.0, %v12704_v5 }
 0x974   : > { %v12708_v26 = vpop.eup %12707  ;;  %v8352_v49 = vmul.f32 %v12706_v11, %v8256_v10  ;;  %12711 = vpow2.f32 %v8303_v43 }
 0x975   : > { %v12710_v20 = vpop.eup %12709  ;;  %12713 = vrcp.f32 %v8321_v0  ;;  %v8212_v1 = vadd.f32 1.0, %v12708_v26 }
 0x976   : > { %8368 = vst [vmem:[%s16473_s20 + $0x58] sm:$0xff] %v8352_v49  ;;  %v8243_v25 = vmul.f32 %v12710_v20, %v8145_v9 }
 0x977   : > { %12715 = vrcp.f32 %v8212_v1 }
 0x978   : > { %v8259_v12 = vadd.f32 %v8243_v25, %v15924_v62 }
 0x97a   : > { %v12712_v32 = vpop.eup %12711  ;;  %v8275_v24 = vsub.f32 0.0, %v8259_v12 }
 0x97b   : > { %v12714_v60 = vpop.eup %12713  ;;  %v8322_v18 = vadd.f32 1.0, %v12712_v32 }
 0x97c   : > { %v8353_v33 = vmul.f32 %v12714_v60, %v8257_v34  ;;  %v8305_v59 = vmul.f32 1.442695, %v8275_v24 }
 0x97d   : > { %v12716_v42 = vpop.eup %12715  ;;  %12717 = vrcp.f32 %v8322_v18 }
 0x97e   : > { %8369 = vst [vmem:[%s16473_s20 + $0x60] sm:$0xff] %v8353_v33  ;;  %12719 = vpow2.f32 %v8305_v59  ;;  %v8244_v23 = vmul.f32 %v12716_v42, %v8147_v55 }
 0x980   : > { %v8260_v35 = vadd.f32 %v8244_v23, %v15928_v29 }
 0x982   : > { %v8276_v52 = vsub.f32 0.0, %v8260_v35 }
 0x983   : > { %v12718_v28 = vpop.eup %12717 }
 0x984   : > { %v12720_v62 = vpop.eup %12719  ;;  %v8354_v53 = vmul.f32 %v12718_v28, %v8258_v3  ;;  %v8307_v51 = vmul.f32 1.442695, %v8276_v52 }
 0x985   : > { %v8323_v46 = vadd.f32 1.0, %v12720_v62 }
 0x986   : > { %8370 = vst [vmem:[%s16473_s20 + $0x68] sm:$0xff] %v8354_v53  ;;  %12721 = vpow2.f32 %v8307_v51 }
 0x987   : > { %12723 = vrcp.f32 %v8323_v46 }
 0x98c   : > { %v12722_v58 = vpop.eup %12721 }
 0x98d   : > { %v12724_v63 = vpop.eup %12723  ;;  %v8324_v14 = vadd.f32 1.0, %v12722_v58 }
 0x98e   : > { %v8355_v2 = vmul.f32 %v12724_v63, %v8259_v12 }
 0x98f   : > { %12725 = vrcp.f32 %v8324_v14 }
 0x990   : > { %8371 = vst [vmem:[%s16473_s20 + $0x70] sm:$0xff] %v8355_v2 }
 0x995   : > { %v12726_v29 = vpop.eup %12725 }
 0x996   : > { %v8356_v15 = vmul.f32 %v12726_v29, %v8260_v35 }
 0x998   : > { %8372 = vst [vmem:[%s16473_s20 + $0x78] sm:$0xff] %v8356_v15 }
 0x999   : > { %13310 = shalt.err (!%p13307_p2)
}
 0x99a   : > { %10881 = dma.vmem_to_hbm [thread:$0]  (%p13642_p0), %s8616_s5, 2048, %s8618_s2, %s8598_s29, %s13407_s8, %s13407_s8, %s13408_s30  }
 0x99b PF: > { %s16916_s12 = sld [smem:[#allocation43_spill]] }
 0x99c   : > { %s16918_s4 = sld [smem:[#allocation44_spill]] }
 0x9a1   : > { %s8649_s18 = sand.u32 1, %s16916_s12  }
 0x9a2   : > { %p16919_p4 = scmp.ge.s32.totalorder %s16918_s4, 2  ;;  %s8650_s23 = scalar_lea.sflag [#allocation4], %s8649_s18 }
 0x9a4   : > { %p10939_p13 = pnand %p16919_p4, %p13648_p5 }
 0x9a6   : > { %p10940_p1 = pneg %p10939_p13 }
 0x9a8   : > { %13364 = dma.done.wait (%p10940_p1), %s8650_s23, 2048  }
 0x9a9   : > { %13366 = vsyncadd (%p10940_p1), %s8650_s23, 4294965248  ;;  %s8660_s0 = scalar_lea.sflag [#allocation31], %s8649_s18 }
 0x9aa   : > { %13368 = dma.done.wait (%p10940_p1), %s8660_s0, 2048  }
 0x9ab   : > { %13370 = vsyncadd (%p10940_p1), %s8660_s0, 4294965248  ;;  %s16920_s28 = sld [smem:[#allocation45_spill]]  ;;  %s16922_s5 = smov %s13377_s26 }
 0x9ac   : > { %s16921_s15 = sld [smem:[#allocation46_spill]]  ;;  %s16923_s26 = smov %s13381_s27 }
 0x9b1   : > { %p51_p0 = scmp.ge.s32.totalorder %s16920_s28, 4  }
 0x9b2   : > { %s16924_s27 = smov %s16921_s15 }
 0x9b3   :  { %53 = sbr.rel (!%p51_p0) target bundleno = 38 (0x26), region = 260 }
 0x9b8   :  { %8666 = vsyncpa [#allocation3], 1 }
 0x9b9   :  { %8668 = vsyncpa [#allocation3 + $0x1], 1 }
 0x9ba   :  { %8669 = vsyncpa [#allocation6], 1 }
 0x9bb   :  { %8671 = vsyncpa [#allocation6 + $0x1], 1 }
 0x9bc   :  { %8672 = vsyncpa [#allocation9], 1 }
 0x9bd   :  { %8673 = vsyncpa [#allocation12], 1 }
 0x9be   :  { %8674 = vsyncpa [#allocation15], 1 }
 0x9bf   :  { %8675 = vsyncpa [#allocation18], 1 }
 0x9c0   :  { %8676 = vsyncpa [#allocation21], 1 }
 0x9c1   :  { %8677 = vsyncpa [#allocation24], 1 }
 0x9c2   :  { %8678 = vsyncpa [#allocation27], 1 }
 0x9c3   :  { %8679 = vsyncpa [#allocation4], 1 }
 0x9c4   :  { %8681 = vsyncpa [#allocation4 + $0x1], 1 }
 0x9c5   :  { %8682 = vsyncpa [#allocation31], 1 }
 0x9c6   :  { %8684 = vsyncpa [#allocation31 + $0x1], 1 }

</bundles_post_ra>
